<compile_context>
chip_gen: v6e
topology: v6e:2x2x1
jax: 0.10.0
libtpu: 0.0.40
codegen_flags: <defaults>
</compile_context>

<pallas_src>
import jax
import jax.numpy as jnp
from jax.experimental import pallas as pl
from jax.experimental.pallas import tpu as pltpu

VOCAB = 19        # number of discrete actions
EMB = 64          # embedding dim == GRU input dim
H = 64            # GRU hidden size per direction
G = 3 * H         # gates (r, z, n) stacked, PyTorch order
OUT = 2 * H       # bidirectional output width
GI = 2 * G        # fused interleaved gate width [r_f r_b | z_f z_b | n_f n_b]
KPAD = 64         # padded "double vocab" (2*19 -> 64) for an aligned MXU K dim


def _sigmoid_tanh(x):
    # sigmoid(x) == 0.5 * (tanh(x / 2) + 1): a single EUP op, no divide.
    return 0.5 * (jnp.tanh(0.5 * x) + 1.0)


def action_history_kernel(
    ids_ref,                                   # [BT, T] int32
    t0dbl_ref,                                 # [KPAD, GI] bf16 (layer-0 folded table)
    w0blk_ref, bhhn0_ref,                      # [OUT, GI] bf16, [1, OUT] f32
    wu_ref, wv_ref, bias1_ref,                 # [OUT, GI] bf16 x2, [1, GI] f32
    w1blk_ref, bhhn1_ref,                      # [OUT, GI] bf16, [1, OUT] f32
    out_ref,                                   # [BT, T*OUT] f32 batch-major output
    gx_scr,                                    # VMEM [T, BT, GI] f32 (reused by both layers)
    h0_scr,                                    # VMEM [T, BT, OUT] f32 (layer-0 fused state)
):
    BT, T = ids_ref.shape
    f32, bf16 = jnp.float32, jnp.bfloat16

    def fused_step(gx, h, w_ref, bhhn):
        # gx/gh columns: [r_f r_b | z_f z_b | n_f n_b]; h = [h_f | h_b] (BT, 128).
        gh = jnp.dot(h.astype(bf16), w_ref[...], preferred_element_type=f32)
        r = _sigmoid_tanh(gx[:, 0:OUT] + gh[:, 0:OUT])
        z = _sigmoid_tanh(gx[:, OUT:2 * OUT] + gh[:, OUT:2 * OUT])
        n = jnp.tanh(gx[:, 2 * OUT:3 * OUT] + r * (gh[:, 2 * OUT:3 * OUT] + bhhn))
        return (1.0 - z) * n + z * h

    # ---------- layer 0: input projections, hoisted off the recurrent chain ----------
    ids = ids_ref[...]
    iota = jax.lax.broadcasted_iota(jnp.int32, (BT, KPAD), 1)
    for s in range(T):
        idf = ids[:, s:s + 1]                  # fwd direction consumes time s
        idb = ids[:, T - 1 - s:T - s]          # bwd direction consumes time T-1-s
        oh = jnp.logical_or(iota == idf, iota == idb + VOCAB)
        oh = oh.astype(f32).astype(bf16)
        gx_scr[s] = jnp.dot(oh, t0dbl_ref[...], preferred_element_type=f32)

    # ---------- layer 0: fused fwd/bwd recurrence ----------
    bhhn0 = jnp.broadcast_to(bhhn0_ref[...], (BT, OUT))      # hoisted broadcast
    h = jnp.zeros((BT, OUT), f32)
    for s in range(T):
        h = fused_step(gx_scr[s], h, w0blk_ref, bhhn0)
        h0_scr[s] = h        # = [h0_fwd[s] | h0_bwd[T-1-s]]  (dense 128-lane store)

    # ---------- layer 1: input projections, hoisted ----------
    bias1 = jnp.broadcast_to(bias1_ref[...], (BT, GI))        # hoisted broadcast
    for s in range(T):
        u = h0_scr[s].astype(bf16)             # [h0_f[s]     | h0_b[T-1-s]]
        v = h0_scr[T - 1 - s].astype(bf16)     # [h0_f[T-1-s] | h0_b[s]    ]
        gx_scr[s] = (jnp.dot(u, wu_ref[...], preferred_element_type=f32)
                     + jnp.dot(v, wv_ref[...], preferred_element_type=f32)
                     + bias1)

    # ---------- layer 1: fused recurrence + batch-major flattened output ----------
    bhhn1 = jnp.broadcast_to(bhhn1_ref[...], (BT, OUT))
    h = jnp.zeros((BT, OUT), f32)
    for s in range(T):
        h = fused_step(gx_scr[s], h, w1blk_ref, bhhn1)
        # fwd half belongs to time s, bwd half to time T-1-s; lane offsets are
        # 128-aligned columns of the flattened [BT, T*128] output block.
        out_ref[:, s * OUT:s * OUT + H] = h[:, 0:H]
        out_ref[:, (T - 1 - s) * OUT + H:(T - 1 - s) * OUT + OUT] = h[:, H:OUT]


def _round_up(x, m):
    return (x + m - 1) // m * m


def _place(m, direction):
    """Spread a per-direction [in, 3H] (cols r|z|n) matrix into the fused
    gate-interleaved [in, 6H] layout [r_f r_b | z_f z_b | n_f n_b]."""
    z = jnp.zeros_like(m[:, :H])
    blocks = []
    for g in range(3):
        blk = m[:, g * H:(g + 1) * H]
        blocks.extend([blk, z] if direction == 0 else [z, blk])
    return jnp.concatenate(blocks, axis=1)


def _prep_params(p):
    """Fold / fuse PyTorch-layout GRU parameters for the fused kernel."""
    f32, bf16 = jnp.float32, jnp.bfloat16
    hp = jax.lax.Precision.HIGHEST     # one-time, tiny folds: keep them exact

    def tr(w):                         # PyTorch [out, in] -> [in, out]
        return jnp.transpose(w).astype(f32)

    def rz_fold(b_hh):                 # b_hh_r, b_hh_z folded into gx; b_hh_n stays out
        return jnp.concatenate([b_hh[:2 * H], jnp.zeros((H,), f32)])

    emb = p["emb"].astype(f32)
    l0f, l0b, l1f, l1b = p["l0f"], p["l0b"], p["l1f"], p["l1b"]

    # layer 0: embedding, W_ih, b_ih and b_hh(r,z) folded into one table per direction
    # (exact: one-hot rows select a single table row, no nonlinearity in between).
    t0f = jnp.dot(emb, tr(l0f["w_ih"]), precision=hp) \
        + (l0f["b_ih"] + rz_fold(l0f["b_hh"]))[None, :]
    t0b = jnp.dot(emb, tr(l0b["w_ih"]), precision=hp) \
        + (l0b["b_ih"] + rz_fold(l0b["b_hh"]))[None, :]
    t0dbl = jnp.concatenate([_place(t0f, 0), _place(t0b, 1)], axis=0)       # [38, 384]
    t0dbl = jnp.pad(t0dbl, ((0, KPAD - 2 * VOCAB), (0, 0)))                 # [64, 384]

    w0blk = jnp.concatenate([_place(tr(l0f["w_hh"]), 0),
                             _place(tr(l0b["w_hh"]), 1)], axis=0)           # [128, 384]
    bhhn0 = jnp.concatenate([l0f["b_hh"][2 * H:], l0b["b_hh"][2 * H:]])[None, :]

    # layer 1: input at fused step s is built from the layer-0 "raw" fused states
    # u = [f_s | b_{T-1-s}] and v = [f_{T-1-s} | b_s]; Wu / Wv realize the crossing.
    w1f_t, w1b_t = tr(l1f["w_ih"]), tr(l1b["w_ih"])                         # [128, 192]
    wu = jnp.concatenate([_place(w1f_t[:H], 0), _place(w1b_t[H:], 1)], axis=0)
    wv = jnp.concatenate([_place(w1b_t[:H], 1), _place(w1f_t[H:], 0)], axis=0)
    bias1 = (_place((l1f["b_ih"] + rz_fold(l1f["b_hh"]))[None, :], 0)
             + _place((l1b["b_ih"] + rz_fold(l1b["b_hh"]))[None, :], 1))    # [1, 384]

    w1blk = jnp.concatenate([_place(tr(l1f["w_hh"]), 0),
                             _place(tr(l1b["w_hh"]), 1)], axis=0)
    bhhn1 = jnp.concatenate([l1f["b_hh"][2 * H:], l1b["b_hh"][2 * H:]])[None, :]

    return (t0dbl.astype(bf16),
            w0blk.astype(bf16), bhhn0.astype(f32),
            wu.astype(bf16), wv.astype(bf16), bias1.astype(f32),
            w1blk.astype(bf16), bhhn1.astype(f32))


def action_history_encoder(x_ids, params, *, b_tile_max=512):
    """x_ids: int action indices [..., T]; returns f32 [..., T, 128]."""
    lead = x_ids.shape[:-1]
    T = x_ids.shape[-1]
    x2 = x_ids.reshape(-1, T).astype(jnp.int32)     # mirrors the module's view(-1, T, ...)
    B = x2.shape[0]

    weights = _prep_params(params)

    # Batch tile: aim for >=2 tiles whenever the batch allows (v7x megacore split),
    # capped at b_tile_max; all weights stay VMEM-resident across grid steps.
    b_tile = min(b_tile_max, _round_up(max(-(-B // 2), 8), 8))
    Bp = _round_up(B, b_tile)
    ids = jnp.zeros((Bp, T), jnp.int32).at[:B].set(x2)

    def resident(a):   # full-array block, constant index map -> stays in VMEM
        return pl.BlockSpec(a.shape, lambda i: (0, 0))

    out_flat = pl.pallas_call(
        action_history_kernel,
        out_shape=jax.ShapeDtypeStruct((Bp, T * OUT), jnp.float32),
        grid_spec=pltpu.PrefetchScalarGridSpec(
            num_scalar_prefetch=0,
            grid=(Bp // b_tile,),
            in_specs=[pl.BlockSpec((b_tile, T), lambda i: (i, 0))]
            + [resident(w) for w in weights],
            out_specs=pl.BlockSpec((b_tile, T * OUT), lambda i: (i, 0)),
            scratch_shapes=[
                pltpu.VMEM((T, b_tile, GI), jnp.float32),
                pltpu.VMEM((T, b_tile, OUT), jnp.float32),
            ],
        ),
        compiler_params=pltpu.CompilerParams(
            dimension_semantics=("parallel",),
            vmem_limit_bytes=32 * 1024 * 1024,
        ),
    )(ids, *weights)

    out = out_flat[:B].reshape(B, T, OUT)           # free reshape (no HBM transpose)
    return out.reshape(*lead, T, OUT)


def init_params(key):
    """Deterministic synthetic parameters in PyTorch layout:
    embedding ~ N(0,1); GRU weights/biases ~ U(-1/sqrt(H), 1/sqrt(H))."""
    ks = jax.random.split(key, 17)
    bound = 1.0 / (H ** 0.5)

    def u(k, shape):
        return jax.random.uniform(k, shape, jnp.float32, -bound, bound)

    p = {"emb": jax.random.normal(ks[0], (VOCAB, EMB), jnp.float32)}
    ki = 1
    for name, in_dim in (("l0f", EMB), ("l0b", EMB), ("l1f", OUT), ("l1b", OUT)):
        p[name] = {
            "w_ih": u(ks[ki + 0], (G, in_dim)),
            "w_hh": u(ks[ki + 1], (G, H)),
            "b_ih": u(ks[ki + 2], (G,)),
            "b_hh": u(ks[ki + 3], (G,)),
        }
        ki += 4
    return p


def _gru_dir_ref(x, w_ih, w_hh, b_ih, b_hh, reverse):
    """Pure-JAX reference (HIGHEST-precision matmuls) for one GRU direction."""
    B, T, _ = x.shape
    hp = jax.lax.Precision.HIGHEST
    h = jnp.zeros((B, H), jnp.float32)
    outs = [None] * T
    steps = range(T - 1, -1, -1) if reverse else range(T)
    for t in steps:
        gi = jnp.dot(x[:, t], w_ih.T, precision=hp) + b_ih
        gh = jnp.dot(h, w_hh.T, precision=hp) + b_hh
        r = jax.nn.sigmoid(gi[:, :H] + gh[:, :H])
        z = jax.nn.sigmoid(gi[:, H:2 * H] + gh[:, H:2 * H])
        n = jnp.tanh(gi[:, 2 * H:] + r * gh[:, 2 * H:])
        h = (1.0 - z) * n + z * h
        outs[t] = h
    return jnp.stack(outs, axis=1)  # [B, T, H]


def reference(x_ids, p):
    lead = x_ids.shape[:-1]
    T = x_ids.shape[-1]
    ids = x_ids.reshape(-1, T)
    emb = p["emb"][ids]                                   # [B, T, 64]
    f0 = _gru_dir_ref(emb, **p["l0f"], reverse=False)
    b0 = _gru_dir_ref(emb, **p["l0b"], reverse=True)
    h0 = jnp.concatenate([f0, b0], axis=-1)               # [B, T, 128]
    f1 = _gru_dir_ref(h0, **p["l1f"], reverse=False)
    b1 = _gru_dir_ref(h0, **p["l1b"], reverse=True)
    out = jnp.concatenate([f1, b1], axis=-1)              # [B, T, 128]
    return out.reshape(*lead, T, OUT)


if __name__ == "__main__":
    key = jax.random.PRNGKey(0)
    k_param, k_ids = jax.random.split(key)

    B, T = 2, 8  # batch=2, action-history length=8
    params = init_params(k_param)
    x = jax.random.randint(k_ids, (B, T), 0, VOCAB, dtype=jnp.int32)

    out = action_history_encoder(x, params)
    out = jax.block_until_ready(out)

    ref = reference(x, params)
    assert out.shape == (B, T, OUT)
    err = float(jnp.max(jnp.abs(out - ref)))
    # Kernel uses single-pass bf16 MXU matmuls (f32 accumulation); reference is
    # HIGHEST precision, so allow bf16-level accumulation error.
    assert err < 2e-2, err

    print("KERNEL_OK")
</pallas_src>

<mosaic_0001>
module attributes {stable_mosaic.version = 11 : i64} {
  func.func @action_history_kernel(%arg0: i32, %arg1: memref<8x8xi32, #tpu.memory_space<vmem>>, %arg2: memref<64x384xbf16, #tpu.memory_space<vmem>>, %arg3: memref<128x384xbf16, #tpu.memory_space<vmem>>, %arg4: memref<1x128xf32, #tpu.memory_space<vmem>>, %arg5: memref<128x384xbf16, #tpu.memory_space<vmem>>, %arg6: memref<128x384xbf16, #tpu.memory_space<vmem>>, %arg7: memref<1x384xf32, #tpu.memory_space<vmem>>, %arg8: memref<128x384xbf16, #tpu.memory_space<vmem>>, %arg9: memref<1x128xf32, #tpu.memory_space<vmem>>, %arg10: memref<8x1024xf32, #tpu.memory_space<vmem>>, %arg11: memref<8x8x384xf32, #tpu.memory_space<vmem>>, %arg12: memref<8x8x128xf32, #tpu.memory_space<vmem>>) attributes {dimension_semantics = [#tpu.dimension_semantics<parallel>], iteration_bounds = array<i64: 1>, scalar_prefetch = 0 : i64, scratch_operands = 2 : i64, tpu.core_type = #tpu.core_type<tc>, window_params = [{transform_indices = @transform_0, window_bounds = array<i64: 8, 8>}, {pipeline_mode = #tpu.pipeline_mode<synchronous>, transform_indices = @transform_1, window_bounds = array<i64: 64, 384>}, {pipeline_mode = #tpu.pipeline_mode<synchronous>, transform_indices = @transform_2, window_bounds = array<i64: 128, 384>}, {pipeline_mode = #tpu.pipeline_mode<synchronous>, transform_indices = @transform_3, window_bounds = array<i64: 1, 128>}, {pipeline_mode = #tpu.pipeline_mode<synchronous>, transform_indices = @transform_4, window_bounds = array<i64: 128, 384>}, {pipeline_mode = #tpu.pipeline_mode<synchronous>, transform_indices = @transform_5, window_bounds = array<i64: 128, 384>}, {pipeline_mode = #tpu.pipeline_mode<synchronous>, transform_indices = @transform_6, window_bounds = array<i64: 1, 384>}, {pipeline_mode = #tpu.pipeline_mode<synchronous>, transform_indices = @transform_7, window_bounds = array<i64: 128, 384>}, {pipeline_mode = #tpu.pipeline_mode<synchronous>, transform_indices = @transform_8, window_bounds = array<i64: 1, 128>}, {transform_indices = @transform_9, window_bounds = array<i64: 8, 1024>}]} {
    %c0 = arith.constant 0 : index
    %c0_0 = arith.constant 0 : index
    %0 = vector.load %arg1[%c0, %c0_0] : memref<8x8xi32, #tpu.memory_space<vmem>>, vector<8x8xi32>
    %1 = tpu.iota {dimensions = array<i32: 1>} : vector<8x64xi32>
    %2 = vector.extract_strided_slice %0 {offsets = [0, 0], sizes = [8, 1], strides = [1, 1]} : vector<8x8xi32> to vector<8x1xi32>
    %3 = vector.extract_strided_slice %0 {offsets = [0, 7], sizes = [8, 1], strides = [1, 1]} : vector<8x8xi32> to vector<8x1xi32>
    %4 = vector.broadcast %2 : vector<8x1xi32> to vector<8x64xi32>
    %5 = arith.cmpi eq, %1, %4 : vector<8x64xi32>
    %c19_i32 = arith.constant 19 : i32
    %6 = vector.broadcast %c19_i32 : i32 to vector<8x1xi32>
    %7 = arith.addi %3, %6 : vector<8x1xi32>
    %8 = vector.broadcast %7 : vector<8x1xi32> to vector<8x64xi32>
    %9 = arith.cmpi eq, %1, %8 : vector<8x64xi32>
    %10 = arith.ori %5, %9 : vector<8x64xi1>
    %11 = arith.extui %10 : vector<8x64xi1> to vector<8x64xi32>
    %12 = arith.sitofp %11 : vector<8x64xi32> to vector<8x64xf32>
    %13 = arith.truncf %12 : vector<8x64xf32> to vector<8x64xbf16>
    %c0_1 = arith.constant 0 : index
    %c0_2 = arith.constant 0 : index
    %14 = vector.load %arg2[%c0_1, %c0_2] : memref<64x384xbf16, #tpu.memory_space<vmem>>, vector<64x384xbf16>
    %cst = arith.constant dense<0.000000e+00> : vector<8x384xf32>
    %15 = tpu.matmul %13, %14, %cst {dimension_numbers = #tpu.dot_dimension_numbers<[1], [0], [0], [1], [0, 0, 1, 1], [], []>} : vector<8x64xbf16>, vector<64x384xbf16>, vector<8x384xf32> -> vector<8x384xf32>
    %c0_3 = arith.constant 0 : index
    %c0_4 = arith.constant 0 : index
    %c0_5 = arith.constant 0 : index
    %16 = vector.load %arg11[%c0_3, %c0_4, %c0_5] : memref<8x8x384xf32, #tpu.memory_space<vmem>>, vector<1x8x384xf32>
    %17 = vector.shape_cast %16 : vector<1x8x384xf32> to vector<8x384xf32>
    %18 = vector.shape_cast %15 : vector<8x384xf32> to vector<1x8x384xf32>
    tpu.vector_store %arg11[%c0_3, %c0_4, %c0_5], %18 {strides = array<i32>} : memref<8x8x384xf32, #tpu.memory_space<vmem>>, vector<1x8x384xf32>,
    %19 = vector.extract_strided_slice %0 {offsets = [0, 1], sizes = [8, 1], strides = [1, 1]} : vector<8x8xi32> to vector<8x1xi32>
    %20 = vector.extract_strided_slice %0 {offsets = [0, 6], sizes = [8, 1], strides = [1, 1]} : vector<8x8xi32> to vector<8x1xi32>
    %21 = vector.broadcast %19 : vector<8x1xi32> to vector<8x64xi32>
    %22 = arith.cmpi eq, %1, %21 : vector<8x64xi32>
    %c19_i32_6 = arith.constant 19 : i32
    %23 = vector.broadcast %c19_i32_6 : i32 to vector<8x1xi32>
    %24 = arith.addi %20, %23 : vector<8x1xi32>
    %25 = vector.broadcast %24 : vector<8x1xi32> to vector<8x64xi32>
    %26 = arith.cmpi eq, %1, %25 : vector<8x64xi32>
    %27 = arith.ori %22, %26 : vector<8x64xi1>
    %28 = arith.extui %27 : vector<8x64xi1> to vector<8x64xi32>
    %29 = arith.sitofp %28 : vector<8x64xi32> to vector<8x64xf32>
    %30 = arith.truncf %29 : vector<8x64xf32> to vector<8x64xbf16>
    %c0_7 = arith.constant 0 : index
    %c0_8 = arith.constant 0 : index
    %31 = vector.load %arg2[%c0_7, %c0_8] : memref<64x384xbf16, #tpu.memory_space<vmem>>, vector<64x384xbf16>
    %cst_9 = arith.constant dense<0.000000e+00> : vector<8x384xf32>
    %32 = tpu.matmul %30, %31, %cst_9 {dimension_numbers = #tpu.dot_dimension_numbers<[1], [0], [0], [1], [0, 0, 1, 1], [], []>} : vector<8x64xbf16>, vector<64x384xbf16>, vector<8x384xf32> -> vector<8x384xf32>
    %c1 = arith.constant 1 : index
    %c0_10 = arith.constant 0 : index
    %c0_11 = arith.constant 0 : index
    %33 = vector.load %arg11[%c1, %c0_10, %c0_11] : memref<8x8x384xf32, #tpu.memory_space<vmem>>, vector<1x8x384xf32>
    %34 = vector.shape_cast %33 : vector<1x8x384xf32> to vector<8x384xf32>
    %35 = vector.shape_cast %32 : vector<8x384xf32> to vector<1x8x384xf32>
    tpu.vector_store %arg11[%c1, %c0_10, %c0_11], %35 {strides = array<i32>} : memref<8x8x384xf32, #tpu.memory_space<vmem>>, vector<1x8x384xf32>,
    %36 = vector.extract_strided_slice %0 {offsets = [0, 2], sizes = [8, 1], strides = [1, 1]} : vector<8x8xi32> to vector<8x1xi32>
    %37 = vector.extract_strided_slice %0 {offsets = [0, 5], sizes = [8, 1], strides = [1, 1]} : vector<8x8xi32> to vector<8x1xi32>
    %38 = vector.broadcast %36 : vector<8x1xi32> to vector<8x64xi32>
    %39 = arith.cmpi eq, %1, %38 : vector<8x64xi32>
    %c19_i32_12 = arith.constant 19 : i32
    %40 = vector.broadcast %c19_i32_12 : i32 to vector<8x1xi32>
    %41 = arith.addi %37, %40 : vector<8x1xi32>
    %42 = vector.broadcast %41 : vector<8x1xi32> to vector<8x64xi32>
    %43 = arith.cmpi eq, %1, %42 : vector<8x64xi32>
    %44 = arith.ori %39, %43 : vector<8x64xi1>
    %45 = arith.extui %44 : vector<8x64xi1> to vector<8x64xi32>
    %46 = arith.sitofp %45 : vector<8x64xi32> to vector<8x64xf32>
    %47 = arith.truncf %46 : vector<8x64xf32> to vector<8x64xbf16>
    %c0_13 = arith.constant 0 : index
    %c0_14 = arith.constant 0 : index
    %48 = vector.load %arg2[%c0_13, %c0_14] : memref<64x384xbf16, #tpu.memory_space<vmem>>, vector<64x384xbf16>
    %cst_15 = arith.constant dense<0.000000e+00> : vector<8x384xf32>
    %49 = tpu.matmul %47, %48, %cst_15 {dimension_numbers = #tpu.dot_dimension_numbers<[1], [0], [0], [1], [0, 0, 1, 1], [], []>} : vector<8x64xbf16>, vector<64x384xbf16>, vector<8x384xf32> -> vector<8x384xf32>
    %c2 = arith.constant 2 : index
    %c0_16 = arith.constant 0 : index
    %c0_17 = arith.constant 0 : index
    %50 = vector.load %arg11[%c2, %c0_16, %c0_17] : memref<8x8x384xf32, #tpu.memory_space<vmem>>, vector<1x8x384xf32>
    %51 = vector.shape_cast %50 : vector<1x8x384xf32> to vector<8x384xf32>
    %52 = vector.shape_cast %49 : vector<8x384xf32> to vector<1x8x384xf32>
    tpu.vector_store %arg11[%c2, %c0_16, %c0_17], %52 {strides = array<i32>} : memref<8x8x384xf32, #tpu.memory_space<vmem>>, vector<1x8x384xf32>,
    %53 = vector.extract_strided_slice %0 {offsets = [0, 3], sizes = [8, 1], strides = [1, 1]} : vector<8x8xi32> to vector<8x1xi32>
    %54 = vector.extract_strided_slice %0 {offsets = [0, 4], sizes = [8, 1], strides = [1, 1]} : vector<8x8xi32> to vector<8x1xi32>
    %55 = vector.broadcast %53 : vector<8x1xi32> to vector<8x64xi32>
    %56 = arith.cmpi eq, %1, %55 : vector<8x64xi32>
    %c19_i32_18 = arith.constant 19 : i32
    %57 = vector.broadcast %c19_i32_18 : i32 to vector<8x1xi32>
    %58 = arith.addi %54, %57 : vector<8x1xi32>
    %59 = vector.broadcast %58 : vector<8x1xi32> to vector<8x64xi32>
    %60 = arith.cmpi eq, %1, %59 : vector<8x64xi32>
    %61 = arith.ori %56, %60 : vector<8x64xi1>
    %62 = arith.extui %61 : vector<8x64xi1> to vector<8x64xi32>
    %63 = arith.sitofp %62 : vector<8x64xi32> to vector<8x64xf32>
    %64 = arith.truncf %63 : vector<8x64xf32> to vector<8x64xbf16>
    %c0_19 = arith.constant 0 : index
    %c0_20 = arith.constant 0 : index
    %65 = vector.load %arg2[%c0_19, %c0_20] : memref<64x384xbf16, #tpu.memory_space<vmem>>, vector<64x384xbf16>
    %cst_21 = arith.constant dense<0.000000e+00> : vector<8x384xf32>
    %66 = tpu.matmul %64, %65, %cst_21 {dimension_numbers = #tpu.dot_dimension_numbers<[1], [0], [0], [1], [0, 0, 1, 1], [], []>} : vector<8x64xbf16>, vector<64x384xbf16>, vector<8x384xf32> -> vector<8x384xf32>
    %c3 = arith.constant 3 : index
    %c0_22 = arith.constant 0 : index
    %c0_23 = arith.constant 0 : index
    %67 = vector.load %arg11[%c3, %c0_22, %c0_23] : memref<8x8x384xf32, #tpu.memory_space<vmem>>, vector<1x8x384xf32>
    %68 = vector.shape_cast %67 : vector<1x8x384xf32> to vector<8x384xf32>
    %69 = vector.shape_cast %66 : vector<8x384xf32> to vector<1x8x384xf32>
    tpu.vector_store %arg11[%c3, %c0_22, %c0_23], %69 {strides = array<i32>} : memref<8x8x384xf32, #tpu.memory_space<vmem>>, vector<1x8x384xf32>,
    %70 = vector.extract_strided_slice %0 {offsets = [0, 4], sizes = [8, 1], strides = [1, 1]} : vector<8x8xi32> to vector<8x1xi32>
    %71 = vector.extract_strided_slice %0 {offsets = [0, 3], sizes = [8, 1], strides = [1, 1]} : vector<8x8xi32> to vector<8x1xi32>
    %72 = vector.broadcast %70 : vector<8x1xi32> to vector<8x64xi32>
    %73 = arith.cmpi eq, %1, %72 : vector<8x64xi32>
    %c19_i32_24 = arith.constant 19 : i32
    %74 = vector.broadcast %c19_i32_24 : i32 to vector<8x1xi32>
    %75 = arith.addi %71, %74 : vector<8x1xi32>
    %76 = vector.broadcast %75 : vector<8x1xi32> to vector<8x64xi32>
    %77 = arith.cmpi eq, %1, %76 : vector<8x64xi32>
    %78 = arith.ori %73, %77 : vector<8x64xi1>
    %79 = arith.extui %78 : vector<8x64xi1> to vector<8x64xi32>
    %80 = arith.sitofp %79 : vector<8x64xi32> to vector<8x64xf32>
    %81 = arith.truncf %80 : vector<8x64xf32> to vector<8x64xbf16>
    %c0_25 = arith.constant 0 : index
    %c0_26 = arith.constant 0 : index
    %82 = vector.load %arg2[%c0_25, %c0_26] : memref<64x384xbf16, #tpu.memory_space<vmem>>, vector<64x384xbf16>
    %cst_27 = arith.constant dense<0.000000e+00> : vector<8x384xf32>
    %83 = tpu.matmul %81, %82, %cst_27 {dimension_numbers = #tpu.dot_dimension_numbers<[1], [0], [0], [1], [0, 0, 1, 1], [], []>} : vector<8x64xbf16>, vector<64x384xbf16>, vector<8x384xf32> -> vector<8x384xf32>
    %c4 = arith.constant 4 : index
    %c0_28 = arith.constant 0 : index
    %c0_29 = arith.constant 0 : index
    %84 = vector.load %arg11[%c4, %c0_28, %c0_29] : memref<8x8x384xf32, #tpu.memory_space<vmem>>, vector<1x8x384xf32>
    %85 = vector.shape_cast %84 : vector<1x8x384xf32> to vector<8x384xf32>
    %86 = vector.shape_cast %83 : vector<8x384xf32> to vector<1x8x384xf32>
    tpu.vector_store %arg11[%c4, %c0_28, %c0_29], %86 {strides = array<i32>} : memref<8x8x384xf32, #tpu.memory_space<vmem>>, vector<1x8x384xf32>,
    %87 = vector.extract_strided_slice %0 {offsets = [0, 5], sizes = [8, 1], strides = [1, 1]} : vector<8x8xi32> to vector<8x1xi32>
    %88 = vector.extract_strided_slice %0 {offsets = [0, 2], sizes = [8, 1], strides = [1, 1]} : vector<8x8xi32> to vector<8x1xi32>
    %89 = vector.broadcast %87 : vector<8x1xi32> to vector<8x64xi32>
    %90 = arith.cmpi eq, %1, %89 : vector<8x64xi32>
    %c19_i32_30 = arith.constant 19 : i32
    %91 = vector.broadcast %c19_i32_30 : i32 to vector<8x1xi32>
    %92 = arith.addi %88, %91 : vector<8x1xi32>
    %93 = vector.broadcast %92 : vector<8x1xi32> to vector<8x64xi32>
    %94 = arith.cmpi eq, %1, %93 : vector<8x64xi32>
    %95 = arith.ori %90, %94 : vector<8x64xi1>
    %96 = arith.extui %95 : vector<8x64xi1> to vector<8x64xi32>
    %97 = arith.sitofp %96 : vector<8x64xi32> to vector<8x64xf32>
    %98 = arith.truncf %97 : vector<8x64xf32> to vector<8x64xbf16>
    %c0_31 = arith.constant 0 : index
    %c0_32 = arith.constant 0 : index
    %99 = vector.load %arg2[%c0_31, %c0_32] : memref<64x384xbf16, #tpu.memory_space<vmem>>, vector<64x384xbf16>
    %cst_33 = arith.constant dense<0.000000e+00> : vector<8x384xf32>
    %100 = tpu.matmul %98, %99, %cst_33 {dimension_numbers = #tpu.dot_dimension_numbers<[1], [0], [0], [1], [0, 0, 1, 1], [], []>} : vector<8x64xbf16>, vector<64x384xbf16>, vector<8x384xf32> -> vector<8x384xf32>
    %c5 = arith.constant 5 : index
    %c0_34 = arith.constant 0 : index
    %c0_35 = arith.constant 0 : index
    %101 = vector.load %arg11[%c5, %c0_34, %c0_35] : memref<8x8x384xf32, #tpu.memory_space<vmem>>, vector<1x8x384xf32>
    %102 = vector.shape_cast %101 : vector<1x8x384xf32> to vector<8x384xf32>
    %103 = vector.shape_cast %100 : vector<8x384xf32> to vector<1x8x384xf32>
    tpu.vector_store %arg11[%c5, %c0_34, %c0_35], %103 {strides = array<i32>} : memref<8x8x384xf32, #tpu.memory_space<vmem>>, vector<1x8x384xf32>,
    %104 = vector.extract_strided_slice %0 {offsets = [0, 6], sizes = [8, 1], strides = [1, 1]} : vector<8x8xi32> to vector<8x1xi32>
    %105 = vector.extract_strided_slice %0 {offsets = [0, 1], sizes = [8, 1], strides = [1, 1]} : vector<8x8xi32> to vector<8x1xi32>
    %106 = vector.broadcast %104 : vector<8x1xi32> to vector<8x64xi32>
    %107 = arith.cmpi eq, %1, %106 : vector<8x64xi32>
    %c19_i32_36 = arith.constant 19 : i32
    %108 = vector.broadcast %c19_i32_36 : i32 to vector<8x1xi32>
    %109 = arith.addi %105, %108 : vector<8x1xi32>
    %110 = vector.broadcast %109 : vector<8x1xi32> to vector<8x64xi32>
    %111 = arith.cmpi eq, %1, %110 : vector<8x64xi32>
    %112 = arith.ori %107, %111 : vector<8x64xi1>
    %113 = arith.extui %112 : vector<8x64xi1> to vector<8x64xi32>
    %114 = arith.sitofp %113 : vector<8x64xi32> to vector<8x64xf32>
    %115 = arith.truncf %114 : vector<8x64xf32> to vector<8x64xbf16>
    %c0_37 = arith.constant 0 : index
    %c0_38 = arith.constant 0 : index
    %116 = vector.load %arg2[%c0_37, %c0_38] : memref<64x384xbf16, #tpu.memory_space<vmem>>, vector<64x384xbf16>
    %cst_39 = arith.constant dense<0.000000e+00> : vector<8x384xf32>
    %117 = tpu.matmul %115, %116, %cst_39 {dimension_numbers = #tpu.dot_dimension_numbers<[1], [0], [0], [1], [0, 0, 1, 1], [], []>} : vector<8x64xbf16>, vector<64x384xbf16>, vector<8x384xf32> -> vector<8x384xf32>
    %c6 = arith.constant 6 : index
    %c0_40 = arith.constant 0 : index
    %c0_41 = arith.constant 0 : index
    %118 = vector.load %arg11[%c6, %c0_40, %c0_41] : memref<8x8x384xf32, #tpu.memory_space<vmem>>, vector<1x8x384xf32>
    %119 = vector.shape_cast %118 : vector<1x8x384xf32> to vector<8x384xf32>
    %120 = vector.shape_cast %117 : vector<8x384xf32> to vector<1x8x384xf32>
    tpu.vector_store %arg11[%c6, %c0_40, %c0_41], %120 {strides = array<i32>} : memref<8x8x384xf32, #tpu.memory_space<vmem>>, vector<1x8x384xf32>,
    %121 = vector.extract_strided_slice %0 {offsets = [0, 7], sizes = [8, 1], strides = [1, 1]} : vector<8x8xi32> to vector<8x1xi32>
    %122 = vector.extract_strided_slice %0 {offsets = [0, 0], sizes = [8, 1], strides = [1, 1]} : vector<8x8xi32> to vector<8x1xi32>
    %123 = vector.broadcast %121 : vector<8x1xi32> to vector<8x64xi32>
    %124 = arith.cmpi eq, %1, %123 : vector<8x64xi32>
    %c19_i32_42 = arith.constant 19 : i32
    %125 = vector.broadcast %c19_i32_42 : i32 to vector<8x1xi32>
    %126 = arith.addi %122, %125 : vector<8x1xi32>
    %127 = vector.broadcast %126 : vector<8x1xi32> to vector<8x64xi32>
    %128 = arith.cmpi eq, %1, %127 : vector<8x64xi32>
    %129 = arith.ori %124, %128 : vector<8x64xi1>
    %130 = arith.extui %129 : vector<8x64xi1> to vector<8x64xi32>
    %131 = arith.sitofp %130 : vector<8x64xi32> to vector<8x64xf32>
    %132 = arith.truncf %131 : vector<8x64xf32> to vector<8x64xbf16>
    %c0_43 = arith.constant 0 : index
    %c0_44 = arith.constant 0 : index
    %133 = vector.load %arg2[%c0_43, %c0_44] : memref<64x384xbf16, #tpu.memory_space<vmem>>, vector<64x384xbf16>
    %cst_45 = arith.constant dense<0.000000e+00> : vector<8x384xf32>
    %134 = tpu.matmul %132, %133, %cst_45 {dimension_numbers = #tpu.dot_dimension_numbers<[1], [0], [0], [1], [0, 0, 1, 1], [], []>} : vector<8x64xbf16>, vector<64x384xbf16>, vector<8x384xf32> -> vector<8x384xf32>
    %c7 = arith.constant 7 : index
    %c0_46 = arith.constant 0 : index
    %c0_47 = arith.constant 0 : index
    %135 = vector.load %arg11[%c7, %c0_46, %c0_47] : memref<8x8x384xf32, #tpu.memory_space<vmem>>, vector<1x8x384xf32>
    %136 = vector.shape_cast %135 : vector<1x8x384xf32> to vector<8x384xf32>
    %137 = vector.shape_cast %134 : vector<8x384xf32> to vector<1x8x384xf32>
    tpu.vector_store %arg11[%c7, %c0_46, %c0_47], %137 {strides = array<i32>} : memref<8x8x384xf32, #tpu.memory_space<vmem>>, vector<1x8x384xf32>,
    %c0_48 = arith.constant 0 : index
    %c0_49 = arith.constant 0 : index
    %138 = vector.load %arg4[%c0_48, %c0_49] : memref<1x128xf32, #tpu.memory_space<vmem>>, vector<1x128xf32>
    %139 = vector.shape_cast %138 : vector<1x128xf32> to vector<1x128xf32>
    %140 = vector.broadcast %139 : vector<1x128xf32> to vector<8x128xf32>
    %cst_50 = arith.constant 0.000000e+00 : f32
    %141 = vector.broadcast %cst_50 : f32 to vector<8x128xf32>
    %c0_51 = arith.constant 0 : index
    %c0_52 = arith.constant 0 : index
    %c0_53 = arith.constant 0 : index
    %142 = vector.load %arg11[%c0_51, %c0_52, %c0_53] : memref<8x8x384xf32, #tpu.memory_space<vmem>>, vector<1x8x384xf32>
    %143 = vector.shape_cast %142 : vector<1x8x384xf32> to vector<8x384xf32>
    %144 = arith.truncf %141 : vector<8x128xf32> to vector<8x128xbf16>
    %c0_54 = arith.constant 0 : index
    %c0_55 = arith.constant 0 : index
    %145 = vector.load %arg3[%c0_54, %c0_55] : memref<128x384xbf16, #tpu.memory_space<vmem>>, vector<128x384xbf16>
    %cst_56 = arith.constant dense<0.000000e+00> : vector<8x384xf32>
    %146 = tpu.matmul %144, %145, %cst_56 {dimension_numbers = #tpu.dot_dimension_numbers<[1], [0], [0], [1], [0, 0, 1, 1], [], []>} : vector<8x128xbf16>, vector<128x384xbf16>, vector<8x384xf32> -> vector<8x384xf32>
    %147 = vector.extract_strided_slice %143 {offsets = [0, 0], sizes = [8, 128], strides = [1, 1]} : vector<8x384xf32> to vector<8x128xf32>
    %148 = vector.extract_strided_slice %146 {offsets = [0, 0], sizes = [8, 128], strides = [1, 1]} : vector<8x384xf32> to vector<8x128xf32>
    %149 = arith.addf %147, %148 : vector<8x128xf32>
    %cst_57 = arith.constant 5.000000e-01 : f32
    %150 = vector.broadcast %cst_57 : f32 to vector<8x128xf32>
    %151 = arith.mulf %150, %149 : vector<8x128xf32>
    %152 = math.tanh %151 : vector<8x128xf32>
    %cst_58 = arith.constant 1.000000e+00 : f32
    %153 = vector.broadcast %cst_58 : f32 to vector<8x128xf32>
    %154 = arith.addf %152, %153 : vector<8x128xf32>
    %cst_59 = arith.constant 5.000000e-01 : f32
    %155 = vector.broadcast %cst_59 : f32 to vector<8x128xf32>
    %156 = arith.mulf %155, %154 : vector<8x128xf32>
    %157 = vector.extract_strided_slice %143 {offsets = [0, 128], sizes = [8, 128], strides = [1, 1]} : vector<8x384xf32> to vector<8x128xf32>
    %158 = vector.extract_strided_slice %146 {offsets = [0, 128], sizes = [8, 128], strides = [1, 1]} : vector<8x384xf32> to vector<8x128xf32>
    %159 = arith.addf %157, %158 : vector<8x128xf32>
    %cst_60 = arith.constant 5.000000e-01 : f32
    %160 = vector.broadcast %cst_60 : f32 to vector<8x128xf32>
    %161 = arith.mulf %160, %159 : vector<8x128xf32>
    %162 = math.tanh %161 : vector<8x128xf32>
    %cst_61 = arith.constant 1.000000e+00 : f32
    %163 = vector.broadcast %cst_61 : f32 to vector<8x128xf32>
    %164 = arith.addf %162, %163 : vector<8x128xf32>
    %cst_62 = arith.constant 5.000000e-01 : f32
    %165 = vector.broadcast %cst_62 : f32 to vector<8x128xf32>
    %166 = arith.mulf %165, %164 : vector<8x128xf32>
    %167 = vector.extract_strided_slice %143 {offsets = [0, 256], sizes = [8, 128], strides = [1, 1]} : vector<8x384xf32> to vector<8x128xf32>
    %168 = vector.extract_strided_slice %146 {offsets = [0, 256], sizes = [8, 128], strides = [1, 1]} : vector<8x384xf32> to vector<8x128xf32>
    %169 = arith.addf %168, %140 : vector<8x128xf32>
    %170 = arith.mulf %156, %169 : vector<8x128xf32>
    %171 = arith.addf %167, %170 : vector<8x128xf32>
    %172 = math.tanh %171 : vector<8x128xf32>
    %cst_63 = arith.constant 1.000000e+00 : f32
    %173 = vector.broadcast %cst_63 : f32 to vector<8x128xf32>
    %174 = arith.subf %173, %166 : vector<8x128xf32>
    %175 = arith.mulf %174, %172 : vector<8x128xf32>
    %176 = arith.mulf %166, %141 : vector<8x128xf32>
    %177 = arith.addf %175, %176 : vector<8x128xf32>
    %c0_64 = arith.constant 0 : index
    %c0_65 = arith.constant 0 : index
    %c0_66 = arith.constant 0 : index
    %178 = vector.load %arg12[%c0_64, %c0_65, %c0_66] : memref<8x8x128xf32, #tpu.memory_space<vmem>>, vector<1x8x128xf32>
    %179 = vector.shape_cast %178 : vector<1x8x128xf32> to vector<8x128xf32>
    %180 = vector.shape_cast %177 : vector<8x128xf32> to vector<1x8x128xf32>
    tpu.vector_store %arg12[%c0_64, %c0_65, %c0_66], %180 {strides = array<i32>} : memref<8x8x128xf32, #tpu.memory_space<vmem>>, vector<1x8x128xf32>,
    %c1_67 = arith.constant 1 : index
    %c0_68 = arith.constant 0 : index
    %c0_69 = arith.constant 0 : index
    %181 = vector.load %arg11[%c1_67, %c0_68, %c0_69] : memref<8x8x384xf32, #tpu.memory_space<vmem>>, vector<1x8x384xf32>
    %182 = vector.shape_cast %181 : vector<1x8x384xf32> to vector<8x384xf32>
    %183 = arith.truncf %177 : vector<8x128xf32> to vector<8x128xbf16>
    %c0_70 = arith.constant 0 : index
    %c0_71 = arith.constant 0 : index
    %184 = vector.load %arg3[%c0_70, %c0_71] : memref<128x384xbf16, #tpu.memory_space<vmem>>, vector<128x384xbf16>
    %cst_72 = arith.constant dense<0.000000e+00> : vector<8x384xf32>
    %185 = tpu.matmul %183, %184, %cst_72 {dimension_numbers = #tpu.dot_dimension_numbers<[1], [0], [0], [1], [0, 0, 1, 1], [], []>} : vector<8x128xbf16>, vector<128x384xbf16>, vector<8x384xf32> -> vector<8x384xf32>
    %186 = vector.extract_strided_slice %182 {offsets = [0, 0], sizes = [8, 128], strides = [1, 1]} : vector<8x384xf32> to vector<8x128xf32>
    %187 = vector.extract_strided_slice %185 {offsets = [0, 0], sizes = [8, 128], strides = [1, 1]} : vector<8x384xf32> to vector<8x128xf32>
    %188 = arith.addf %186, %187 : vector<8x128xf32>
    %cst_73 = arith.constant 5.000000e-01 : f32
    %189 = vector.broadcast %cst_73 : f32 to vector<8x128xf32>
    %190 = arith.mulf %189, %188 : vector<8x128xf32>
    %191 = math.tanh %190 : vector<8x128xf32>
    %cst_74 = arith.constant 1.000000e+00 : f32
    %192 = vector.broadcast %cst_74 : f32 to vector<8x128xf32>
    %193 = arith.addf %191, %192 : vector<8x128xf32>
    %cst_75 = arith.constant 5.000000e-01 : f32
    %194 = vector.broadcast %cst_75 : f32 to vector<8x128xf32>
    %195 = arith.mulf %194, %193 : vector<8x128xf32>
    %196 = vector.extract_strided_slice %182 {offsets = [0, 128], sizes = [8, 128], strides = [1, 1]} : vector<8x384xf32> to vector<8x128xf32>
    %197 = vector.extract_strided_slice %185 {offsets = [0, 128], sizes = [8, 128], strides = [1, 1]} : vector<8x384xf32> to vector<8x128xf32>
    %198 = arith.addf %196, %197 : vector<8x128xf32>
    %cst_76 = arith.constant 5.000000e-01 : f32
    %199 = vector.broadcast %cst_76 : f32 to vector<8x128xf32>
    %200 = arith.mulf %199, %198 : vector<8x128xf32>
    %201 = math.tanh %200 : vector<8x128xf32>
    %cst_77 = arith.constant 1.000000e+00 : f32
    %202 = vector.broadcast %cst_77 : f32 to vector<8x128xf32>
    %203 = arith.addf %201, %202 : vector<8x128xf32>
    %cst_78 = arith.constant 5.000000e-01 : f32
    %204 = vector.broadcast %cst_78 : f32 to vector<8x128xf32>
    %205 = arith.mulf %204, %203 : vector<8x128xf32>
    %206 = vector.extract_strided_slice %182 {offsets = [0, 256], sizes = [8, 128], strides = [1, 1]} : vector<8x384xf32> to vector<8x128xf32>
    %207 = vector.extract_strided_slice %185 {offsets = [0, 256], sizes = [8, 128], strides = [1, 1]} : vector<8x384xf32> to vector<8x128xf32>
    %208 = arith.addf %207, %140 : vector<8x128xf32>
    %209 = arith.mulf %195, %208 : vector<8x128xf32>
    %210 = arith.addf %206, %209 : vector<8x128xf32>
    %211 = math.tanh %210 : vector<8x128xf32>
    %cst_79 = arith.constant 1.000000e+00 : f32
    %212 = vector.broadcast %cst_79 : f32 to vector<8x128xf32>
    %213 = arith.subf %212, %205 : vector<8x128xf32>
    %214 = arith.mulf %213, %211 : vector<8x128xf32>
    %215 = arith.mulf %205, %177 : vector<8x128xf32>
    %216 = arith.addf %214, %215 : vector<8x128xf32>
    %c1_80 = arith.constant 1 : index
    %c0_81 = arith.constant 0 : index
    %c0_82 = arith.constant 0 : index
    %217 = vector.load %arg12[%c1_80, %c0_81, %c0_82] : memref<8x8x128xf32, #tpu.memory_space<vmem>>, vector<1x8x128xf32>
    %218 = vector.shape_cast %217 : vector<1x8x128xf32> to vector<8x128xf32>
    %219 = vector.shape_cast %216 : vector<8x128xf32> to vector<1x8x128xf32>
    tpu.vector_store %arg12[%c1_80, %c0_81, %c0_82], %219 {strides = array<i32>} : memref<8x8x128xf32, #tpu.memory_space<vmem>>, vector<1x8x128xf32>,
    %c2_83 = arith.constant 2 : index
    %c0_84 = arith.constant 0 : index
    %c0_85 = arith.constant 0 : index
    %220 = vector.load %arg11[%c2_83, %c0_84, %c0_85] : memref<8x8x384xf32, #tpu.memory_space<vmem>>, vector<1x8x384xf32>
    %221 = vector.shape_cast %220 : vector<1x8x384xf32> to vector<8x384xf32>
    %222 = arith.truncf %216 : vector<8x128xf32> to vector<8x128xbf16>
    %c0_86 = arith.constant 0 : index
    %c0_87 = arith.constant 0 : index
    %223 = vector.load %arg3[%c0_86, %c0_87] : memref<128x384xbf16, #tpu.memory_space<vmem>>, vector<128x384xbf16>
    %cst_88 = arith.constant dense<0.000000e+00> : vector<8x384xf32>
    %224 = tpu.matmul %222, %223, %cst_88 {dimension_numbers = #tpu.dot_dimension_numbers<[1], [0], [0], [1], [0, 0, 1, 1], [], []>} : vector<8x128xbf16>, vector<128x384xbf16>, vector<8x384xf32> -> vector<8x384xf32>
    %225 = vector.extract_strided_slice %221 {offsets = [0, 0], sizes = [8, 128], strides = [1, 1]} : vector<8x384xf32> to vector<8x128xf32>
    %226 = vector.extract_strided_slice %224 {offsets = [0, 0], sizes = [8, 128], strides = [1, 1]} : vector<8x384xf32> to vector<8x128xf32>
    %227 = arith.addf %225, %226 : vector<8x128xf32>
    %cst_89 = arith.constant 5.000000e-01 : f32
    %228 = vector.broadcast %cst_89 : f32 to vector<8x128xf32>
    %229 = arith.mulf %228, %227 : vector<8x128xf32>
    %230 = math.tanh %229 : vector<8x128xf32>
    %cst_90 = arith.constant 1.000000e+00 : f32
    %231 = vector.broadcast %cst_90 : f32 to vector<8x128xf32>
    %232 = arith.addf %230, %231 : vector<8x128xf32>
    %cst_91 = arith.constant 5.000000e-01 : f32
    %233 = vector.broadcast %cst_91 : f32 to vector<8x128xf32>
    %234 = arith.mulf %233, %232 : vector<8x128xf32>
    %235 = vector.extract_strided_slice %221 {offsets = [0, 128], sizes = [8, 128], strides = [1, 1]} : vector<8x384xf32> to vector<8x128xf32>
    %236 = vector.extract_strided_slice %224 {offsets = [0, 128], sizes = [8, 128], strides = [1, 1]} : vector<8x384xf32> to vector<8x128xf32>
    %237 = arith.addf %235, %236 : vector<8x128xf32>
    %cst_92 = arith.constant 5.000000e-01 : f32
    %238 = vector.broadcast %cst_92 : f32 to vector<8x128xf32>
    %239 = arith.mulf %238, %237 : vector<8x128xf32>
    %240 = math.tanh %239 : vector<8x128xf32>
    %cst_93 = arith.constant 1.000000e+00 : f32
    %241 = vector.broadcast %cst_93 : f32 to vector<8x128xf32>
    %242 = arith.addf %240, %241 : vector<8x128xf32>
    %cst_94 = arith.constant 5.000000e-01 : f32
    %243 = vector.broadcast %cst_94 : f32 to vector<8x128xf32>
    %244 = arith.mulf %243, %242 : vector<8x128xf32>
    %245 = vector.extract_strided_slice %221 {offsets = [0, 256], sizes = [8, 128], strides = [1, 1]} : vector<8x384xf32> to vector<8x128xf32>
    %246 = vector.extract_strided_slice %224 {offsets = [0, 256], sizes = [8, 128], strides = [1, 1]} : vector<8x384xf32> to vector<8x128xf32>
    %247 = arith.addf %246, %140 : vector<8x128xf32>
    %248 = arith.mulf %234, %247 : vector<8x128xf32>
    %249 = arith.addf %245, %248 : vector<8x128xf32>
    %250 = math.tanh %249 : vector<8x128xf32>
    %cst_95 = arith.constant 1.000000e+00 : f32
    %251 = vector.broadcast %cst_95 : f32 to vector<8x128xf32>
    %252 = arith.subf %251, %244 : vector<8x128xf32>
    %253 = arith.mulf %252, %250 : vector<8x128xf32>
    %254 = arith.mulf %244, %216 : vector<8x128xf32>
    %255 = arith.addf %253, %254 : vector<8x128xf32>
    %c2_96 = arith.constant 2 : index
    %c0_97 = arith.constant 0 : index
    %c0_98 = arith.constant 0 : index
    %256 = vector.load %arg12[%c2_96, %c0_97, %c0_98] : memref<8x8x128xf32, #tpu.memory_space<vmem>>, vector<1x8x128xf32>
    %257 = vector.shape_cast %256 : vector<1x8x128xf32> to vector<8x128xf32>
    %258 = vector.shape_cast %255 : vector<8x128xf32> to vector<1x8x128xf32>
    tpu.vector_store %arg12[%c2_96, %c0_97, %c0_98], %258 {strides = array<i32>} : memref<8x8x128xf32, #tpu.memory_space<vmem>>, vector<1x8x128xf32>,
    %c3_99 = arith.constant 3 : index
    %c0_100 = arith.constant 0 : index
    %c0_101 = arith.constant 0 : index
    %259 = vector.load %arg11[%c3_99, %c0_100, %c0_101] : memref<8x8x384xf32, #tpu.memory_space<vmem>>, vector<1x8x384xf32>
    %260 = vector.shape_cast %259 : vector<1x8x384xf32> to vector<8x384xf32>
    %261 = arith.truncf %255 : vector<8x128xf32> to vector<8x128xbf16>
    %c0_102 = arith.constant 0 : index
    %c0_103 = arith.constant 0 : index
    %262 = vector.load %arg3[%c0_102, %c0_103] : memref<128x384xbf16, #tpu.memory_space<vmem>>, vector<128x384xbf16>
    %cst_104 = arith.constant dense<0.000000e+00> : vector<8x384xf32>
    %263 = tpu.matmul %261, %262, %cst_104 {dimension_numbers = #tpu.dot_dimension_numbers<[1], [0], [0], [1], [0, 0, 1, 1], [], []>} : vector<8x128xbf16>, vector<128x384xbf16>, vector<8x384xf32> -> vector<8x384xf32>
    %264 = vector.extract_strided_slice %260 {offsets = [0, 0], sizes = [8, 128], strides = [1, 1]} : vector<8x384xf32> to vector<8x128xf32>
    %265 = vector.extract_strided_slice %263 {offsets = [0, 0], sizes = [8, 128], strides = [1, 1]} : vector<8x384xf32> to vector<8x128xf32>
    %266 = arith.addf %264, %265 : vector<8x128xf32>
    %cst_105 = arith.constant 5.000000e-01 : f32
    %267 = vector.broadcast %cst_105 : f32 to vector<8x128xf32>
    %268 = arith.mulf %267, %266 : vector<8x128xf32>
    %269 = math.tanh %268 : vector<8x128xf32>
    %cst_106 = arith.constant 1.000000e+00 : f32
    %270 = vector.broadcast %cst_106 : f32 to vector<8x128xf32>
    %271 = arith.addf %269, %270 : vector<8x128xf32>
    %cst_107 = arith.constant 5.000000e-01 : f32
    %272 = vector.broadcast %cst_107 : f32 to vector<8x128xf32>
    %273 = arith.mulf %272, %271 : vector<8x128xf32>
    %274 = vector.extract_strided_slice %260 {offsets = [0, 128], sizes = [8, 128], strides = [1, 1]} : vector<8x384xf32> to vector<8x128xf32>
    %275 = vector.extract_strided_slice %263 {offsets = [0, 128], sizes = [8, 128], strides = [1, 1]} : vector<8x384xf32> to vector<8x128xf32>
    %276 = arith.addf %274, %275 : vector<8x128xf32>
    %cst_108 = arith.constant 5.000000e-01 : f32
    %277 = vector.broadcast %cst_108 : f32 to vector<8x128xf32>
    %278 = arith.mulf %277, %276 : vector<8x128xf32>
    %279 = math.tanh %278 : vector<8x128xf32>
    %cst_109 = arith.constant 1.000000e+00 : f32
    %280 = vector.broadcast %cst_109 : f32 to vector<8x128xf32>
    %281 = arith.addf %279, %280 : vector<8x128xf32>
    %cst_110 = arith.constant 5.000000e-01 : f32
    %282 = vector.broadcast %cst_110 : f32 to vector<8x128xf32>
    %283 = arith.mulf %282, %281 : vector<8x128xf32>
    %284 = vector.extract_strided_slice %260 {offsets = [0, 256], sizes = [8, 128], strides = [1, 1]} : vector<8x384xf32> to vector<8x128xf32>
    %285 = vector.extract_strided_slice %263 {offsets = [0, 256], sizes = [8, 128], strides = [1, 1]} : vector<8x384xf32> to vector<8x128xf32>
    %286 = arith.addf %285, %140 : vector<8x128xf32>
    %287 = arith.mulf %273, %286 : vector<8x128xf32>
    %288 = arith.addf %284, %287 : vector<8x128xf32>
    %289 = math.tanh %288 : vector<8x128xf32>
    %cst_111 = arith.constant 1.000000e+00 : f32
    %290 = vector.broadcast %cst_111 : f32 to vector<8x128xf32>
    %291 = arith.subf %290, %283 : vector<8x128xf32>
    %292 = arith.mulf %291, %289 : vector<8x128xf32>
    %293 = arith.mulf %283, %255 : vector<8x128xf32>
    %294 = arith.addf %292, %293 : vector<8x128xf32>
    %c3_112 = arith.constant 3 : index
    %c0_113 = arith.constant 0 : index
    %c0_114 = arith.constant 0 : index
    %295 = vector.load %arg12[%c3_112, %c0_113, %c0_114] : memref<8x8x128xf32, #tpu.memory_space<vmem>>, vector<1x8x128xf32>
    %296 = vector.shape_cast %295 : vector<1x8x128xf32> to vector<8x128xf32>
    %297 = vector.shape_cast %294 : vector<8x128xf32> to vector<1x8x128xf32>
    tpu.vector_store %arg12[%c3_112, %c0_113, %c0_114], %297 {strides = array<i32>} : memref<8x8x128xf32, #tpu.memory_space<vmem>>, vector<1x8x128xf32>,
    %c4_115 = arith.constant 4 : index
    %c0_116 = arith.constant 0 : index
    %c0_117 = arith.constant 0 : index
    %298 = vector.load %arg11[%c4_115, %c0_116, %c0_117] : memref<8x8x384xf32, #tpu.memory_space<vmem>>, vector<1x8x384xf32>
    %299 = vector.shape_cast %298 : vector<1x8x384xf32> to vector<8x384xf32>
    %300 = arith.truncf %294 : vector<8x128xf32> to vector<8x128xbf16>
    %c0_118 = arith.constant 0 : index
    %c0_119 = arith.constant 0 : index
    %301 = vector.load %arg3[%c0_118, %c0_119] : memref<128x384xbf16, #tpu.memory_space<vmem>>, vector<128x384xbf16>
    %cst_120 = arith.constant dense<0.000000e+00> : vector<8x384xf32>
    %302 = tpu.matmul %300, %301, %cst_120 {dimension_numbers = #tpu.dot_dimension_numbers<[1], [0], [0], [1], [0, 0, 1, 1], [], []>} : vector<8x128xbf16>, vector<128x384xbf16>, vector<8x384xf32> -> vector<8x384xf32>
    %303 = vector.extract_strided_slice %299 {offsets = [0, 0], sizes = [8, 128], strides = [1, 1]} : vector<8x384xf32> to vector<8x128xf32>
    %304 = vector.extract_strided_slice %302 {offsets = [0, 0], sizes = [8, 128], strides = [1, 1]} : vector<8x384xf32> to vector<8x128xf32>
    %305 = arith.addf %303, %304 : vector<8x128xf32>
    %cst_121 = arith.constant 5.000000e-01 : f32
    %306 = vector.broadcast %cst_121 : f32 to vector<8x128xf32>
    %307 = arith.mulf %306, %305 : vector<8x128xf32>
    %308 = math.tanh %307 : vector<8x128xf32>
    %cst_122 = arith.constant 1.000000e+00 : f32
    %309 = vector.broadcast %cst_122 : f32 to vector<8x128xf32>
    %310 = arith.addf %308, %309 : vector<8x128xf32>
    %cst_123 = arith.constant 5.000000e-01 : f32
    %311 = vector.broadcast %cst_123 : f32 to vector<8x128xf32>
    %312 = arith.mulf %311, %310 : vector<8x128xf32>
    %313 = vector.extract_strided_slice %299 {offsets = [0, 128], sizes = [8, 128], strides = [1, 1]} : vector<8x384xf32> to vector<8x128xf32>
    %314 = vector.extract_strided_slice %302 {offsets = [0, 128], sizes = [8, 128], strides = [1, 1]} : vector<8x384xf32> to vector<8x128xf32>
    %315 = arith.addf %313, %314 : vector<8x128xf32>
    %cst_124 = arith.constant 5.000000e-01 : f32
    %316 = vector.broadcast %cst_124 : f32 to vector<8x128xf32>
    %317 = arith.mulf %316, %315 : vector<8x128xf32>
    %318 = math.tanh %317 : vector<8x128xf32>
    %cst_125 = arith.constant 1.000000e+00 : f32
    %319 = vector.broadcast %cst_125 : f32 to vector<8x128xf32>
    %320 = arith.addf %318, %319 : vector<8x128xf32>
    %cst_126 = arith.constant 5.000000e-01 : f32
    %321 = vector.broadcast %cst_126 : f32 to vector<8x128xf32>
    %322 = arith.mulf %321, %320 : vector<8x128xf32>
    %323 = vector.extract_strided_slice %299 {offsets = [0, 256], sizes = [8, 128], strides = [1, 1]} : vector<8x384xf32> to vector<8x128xf32>
    %324 = vector.extract_strided_slice %302 {offsets = [0, 256], sizes = [8, 128], strides = [1, 1]} : vector<8x384xf32> to vector<8x128xf32>
    %325 = arith.addf %324, %140 : vector<8x128xf32>
    %326 = arith.mulf %312, %325 : vector<8x128xf32>
    %327 = arith.addf %323, %326 : vector<8x128xf32>
    %328 = math.tanh %327 : vector<8x128xf32>
    %cst_127 = arith.constant 1.000000e+00 : f32
    %329 = vector.broadcast %cst_127 : f32 to vector<8x128xf32>
    %330 = arith.subf %329, %322 : vector<8x128xf32>
    %331 = arith.mulf %330, %328 : vector<8x128xf32>
    %332 = arith.mulf %322, %294 : vector<8x128xf32>
    %333 = arith.addf %331, %332 : vector<8x128xf32>
    %c4_128 = arith.constant 4 : index
    %c0_129 = arith.constant 0 : index
    %c0_130 = arith.constant 0 : index
    %334 = vector.load %arg12[%c4_128, %c0_129, %c0_130] : memref<8x8x128xf32, #tpu.memory_space<vmem>>, vector<1x8x128xf32>
    %335 = vector.shape_cast %334 : vector<1x8x128xf32> to vector<8x128xf32>
    %336 = vector.shape_cast %333 : vector<8x128xf32> to vector<1x8x128xf32>
    tpu.vector_store %arg12[%c4_128, %c0_129, %c0_130], %336 {strides = array<i32>} : memref<8x8x128xf32, #tpu.memory_space<vmem>>, vector<1x8x128xf32>,
    %c5_131 = arith.constant 5 : index
    %c0_132 = arith.constant 0 : index
    %c0_133 = arith.constant 0 : index
    %337 = vector.load %arg11[%c5_131, %c0_132, %c0_133] : memref<8x8x384xf32, #tpu.memory_space<vmem>>, vector<1x8x384xf32>
    %338 = vector.shape_cast %337 : vector<1x8x384xf32> to vector<8x384xf32>
    %339 = arith.truncf %333 : vector<8x128xf32> to vector<8x128xbf16>
    %c0_134 = arith.constant 0 : index
    %c0_135 = arith.constant 0 : index
    %340 = vector.load %arg3[%c0_134, %c0_135] : memref<128x384xbf16, #tpu.memory_space<vmem>>, vector<128x384xbf16>
    %cst_136 = arith.constant dense<0.000000e+00> : vector<8x384xf32>
    %341 = tpu.matmul %339, %340, %cst_136 {dimension_numbers = #tpu.dot_dimension_numbers<[1], [0], [0], [1], [0, 0, 1, 1], [], []>} : vector<8x128xbf16>, vector<128x384xbf16>, vector<8x384xf32> -> vector<8x384xf32>
    %342 = vector.extract_strided_slice %338 {offsets = [0, 0], sizes = [8, 128], strides = [1, 1]} : vector<8x384xf32> to vector<8x128xf32>
    %343 = vector.extract_strided_slice %341 {offsets = [0, 0], sizes = [8, 128], strides = [1, 1]} : vector<8x384xf32> to vector<8x128xf32>
    %344 = arith.addf %342, %343 : vector<8x128xf32>
    %cst_137 = arith.constant 5.000000e-01 : f32
    %345 = vector.broadcast %cst_137 : f32 to vector<8x128xf32>
    %346 = arith.mulf %345, %344 : vector<8x128xf32>
    %347 = math.tanh %346 : vector<8x128xf32>
    %cst_138 = arith.constant 1.000000e+00 : f32
    %348 = vector.broadcast %cst_138 : f32 to vector<8x128xf32>
    %349 = arith.addf %347, %348 : vector<8x128xf32>
    %cst_139 = arith.constant 5.000000e-01 : f32
    %350 = vector.broadcast %cst_139 : f32 to vector<8x128xf32>
    %351 = arith.mulf %350, %349 : vector<8x128xf32>
    %352 = vector.extract_strided_slice %338 {offsets = [0, 128], sizes = [8, 128], strides = [1, 1]} : vector<8x384xf32> to vector<8x128xf32>
    %353 = vector.extract_strided_slice %341 {offsets = [0, 128], sizes = [8, 128], strides = [1, 1]} : vector<8x384xf32> to vector<8x128xf32>
    %354 = arith.addf %352, %353 : vector<8x128xf32>
    %cst_140 = arith.constant 5.000000e-01 : f32
    %355 = vector.broadcast %cst_140 : f32 to vector<8x128xf32>
    %356 = arith.mulf %355, %354 : vector<8x128xf32>
    %357 = math.tanh %356 : vector<8x128xf32>
    %cst_141 = arith.constant 1.000000e+00 : f32
    %358 = vector.broadcast %cst_141 : f32 to vector<8x128xf32>
    %359 = arith.addf %357, %358 : vector<8x128xf32>
    %cst_142 = arith.constant 5.000000e-01 : f32
    %360 = vector.broadcast %cst_142 : f32 to vector<8x128xf32>
    %361 = arith.mulf %360, %359 : vector<8x128xf32>
    %362 = vector.extract_strided_slice %338 {offsets = [0, 256], sizes = [8, 128], strides = [1, 1]} : vector<8x384xf32> to vector<8x128xf32>
    %363 = vector.extract_strided_slice %341 {offsets = [0, 256], sizes = [8, 128], strides = [1, 1]} : vector<8x384xf32> to vector<8x128xf32>
    %364 = arith.addf %363, %140 : vector<8x128xf32>
    %365 = arith.mulf %351, %364 : vector<8x128xf32>
    %366 = arith.addf %362, %365 : vector<8x128xf32>
    %367 = math.tanh %366 : vector<8x128xf32>
    %cst_143 = arith.constant 1.000000e+00 : f32
    %368 = vector.broadcast %cst_143 : f32 to vector<8x128xf32>
    %369 = arith.subf %368, %361 : vector<8x128xf32>
    %370 = arith.mulf %369, %367 : vector<8x128xf32>
    %371 = arith.mulf %361, %333 : vector<8x128xf32>
    %372 = arith.addf %370, %371 : vector<8x128xf32>
    %c5_144 = arith.constant 5 : index
    %c0_145 = arith.constant 0 : index
    %c0_146 = arith.constant 0 : index
    %373 = vector.load %arg12[%c5_144, %c0_145, %c0_146] : memref<8x8x128xf32, #tpu.memory_space<vmem>>, vector<1x8x128xf32>
    %374 = vector.shape_cast %373 : vector<1x8x128xf32> to vector<8x128xf32>
    %375 = vector.shape_cast %372 : vector<8x128xf32> to vector<1x8x128xf32>
    tpu.vector_store %arg12[%c5_144, %c0_145, %c0_146], %375 {strides = array<i32>} : memref<8x8x128xf32, #tpu.memory_space<vmem>>, vector<1x8x128xf32>,
    %c6_147 = arith.constant 6 : index
    %c0_148 = arith.constant 0 : index
    %c0_149 = arith.constant 0 : index
    %376 = vector.load %arg11[%c6_147, %c0_148, %c0_149] : memref<8x8x384xf32, #tpu.memory_space<vmem>>, vector<1x8x384xf32>
    %377 = vector.shape_cast %376 : vector<1x8x384xf32> to vector<8x384xf32>
    %378 = arith.truncf %372 : vector<8x128xf32> to vector<8x128xbf16>
    %c0_150 = arith.constant 0 : index
    %c0_151 = arith.constant 0 : index
    %379 = vector.load %arg3[%c0_150, %c0_151] : memref<128x384xbf16, #tpu.memory_space<vmem>>, vector<128x384xbf16>
    %cst_152 = arith.constant dense<0.000000e+00> : vector<8x384xf32>
    %380 = tpu.matmul %378, %379, %cst_152 {dimension_numbers = #tpu.dot_dimension_numbers<[1], [0], [0], [1], [0, 0, 1, 1], [], []>} : vector<8x128xbf16>, vector<128x384xbf16>, vector<8x384xf32> -> vector<8x384xf32>
    %381 = vector.extract_strided_slice %377 {offsets = [0, 0], sizes = [8, 128], strides = [1, 1]} : vector<8x384xf32> to vector<8x128xf32>
    %382 = vector.extract_strided_slice %380 {offsets = [0, 0], sizes = [8, 128], strides = [1, 1]} : vector<8x384xf32> to vector<8x128xf32>
    %383 = arith.addf %381, %382 : vector<8x128xf32>
    %cst_153 = arith.constant 5.000000e-01 : f32
    %384 = vector.broadcast %cst_153 : f32 to vector<8x128xf32>
    %385 = arith.mulf %384, %383 : vector<8x128xf32>
    %386 = math.tanh %385 : vector<8x128xf32>
    %cst_154 = arith.constant 1.000000e+00 : f32
    %387 = vector.broadcast %cst_154 : f32 to vector<8x128xf32>
    %388 = arith.addf %386, %387 : vector<8x128xf32>
    %cst_155 = arith.constant 5.000000e-01 : f32
    %389 = vector.broadcast %cst_155 : f32 to vector<8x128xf32>
    %390 = arith.mulf %389, %388 : vector<8x128xf32>
    %391 = vector.extract_strided_slice %377 {offsets = [0, 128], sizes = [8, 128], strides = [1, 1]} : vector<8x384xf32> to vector<8x128xf32>
    %392 = vector.extract_strided_slice %380 {offsets = [0, 128], sizes = [8, 128], strides = [1, 1]} : vector<8x384xf32> to vector<8x128xf32>
    %393 = arith.addf %391, %392 : vector<8x128xf32>
    %cst_156 = arith.constant 5.000000e-01 : f32
    %394 = vector.broadcast %cst_156 : f32 to vector<8x128xf32>
    %395 = arith.mulf %394, %393 : vector<8x128xf32>
    %396 = math.tanh %395 : vector<8x128xf32>
    %cst_157 = arith.constant 1.000000e+00 : f32
    %397 = vector.broadcast %cst_157 : f32 to vector<8x128xf32>
    %398 = arith.addf %396, %397 : vector<8x128xf32>
    %cst_158 = arith.constant 5.000000e-01 : f32
    %399 = vector.broadcast %cst_158 : f32 to vector<8x128xf32>
    %400 = arith.mulf %399, %398 : vector<8x128xf32>
    %401 = vector.extract_strided_slice %377 {offsets = [0, 256], sizes = [8, 128], strides = [1, 1]} : vector<8x384xf32> to vector<8x128xf32>
    %402 = vector.extract_strided_slice %380 {offsets = [0, 256], sizes = [8, 128], strides = [1, 1]} : vector<8x384xf32> to vector<8x128xf32>
    %403 = arith.addf %402, %140 : vector<8x128xf32>
    %404 = arith.mulf %390, %403 : vector<8x128xf32>
    %405 = arith.addf %401, %404 : vector<8x128xf32>
    %406 = math.tanh %405 : vector<8x128xf32>
    %cst_159 = arith.constant 1.000000e+00 : f32
    %407 = vector.broadcast %cst_159 : f32 to vector<8x128xf32>
    %408 = arith.subf %407, %400 : vector<8x128xf32>
    %409 = arith.mulf %408, %406 : vector<8x128xf32>
    %410 = arith.mulf %400, %372 : vector<8x128xf32>
    %411 = arith.addf %409, %410 : vector<8x128xf32>
    %c6_160 = arith.constant 6 : index
    %c0_161 = arith.constant 0 : index
    %c0_162 = arith.constant 0 : index
    %412 = vector.load %arg12[%c6_160, %c0_161, %c0_162] : memref<8x8x128xf32, #tpu.memory_space<vmem>>, vector<1x8x128xf32>
    %413 = vector.shape_cast %412 : vector<1x8x128xf32> to vector<8x128xf32>
    %414 = vector.shape_cast %411 : vector<8x128xf32> to vector<1x8x128xf32>
    tpu.vector_store %arg12[%c6_160, %c0_161, %c0_162], %414 {strides = array<i32>} : memref<8x8x128xf32, #tpu.memory_space<vmem>>, vector<1x8x128xf32>,
    %c7_163 = arith.constant 7 : index
    %c0_164 = arith.constant 0 : index
    %c0_165 = arith.constant 0 : index
    %415 = vector.load %arg11[%c7_163, %c0_164, %c0_165] : memref<8x8x384xf32, #tpu.memory_space<vmem>>, vector<1x8x384xf32>
    %416 = vector.shape_cast %415 : vector<1x8x384xf32> to vector<8x384xf32>
    %417 = arith.truncf %411 : vector<8x128xf32> to vector<8x128xbf16>
    %c0_166 = arith.constant 0 : index
    %c0_167 = arith.constant 0 : index
    %418 = vector.load %arg3[%c0_166, %c0_167] : memref<128x384xbf16, #tpu.memory_space<vmem>>, vector<128x384xbf16>
    %cst_168 = arith.constant dense<0.000000e+00> : vector<8x384xf32>
    %419 = tpu.matmul %417, %418, %cst_168 {dimension_numbers = #tpu.dot_dimension_numbers<[1], [0], [0], [1], [0, 0, 1, 1], [], []>} : vector<8x128xbf16>, vector<128x384xbf16>, vector<8x384xf32> -> vector<8x384xf32>
    %420 = vector.extract_strided_slice %416 {offsets = [0, 0], sizes = [8, 128], strides = [1, 1]} : vector<8x384xf32> to vector<8x128xf32>
    %421 = vector.extract_strided_slice %419 {offsets = [0, 0], sizes = [8, 128], strides = [1, 1]} : vector<8x384xf32> to vector<8x128xf32>
    %422 = arith.addf %420, %421 : vector<8x128xf32>
    %cst_169 = arith.constant 5.000000e-01 : f32
    %423 = vector.broadcast %cst_169 : f32 to vector<8x128xf32>
    %424 = arith.mulf %423, %422 : vector<8x128xf32>
    %425 = math.tanh %424 : vector<8x128xf32>
    %cst_170 = arith.constant 1.000000e+00 : f32
    %426 = vector.broadcast %cst_170 : f32 to vector<8x128xf32>
    %427 = arith.addf %425, %426 : vector<8x128xf32>
    %cst_171 = arith.constant 5.000000e-01 : f32
    %428 = vector.broadcast %cst_171 : f32 to vector<8x128xf32>
    %429 = arith.mulf %428, %427 : vector<8x128xf32>
    %430 = vector.extract_strided_slice %416 {offsets = [0, 128], sizes = [8, 128], strides = [1, 1]} : vector<8x384xf32> to vector<8x128xf32>
    %431 = vector.extract_strided_slice %419 {offsets = [0, 128], sizes = [8, 128], strides = [1, 1]} : vector<8x384xf32> to vector<8x128xf32>
    %432 = arith.addf %430, %431 : vector<8x128xf32>
    %cst_172 = arith.constant 5.000000e-01 : f32
    %433 = vector.broadcast %cst_172 : f32 to vector<8x128xf32>
    %434 = arith.mulf %433, %432 : vector<8x128xf32>
    %435 = math.tanh %434 : vector<8x128xf32>
    %cst_173 = arith.constant 1.000000e+00 : f32
    %436 = vector.broadcast %cst_173 : f32 to vector<8x128xf32>
    %437 = arith.addf %435, %436 : vector<8x128xf32>
    %cst_174 = arith.constant 5.000000e-01 : f32
    %438 = vector.broadcast %cst_174 : f32 to vector<8x128xf32>
    %439 = arith.mulf %438, %437 : vector<8x128xf32>
    %440 = vector.extract_strided_slice %416 {offsets = [0, 256], sizes = [8, 128], strides = [1, 1]} : vector<8x384xf32> to vector<8x128xf32>
    %441 = vector.extract_strided_slice %419 {offsets = [0, 256], sizes = [8, 128], strides = [1, 1]} : vector<8x384xf32> to vector<8x128xf32>
    %442 = arith.addf %441, %140 : vector<8x128xf32>
    %443 = arith.mulf %429, %442 : vector<8x128xf32>
    %444 = arith.addf %440, %443 : vector<8x128xf32>
    %445 = math.tanh %444 : vector<8x128xf32>
    %cst_175 = arith.constant 1.000000e+00 : f32
    %446 = vector.broadcast %cst_175 : f32 to vector<8x128xf32>
    %447 = arith.subf %446, %439 : vector<8x128xf32>
    %448 = arith.mulf %447, %445 : vector<8x128xf32>
    %449 = arith.mulf %439, %411 : vector<8x128xf32>
    %450 = arith.addf %448, %449 : vector<8x128xf32>
    %c7_176 = arith.constant 7 : index
    %c0_177 = arith.constant 0 : index
    %c0_178 = arith.constant 0 : index
    %451 = vector.load %arg12[%c7_176, %c0_177, %c0_178] : memref<8x8x128xf32, #tpu.memory_space<vmem>>, vector<1x8x128xf32>
    %452 = vector.shape_cast %451 : vector<1x8x128xf32> to vector<8x128xf32>
    %453 = vector.shape_cast %450 : vector<8x128xf32> to vector<1x8x128xf32>
    tpu.vector_store %arg12[%c7_176, %c0_177, %c0_178], %453 {strides = array<i32>} : memref<8x8x128xf32, #tpu.memory_space<vmem>>, vector<1x8x128xf32>,
    %c0_179 = arith.constant 0 : index
    %c0_180 = arith.constant 0 : index
    %454 = vector.load %arg7[%c0_179, %c0_180] : memref<1x384xf32, #tpu.memory_space<vmem>>, vector<1x384xf32>
    %455 = vector.shape_cast %454 : vector<1x384xf32> to vector<1x384xf32>
    %456 = vector.broadcast %455 : vector<1x384xf32> to vector<8x384xf32>
    %c0_181 = arith.constant 0 : index
    %c0_182 = arith.constant 0 : index
    %c0_183 = arith.constant 0 : index
    %457 = vector.load %arg12[%c0_181, %c0_182, %c0_183] : memref<8x8x128xf32, #tpu.memory_space<vmem>>, vector<1x8x128xf32>
    %458 = vector.shape_cast %457 : vector<1x8x128xf32> to vector<8x128xf32>
    %459 = arith.truncf %458 : vector<8x128xf32> to vector<8x128xbf16>
    %c7_184 = arith.constant 7 : index
    %c0_185 = arith.constant 0 : index
    %c0_186 = arith.constant 0 : index
    %460 = vector.load %arg12[%c7_184, %c0_185, %c0_186] : memref<8x8x128xf32, #tpu.memory_space<vmem>>, vector<1x8x128xf32>
    %461 = vector.shape_cast %460 : vector<1x8x128xf32> to vector<8x128xf32>
    %462 = arith.truncf %461 : vector<8x128xf32> to vector<8x128xbf16>
    %c0_187 = arith.constant 0 : index
    %c0_188 = arith.constant 0 : index
    %463 = vector.load %arg5[%c0_187, %c0_188] : memref<128x384xbf16, #tpu.memory_space<vmem>>, vector<128x384xbf16>
    %cst_189 = arith.constant dense<0.000000e+00> : vector<8x384xf32>
    %464 = tpu.matmul %459, %463, %cst_189 {dimension_numbers = #tpu.dot_dimension_numbers<[1], [0], [0], [1], [0, 0, 1, 1], [], []>} : vector<8x128xbf16>, vector<128x384xbf16>, vector<8x384xf32> -> vector<8x384xf32>
    %c0_190 = arith.constant 0 : index
    %c0_191 = arith.constant 0 : index
    %465 = vector.load %arg6[%c0_190, %c0_191] : memref<128x384xbf16, #tpu.memory_space<vmem>>, vector<128x384xbf16>
    %cst_192 = arith.constant dense<0.000000e+00> : vector<8x384xf32>
    %466 = tpu.matmul %462, %465, %cst_192 {dimension_numbers = #tpu.dot_dimension_numbers<[1], [0], [0], [1], [0, 0, 1, 1], [], []>} : vector<8x128xbf16>, vector<128x384xbf16>, vector<8x384xf32> -> vector<8x384xf32>
    %467 = arith.addf %464, %466 : vector<8x384xf32>
    %468 = arith.addf %467, %456 : vector<8x384xf32>
    %c0_193 = arith.constant 0 : index
    %c0_194 = arith.constant 0 : index
    %c0_195 = arith.constant 0 : index
    %469 = vector.load %arg11[%c0_193, %c0_194, %c0_195] : memref<8x8x384xf32, #tpu.memory_space<vmem>>, vector<1x8x384xf32>
    %470 = vector.shape_cast %469 : vector<1x8x384xf32> to vector<8x384xf32>
    %471 = vector.shape_cast %468 : vector<8x384xf32> to vector<1x8x384xf32>
    tpu.vector_store %arg11[%c0_193, %c0_194, %c0_195], %471 {strides = array<i32>} : memref<8x8x384xf32, #tpu.memory_space<vmem>>, vector<1x8x384xf32>,
    %c1_196 = arith.constant 1 : index
    %c0_197 = arith.constant 0 : index
    %c0_198 = arith.constant 0 : index
    %472 = vector.load %arg12[%c1_196, %c0_197, %c0_198] : memref<8x8x128xf32, #tpu.memory_space<vmem>>, vector<1x8x128xf32>
    %473 = vector.shape_cast %472 : vector<1x8x128xf32> to vector<8x128xf32>
    %474 = arith.truncf %473 : vector<8x128xf32> to vector<8x128xbf16>
    %c6_199 = arith.constant 6 : index
    %c0_200 = arith.constant 0 : index
    %c0_201 = arith.constant 0 : index
    %475 = vector.load %arg12[%c6_199, %c0_200, %c0_201] : memref<8x8x128xf32, #tpu.memory_space<vmem>>, vector<1x8x128xf32>
    %476 = vector.shape_cast %475 : vector<1x8x128xf32> to vector<8x128xf32>
    %477 = arith.truncf %476 : vector<8x128xf32> to vector<8x128xbf16>
    %c0_202 = arith.constant 0 : index
    %c0_203 = arith.constant 0 : index
    %478 = vector.load %arg5[%c0_202, %c0_203] : memref<128x384xbf16, #tpu.memory_space<vmem>>, vector<128x384xbf16>
    %cst_204 = arith.constant dense<0.000000e+00> : vector<8x384xf32>
    %479 = tpu.matmul %474, %478, %cst_204 {dimension_numbers = #tpu.dot_dimension_numbers<[1], [0], [0], [1], [0, 0, 1, 1], [], []>} : vector<8x128xbf16>, vector<128x384xbf16>, vector<8x384xf32> -> vector<8x384xf32>
    %c0_205 = arith.constant 0 : index
    %c0_206 = arith.constant 0 : index
    %480 = vector.load %arg6[%c0_205, %c0_206] : memref<128x384xbf16, #tpu.memory_space<vmem>>, vector<128x384xbf16>
    %cst_207 = arith.constant dense<0.000000e+00> : vector<8x384xf32>
    %481 = tpu.matmul %477, %480, %cst_207 {dimension_numbers = #tpu.dot_dimension_numbers<[1], [0], [0], [1], [0, 0, 1, 1], [], []>} : vector<8x128xbf16>, vector<128x384xbf16>, vector<8x384xf32> -> vector<8x384xf32>
    %482 = arith.addf %479, %481 : vector<8x384xf32>
    %483 = arith.addf %482, %456 : vector<8x384xf32>
    %c1_208 = arith.constant 1 : index
    %c0_209 = arith.constant 0 : index
    %c0_210 = arith.constant 0 : index
    %484 = vector.load %arg11[%c1_208, %c0_209, %c0_210] : memref<8x8x384xf32, #tpu.memory_space<vmem>>, vector<1x8x384xf32>
    %485 = vector.shape_cast %484 : vector<1x8x384xf32> to vector<8x384xf32>
    %486 = vector.shape_cast %483 : vector<8x384xf32> to vector<1x8x384xf32>
    tpu.vector_store %arg11[%c1_208, %c0_209, %c0_210], %486 {strides = array<i32>} : memref<8x8x384xf32, #tpu.memory_space<vmem>>, vector<1x8x384xf32>,
    %c2_211 = arith.constant 2 : index
    %c0_212 = arith.constant 0 : index
    %c0_213 = arith.constant 0 : index
    %487 = vector.load %arg12[%c2_211, %c0_212, %c0_213] : memref<8x8x128xf32, #tpu.memory_space<vmem>>, vector<1x8x128xf32>
    %488 = vector.shape_cast %487 : vector<1x8x128xf32> to vector<8x128xf32>
    %489 = arith.truncf %488 : vector<8x128xf32> to vector<8x128xbf16>
    %c5_214 = arith.constant 5 : index
    %c0_215 = arith.constant 0 : index
    %c0_216 = arith.constant 0 : index
    %490 = vector.load %arg12[%c5_214, %c0_215, %c0_216] : memref<8x8x128xf32, #tpu.memory_space<vmem>>, vector<1x8x128xf32>
    %491 = vector.shape_cast %490 : vector<1x8x128xf32> to vector<8x128xf32>
    %492 = arith.truncf %491 : vector<8x128xf32> to vector<8x128xbf16>
    %c0_217 = arith.constant 0 : index
    %c0_218 = arith.constant 0 : index
    %493 = vector.load %arg5[%c0_217, %c0_218] : memref<128x384xbf16, #tpu.memory_space<vmem>>, vector<128x384xbf16>
    %cst_219 = arith.constant dense<0.000000e+00> : vector<8x384xf32>
    %494 = tpu.matmul %489, %493, %cst_219 {dimension_numbers = #tpu.dot_dimension_numbers<[1], [0], [0], [1], [0, 0, 1, 1], [], []>} : vector<8x128xbf16>, vector<128x384xbf16>, vector<8x384xf32> -> vector<8x384xf32>
    %c0_220 = arith.constant 0 : index
    %c0_221 = arith.constant 0 : index
    %495 = vector.load %arg6[%c0_220, %c0_221] : memref<128x384xbf16, #tpu.memory_space<vmem>>, vector<128x384xbf16>
    %cst_222 = arith.constant dense<0.000000e+00> : vector<8x384xf32>
    %496 = tpu.matmul %492, %495, %cst_222 {dimension_numbers = #tpu.dot_dimension_numbers<[1], [0], [0], [1], [0, 0, 1, 1], [], []>} : vector<8x128xbf16>, vector<128x384xbf16>, vector<8x384xf32> -> vector<8x384xf32>
    %497 = arith.addf %494, %496 : vector<8x384xf32>
    %498 = arith.addf %497, %456 : vector<8x384xf32>
    %c2_223 = arith.constant 2 : index
    %c0_224 = arith.constant 0 : index
    %c0_225 = arith.constant 0 : index
    %499 = vector.load %arg11[%c2_223, %c0_224, %c0_225] : memref<8x8x384xf32, #tpu.memory_space<vmem>>, vector<1x8x384xf32>
    %500 = vector.shape_cast %499 : vector<1x8x384xf32> to vector<8x384xf32>
    %501 = vector.shape_cast %498 : vector<8x384xf32> to vector<1x8x384xf32>
    tpu.vector_store %arg11[%c2_223, %c0_224, %c0_225], %501 {strides = array<i32>} : memref<8x8x384xf32, #tpu.memory_space<vmem>>, vector<1x8x384xf32>,
    %c3_226 = arith.constant 3 : index
    %c0_227 = arith.constant 0 : index
    %c0_228 = arith.constant 0 : index
    %502 = vector.load %arg12[%c3_226, %c0_227, %c0_228] : memref<8x8x128xf32, #tpu.memory_space<vmem>>, vector<1x8x128xf32>
    %503 = vector.shape_cast %502 : vector<1x8x128xf32> to vector<8x128xf32>
    %504 = arith.truncf %503 : vector<8x128xf32> to vector<8x128xbf16>
    %c4_229 = arith.constant 4 : index
    %c0_230 = arith.constant 0 : index
    %c0_231 = arith.constant 0 : index
    %505 = vector.load %arg12[%c4_229, %c0_230, %c0_231] : memref<8x8x128xf32, #tpu.memory_space<vmem>>, vector<1x8x128xf32>
    %506 = vector.shape_cast %505 : vector<1x8x128xf32> to vector<8x128xf32>
    %507 = arith.truncf %506 : vector<8x128xf32> to vector<8x128xbf16>
    %c0_232 = arith.constant 0 : index
    %c0_233 = arith.constant 0 : index
    %508 = vector.load %arg5[%c0_232, %c0_233] : memref<128x384xbf16, #tpu.memory_space<vmem>>, vector<128x384xbf16>
    %cst_234 = arith.constant dense<0.000000e+00> : vector<8x384xf32>
    %509 = tpu.matmul %504, %508, %cst_234 {dimension_numbers = #tpu.dot_dimension_numbers<[1], [0], [0], [1], [0, 0, 1, 1], [], []>} : vector<8x128xbf16>, vector<128x384xbf16>, vector<8x384xf32> -> vector<8x384xf32>
    %c0_235 = arith.constant 0 : index
    %c0_236 = arith.constant 0 : index
    %510 = vector.load %arg6[%c0_235, %c0_236] : memref<128x384xbf16, #tpu.memory_space<vmem>>, vector<128x384xbf16>
    %cst_237 = arith.constant dense<0.000000e+00> : vector<8x384xf32>
    %511 = tpu.matmul %507, %510, %cst_237 {dimension_numbers = #tpu.dot_dimension_numbers<[1], [0], [0], [1], [0, 0, 1, 1], [], []>} : vector<8x128xbf16>, vector<128x384xbf16>, vector<8x384xf32> -> vector<8x384xf32>
    %512 = arith.addf %509, %511 : vector<8x384xf32>
    %513 = arith.addf %512, %456 : vector<8x384xf32>
    %c3_238 = arith.constant 3 : index
    %c0_239 = arith.constant 0 : index
    %c0_240 = arith.constant 0 : index
    %514 = vector.load %arg11[%c3_238, %c0_239, %c0_240] : memref<8x8x384xf32, #tpu.memory_space<vmem>>, vector<1x8x384xf32>
    %515 = vector.shape_cast %514 : vector<1x8x384xf32> to vector<8x384xf32>
    %516 = vector.shape_cast %513 : vector<8x384xf32> to vector<1x8x384xf32>
    tpu.vector_store %arg11[%c3_238, %c0_239, %c0_240], %516 {strides = array<i32>} : memref<8x8x384xf32, #tpu.memory_space<vmem>>, vector<1x8x384xf32>,
    %c4_241 = arith.constant 4 : index
    %c0_242 = arith.constant 0 : index
    %c0_243 = arith.constant 0 : index
    %517 = vector.load %arg12[%c4_241, %c0_242, %c0_243] : memref<8x8x128xf32, #tpu.memory_space<vmem>>, vector<1x8x128xf32>
    %518 = vector.shape_cast %517 : vector<1x8x128xf32> to vector<8x128xf32>
    %519 = arith.truncf %518 : vector<8x128xf32> to vector<8x128xbf16>
    %c3_244 = arith.constant 3 : index
    %c0_245 = arith.constant 0 : index
    %c0_246 = arith.constant 0 : index
    %520 = vector.load %arg12[%c3_244, %c0_245, %c0_246] : memref<8x8x128xf32, #tpu.memory_space<vmem>>, vector<1x8x128xf32>
    %521 = vector.shape_cast %520 : vector<1x8x128xf32> to vector<8x128xf32>
    %522 = arith.truncf %521 : vector<8x128xf32> to vector<8x128xbf16>
    %c0_247 = arith.constant 0 : index
    %c0_248 = arith.constant 0 : index
    %523 = vector.load %arg5[%c0_247, %c0_248] : memref<128x384xbf16, #tpu.memory_space<vmem>>, vector<128x384xbf16>
    %cst_249 = arith.constant dense<0.000000e+00> : vector<8x384xf32>
    %524 = tpu.matmul %519, %523, %cst_249 {dimension_numbers = #tpu.dot_dimension_numbers<[1], [0], [0], [1], [0, 0, 1, 1], [], []>} : vector<8x128xbf16>, vector<128x384xbf16>, vector<8x384xf32> -> vector<8x384xf32>
    %c0_250 = arith.constant 0 : index
    %c0_251 = arith.constant 0 : index
    %525 = vector.load %arg6[%c0_250, %c0_251] : memref<128x384xbf16, #tpu.memory_space<vmem>>, vector<128x384xbf16>
    %cst_252 = arith.constant dense<0.000000e+00> : vector<8x384xf32>
    %526 = tpu.matmul %522, %525, %cst_252 {dimension_numbers = #tpu.dot_dimension_numbers<[1], [0], [0], [1], [0, 0, 1, 1], [], []>} : vector<8x128xbf16>, vector<128x384xbf16>, vector<8x384xf32> -> vector<8x384xf32>
    %527 = arith.addf %524, %526 : vector<8x384xf32>
    %528 = arith.addf %527, %456 : vector<8x384xf32>
    %c4_253 = arith.constant 4 : index
    %c0_254 = arith.constant 0 : index
    %c0_255 = arith.constant 0 : index
    %529 = vector.load %arg11[%c4_253, %c0_254, %c0_255] : memref<8x8x384xf32, #tpu.memory_space<vmem>>, vector<1x8x384xf32>
    %530 = vector.shape_cast %529 : vector<1x8x384xf32> to vector<8x384xf32>
    %531 = vector.shape_cast %528 : vector<8x384xf32> to vector<1x8x384xf32>
    tpu.vector_store %arg11[%c4_253, %c0_254, %c0_255], %531 {strides = array<i32>} : memref<8x8x384xf32, #tpu.memory_space<vmem>>, vector<1x8x384xf32>,
    %c5_256 = arith.constant 5 : index
    %c0_257 = arith.constant 0 : index
    %c0_258 = arith.constant 0 : index
    %532 = vector.load %arg12[%c5_256, %c0_257, %c0_258] : memref<8x8x128xf32, #tpu.memory_space<vmem>>, vector<1x8x128xf32>
    %533 = vector.shape_cast %532 : vector<1x8x128xf32> to vector<8x128xf32>
    %534 = arith.truncf %533 : vector<8x128xf32> to vector<8x128xbf16>
    %c2_259 = arith.constant 2 : index
    %c0_260 = arith.constant 0 : index
    %c0_261 = arith.constant 0 : index
    %535 = vector.load %arg12[%c2_259, %c0_260, %c0_261] : memref<8x8x128xf32, #tpu.memory_space<vmem>>, vector<1x8x128xf32>
    %536 = vector.shape_cast %535 : vector<1x8x128xf32> to vector<8x128xf32>
    %537 = arith.truncf %536 : vector<8x128xf32> to vector<8x128xbf16>
    %c0_262 = arith.constant 0 : index
    %c0_263 = arith.constant 0 : index
    %538 = vector.load %arg5[%c0_262, %c0_263] : memref<128x384xbf16, #tpu.memory_space<vmem>>, vector<128x384xbf16>
    %cst_264 = arith.constant dense<0.000000e+00> : vector<8x384xf32>
    %539 = tpu.matmul %534, %538, %cst_264 {dimension_numbers = #tpu.dot_dimension_numbers<[1], [0], [0], [1], [0, 0, 1, 1], [], []>} : vector<8x128xbf16>, vector<128x384xbf16>, vector<8x384xf32> -> vector<8x384xf32>
    %c0_265 = arith.constant 0 : index
    %c0_266 = arith.constant 0 : index
    %540 = vector.load %arg6[%c0_265, %c0_266] : memref<128x384xbf16, #tpu.memory_space<vmem>>, vector<128x384xbf16>
    %cst_267 = arith.constant dense<0.000000e+00> : vector<8x384xf32>
    %541 = tpu.matmul %537, %540, %cst_267 {dimension_numbers = #tpu.dot_dimension_numbers<[1], [0], [0], [1], [0, 0, 1, 1], [], []>} : vector<8x128xbf16>, vector<128x384xbf16>, vector<8x384xf32> -> vector<8x384xf32>
    %542 = arith.addf %539, %541 : vector<8x384xf32>
    %543 = arith.addf %542, %456 : vector<8x384xf32>
    %c5_268 = arith.constant 5 : index
    %c0_269 = arith.constant 0 : index
    %c0_270 = arith.constant 0 : index
    %544 = vector.load %arg11[%c5_268, %c0_269, %c0_270] : memref<8x8x384xf32, #tpu.memory_space<vmem>>, vector<1x8x384xf32>
    %545 = vector.shape_cast %544 : vector<1x8x384xf32> to vector<8x384xf32>
    %546 = vector.shape_cast %543 : vector<8x384xf32> to vector<1x8x384xf32>
    tpu.vector_store %arg11[%c5_268, %c0_269, %c0_270], %546 {strides = array<i32>} : memref<8x8x384xf32, #tpu.memory_space<vmem>>, vector<1x8x384xf32>,
    %c6_271 = arith.constant 6 : index
    %c0_272 = arith.constant 0 : index
    %c0_273 = arith.constant 0 : index
    %547 = vector.load %arg12[%c6_271, %c0_272, %c0_273] : memref<8x8x128xf32, #tpu.memory_space<vmem>>, vector<1x8x128xf32>
    %548 = vector.shape_cast %547 : vector<1x8x128xf32> to vector<8x128xf32>
    %549 = arith.truncf %548 : vector<8x128xf32> to vector<8x128xbf16>
    %c1_274 = arith.constant 1 : index
    %c0_275 = arith.constant 0 : index
    %c0_276 = arith.constant 0 : index
    %550 = vector.load %arg12[%c1_274, %c0_275, %c0_276] : memref<8x8x128xf32, #tpu.memory_space<vmem>>, vector<1x8x128xf32>
    %551 = vector.shape_cast %550 : vector<1x8x128xf32> to vector<8x128xf32>
    %552 = arith.truncf %551 : vector<8x128xf32> to vector<8x128xbf16>
    %c0_277 = arith.constant 0 : index
    %c0_278 = arith.constant 0 : index
    %553 = vector.load %arg5[%c0_277, %c0_278] : memref<128x384xbf16, #tpu.memory_space<vmem>>, vector<128x384xbf16>
    %cst_279 = arith.constant dense<0.000000e+00> : vector<8x384xf32>
    %554 = tpu.matmul %549, %553, %cst_279 {dimension_numbers = #tpu.dot_dimension_numbers<[1], [0], [0], [1], [0, 0, 1, 1], [], []>} : vector<8x128xbf16>, vector<128x384xbf16>, vector<8x384xf32> -> vector<8x384xf32>
    %c0_280 = arith.constant 0 : index
    %c0_281 = arith.constant 0 : index
    %555 = vector.load %arg6[%c0_280, %c0_281] : memref<128x384xbf16, #tpu.memory_space<vmem>>, vector<128x384xbf16>
    %cst_282 = arith.constant dense<0.000000e+00> : vector<8x384xf32>
    %556 = tpu.matmul %552, %555, %cst_282 {dimension_numbers = #tpu.dot_dimension_numbers<[1], [0], [0], [1], [0, 0, 1, 1], [], []>} : vector<8x128xbf16>, vector<128x384xbf16>, vector<8x384xf32> -> vector<8x384xf32>
    %557 = arith.addf %554, %556 : vector<8x384xf32>
    %558 = arith.addf %557, %456 : vector<8x384xf32>
    %c6_283 = arith.constant 6 : index
    %c0_284 = arith.constant 0 : index
    %c0_285 = arith.constant 0 : index
    %559 = vector.load %arg11[%c6_283, %c0_284, %c0_285] : memref<8x8x384xf32, #tpu.memory_space<vmem>>, vector<1x8x384xf32>
    %560 = vector.shape_cast %559 : vector<1x8x384xf32> to vector<8x384xf32>
    %561 = vector.shape_cast %558 : vector<8x384xf32> to vector<1x8x384xf32>
    tpu.vector_store %arg11[%c6_283, %c0_284, %c0_285], %561 {strides = array<i32>} : memref<8x8x384xf32, #tpu.memory_space<vmem>>, vector<1x8x384xf32>,
    %c7_286 = arith.constant 7 : index
    %c0_287 = arith.constant 0 : index
    %c0_288 = arith.constant 0 : index
    %562 = vector.load %arg12[%c7_286, %c0_287, %c0_288] : memref<8x8x128xf32, #tpu.memory_space<vmem>>, vector<1x8x128xf32>
    %563 = vector.shape_cast %562 : vector<1x8x128xf32> to vector<8x128xf32>
    %564 = arith.truncf %563 : vector<8x128xf32> to vector<8x128xbf16>
    %c0_289 = arith.constant 0 : index
    %c0_290 = arith.constant 0 : index
    %c0_291 = arith.constant 0 : index
    %565 = vector.load %arg12[%c0_289, %c0_290, %c0_291] : memref<8x8x128xf32, #tpu.memory_space<vmem>>, vector<1x8x128xf32>
    %566 = vector.shape_cast %565 : vector<1x8x128xf32> to vector<8x128xf32>
    %567 = arith.truncf %566 : vector<8x128xf32> to vector<8x128xbf16>
    %c0_292 = arith.constant 0 : index
    %c0_293 = arith.constant 0 : index
    %568 = vector.load %arg5[%c0_292, %c0_293] : memref<128x384xbf16, #tpu.memory_space<vmem>>, vector<128x384xbf16>
    %cst_294 = arith.constant dense<0.000000e+00> : vector<8x384xf32>
    %569 = tpu.matmul %564, %568, %cst_294 {dimension_numbers = #tpu.dot_dimension_numbers<[1], [0], [0], [1], [0, 0, 1, 1], [], []>} : vector<8x128xbf16>, vector<128x384xbf16>, vector<8x384xf32> -> vector<8x384xf32>
    %c0_295 = arith.constant 0 : index
    %c0_296 = arith.constant 0 : index
    %570 = vector.load %arg6[%c0_295, %c0_296] : memref<128x384xbf16, #tpu.memory_space<vmem>>, vector<128x384xbf16>
    %cst_297 = arith.constant dense<0.000000e+00> : vector<8x384xf32>
    %571 = tpu.matmul %567, %570, %cst_297 {dimension_numbers = #tpu.dot_dimension_numbers<[1], [0], [0], [1], [0, 0, 1, 1], [], []>} : vector<8x128xbf16>, vector<128x384xbf16>, vector<8x384xf32> -> vector<8x384xf32>
    %572 = arith.addf %569, %571 : vector<8x384xf32>
    %573 = arith.addf %572, %456 : vector<8x384xf32>
    %c7_298 = arith.constant 7 : index
    %c0_299 = arith.constant 0 : index
    %c0_300 = arith.constant 0 : index
    %574 = vector.load %arg11[%c7_298, %c0_299, %c0_300] : memref<8x8x384xf32, #tpu.memory_space<vmem>>, vector<1x8x384xf32>
    %575 = vector.shape_cast %574 : vector<1x8x384xf32> to vector<8x384xf32>
    %576 = vector.shape_cast %573 : vector<8x384xf32> to vector<1x8x384xf32>
    tpu.vector_store %arg11[%c7_298, %c0_299, %c0_300], %576 {strides = array<i32>} : memref<8x8x384xf32, #tpu.memory_space<vmem>>, vector<1x8x384xf32>,
    %c0_301 = arith.constant 0 : index
    %c0_302 = arith.constant 0 : index
    %577 = vector.load %arg9[%c0_301, %c0_302] : memref<1x128xf32, #tpu.memory_space<vmem>>, vector<1x128xf32>
    %578 = vector.shape_cast %577 : vector<1x128xf32> to vector<1x128xf32>
    %579 = vector.broadcast %578 : vector<1x128xf32> to vector<8x128xf32>
    %cst_303 = arith.constant 0.000000e+00 : f32
    %580 = vector.broadcast %cst_303 : f32 to vector<8x128xf32>
    %c0_304 = arith.constant 0 : index
    %c0_305 = arith.constant 0 : index
    %c0_306 = arith.constant 0 : index
    %581 = vector.load %arg11[%c0_304, %c0_305, %c0_306] : memref<8x8x384xf32, #tpu.memory_space<vmem>>, vector<1x8x384xf32>
    %582 = vector.shape_cast %581 : vector<1x8x384xf32> to vector<8x384xf32>
    %583 = arith.truncf %580 : vector<8x128xf32> to vector<8x128xbf16>
    %c0_307 = arith.constant 0 : index
    %c0_308 = arith.constant 0 : index
    %584 = vector.load %arg8[%c0_307, %c0_308] : memref<128x384xbf16, #tpu.memory_space<vmem>>, vector<128x384xbf16>
    %cst_309 = arith.constant dense<0.000000e+00> : vector<8x384xf32>
    %585 = tpu.matmul %583, %584, %cst_309 {dimension_numbers = #tpu.dot_dimension_numbers<[1], [0], [0], [1], [0, 0, 1, 1], [], []>} : vector<8x128xbf16>, vector<128x384xbf16>, vector<8x384xf32> -> vector<8x384xf32>
    %586 = vector.extract_strided_slice %582 {offsets = [0, 0], sizes = [8, 128], strides = [1, 1]} : vector<8x384xf32> to vector<8x128xf32>
    %587 = vector.extract_strided_slice %585 {offsets = [0, 0], sizes = [8, 128], strides = [1, 1]} : vector<8x384xf32> to vector<8x128xf32>
    %588 = arith.addf %586, %587 : vector<8x128xf32>
    %cst_310 = arith.constant 5.000000e-01 : f32
    %589 = vector.broadcast %cst_310 : f32 to vector<8x128xf32>
    %590 = arith.mulf %589, %588 : vector<8x128xf32>
    %591 = math.tanh %590 : vector<8x128xf32>
    %cst_311 = arith.constant 1.000000e+00 : f32
    %592 = vector.broadcast %cst_311 : f32 to vector<8x128xf32>
    %593 = arith.addf %591, %592 : vector<8x128xf32>
    %cst_312 = arith.constant 5.000000e-01 : f32
    %594 = vector.broadcast %cst_312 : f32 to vector<8x128xf32>
    %595 = arith.mulf %594, %593 : vector<8x128xf32>
    %596 = vector.extract_strided_slice %582 {offsets = [0, 128], sizes = [8, 128], strides = [1, 1]} : vector<8x384xf32> to vector<8x128xf32>
    %597 = vector.extract_strided_slice %585 {offsets = [0, 128], sizes = [8, 128], strides = [1, 1]} : vector<8x384xf32> to vector<8x128xf32>
    %598 = arith.addf %596, %597 : vector<8x128xf32>
    %cst_313 = arith.constant 5.000000e-01 : f32
    %599 = vector.broadcast %cst_313 : f32 to vector<8x128xf32>
    %600 = arith.mulf %599, %598 : vector<8x128xf32>
    %601 = math.tanh %600 : vector<8x128xf32>
    %cst_314 = arith.constant 1.000000e+00 : f32
    %602 = vector.broadcast %cst_314 : f32 to vector<8x128xf32>
    %603 = arith.addf %601, %602 : vector<8x128xf32>
    %cst_315 = arith.constant 5.000000e-01 : f32
    %604 = vector.broadcast %cst_315 : f32 to vector<8x128xf32>
    %605 = arith.mulf %604, %603 : vector<8x128xf32>
    %606 = vector.extract_strided_slice %582 {offsets = [0, 256], sizes = [8, 128], strides = [1, 1]} : vector<8x384xf32> to vector<8x128xf32>
    %607 = vector.extract_strided_slice %585 {offsets = [0, 256], sizes = [8, 128], strides = [1, 1]} : vector<8x384xf32> to vector<8x128xf32>
    %608 = arith.addf %607, %579 : vector<8x128xf32>
    %609 = arith.mulf %595, %608 : vector<8x128xf32>
    %610 = arith.addf %606, %609 : vector<8x128xf32>
    %611 = math.tanh %610 : vector<8x128xf32>
    %cst_316 = arith.constant 1.000000e+00 : f32
    %612 = vector.broadcast %cst_316 : f32 to vector<8x128xf32>
    %613 = arith.subf %612, %605 : vector<8x128xf32>
    %614 = arith.mulf %613, %611 : vector<8x128xf32>
    %615 = arith.mulf %605, %580 : vector<8x128xf32>
    %616 = arith.addf %614, %615 : vector<8x128xf32>
    %617 = vector.extract_strided_slice %616 {offsets = [0, 0], sizes = [8, 64], strides = [1, 1]} : vector<8x128xf32> to vector<8x64xf32>
    %c0_317 = arith.constant 0 : index
    %c0_318 = arith.constant 0 : index
    %618 = vector.load %arg10[%c0_317, %c0_318] : memref<8x1024xf32, #tpu.memory_space<vmem>>, vector<8x64xf32>
    tpu.vector_store %arg10[%c0_317, %c0_318], %617 {strides = array<i32>} : memref<8x1024xf32, #tpu.memory_space<vmem>>, vector<8x64xf32>,
    %619 = vector.extract_strided_slice %616 {offsets = [0, 64], sizes = [8, 64], strides = [1, 1]} : vector<8x128xf32> to vector<8x64xf32>
    %c0_319 = arith.constant 0 : index
    %c960 = arith.constant 960 : index
    %620 = vector.load %arg10[%c0_319, %c960] : memref<8x1024xf32, #tpu.memory_space<vmem>>, vector<8x64xf32>
    tpu.vector_store %arg10[%c0_319, %c960], %619 {strides = array<i32>} : memref<8x1024xf32, #tpu.memory_space<vmem>>, vector<8x64xf32>,
    %c1_320 = arith.constant 1 : index
    %c0_321 = arith.constant 0 : index
    %c0_322 = arith.constant 0 : index
    %621 = vector.load %arg11[%c1_320, %c0_321, %c0_322] : memref<8x8x384xf32, #tpu.memory_space<vmem>>, vector<1x8x384xf32>
    %622 = vector.shape_cast %621 : vector<1x8x384xf32> to vector<8x384xf32>
    %623 = arith.truncf %616 : vector<8x128xf32> to vector<8x128xbf16>
    %c0_323 = arith.constant 0 : index
    %c0_324 = arith.constant 0 : index
    %624 = vector.load %arg8[%c0_323, %c0_324] : memref<128x384xbf16, #tpu.memory_space<vmem>>, vector<128x384xbf16>
    %cst_325 = arith.constant dense<0.000000e+00> : vector<8x384xf32>
    %625 = tpu.matmul %623, %624, %cst_325 {dimension_numbers = #tpu.dot_dimension_numbers<[1], [0], [0], [1], [0, 0, 1, 1], [], []>} : vector<8x128xbf16>, vector<128x384xbf16>, vector<8x384xf32> -> vector<8x384xf32>
    %626 = vector.extract_strided_slice %622 {offsets = [0, 0], sizes = [8, 128], strides = [1, 1]} : vector<8x384xf32> to vector<8x128xf32>
    %627 = vector.extract_strided_slice %625 {offsets = [0, 0], sizes = [8, 128], strides = [1, 1]} : vector<8x384xf32> to vector<8x128xf32>
    %628 = arith.addf %626, %627 : vector<8x128xf32>
    %cst_326 = arith.constant 5.000000e-01 : f32
    %629 = vector.broadcast %cst_326 : f32 to vector<8x128xf32>
    %630 = arith.mulf %629, %628 : vector<8x128xf32>
    %631 = math.tanh %630 : vector<8x128xf32>
    %cst_327 = arith.constant 1.000000e+00 : f32
    %632 = vector.broadcast %cst_327 : f32 to vector<8x128xf32>
    %633 = arith.addf %631, %632 : vector<8x128xf32>
    %cst_328 = arith.constant 5.000000e-01 : f32
    %634 = vector.broadcast %cst_328 : f32 to vector<8x128xf32>
    %635 = arith.mulf %634, %633 : vector<8x128xf32>
    %636 = vector.extract_strided_slice %622 {offsets = [0, 128], sizes = [8, 128], strides = [1, 1]} : vector<8x384xf32> to vector<8x128xf32>
    %637 = vector.extract_strided_slice %625 {offsets = [0, 128], sizes = [8, 128], strides = [1, 1]} : vector<8x384xf32> to vector<8x128xf32>
    %638 = arith.addf %636, %637 : vector<8x128xf32>
    %cst_329 = arith.constant 5.000000e-01 : f32
    %639 = vector.broadcast %cst_329 : f32 to vector<8x128xf32>
    %640 = arith.mulf %639, %638 : vector<8x128xf32>
    %641 = math.tanh %640 : vector<8x128xf32>
    %cst_330 = arith.constant 1.000000e+00 : f32
    %642 = vector.broadcast %cst_330 : f32 to vector<8x128xf32>
    %643 = arith.addf %641, %642 : vector<8x128xf32>
    %cst_331 = arith.constant 5.000000e-01 : f32
    %644 = vector.broadcast %cst_331 : f32 to vector<8x128xf32>
    %645 = arith.mulf %644, %643 : vector<8x128xf32>
    %646 = vector.extract_strided_slice %622 {offsets = [0, 256], sizes = [8, 128], strides = [1, 1]} : vector<8x384xf32> to vector<8x128xf32>
    %647 = vector.extract_strided_slice %625 {offsets = [0, 256], sizes = [8, 128], strides = [1, 1]} : vector<8x384xf32> to vector<8x128xf32>
    %648 = arith.addf %647, %579 : vector<8x128xf32>
    %649 = arith.mulf %635, %648 : vector<8x128xf32>
    %650 = arith.addf %646, %649 : vector<8x128xf32>
    %651 = math.tanh %650 : vector<8x128xf32>
    %cst_332 = arith.constant 1.000000e+00 : f32
    %652 = vector.broadcast %cst_332 : f32 to vector<8x128xf32>
    %653 = arith.subf %652, %645 : vector<8x128xf32>
    %654 = arith.mulf %653, %651 : vector<8x128xf32>
    %655 = arith.mulf %645, %616 : vector<8x128xf32>
    %656 = arith.addf %654, %655 : vector<8x128xf32>
    %657 = vector.extract_strided_slice %656 {offsets = [0, 0], sizes = [8, 64], strides = [1, 1]} : vector<8x128xf32> to vector<8x64xf32>
    %c0_333 = arith.constant 0 : index
    %c128 = arith.constant 128 : index
    %658 = vector.load %arg10[%c0_333, %c128] : memref<8x1024xf32, #tpu.memory_space<vmem>>, vector<8x64xf32>
    tpu.vector_store %arg10[%c0_333, %c128], %657 {strides = array<i32>} : memref<8x1024xf32, #tpu.memory_space<vmem>>, vector<8x64xf32>,
    %659 = vector.extract_strided_slice %656 {offsets = [0, 64], sizes = [8, 64], strides = [1, 1]} : vector<8x128xf32> to vector<8x64xf32>
    %c0_334 = arith.constant 0 : index
    %c832 = arith.constant 832 : index
    %660 = vector.load %arg10[%c0_334, %c832] : memref<8x1024xf32, #tpu.memory_space<vmem>>, vector<8x64xf32>
    tpu.vector_store %arg10[%c0_334, %c832], %659 {strides = array<i32>} : memref<8x1024xf32, #tpu.memory_space<vmem>>, vector<8x64xf32>,
    %c2_335 = arith.constant 2 : index
    %c0_336 = arith.constant 0 : index
    %c0_337 = arith.constant 0 : index
    %661 = vector.load %arg11[%c2_335, %c0_336, %c0_337] : memref<8x8x384xf32, #tpu.memory_space<vmem>>, vector<1x8x384xf32>
    %662 = vector.shape_cast %661 : vector<1x8x384xf32> to vector<8x384xf32>
    %663 = arith.truncf %656 : vector<8x128xf32> to vector<8x128xbf16>
    %c0_338 = arith.constant 0 : index
    %c0_339 = arith.constant 0 : index
    %664 = vector.load %arg8[%c0_338, %c0_339] : memref<128x384xbf16, #tpu.memory_space<vmem>>, vector<128x384xbf16>
    %cst_340 = arith.constant dense<0.000000e+00> : vector<8x384xf32>
    %665 = tpu.matmul %663, %664, %cst_340 {dimension_numbers = #tpu.dot_dimension_numbers<[1], [0], [0], [1], [0, 0, 1, 1], [], []>} : vector<8x128xbf16>, vector<128x384xbf16>, vector<8x384xf32> -> vector<8x384xf32>
    %666 = vector.extract_strided_slice %662 {offsets = [0, 0], sizes = [8, 128], strides = [1, 1]} : vector<8x384xf32> to vector<8x128xf32>
    %667 = vector.extract_strided_slice %665 {offsets = [0, 0], sizes = [8, 128], strides = [1, 1]} : vector<8x384xf32> to vector<8x128xf32>
    %668 = arith.addf %666, %667 : vector<8x128xf32>
    %cst_341 = arith.constant 5.000000e-01 : f32
    %669 = vector.broadcast %cst_341 : f32 to vector<8x128xf32>
    %670 = arith.mulf %669, %668 : vector<8x128xf32>
    %671 = math.tanh %670 : vector<8x128xf32>
    %cst_342 = arith.constant 1.000000e+00 : f32
    %672 = vector.broadcast %cst_342 : f32 to vector<8x128xf32>
    %673 = arith.addf %671, %672 : vector<8x128xf32>
    %cst_343 = arith.constant 5.000000e-01 : f32
    %674 = vector.broadcast %cst_343 : f32 to vector<8x128xf32>
    %675 = arith.mulf %674, %673 : vector<8x128xf32>
    %676 = vector.extract_strided_slice %662 {offsets = [0, 128], sizes = [8, 128], strides = [1, 1]} : vector<8x384xf32> to vector<8x128xf32>
    %677 = vector.extract_strided_slice %665 {offsets = [0, 128], sizes = [8, 128], strides = [1, 1]} : vector<8x384xf32> to vector<8x128xf32>
    %678 = arith.addf %676, %677 : vector<8x128xf32>
    %cst_344 = arith.constant 5.000000e-01 : f32
    %679 = vector.broadcast %cst_344 : f32 to vector<8x128xf32>
    %680 = arith.mulf %679, %678 : vector<8x128xf32>
    %681 = math.tanh %680 : vector<8x128xf32>
    %cst_345 = arith.constant 1.000000e+00 : f32
    %682 = vector.broadcast %cst_345 : f32 to vector<8x128xf32>
    %683 = arith.addf %681, %682 : vector<8x128xf32>
    %cst_346 = arith.constant 5.000000e-01 : f32
    %684 = vector.broadcast %cst_346 : f32 to vector<8x128xf32>
    %685 = arith.mulf %684, %683 : vector<8x128xf32>
    %686 = vector.extract_strided_slice %662 {offsets = [0, 256], sizes = [8, 128], strides = [1, 1]} : vector<8x384xf32> to vector<8x128xf32>
    %687 = vector.extract_strided_slice %665 {offsets = [0, 256], sizes = [8, 128], strides = [1, 1]} : vector<8x384xf32> to vector<8x128xf32>
    %688 = arith.addf %687, %579 : vector<8x128xf32>
    %689 = arith.mulf %675, %688 : vector<8x128xf32>
    %690 = arith.addf %686, %689 : vector<8x128xf32>
    %691 = math.tanh %690 : vector<8x128xf32>
    %cst_347 = arith.constant 1.000000e+00 : f32
    %692 = vector.broadcast %cst_347 : f32 to vector<8x128xf32>
    %693 = arith.subf %692, %685 : vector<8x128xf32>
    %694 = arith.mulf %693, %691 : vector<8x128xf32>
    %695 = arith.mulf %685, %656 : vector<8x128xf32>
    %696 = arith.addf %694, %695 : vector<8x128xf32>
    %697 = vector.extract_strided_slice %696 {offsets = [0, 0], sizes = [8, 64], strides = [1, 1]} : vector<8x128xf32> to vector<8x64xf32>
    %c0_348 = arith.constant 0 : index
    %c256 = arith.constant 256 : index
    %698 = vector.load %arg10[%c0_348, %c256] : memref<8x1024xf32, #tpu.memory_space<vmem>>, vector<8x64xf32>
    tpu.vector_store %arg10[%c0_348, %c256], %697 {strides = array<i32>} : memref<8x1024xf32, #tpu.memory_space<vmem>>, vector<8x64xf32>,
    %699 = vector.extract_strided_slice %696 {offsets = [0, 64], sizes = [8, 64], strides = [1, 1]} : vector<8x128xf32> to vector<8x64xf32>
    %c0_349 = arith.constant 0 : index
    %c704 = arith.constant 704 : index
    %700 = vector.load %arg10[%c0_349, %c704] : memref<8x1024xf32, #tpu.memory_space<vmem>>, vector<8x64xf32>
    tpu.vector_store %arg10[%c0_349, %c704], %699 {strides = array<i32>} : memref<8x1024xf32, #tpu.memory_space<vmem>>, vector<8x64xf32>,
    %c3_350 = arith.constant 3 : index
    %c0_351 = arith.constant 0 : index
    %c0_352 = arith.constant 0 : index
    %701 = vector.load %arg11[%c3_350, %c0_351, %c0_352] : memref<8x8x384xf32, #tpu.memory_space<vmem>>, vector<1x8x384xf32>
    %702 = vector.shape_cast %701 : vector<1x8x384xf32> to vector<8x384xf32>
    %703 = arith.truncf %696 : vector<8x128xf32> to vector<8x128xbf16>
    %c0_353 = arith.constant 0 : index
    %c0_354 = arith.constant 0 : index
    %704 = vector.load %arg8[%c0_353, %c0_354] : memref<128x384xbf16, #tpu.memory_space<vmem>>, vector<128x384xbf16>
    %cst_355 = arith.constant dense<0.000000e+00> : vector<8x384xf32>
    %705 = tpu.matmul %703, %704, %cst_355 {dimension_numbers = #tpu.dot_dimension_numbers<[1], [0], [0], [1], [0, 0, 1, 1], [], []>} : vector<8x128xbf16>, vector<128x384xbf16>, vector<8x384xf32> -> vector<8x384xf32>
    %706 = vector.extract_strided_slice %702 {offsets = [0, 0], sizes = [8, 128], strides = [1, 1]} : vector<8x384xf32> to vector<8x128xf32>
    %707 = vector.extract_strided_slice %705 {offsets = [0, 0], sizes = [8, 128], strides = [1, 1]} : vector<8x384xf32> to vector<8x128xf32>
    %708 = arith.addf %706, %707 : vector<8x128xf32>
    %cst_356 = arith.constant 5.000000e-01 : f32
    %709 = vector.broadcast %cst_356 : f32 to vector<8x128xf32>
    %710 = arith.mulf %709, %708 : vector<8x128xf32>
    %711 = math.tanh %710 : vector<8x128xf32>
    %cst_357 = arith.constant 1.000000e+00 : f32
    %712 = vector.broadcast %cst_357 : f32 to vector<8x128xf32>
    %713 = arith.addf %711, %712 : vector<8x128xf32>
    %cst_358 = arith.constant 5.000000e-01 : f32
    %714 = vector.broadcast %cst_358 : f32 to vector<8x128xf32>
    %715 = arith.mulf %714, %713 : vector<8x128xf32>
    %716 = vector.extract_strided_slice %702 {offsets = [0, 128], sizes = [8, 128], strides = [1, 1]} : vector<8x384xf32> to vector<8x128xf32>
    %717 = vector.extract_strided_slice %705 {offsets = [0, 128], sizes = [8, 128], strides = [1, 1]} : vector<8x384xf32> to vector<8x128xf32>
    %718 = arith.addf %716, %717 : vector<8x128xf32>
    %cst_359 = arith.constant 5.000000e-01 : f32
    %719 = vector.broadcast %cst_359 : f32 to vector<8x128xf32>
    %720 = arith.mulf %719, %718 : vector<8x128xf32>
    %721 = math.tanh %720 : vector<8x128xf32>
    %cst_360 = arith.constant 1.000000e+00 : f32
    %722 = vector.broadcast %cst_360 : f32 to vector<8x128xf32>
    %723 = arith.addf %721, %722 : vector<8x128xf32>
    %cst_361 = arith.constant 5.000000e-01 : f32
    %724 = vector.broadcast %cst_361 : f32 to vector<8x128xf32>
    %725 = arith.mulf %724, %723 : vector<8x128xf32>
    %726 = vector.extract_strided_slice %702 {offsets = [0, 256], sizes = [8, 128], strides = [1, 1]} : vector<8x384xf32> to vector<8x128xf32>
    %727 = vector.extract_strided_slice %705 {offsets = [0, 256], sizes = [8, 128], strides = [1, 1]} : vector<8x384xf32> to vector<8x128xf32>
    %728 = arith.addf %727, %579 : vector<8x128xf32>
    %729 = arith.mulf %715, %728 : vector<8x128xf32>
    %730 = arith.addf %726, %729 : vector<8x128xf32>
    %731 = math.tanh %730 : vector<8x128xf32>
    %cst_362 = arith.constant 1.000000e+00 : f32
    %732 = vector.broadcast %cst_362 : f32 to vector<8x128xf32>
    %733 = arith.subf %732, %725 : vector<8x128xf32>
    %734 = arith.mulf %733, %731 : vector<8x128xf32>
    %735 = arith.mulf %725, %696 : vector<8x128xf32>
    %736 = arith.addf %734, %735 : vector<8x128xf32>
    %737 = vector.extract_strided_slice %736 {offsets = [0, 0], sizes = [8, 64], strides = [1, 1]} : vector<8x128xf32> to vector<8x64xf32>
    %c0_363 = arith.constant 0 : index
    %c384 = arith.constant 384 : index
    %738 = vector.load %arg10[%c0_363, %c384] : memref<8x1024xf32, #tpu.memory_space<vmem>>, vector<8x64xf32>
    tpu.vector_store %arg10[%c0_363, %c384], %737 {strides = array<i32>} : memref<8x1024xf32, #tpu.memory_space<vmem>>, vector<8x64xf32>,
    %739 = vector.extract_strided_slice %736 {offsets = [0, 64], sizes = [8, 64], strides = [1, 1]} : vector<8x128xf32> to vector<8x64xf32>
    %c0_364 = arith.constant 0 : index
    %c576 = arith.constant 576 : index
    %740 = vector.load %arg10[%c0_364, %c576] : memref<8x1024xf32, #tpu.memory_space<vmem>>, vector<8x64xf32>
    tpu.vector_store %arg10[%c0_364, %c576], %739 {strides = array<i32>} : memref<8x1024xf32, #tpu.memory_space<vmem>>, vector<8x64xf32>,
    %c4_365 = arith.constant 4 : index
    %c0_366 = arith.constant 0 : index
    %c0_367 = arith.constant 0 : index
    %741 = vector.load %arg11[%c4_365, %c0_366, %c0_367] : memref<8x8x384xf32, #tpu.memory_space<vmem>>, vector<1x8x384xf32>
    %742 = vector.shape_cast %741 : vector<1x8x384xf32> to vector<8x384xf32>
    %743 = arith.truncf %736 : vector<8x128xf32> to vector<8x128xbf16>
    %c0_368 = arith.constant 0 : index
    %c0_369 = arith.constant 0 : index
    %744 = vector.load %arg8[%c0_368, %c0_369] : memref<128x384xbf16, #tpu.memory_space<vmem>>, vector<128x384xbf16>
    %cst_370 = arith.constant dense<0.000000e+00> : vector<8x384xf32>
    %745 = tpu.matmul %743, %744, %cst_370 {dimension_numbers = #tpu.dot_dimension_numbers<[1], [0], [0], [1], [0, 0, 1, 1], [], []>} : vector<8x128xbf16>, vector<128x384xbf16>, vector<8x384xf32> -> vector<8x384xf32>
    %746 = vector.extract_strided_slice %742 {offsets = [0, 0], sizes = [8, 128], strides = [1, 1]} : vector<8x384xf32> to vector<8x128xf32>
    %747 = vector.extract_strided_slice %745 {offsets = [0, 0], sizes = [8, 128], strides = [1, 1]} : vector<8x384xf32> to vector<8x128xf32>
    %748 = arith.addf %746, %747 : vector<8x128xf32>
    %cst_371 = arith.constant 5.000000e-01 : f32
    %749 = vector.broadcast %cst_371 : f32 to vector<8x128xf32>
    %750 = arith.mulf %749, %748 : vector<8x128xf32>
    %751 = math.tanh %750 : vector<8x128xf32>
    %cst_372 = arith.constant 1.000000e+00 : f32
    %752 = vector.broadcast %cst_372 : f32 to vector<8x128xf32>
    %753 = arith.addf %751, %752 : vector<8x128xf32>
    %cst_373 = arith.constant 5.000000e-01 : f32
    %754 = vector.broadcast %cst_373 : f32 to vector<8x128xf32>
    %755 = arith.mulf %754, %753 : vector<8x128xf32>
    %756 = vector.extract_strided_slice %742 {offsets = [0, 128], sizes = [8, 128], strides = [1, 1]} : vector<8x384xf32> to vector<8x128xf32>
    %757 = vector.extract_strided_slice %745 {offsets = [0, 128], sizes = [8, 128], strides = [1, 1]} : vector<8x384xf32> to vector<8x128xf32>
    %758 = arith.addf %756, %757 : vector<8x128xf32>
    %cst_374 = arith.constant 5.000000e-01 : f32
    %759 = vector.broadcast %cst_374 : f32 to vector<8x128xf32>
    %760 = arith.mulf %759, %758 : vector<8x128xf32>
    %761 = math.tanh %760 : vector<8x128xf32>
    %cst_375 = arith.constant 1.000000e+00 : f32
    %762 = vector.broadcast %cst_375 : f32 to vector<8x128xf32>
    %763 = arith.addf %761, %762 : vector<8x128xf32>
    %cst_376 = arith.constant 5.000000e-01 : f32
    %764 = vector.broadcast %cst_376 : f32 to vector<8x128xf32>
    %765 = arith.mulf %764, %763 : vector<8x128xf32>
    %766 = vector.extract_strided_slice %742 {offsets = [0, 256], sizes = [8, 128], strides = [1, 1]} : vector<8x384xf32> to vector<8x128xf32>
    %767 = vector.extract_strided_slice %745 {offsets = [0, 256], sizes = [8, 128], strides = [1, 1]} : vector<8x384xf32> to vector<8x128xf32>
    %768 = arith.addf %767, %579 : vector<8x128xf32>
    %769 = arith.mulf %755, %768 : vector<8x128xf32>
    %770 = arith.addf %766, %769 : vector<8x128xf32>
    %771 = math.tanh %770 : vector<8x128xf32>
    %cst_377 = arith.constant 1.000000e+00 : f32
    %772 = vector.broadcast %cst_377 : f32 to vector<8x128xf32>
    %773 = arith.subf %772, %765 : vector<8x128xf32>
    %774 = arith.mulf %773, %771 : vector<8x128xf32>
    %775 = arith.mulf %765, %736 : vector<8x128xf32>
    %776 = arith.addf %774, %775 : vector<8x128xf32>
    %777 = vector.extract_strided_slice %776 {offsets = [0, 0], sizes = [8, 64], strides = [1, 1]} : vector<8x128xf32> to vector<8x64xf32>
    %c0_378 = arith.constant 0 : index
    %c512 = arith.constant 512 : index
    %778 = vector.load %arg10[%c0_378, %c512] : memref<8x1024xf32, #tpu.memory_space<vmem>>, vector<8x64xf32>
    tpu.vector_store %arg10[%c0_378, %c512], %777 {strides = array<i32>} : memref<8x1024xf32, #tpu.memory_space<vmem>>, vector<8x64xf32>,
    %779 = vector.extract_strided_slice %776 {offsets = [0, 64], sizes = [8, 64], strides = [1, 1]} : vector<8x128xf32> to vector<8x64xf32>
    %c0_379 = arith.constant 0 : index
    %c448 = arith.constant 448 : index
    %780 = vector.load %arg10[%c0_379, %c448] : memref<8x1024xf32, #tpu.memory_space<vmem>>, vector<8x64xf32>
    tpu.vector_store %arg10[%c0_379, %c448], %779 {strides = array<i32>} : memref<8x1024xf32, #tpu.memory_space<vmem>>, vector<8x64xf32>,
    %c5_380 = arith.constant 5 : index
    %c0_381 = arith.constant 0 : index
    %c0_382 = arith.constant 0 : index
    %781 = vector.load %arg11[%c5_380, %c0_381, %c0_382] : memref<8x8x384xf32, #tpu.memory_space<vmem>>, vector<1x8x384xf32>
    %782 = vector.shape_cast %781 : vector<1x8x384xf32> to vector<8x384xf32>
    %783 = arith.truncf %776 : vector<8x128xf32> to vector<8x128xbf16>
    %c0_383 = arith.constant 0 : index
    %c0_384 = arith.constant 0 : index
    %784 = vector.load %arg8[%c0_383, %c0_384] : memref<128x384xbf16, #tpu.memory_space<vmem>>, vector<128x384xbf16>
    %cst_385 = arith.constant dense<0.000000e+00> : vector<8x384xf32>
    %785 = tpu.matmul %783, %784, %cst_385 {dimension_numbers = #tpu.dot_dimension_numbers<[1], [0], [0], [1], [0, 0, 1, 1], [], []>} : vector<8x128xbf16>, vector<128x384xbf16>, vector<8x384xf32> -> vector<8x384xf32>
    %786 = vector.extract_strided_slice %782 {offsets = [0, 0], sizes = [8, 128], strides = [1, 1]} : vector<8x384xf32> to vector<8x128xf32>
    %787 = vector.extract_strided_slice %785 {offsets = [0, 0], sizes = [8, 128], strides = [1, 1]} : vector<8x384xf32> to vector<8x128xf32>
    %788 = arith.addf %786, %787 : vector<8x128xf32>
    %cst_386 = arith.constant 5.000000e-01 : f32
    %789 = vector.broadcast %cst_386 : f32 to vector<8x128xf32>
    %790 = arith.mulf %789, %788 : vector<8x128xf32>
    %791 = math.tanh %790 : vector<8x128xf32>
    %cst_387 = arith.constant 1.000000e+00 : f32
    %792 = vector.broadcast %cst_387 : f32 to vector<8x128xf32>
    %793 = arith.addf %791, %792 : vector<8x128xf32>
    %cst_388 = arith.constant 5.000000e-01 : f32
    %794 = vector.broadcast %cst_388 : f32 to vector<8x128xf32>
    %795 = arith.mulf %794, %793 : vector<8x128xf32>
    %796 = vector.extract_strided_slice %782 {offsets = [0, 128], sizes = [8, 128], strides = [1, 1]} : vector<8x384xf32> to vector<8x128xf32>
    %797 = vector.extract_strided_slice %785 {offsets = [0, 128], sizes = [8, 128], strides = [1, 1]} : vector<8x384xf32> to vector<8x128xf32>
    %798 = arith.addf %796, %797 : vector<8x128xf32>
    %cst_389 = arith.constant 5.000000e-01 : f32
    %799 = vector.broadcast %cst_389 : f32 to vector<8x128xf32>
    %800 = arith.mulf %799, %798 : vector<8x128xf32>
    %801 = math.tanh %800 : vector<8x128xf32>
    %cst_390 = arith.constant 1.000000e+00 : f32
    %802 = vector.broadcast %cst_390 : f32 to vector<8x128xf32>
    %803 = arith.addf %801, %802 : vector<8x128xf32>
    %cst_391 = arith.constant 5.000000e-01 : f32
    %804 = vector.broadcast %cst_391 : f32 to vector<8x128xf32>
    %805 = arith.mulf %804, %803 : vector<8x128xf32>
    %806 = vector.extract_strided_slice %782 {offsets = [0, 256], sizes = [8, 128], strides = [1, 1]} : vector<8x384xf32> to vector<8x128xf32>
    %807 = vector.extract_strided_slice %785 {offsets = [0, 256], sizes = [8, 128], strides = [1, 1]} : vector<8x384xf32> to vector<8x128xf32>
    %808 = arith.addf %807, %579 : vector<8x128xf32>
    %809 = arith.mulf %795, %808 : vector<8x128xf32>
    %810 = arith.addf %806, %809 : vector<8x128xf32>
    %811 = math.tanh %810 : vector<8x128xf32>
    %cst_392 = arith.constant 1.000000e+00 : f32
    %812 = vector.broadcast %cst_392 : f32 to vector<8x128xf32>
    %813 = arith.subf %812, %805 : vector<8x128xf32>
    %814 = arith.mulf %813, %811 : vector<8x128xf32>
    %815 = arith.mulf %805, %776 : vector<8x128xf32>
    %816 = arith.addf %814, %815 : vector<8x128xf32>
    %817 = vector.extract_strided_slice %816 {offsets = [0, 0], sizes = [8, 64], strides = [1, 1]} : vector<8x128xf32> to vector<8x64xf32>
    %c0_393 = arith.constant 0 : index
    %c640 = arith.constant 640 : index
    %818 = vector.load %arg10[%c0_393, %c640] : memref<8x1024xf32, #tpu.memory_space<vmem>>, vector<8x64xf32>
    tpu.vector_store %arg10[%c0_393, %c640], %817 {strides = array<i32>} : memref<8x1024xf32, #tpu.memory_space<vmem>>, vector<8x64xf32>,
    %819 = vector.extract_strided_slice %816 {offsets = [0, 64], sizes = [8, 64], strides = [1, 1]} : vector<8x128xf32> to vector<8x64xf32>
    %c0_394 = arith.constant 0 : index
    %c320 = arith.constant 320 : index
    %820 = vector.load %arg10[%c0_394, %c320] : memref<8x1024xf32, #tpu.memory_space<vmem>>, vector<8x64xf32>
    tpu.vector_store %arg10[%c0_394, %c320], %819 {strides = array<i32>} : memref<8x1024xf32, #tpu.memory_space<vmem>>, vector<8x64xf32>,
    %c6_395 = arith.constant 6 : index
    %c0_396 = arith.constant 0 : index
    %c0_397 = arith.constant 0 : index
    %821 = vector.load %arg11[%c6_395, %c0_396, %c0_397] : memref<8x8x384xf32, #tpu.memory_space<vmem>>, vector<1x8x384xf32>
    %822 = vector.shape_cast %821 : vector<1x8x384xf32> to vector<8x384xf32>
    %823 = arith.truncf %816 : vector<8x128xf32> to vector<8x128xbf16>
    %c0_398 = arith.constant 0 : index
    %c0_399 = arith.constant 0 : index
    %824 = vector.load %arg8[%c0_398, %c0_399] : memref<128x384xbf16, #tpu.memory_space<vmem>>, vector<128x384xbf16>
    %cst_400 = arith.constant dense<0.000000e+00> : vector<8x384xf32>
    %825 = tpu.matmul %823, %824, %cst_400 {dimension_numbers = #tpu.dot_dimension_numbers<[1], [0], [0], [1], [0, 0, 1, 1], [], []>} : vector<8x128xbf16>, vector<128x384xbf16>, vector<8x384xf32> -> vector<8x384xf32>
    %826 = vector.extract_strided_slice %822 {offsets = [0, 0], sizes = [8, 128], strides = [1, 1]} : vector<8x384xf32> to vector<8x128xf32>
    %827 = vector.extract_strided_slice %825 {offsets = [0, 0], sizes = [8, 128], strides = [1, 1]} : vector<8x384xf32> to vector<8x128xf32>
    %828 = arith.addf %826, %827 : vector<8x128xf32>
    %cst_401 = arith.constant 5.000000e-01 : f32
    %829 = vector.broadcast %cst_401 : f32 to vector<8x128xf32>
    %830 = arith.mulf %829, %828 : vector<8x128xf32>
    %831 = math.tanh %830 : vector<8x128xf32>
    %cst_402 = arith.constant 1.000000e+00 : f32
    %832 = vector.broadcast %cst_402 : f32 to vector<8x128xf32>
    %833 = arith.addf %831, %832 : vector<8x128xf32>
    %cst_403 = arith.constant 5.000000e-01 : f32
    %834 = vector.broadcast %cst_403 : f32 to vector<8x128xf32>
    %835 = arith.mulf %834, %833 : vector<8x128xf32>
    %836 = vector.extract_strided_slice %822 {offsets = [0, 128], sizes = [8, 128], strides = [1, 1]} : vector<8x384xf32> to vector<8x128xf32>
    %837 = vector.extract_strided_slice %825 {offsets = [0, 128], sizes = [8, 128], strides = [1, 1]} : vector<8x384xf32> to vector<8x128xf32>
    %838 = arith.addf %836, %837 : vector<8x128xf32>
    %cst_404 = arith.constant 5.000000e-01 : f32
    %839 = vector.broadcast %cst_404 : f32 to vector<8x128xf32>
    %840 = arith.mulf %839, %838 : vector<8x128xf32>
    %841 = math.tanh %840 : vector<8x128xf32>
    %cst_405 = arith.constant 1.000000e+00 : f32
    %842 = vector.broadcast %cst_405 : f32 to vector<8x128xf32>
    %843 = arith.addf %841, %842 : vector<8x128xf32>
    %cst_406 = arith.constant 5.000000e-01 : f32
    %844 = vector.broadcast %cst_406 : f32 to vector<8x128xf32>
    %845 = arith.mulf %844, %843 : vector<8x128xf32>
    %846 = vector.extract_strided_slice %822 {offsets = [0, 256], sizes = [8, 128], strides = [1, 1]} : vector<8x384xf32> to vector<8x128xf32>
    %847 = vector.extract_strided_slice %825 {offsets = [0, 256], sizes = [8, 128], strides = [1, 1]} : vector<8x384xf32> to vector<8x128xf32>
    %848 = arith.addf %847, %579 : vector<8x128xf32>
    %849 = arith.mulf %835, %848 : vector<8x128xf32>
    %850 = arith.addf %846, %849 : vector<8x128xf32>
    %851 = math.tanh %850 : vector<8x128xf32>
    %cst_407 = arith.constant 1.000000e+00 : f32
    %852 = vector.broadcast %cst_407 : f32 to vector<8x128xf32>
    %853 = arith.subf %852, %845 : vector<8x128xf32>
    %854 = arith.mulf %853, %851 : vector<8x128xf32>
    %855 = arith.mulf %845, %816 : vector<8x128xf32>
    %856 = arith.addf %854, %855 : vector<8x128xf32>
    %857 = vector.extract_strided_slice %856 {offsets = [0, 0], sizes = [8, 64], strides = [1, 1]} : vector<8x128xf32> to vector<8x64xf32>
    %c0_408 = arith.constant 0 : index
    %c768 = arith.constant 768 : index
    %858 = vector.load %arg10[%c0_408, %c768] : memref<8x1024xf32, #tpu.memory_space<vmem>>, vector<8x64xf32>
    tpu.vector_store %arg10[%c0_408, %c768], %857 {strides = array<i32>} : memref<8x1024xf32, #tpu.memory_space<vmem>>, vector<8x64xf32>,
    %859 = vector.extract_strided_slice %856 {offsets = [0, 64], sizes = [8, 64], strides = [1, 1]} : vector<8x128xf32> to vector<8x64xf32>
    %c0_409 = arith.constant 0 : index
    %c192 = arith.constant 192 : index
    %860 = vector.load %arg10[%c0_409, %c192] : memref<8x1024xf32, #tpu.memory_space<vmem>>, vector<8x64xf32>
    tpu.vector_store %arg10[%c0_409, %c192], %859 {strides = array<i32>} : memref<8x1024xf32, #tpu.memory_space<vmem>>, vector<8x64xf32>,
    %c7_410 = arith.constant 7 : index
    %c0_411 = arith.constant 0 : index
    %c0_412 = arith.constant 0 : index
    %861 = vector.load %arg11[%c7_410, %c0_411, %c0_412] : memref<8x8x384xf32, #tpu.memory_space<vmem>>, vector<1x8x384xf32>
    %862 = vector.shape_cast %861 : vector<1x8x384xf32> to vector<8x384xf32>
    %863 = arith.truncf %856 : vector<8x128xf32> to vector<8x128xbf16>
    %c0_413 = arith.constant 0 : index
    %c0_414 = arith.constant 0 : index
    %864 = vector.load %arg8[%c0_413, %c0_414] : memref<128x384xbf16, #tpu.memory_space<vmem>>, vector<128x384xbf16>
    %cst_415 = arith.constant dense<0.000000e+00> : vector<8x384xf32>
    %865 = tpu.matmul %863, %864, %cst_415 {dimension_numbers = #tpu.dot_dimension_numbers<[1], [0], [0], [1], [0, 0, 1, 1], [], []>} : vector<8x128xbf16>, vector<128x384xbf16>, vector<8x384xf32> -> vector<8x384xf32>
    %866 = vector.extract_strided_slice %862 {offsets = [0, 0], sizes = [8, 128], strides = [1, 1]} : vector<8x384xf32> to vector<8x128xf32>
    %867 = vector.extract_strided_slice %865 {offsets = [0, 0], sizes = [8, 128], strides = [1, 1]} : vector<8x384xf32> to vector<8x128xf32>
    %868 = arith.addf %866, %867 : vector<8x128xf32>
    %cst_416 = arith.constant 5.000000e-01 : f32
    %869 = vector.broadcast %cst_416 : f32 to vector<8x128xf32>
    %870 = arith.mulf %869, %868 : vector<8x128xf32>
    %871 = math.tanh %870 : vector<8x128xf32>
    %cst_417 = arith.constant 1.000000e+00 : f32
    %872 = vector.broadcast %cst_417 : f32 to vector<8x128xf32>
    %873 = arith.addf %871, %872 : vector<8x128xf32>
    %cst_418 = arith.constant 5.000000e-01 : f32
    %874 = vector.broadcast %cst_418 : f32 to vector<8x128xf32>
    %875 = arith.mulf %874, %873 : vector<8x128xf32>
    %876 = vector.extract_strided_slice %862 {offsets = [0, 128], sizes = [8, 128], strides = [1, 1]} : vector<8x384xf32> to vector<8x128xf32>
    %877 = vector.extract_strided_slice %865 {offsets = [0, 128], sizes = [8, 128], strides = [1, 1]} : vector<8x384xf32> to vector<8x128xf32>
    %878 = arith.addf %876, %877 : vector<8x128xf32>
    %cst_419 = arith.constant 5.000000e-01 : f32
    %879 = vector.broadcast %cst_419 : f32 to vector<8x128xf32>
    %880 = arith.mulf %879, %878 : vector<8x128xf32>
    %881 = math.tanh %880 : vector<8x128xf32>
    %cst_420 = arith.constant 1.000000e+00 : f32
    %882 = vector.broadcast %cst_420 : f32 to vector<8x128xf32>
    %883 = arith.addf %881, %882 : vector<8x128xf32>
    %cst_421 = arith.constant 5.000000e-01 : f32
    %884 = vector.broadcast %cst_421 : f32 to vector<8x128xf32>
    %885 = arith.mulf %884, %883 : vector<8x128xf32>
    %886 = vector.extract_strided_slice %862 {offsets = [0, 256], sizes = [8, 128], strides = [1, 1]} : vector<8x384xf32> to vector<8x128xf32>
    %887 = vector.extract_strided_slice %865 {offsets = [0, 256], sizes = [8, 128], strides = [1, 1]} : vector<8x384xf32> to vector<8x128xf32>
    %888 = arith.addf %887, %579 : vector<8x128xf32>
    %889 = arith.mulf %875, %888 : vector<8x128xf32>
    %890 = arith.addf %886, %889 : vector<8x128xf32>
    %891 = math.tanh %890 : vector<8x128xf32>
    %cst_422 = arith.constant 1.000000e+00 : f32
    %892 = vector.broadcast %cst_422 : f32 to vector<8x128xf32>
    %893 = arith.subf %892, %885 : vector<8x128xf32>
    %894 = arith.mulf %893, %891 : vector<8x128xf32>
    %895 = arith.mulf %885, %856 : vector<8x128xf32>
    %896 = arith.addf %894, %895 : vector<8x128xf32>
    %897 = vector.extract_strided_slice %896 {offsets = [0, 0], sizes = [8, 64], strides = [1, 1]} : vector<8x128xf32> to vector<8x64xf32>
    %c0_423 = arith.constant 0 : index
    %c896 = arith.constant 896 : index
    %898 = vector.load %arg10[%c0_423, %c896] : memref<8x1024xf32, #tpu.memory_space<vmem>>, vector<8x64xf32>
    tpu.vector_store %arg10[%c0_423, %c896], %897 {strides = array<i32>} : memref<8x1024xf32, #tpu.memory_space<vmem>>, vector<8x64xf32>,
    %899 = vector.extract_strided_slice %896 {offsets = [0, 64], sizes = [8, 64], strides = [1, 1]} : vector<8x128xf32> to vector<8x64xf32>
    %c0_424 = arith.constant 0 : index
    %c64 = arith.constant 64 : index
    %900 = vector.load %arg10[%c0_424, %c64] : memref<8x1024xf32, #tpu.memory_space<vmem>>, vector<8x64xf32>
    tpu.vector_store %arg10[%c0_424, %c64], %899 {strides = array<i32>} : memref<8x1024xf32, #tpu.memory_space<vmem>>, vector<8x64xf32>,
    return
  }
  func.func @transform_0(%arg0: i32) -> (i32, i32) {
    %c0_i32 = arith.constant 0 : i32
    %c0_i32_0 = arith.constant 0 : i32
    return %arg0, %c0_i32 : i32, i32
  }
  func.func @transform_1(%arg0: i32) -> (i32, i32) {
    %c0_i32 = arith.constant 0 : i32
    %c0_i32_0 = arith.constant 0 : i32
    %c0_i32_1 = arith.constant 0 : i32
    return %c0_i32, %c0_i32_0 : i32, i32
  }
  func.func @transform_2(%arg0: i32) -> (i32, i32) {
    %c0_i32 = arith.constant 0 : i32
    %c0_i32_0 = arith.constant 0 : i32
    %c0_i32_1 = arith.constant 0 : i32
    return %c0_i32, %c0_i32_0 : i32, i32
  }
  func.func @transform_3(%arg0: i32) -> (i32, i32) {
    %c0_i32 = arith.constant 0 : i32
    %c0_i32_0 = arith.constant 0 : i32
    %c0_i32_1 = arith.constant 0 : i32
    return %c0_i32, %c0_i32_0 : i32, i32
  }
  func.func @transform_4(%arg0: i32) -> (i32, i32) {
    %c0_i32 = arith.constant 0 : i32
    %c0_i32_0 = arith.constant 0 : i32
    %c0_i32_1 = arith.constant 0 : i32
    return %c0_i32, %c0_i32_0 : i32, i32
  }
  func.func @transform_5(%arg0: i32) -> (i32, i32) {
    %c0_i32 = arith.constant 0 : i32
    %c0_i32_0 = arith.constant 0 : i32
    %c0_i32_1 = arith.constant 0 : i32
    return %c0_i32, %c0_i32_0 : i32, i32
  }
  func.func @transform_6(%arg0: i32) -> (i32, i32) {
    %c0_i32 = arith.constant 0 : i32
    %c0_i32_0 = arith.constant 0 : i32
    %c0_i32_1 = arith.constant 0 : i32
    return %c0_i32, %c0_i32_0 : i32, i32
  }
  func.func @transform_7(%arg0: i32) -> (i32, i32) {
    %c0_i32 = arith.constant 0 : i32
    %c0_i32_0 = arith.constant 0 : i32
    %c0_i32_1 = arith.constant 0 : i32
    return %c0_i32, %c0_i32_0 : i32, i32
  }
  func.func @transform_8(%arg0: i32) -> (i32, i32) {
    %c0_i32 = arith.constant 0 : i32
    %c0_i32_0 = arith.constant 0 : i32
    %c0_i32_1 = arith.constant 0 : i32
    return %c0_i32, %c0_i32_0 : i32, i32
  }
  func.func @transform_9(%arg0: i32) -> (i32, i32) {
    %c0_i32 = arith.constant 0 : i32
    %c0_i32_0 = arith.constant 0 : i32
    return %arg0, %c0_i32 : i32, i32
  }
}

</mosaic_0001>

<bundles_post_ra>
// kernel: tpu_custom_call.1
= control target key start
LH: loop header
LB: loop body
LE: loop exit
PB: predicated region body
PF: predicated region fallthrough
CT: control target
= control target key end

     0   :  { %14 = vsyncpa [#allocation5], 0  ;;  %s14492_s0 = inlined_call_operand.hbm [shape: s32[8,8], index: 0, kind: input, shape index: {}]   ;;  %s14493_s1 = inlined_call_operand.hbm [shape: bf16[64,384], index: 1, kind: input, shape index: {}]   ;;  %s14494_s2 = inlined_call_operand.hbm [shape: bf16[128,384], index: 2, kind: input, shape index: {}]   ;;  %s14495_s3 = inlined_call_operand.vmem [shape: f32[1,128], index: 3, kind: input, shape index: {}]   ;;  %s14496_s4 = inlined_call_operand.hbm [shape: bf16[128,384], index: 4, kind: input, shape index: {}]   ;;  %s14497_s5 = inlined_call_operand.hbm [shape: bf16[128,384], index: 5, kind: input, shape index: {}]   ;;  %s14498_s6 = inlined_call_operand.vmem [shape: f32[1,384], index: 6, kind: input, shape index: {}]   ;;  %s14499_s7 = inlined_call_operand.hbm [shape: bf16[128,384], index: 7, kind: input, shape index: {}]   ;;  %s14500_s8 = inlined_call_operand.vmem [shape: f32[1,128], index: 8, kind: input, shape index: {}]   ;;  %s14501_s9 = inlined_call_operand.hbm [shape: f32[8,1024], index: 9, kind: output, shape index: {}]  }
   0x1   :  { %15 = vsyncpa [#allocation8], 0 }
   0x2   :  { %16 = vsyncpa [#allocation11], 0 }
   0x3   :  { %17 = vsyncpa [#allocation14], 0 }
   0x4   :  { %18 = vsyncpa [#allocation6], 0  ;;  %s12567_s30 = smov [#allocation7]  }
   0x5   :  { %s34_s10 = sshll.u32 %s12567_s30, 4  ;;  %s35_s10 = int_to_ptr.vmem [resolvable:$true] %s34_s10 }
   0x6   :  { %s12425_s11 = scalar_lea.vmem %s35_s10, 1536  ;;  %p12430_p1 = scmp.lt.s32.totalorder %s35_s10, %s35_s10 }
   0x7   :  { %p12426_p0 = scmp.ne.s32.totalorder %s35_s10, %s12425_s11  ;;  %p12431_p2 = scmp.lt.s32.totalorder %s12425_s11, %s12425_s11 }
   0x9   :  { %p12432_p3 = por %p12431_p2, %p12430_p1 }
   0xb   :  { %p12433_p4 = pnand %p12432_p3, %p12426_p0 }
   0xd   :  { %12436 = shalt.err (!%p12433_p4)
}
   0xe   :  { %s12568_s12 = smov 192   ;;  %s12569_s13 = smov 12  }
   0xf   :  { %40 = dma.hbm_to_vmem [thread:$0]  %s14493_s1, 1536, %s35_s10, [#allocation8], %s12568_s12, %s12568_s12, %s12569_s13  }
  0x10   :  { %s12570_s16 = smov [#allocation10]   ;;  %s12571_s18 = smov [#allocation4]  }
  0x11   :  { %s60_s17 = sshll.u32 %s12570_s16, 4  ;;  %s25_s19 = sshll.u32 %s12571_s18, 4  ;;  %s61_s17 = int_to_ptr.vmem [resolvable:$true] %s60_s17  ;;  %s26_s19 = int_to_ptr.vmem [resolvable:$true] %s25_s19 }
  0x12   :  { %s12445_s20 = scalar_lea.vmem %s61_s17, 3072  ;;  %p12450_p6 = scmp.lt.s32.totalorder %s61_s17, %s61_s17 }
  0x13   :  { %p12446_p5 = scmp.ne.s32.totalorder %s61_s17, %s12445_s20  ;;  %p12451_p7 = scmp.lt.s32.totalorder %s12445_s20, %s12445_s20 }
  0x15   :  { %p12452_p8 = por %p12451_p7, %p12450_p6 }
  0x17   :  { %p12453_p9 = pnand %p12452_p8, %p12446_p5 }
  0x19   :  { %12456 = shalt.err (!%p12453_p9)
}
  0x1a   :  { %66 = dma.hbm_to_vmem [thread:$0]  %s14496_s4, 3072, %s61_s17, [#allocation11], %s12568_s12, %s12568_s12, %s12569_s13  }
  0x1b   :  { %s12465_s1 = scalar_lea.vmem %s26_s19, 128  ;;  %p12470_p11 = scmp.lt.s32.totalorder %s26_s19, %s26_s19 }
  0x1c   :  { %p12466_p10 = scmp.ne.s32.totalorder %s26_s19, %s12465_s1  ;;  %p12471_p12 = scmp.lt.s32.totalorder %s12465_s1, %s12465_s1 }
  0x1e   :  { %p12472_p13 = por %p12471_p12, %p12470_p11 }
  0x20   :  { %p12473_p0 = pnand %p12472_p13, %p12466_p10 }
  0x22   :  { %12476 = shalt.err (!%p12473_p0)
}
  0x23   :  { %28 = dma.hbm_to_vmem [thread:$0]  %s14492_s0, 128, %s26_s19, [#allocation5]  }
  0x24   :  { %s12572_s25 = smov [#allocation9]   ;;  %s12573_s27 = smov [#allocation12]  }
  0x25   :  { %s46_s26 = sshll.u32 %s12572_s25, 4  ;;  %s72_s28 = sshll.u32 %s12573_s27, 4  ;;  %s47_s26 = int_to_ptr.vmem [resolvable:$true] %s46_s26  ;;  %s73_s28 = int_to_ptr.vmem [resolvable:$true] %s72_s28 }
  0x26   :  { %s12485_s29 = scalar_lea.vmem %s47_s26, 3072  ;;  %p12490_p2 = scmp.lt.s32.totalorder %s47_s26, %s47_s26 }
  0x27   :  { %p12486_p1 = scmp.ne.s32.totalorder %s47_s26, %s12485_s29  ;;  %p12491_p3 = scmp.lt.s32.totalorder %s12485_s29, %s12485_s29 }
  0x29   :  { %p12492_p4 = por %p12491_p3, %p12490_p2 }
  0x2b   :  { %p12493_p5 = pnand %p12492_p4, %p12486_p1 }
  0x2d   :  { %12496 = shalt.err (!%p12493_p5)
}
  0x2e   :  { %52 = dma.hbm_to_vmem [thread:$0]  %s14494_s2, 3072, %s47_s26, [#allocation8], %s12568_s12, %s12568_s12, %s12569_s13  }
  0x2f   :  { %s12505_s0 = scalar_lea.vmem %s73_s28, 3072  ;;  %p12510_p7 = scmp.lt.s32.totalorder %s73_s28, %s73_s28 }
  0x30   :  { %p12506_p6 = scmp.ne.s32.totalorder %s73_s28, %s12505_s0  ;;  %p12511_p8 = scmp.lt.s32.totalorder %s12505_s0, %s12505_s0 }
  0x32   :  { %p12512_p9 = por %p12511_p8, %p12510_p7 }
  0x34   :  { %p12513_p10 = pnand %p12512_p9, %p12506_p6 }
  0x36   :  { %12516 = shalt.err (!%p12513_p10)
}
  0x37   :  { %78 = dma.hbm_to_vmem [thread:$0]  %s14497_s5, 3072, %s73_s28, [#allocation11], %s12568_s12, %s12568_s12, %s12569_s13  }
  0x38   :  { %s12574_s14 = smov [#allocation13]  }
  0x39   :  { %s86_s15 = sshll.u32 %s12574_s14, 4  ;;  %s87_s15 = int_to_ptr.vmem [resolvable:$true] %s86_s15 }
  0x3a   :  { %s12525_s16 = scalar_lea.vmem %s87_s15, 3072  ;;  %p12530_p12 = scmp.lt.s32.totalorder %s87_s15, %s87_s15 }
  0x3b   :  { %p12526_p11 = scmp.ne.s32.totalorder %s87_s15, %s12525_s16  ;;  %p12531_p13 = scmp.lt.s32.totalorder %s12525_s16, %s12525_s16 }
  0x3d   :  { %p12532_p0 = por %p12531_p13, %p12530_p12 }
  0x3f   :  { %p12533_p1 = pnand %p12532_p0, %p12526_p11 }
  0x41   :  { %12536 = shalt.err (!%p12533_p1)
}
  0x42   :  { %92 = dma.hbm_to_vmem [thread:$0]  %s14499_s7, 3072, %s87_s15, [#allocation14], %s12568_s12, %s12568_s12, %s12569_s13  }
  0x43   :  { %12557 = dma.done.wait [#allocation5], 128  }
  0x44   :  { %12558 = vsyncadd [#allocation5], 4294967168 }
  0x45   :  { %12559 = dma.done.wait [#allocation8], 4608  }
  0x46   :  { %12560 = vsyncadd [#allocation8], 4294962688 }
  0x47   :  { %12561 = dma.done.wait [#allocation11], 6144  }
  0x48   :  { %12562 = vsyncadd [#allocation11], 4294961152 }
  0x49   :  { %12563 = dma.done.wait [#allocation14], 3072  }
  0x4a   :  { %12564 = vsyncadd [#allocation14], 4294964224  ;;  %v12575_v0 = vmov 0   ;;  %v12576_v1 = vmov 1   ;;  %v12577_v2 = vmov 0.0   ;;  %v12673_v3 = vld [vmem:[#allocation4] sm:$0xff]  ;;  %v115_v23 = vlaneseq }
  0x4b   :  { %11754 = vset.pattern.permute.xlu0 %v12575_v0  ;;  %11756 = vset.pattern.permute.xlu1 %v12576_v1  ;;  %v12677_v4 = vadd.s32 19, %v12673_v3  ;;  %v12680_v5 = vld [vmem:[#allocation7 + $0x4c] ss:$12 sps:$4 sm:$0xff]   ;;  %v12682_v6 = vld [vmem:[#allocation7 + $0x48] ss:$12 sps:$4 sm:$0xff]   ;;  %v12578_v11 = vmov 7  }
  0x4c   :  { %246 = vmatprep.mubr.bf16.mxu0 %v12575_v0  ;;  %10999 = vmatprep.subr.bf16.mxu1 %v12577_v2  ;;  %v11774_v7 = vld [vmem:[#allocation7 + $0x50] ss:$12 sps:$4 sm:$0xff]   ;;  %v12685_v8 = vld [vmem:[#allocation7 + $0x34] ss:$12 sps:$4 sm:$0xff]   ;;  %v11778_v10 = vld [vmem:[#allocation7 + $0x38] ss:$12 sps:$4 sm:$0xff]  }
  0x4d   :  { %118 = vperm.xlu0 %11754, %v12673_v3   ;;  %299 = vperm.xlu1 %11756, %v12673_v3   ;;  %v12687_v9 = vld [vmem:[#allocation7 + $0x30] ss:$12 sps:$4 sm:$0xff]   ;;  %v12579_v12 = vmov 6   ;;  %v12697_v14 = vld [vmem:[#allocation7 + $0x18] ss:$12 sps:$4 sm:$0xff]   ;;  %v12580_v17 = vmov 2  }
  0x4e   :  { %222 = vmatprep.subr.bf16.mxu0 %v12680_v5  ;;  %11000 = vmatpush3.bf16.msra.mxu1 %v11774_v7  ;;  %v12690_v13 = vld [vmem:[#allocation7 + $0x1c] ss:$12 sps:$4 sm:$0xff]   ;;  %v11782_v15 = vld [vmem:[#allocation7 + $0x20] ss:$12 sps:$4 sm:$0xff]   ;;  %v12701_v16 = vld [vmem:[#allocation7 + $0x4] ss:$12 sps:$4 sm:$0xff]  }
  0x4f   :  { %223 = vmatpush1.bf16.msra.mxu0 %v12682_v6  ;;  %11001 = vmatprep.subr.bf16.mxu1 %v12577_v2  ;;  %v12581_v18 = vmov 5   ;;  %v12705_v19 = vld [vmem:[#allocation7] ss:$12 sps:$4 sm:$0xff]   ;;  %v11786_v20 = vld [vmem:[#allocation7 + $0x8] ss:$12 sps:$4 sm:$0xff]   ;;  %vm12582_vm0 = vmmov 0  }
  0x50   :  { %224 = vmatprep.subr.bf16.mxu0 %v12685_v8  ;;  %11007 = vmatprep.mubr.msk.bf16.mxu1 %vm12582_vm0, %v12577_v2  ;;  %v12583_v21 = vmov 3   ;;  %v12584_v22 = vmov 4   ;;  %v12729_v24 = vand.u32 127, %v115_v23  ;;  %vm210_vm4 = vcmask 523264   ;;  %v11787_v29 = vld [vmem:[#allocation7 + $0x50] ss:$12 sps:$4 sm:$0xff]  }
  0x51   :  { %11755 = vset.pattern.permute.xlu0 %v12578_v11  ;;  %11757 = vset.pattern.permute.xlu1 %v12579_v12  ;;  %v11788_v32 = vld [vmem:[#allocation7 + $0x38] ss:$12 sps:$4 sm:$0xff]   ;;  %v11789_v33 = vld [vmem:[#allocation7 + $0x20] ss:$12 sps:$4 sm:$0xff]   ;;  %v11790_v34 = vld [vmem:[#allocation7 + $0x8] ss:$12 sps:$4 sm:$0xff]  }
  0x52   :  { %123 = vperm.xlu0 %11755, %v12677_v4   ;;  %303 = vperm.xlu1 %11757, %v12677_v4   ;;  %v11791_v36 = vld [vmem:[#allocation7 + $0x50] ss:$12 sps:$4 sm:$0xff]   ;;  %v11792_v40 = vld [vmem:[#allocation7 + $0x38] ss:$12 sps:$4 sm:$0xff]   ;;  %v11793_v41 = vld [vmem:[#allocation7 + $0x20] ss:$12 sps:$4 sm:$0xff]  }
  0x53   :  { %225 = vmatpush1.bf16.msra.mxu0 %v12687_v9  ;;  %11002 = vmatpush3.bf16.msra.mxu1 %v11778_v10  ;;  %v11794_v43 = vld [vmem:[#allocation7 + $0x8] ss:$12 sps:$4 sm:$0xff]   ;;  %v11795_v46 = vld [vmem:[#allocation7 + $0x50] ss:$12 sps:$4 sm:$0xff]   ;;  %v12774_v48 = vld [vmem:[#allocation7 + $0x4c] ss:$12 sps:$4 sm:$0xff]  }
  0x54   :  { %226 = vmatprep.subr.bf16.mxu0 %v12690_v13  ;;  %11003 = vmatprep.subr.bf16.mxu1 %v12577_v2  ;;  %v11796_v49 = vld [vmem:[#allocation7 + $0x38] ss:$12 sps:$4 sm:$0xff]   ;;  %v12780_v50 = vld [vmem:[#allocation7 + $0x48] ss:$12 sps:$4 sm:$0xff]   ;;  %v11797_v52 = vld [vmem:[#allocation7 + $0x20] ss:$12 sps:$4 sm:$0xff]  }
  0x55   :  { %v12783_v51 = vld [vmem:[#allocation7 + $0x34] ss:$12 sps:$4 sm:$0xff]   ;;  %v12790_v53 = vld [vmem:[#allocation7 + $0x30] ss:$12 sps:$4 sm:$0xff]   ;;  %v12798_v59 = vld [vmem:[#allocation7 + $0x18] ss:$12 sps:$4 sm:$0xff]  }
  0x56   :  { %11758 = vset.pattern.permute.xlu1 %v12580_v17  ;;  %11759 = vset.pattern.permute.xlu0 %v12581_v18  ;;  %v12794_v55 = vld [vmem:[#allocation7 + $0x1c] ss:$12 sps:$4 sm:$0xff]   ;;  %v12801_v60 = vld [vmem:[#allocation7 + $0x4] ss:$12 sps:$4 sm:$0xff]   ;;  %v12807_v62 = vld [vmem:[#allocation7] ss:$12 sps:$4 sm:$0xff]  }
  0x57   :  { %479 = vperm.xlu1 %11758, %v12673_v3   ;;  %483 = vperm.xlu0 %11759, %v12677_v4   ;;  %v11798_v56 = vld [vmem:[#allocation7 + $0x8] ss:$12 sps:$4 sm:$0xff]   ;;  %v11799_v61 = vld [vmem:[#allocation7 + $0x50] ss:$12 sps:$4 sm:$0xff]   ;;  %s12585_s22 = smov [#allocation15]  }
  0x58   :  { %227 = vmatpush1.bf16.msra.mxu0 %v12697_v14  ;;  %11004 = vmatpush3.bf16.msra.mxu1 %v11782_v15  ;;  %s9769_s1 = sshll.u32 %s12585_s22, 4  ;;  %s9770_s1 = int_to_ptr.vmem [resolvable:$true] %s9769_s1 }
  0x59   :  { %228 = vmatprep.subr.bf16.mxu0 %v12701_v16  ;;  %11005 = vmatprep.subr.bf16.mxu1 %v12577_v2  ;;  %p12542_p3 = scmp.lt.s32.totalorder %s9770_s1, %s9770_s1 }
  0x5b   :  { %11760 = vset.pattern.permute.xlu1 %v12583_v21  ;;  %11762 = vset.pattern.permute.xlu0 %v12584_v22 }
  0x5c   :  { %659 = vperm.xlu1 %11760, %v12673_v3   ;;  %839 = vperm.xlu0 %11762, %v12673_v3  }
  0x5d   :  { %229 = vmatpush1.bf16.msra.mxu0 %v12705_v19  ;;  %11006 = vmatpush3.bf16.msra.mxu1 %v11786_v20  ;;  %v11807_v20 = vld [vmem:[#allocation7 + $0x50] ss:$12 sps:$4 sm:$0xff]  }
  0x5e   :  { %401 = vmatprep.subr.bf16.mxu0 %v12680_v5  ;;  %11011 = vmatprep.subr.bf16.mxu1 %v12577_v2 }
  0x60   :  { %11761 = vset.pattern.permute.xlu1 %v12584_v22  ;;  %11765 = vset.pattern.permute.xlu0 %v12580_v17  ;;  %v11808_v22 = vld [vmem:[#allocation7 + $0x38] ss:$12 sps:$4 sm:$0xff]  }
  0x61   :  { %663 = vperm.xlu1 %11761, %v12677_v4   ;;  %1023 = vperm.xlu0 %11765, %v12677_v4  }
  0x65   :  { %11763 = vset.pattern.permute.xlu1 %v12583_v21  ;;  %11768 = vset.pattern.permute.xlu0 %v12578_v11 }
  0x66   :  { %843 = vperm.xlu1 %11763, %v12677_v4   ;;  %1379 = vperm.xlu0 %11768, %v12673_v3  }
  0x6a   :  { %11764 = vset.pattern.permute.xlu1 %v12581_v18  ;;  %11770 = vset.pattern.permute.xlu0 %v12575_v0 }
  0x6b   :  { %1019 = vperm.xlu1 %11764, %v12673_v3  }
  0x6f   :  { %11766 = vset.pattern.permute.xlu1 %v12579_v12  ;;  %v11804_v12 = vld [vmem:[#allocation7 + $0x38] ss:$12 sps:$4 sm:$0xff]  }
  0x70   :  { %1199 = vperm.xlu1 %11766, %v12673_v3   ;;  %v11800_v3 = vld [vmem:[#allocation7 + $0x38] ss:$12 sps:$4 sm:$0xff]  }
  0x74   :  { %11767 = vset.pattern.permute.xlu1 %v12576_v1 }
  0x75   :  { %1203 = vperm.xlu1 %11767, %v12677_v4  }
  0x79   :  { %11769 = vset.pattern.permute.xlu1 %v12575_v0 }
  0x7a   :  { %1383 = vperm.xlu1 %11769, %v12677_v4   ;;  %v11801_v4 = vld [vmem:[#allocation7 + $0x20] ss:$12 sps:$4 sm:$0xff]  }
  0xc8   :  { %v119_v25 = vpop.permute.xlu0 %118  ;;  %v300_v26 = vpop.permute.xlu1 %299 }
  0xc9   :  { %vm120_vm1 = vcmp.eq.s32.totalorder %v12729_v24, %v119_v25  ;;  %vm301_vm5 = vcmp.eq.s32.totalorder %v12729_v24, %v300_v26  ;;  %v11849_v26 = vld [vmem:[#allocation9 + $0x80] ss:$12 sps:$4 sm:$0xff]  }
  0xcd   :  { %v124_v27 = vpop.permute.xlu0 %123  ;;  %v304_v31 = vpop.permute.xlu1 %303 }
  0xce   :  { %vm125_vm2 = vcmp.eq.s32.totalorder %v12729_v24, %v124_v27  ;;  %vm305_vm6 = vcmp.eq.s32.totalorder %v12729_v24, %v304_v31  ;;  %v11810_v27 = vld [vmem:[#allocation7 + $0x8] ss:$12 sps:$4 sm:$0xff]  }
  0xcf   :  { %vm126_vm3 = vmor %vm120_vm1, %vm125_vm2 }
  0xd0   :  { %v9781_v28 = vsel %vm126_vm3, 1.0, %v12577_v2  ;;  %vm306_vm7 = vmor %vm301_vm5, %vm305_vm6 }
  0xd1   :  { %v129_v30 = vpack.c.bf16 %v9781_v28, %v9781_v28  ;;  %v9796_v35 = vsel %vm306_vm7, 1.0, %v12577_v2 }
  0xd2   :  { %v309_v37 = vpack.c.bf16 %v9796_v35, %v9796_v35  ;;  %v480_v38 = vpop.permute.xlu1 %479  ;;  %v484_v39 = vpop.permute.xlu0 %483  ;;  %v12908_v35 = vld [vmem:[#allocation9 + $0xac] ss:$12 sps:$4 sm:$0xff]  }
  0xd3   :  { %9794 = vmatmul.mubr.msk.bf16.vlgmr.msra.gmra.mxu0 %vm210_vm4, %v129_v30  ;;  %11008 = vmatmul.mubr.msk.bf16.vlgmr.msra.gmra.mxu1 %vm210_vm4, %v129_v30  ;;  %vm481_vm8 = vcmp.eq.s32.totalorder %v12729_v24, %v480_v38  ;;  %vm485_vm9 = vcmp.eq.s32.totalorder %v12729_v24, %v484_v39  ;;  %v12915_v39 = vld [vmem:[#allocation9 + $0x94] ss:$12 sps:$4 sm:$0xff]  }
  0xd4   :  { %402 = vmatpush1.bf16.msra.mxu0 %v12682_v6  ;;  %11012 = vmatpush3.bf16.msra.mxu1 %v11787_v29  ;;  %vm486_vm10 = vmor %vm481_vm8, %vm485_vm9  ;;  %v11811_v29 = vld [vmem:[#allocation7 + $0x50] ss:$12 sps:$4 sm:$0xff]  }
  0xd5   :  { %403 = vmatprep.subr.bf16.mxu0 %v12685_v8  ;;  %11013 = vmatprep.subr.bf16.mxu1 %v12577_v2  ;;  %v9811_v44 = vsel %vm486_vm10, 1.0, %v12577_v2 }
  0xd6   :  { %425 = vmatprep.mubr.bf16.mxu0 %v12575_v0  ;;  %11019 = vmatprep.mubr.msk.bf16.mxu1 %vm12582_vm0, %v12577_v2  ;;  %v489_v47 = vpack.c.bf16 %v9811_v44, %v9811_v44  ;;  %v11835_v44 = vld [vmem:[#allocation9 + $0x80] ss:$12 sps:$4 sm:$0xff]  }
  0xd7   :  { %v660_v42 = vpop.permute.xlu1 %659  ;;  %v840_v58 = vpop.permute.xlu0 %839 }
  0xd8   :  { %404 = vmatpush1.bf16.msra.mxu0 %v12687_v9  ;;  %11014 = vmatpush3.bf16.msra.mxu1 %v11788_v32  ;;  %vm661_vm11 = vcmp.eq.s32.totalorder %v12729_v24, %v660_v42  ;;  %vm841_vm15 = vcmp.eq.s32.totalorder %v12729_v24, %v840_v58  ;;  %v11812_v32 = vld [vmem:[#allocation7 + $0x38] ss:$12 sps:$4 sm:$0xff]   ;;  %v12924_v42 = vld [vmem:[#allocation9 + $0x7c] ss:$12 sps:$4 sm:$0xff]   ;;  %v12968_v58 = vld [vmem:[#allocation9] ss:$12 sps:$4 sm:$0xff]  }
  0xd9   :  { %405 = vmatprep.subr.bf16.mxu0 %v12690_v13  ;;  %11015 = vmatprep.subr.bf16.mxu1 %v12577_v2 }
  0xdc   :  { %406 = vmatpush1.bf16.msra.mxu0 %v12697_v14  ;;  %11016 = vmatpush3.bf16.msra.mxu1 %v11789_v33  ;;  %v664_v45 = vpop.permute.xlu1 %663  ;;  %v1024_v7 = vpop.permute.xlu0 %1023  ;;  %v11813_v33 = vld [vmem:[#allocation7 + $0x20] ss:$12 sps:$4 sm:$0xff]  }
  0xdd   :  { %407 = vmatprep.subr.bf16.mxu0 %v12701_v16  ;;  %11017 = vmatprep.subr.bf16.mxu1 %v12577_v2  ;;  %vm665_vm12 = vcmp.eq.s32.totalorder %v12729_v24, %v664_v45  ;;  %vm1025_vm3 = vcmp.eq.s32.totalorder %v12729_v24, %v1024_v7  ;;  %v12934_v45 = vld [vmem:[#allocation9 + $0x64] ss:$12 sps:$4 sm:$0xff]  }
  0xde   :  { %vm666_vm13 = vmor %vm661_vm11, %vm665_vm12  ;;  %vm7906_vm12 = vcmask 1048064  }
  0xdf   :  { %v9826_v54 = vsel %vm666_vm13, 1.0, %v12577_v2 }
  0xe0   :  { %408 = vmatpush1.bf16.msra.mxu0 %v12705_v19  ;;  %11018 = vmatpush3.bf16.msra.mxu1 %v11790_v34  ;;  %v669_v63 = vpack.c.bf16 %v9826_v54, %v9826_v54  ;;  %v11814_v34 = vld [vmem:[#allocation7 + $0x8] ss:$12 sps:$4 sm:$0xff]  }
  0xe1   :  { %581 = vmatprep.subr.bf16.mxu0 %v12680_v5  ;;  %11023 = vmatprep.subr.bf16.mxu1 %v12577_v2  ;;  %v844_v57 = vpop.permute.xlu1 %843  ;;  %v11802_v5 = vld [vmem:[#allocation7 + $0x8] ss:$12 sps:$4 sm:$0xff]   ;;  %v1380_v18 = vpop.permute.xlu0 %1379 }
  0xe2   :  { %vm845_vm14 = vcmp.eq.s32.totalorder %v12729_v24, %v844_v57  ;;  %vm1381_vm6 = vcmp.eq.s32.totalorder %v12729_v24, %v1380_v18  ;;  %v12955_v54 = vld [vmem:[#allocation9 + $0x1c] ss:$12 sps:$4 sm:$0xff]   ;;  %v12962_v57 = vld [vmem:[#allocation9 + $0x4] ss:$12 sps:$4 sm:$0xff]  }
  0xe3   :  { %9809 = vmatmul.mubr.msk.bf16.vlgmr.msra.gmra.mxu0 %vm210_vm4, %v309_v37  ;;  %11020 = vmatmul.mubr.msk.bf16.vlgmr.msra.gmra.mxu1 %vm210_vm4, %v309_v37  ;;  %vm12812_vm1 = vmor %vm841_vm15, %vm845_vm14  ;;  %v11827_v37 = vld [vmem:[#allocation9 + $0xb0] ss:$12 sps:$4 sm:$0xff]  }
  0xe4   :  { %582 = vmatpush1.bf16.msra.mxu0 %v12682_v6  ;;  %11024 = vmatpush3.bf16.msra.mxu1 %v11791_v36  ;;  %v12913_v36 = vld [vmem:[#allocation9 + $0xa8] ss:$12 sps:$4 sm:$0xff]  }
  0xe5   :  { %583 = vmatprep.subr.bf16.mxu0 %v12685_v8  ;;  %11025 = vmatprep.subr.bf16.mxu1 %v12577_v2  ;;  %v9841_v8 = vsel %vm12812_vm1, 1.0, %v12577_v2 }
  0xe6   :  { %605 = vmatprep.mubr.bf16.mxu0 %v12575_v0  ;;  %11031 = vmatprep.mubr.msk.bf16.mxu1 %vm12582_vm0, %v12577_v2  ;;  %v1020_v6 = vpop.permute.xlu1 %1019  ;;  %v849_v10 = vpack.c.bf16 %v9841_v8, %v9841_v8 }
  0xe7   :  { %vm1021_vm2 = vcmp.eq.s32.totalorder %v12729_v24, %v1020_v6 }
  0xe8   :  { %584 = vmatpush1.bf16.msra.mxu0 %v12687_v9  ;;  %11026 = vmatpush3.bf16.msra.mxu1 %v11792_v40  ;;  %v11803_v9 = vld [vmem:[#allocation7 + $0x50] ss:$12 sps:$4 sm:$0xff]   ;;  %vm12836_vm5 = vmor %vm1021_vm2, %vm1025_vm3 }
  0xe9   :  { %585 = vmatprep.subr.bf16.mxu0 %v12690_v13  ;;  %11027 = vmatprep.subr.bf16.mxu1 %v12577_v2  ;;  %v9856_v17 = vsel %vm12836_vm5, 1.0, %v12577_v2  ;;  %v12920_v40 = vld [vmem:[#allocation9 + $0x90] ss:$12 sps:$4 sm:$0xff]  }
  0xea   :  { %v1029_v21 = vpack.c.bf16 %v9856_v17, %v9856_v17 }
  0xeb   :  { %v1200_v13 = vpop.permute.xlu1 %1199 }
  0xec   :  { %586 = vmatpush1.bf16.msra.mxu0 %v12697_v14  ;;  %11028 = vmatpush3.bf16.msra.mxu1 %v11793_v41  ;;  %v11805_v14 = vld [vmem:[#allocation7 + $0x20] ss:$12 sps:$4 sm:$0xff]   ;;  %vm1201_vm7 = vcmp.eq.s32.totalorder %v12729_v24, %v1200_v13  ;;  %v11831_v41 = vld [vmem:[#allocation9 + $0x98] ss:$12 sps:$4 sm:$0xff]  }
  0xed   :  { %587 = vmatprep.subr.bf16.mxu0 %v12701_v16  ;;  %11029 = vmatprep.subr.bf16.mxu1 %v12577_v2  ;;  %v11806_v16 = vld [vmem:[#allocation7 + $0x8] ss:$12 sps:$4 sm:$0xff]  }
  0xf0   :  { %588 = vmatpush1.bf16.msra.mxu0 %v12705_v19  ;;  %11030 = vmatpush3.bf16.msra.mxu1 %v11794_v43  ;;  %v1204_v15 = vpop.permute.xlu1 %1203  ;;  %v12929_v43 = vld [vmem:[#allocation9 + $0x78] ss:$12 sps:$4 sm:$0xff]  }
  0xf1   :  { %761 = vmatprep.subr.bf16.mxu0 %v12774_v48  ;;  %11035 = vmatprep.subr.bf16.mxu1 %v12577_v2  ;;  %vm1205_vm8 = vcmp.eq.s32.totalorder %v12729_v24, %v1204_v15 }
  0xf2   :  { %vm12868_vm10 = vmor %vm1201_vm7, %vm1205_vm8 }
  0xf3   :  { %9824 = vmatmul.mubr.msk.bf16.vlgmr.msra.gmra.mxu0 %vm210_vm4, %v489_v47  ;;  %11032 = vmatmul.mubr.msk.bf16.vlgmr.msra.gmra.mxu1 %vm210_vm4, %v489_v47  ;;  %v9871_v28 = vsel %vm12868_vm10, 1.0, %v12577_v2  ;;  %v11839_v47 = vld [vmem:[#allocation9 + $0x68] ss:$12 sps:$4 sm:$0xff]  }
  0xf4   :  { %762 = vmatpush1.bf16.msra.mxu0 %v12780_v50  ;;  %11036 = vmatpush3.bf16.msra.mxu1 %v11795_v46  ;;  %v1209_v31 = vpack.c.bf16 %v9871_v28, %v9871_v28  ;;  %v12939_v46 = vld [vmem:[#allocation9 + $0x60] ss:$12 sps:$4 sm:$0xff]  }
  0xf5   :  { %763 = vmatprep.subr.bf16.mxu0 %v12783_v51  ;;  %11037 = vmatprep.subr.bf16.mxu1 %v12577_v2  ;;  %v1384_v19 = vpop.permute.xlu1 %1383 }
  0xf6   :  { %785 = vmatprep.mubr.bf16.mxu0 %v12575_v0  ;;  %11043 = vmatprep.mubr.msk.bf16.mxu1 %vm12582_vm0, %v12577_v2  ;;  %vm1385_vm9 = vcmp.eq.s32.totalorder %v12729_v24, %v1384_v19  ;;  %v11809_v24 = vld [vmem:[#allocation7 + $0x20] ss:$12 sps:$4 sm:$0xff]   ;;  %v11848_v19 = vld [vmem:[#allocation9 + $0x98] ss:$12 sps:$4 sm:$0xff]  }
  0xf7   :  { %vm12872_vm11 = vmor %vm1381_vm6, %vm1385_vm9 }
  0xf8   :  { %764 = vmatpush1.bf16.msra.mxu0 %v12790_v53  ;;  %11038 = vmatpush3.bf16.msra.mxu1 %v11796_v49  ;;  %v9886_v30 = vsel %vm12872_vm11, 1.0, %v12577_v2  ;;  %v12946_v49 = vld [vmem:[#allocation9 + $0x48] ss:$12 sps:$4 sm:$0xff]  }
  0xf9   :  { %765 = vmatprep.subr.bf16.mxu0 %v12794_v55  ;;  %11039 = vmatprep.subr.bf16.mxu1 %v12577_v2  ;;  %v1389_v38 = vpack.c.bf16 %v9886_v30, %v9886_v30 }
  0xfc   :  { %766 = vmatpush1.bf16.msra.mxu0 %v12798_v59  ;;  %11040 = vmatpush3.bf16.msra.mxu1 %v11797_v52  ;;  %v12953_v52 = vld [vmem:[#allocation9 + $0x30] ss:$12 sps:$4 sm:$0xff]  }
  0xfd   :  { %767 = vmatprep.subr.bf16.mxu0 %v12801_v60  ;;  %11041 = vmatprep.subr.bf16.mxu1 %v12577_v2 }
 0x100   :  { %768 = vmatpush1.bf16.msra.mxu0 %v12807_v62  ;;  %11042 = vmatpush3.bf16.msra.mxu1 %v11798_v56  ;;  %v11845_v56 = vld [vmem:[#allocation9 + $0x20] ss:$12 sps:$4 sm:$0xff]  }
 0x101   :  { %941 = vmatprep.subr.bf16.mxu0 %v12774_v48  ;;  %11047 = vmatprep.subr.bf16.mxu1 %v12577_v2 }
 0x103   :  { %9839 = vmatmul.mubr.msk.bf16.vlgmr.msra.gmra.mxu0 %vm210_vm4, %v669_v63  ;;  %11044 = vmatmul.mubr.msk.bf16.vlgmr.msra.gmra.mxu1 %vm210_vm4, %v669_v63 }
 0x104   :  { %942 = vmatpush1.bf16.msra.mxu0 %v12780_v50  ;;  %11048 = vmatpush3.bf16.msra.mxu1 %v11799_v61 }
 0x105   :  { %943 = vmatprep.subr.bf16.mxu0 %v12783_v51  ;;  %11049 = vmatprep.subr.bf16.mxu1 %v12577_v2 }
 0x106   :  { %965 = vmatprep.mubr.bf16.mxu0 %v12575_v0  ;;  %11055 = vmatprep.mubr.msk.bf16.mxu1 %vm12582_vm0, %v12577_v2 }
 0x108   :  { %944 = vmatpush1.bf16.msra.mxu0 %v12790_v53  ;;  %11050 = vmatpush3.bf16.msra.mxu1 %v11800_v3 }
 0x109   :  { %945 = vmatprep.subr.bf16.mxu0 %v12794_v55  ;;  %11051 = vmatprep.subr.bf16.mxu1 %v12577_v2 }
 0x10c   :  { %946 = vmatpush1.bf16.msra.mxu0 %v12798_v59  ;;  %11052 = vmatpush3.bf16.msra.mxu1 %v11801_v4 }
 0x10d   :  { %947 = vmatprep.subr.bf16.mxu0 %v12801_v60  ;;  %11053 = vmatprep.subr.bf16.mxu1 %v12577_v2 }
 0x110   :  { %948 = vmatpush1.bf16.msra.mxu0 %v12807_v62  ;;  %11054 = vmatpush3.bf16.msra.mxu1 %v11802_v5 }
 0x111   :  { %1121 = vmatprep.subr.bf16.mxu0 %v12774_v48  ;;  %11059 = vmatprep.subr.bf16.mxu1 %v12577_v2 }
 0x113   :  { %9854 = vmatmul.mubr.msk.bf16.vlgmr.msra.gmra.mxu0 %vm210_vm4, %v849_v10  ;;  %11056 = vmatmul.mubr.msk.bf16.vlgmr.msra.gmra.mxu1 %vm210_vm4, %v849_v10 }
 0x114   :  { %1122 = vmatpush1.bf16.msra.mxu0 %v12780_v50  ;;  %11060 = vmatpush3.bf16.msra.mxu1 %v11803_v9 }
 0x115   :  { %1123 = vmatprep.subr.bf16.mxu0 %v12783_v51  ;;  %11061 = vmatprep.subr.bf16.mxu1 %v12577_v2 }
 0x116   :  { %1145 = vmatprep.mubr.bf16.mxu0 %v12575_v0  ;;  %11067 = vmatprep.mubr.msk.bf16.mxu1 %vm12582_vm0, %v12577_v2 }
 0x118   :  { %1124 = vmatpush1.bf16.msra.mxu0 %v12790_v53  ;;  %11062 = vmatpush3.bf16.msra.mxu1 %v11804_v12 }
 0x119   :  { %1125 = vmatprep.subr.bf16.mxu0 %v12794_v55  ;;  %11063 = vmatprep.subr.bf16.mxu1 %v12577_v2 }
 0x11c   :  { %1126 = vmatpush1.bf16.msra.mxu0 %v12798_v59  ;;  %11064 = vmatpush3.bf16.msra.mxu1 %v11805_v14  ;;  %v11847_v14 = vld [vmem:[#allocation9 + $0xb0] ss:$12 sps:$4 sm:$0xff]  }
 0x11d   :  { %1127 = vmatprep.subr.bf16.mxu0 %v12801_v60  ;;  %11065 = vmatprep.subr.bf16.mxu1 %v12577_v2 }
 0x120   :  { %1128 = vmatpush1.bf16.msra.mxu0 %v12807_v62  ;;  %11066 = vmatpush3.bf16.msra.mxu1 %v11806_v16 }
 0x121   :  { %1301 = vmatprep.subr.bf16.mxu0 %v12774_v48  ;;  %11071 = vmatprep.subr.bf16.mxu1 %v12577_v2 }
 0x123   :  { %9869 = vmatmul.mubr.msk.bf16.vlgmr.msra.gmra.mxu0 %vm210_vm4, %v1029_v21  ;;  %11068 = vmatmul.mubr.msk.bf16.vlgmr.msra.gmra.mxu1 %vm210_vm4, %v1029_v21 }
 0x124   :  { %1302 = vmatpush1.bf16.msra.mxu0 %v12780_v50  ;;  %11072 = vmatpush3.bf16.msra.mxu1 %v11807_v20 }
 0x125   :  { %1303 = vmatprep.subr.bf16.mxu0 %v12783_v51  ;;  %11073 = vmatprep.subr.bf16.mxu1 %v12577_v2 }
 0x126   :  { %1325 = vmatprep.mubr.bf16.mxu0 %v12575_v0  ;;  %11079 = vmatprep.mubr.msk.bf16.mxu1 %vm12582_vm0, %v12577_v2 }
 0x128   :  { %1304 = vmatpush1.bf16.msra.mxu0 %v12790_v53  ;;  %11074 = vmatpush3.bf16.msra.mxu1 %v11808_v22 }
 0x129   :  { %1305 = vmatprep.subr.bf16.mxu0 %v12794_v55  ;;  %11075 = vmatprep.subr.bf16.mxu1 %v12577_v2 }
 0x12c   :  { %1306 = vmatpush1.bf16.msra.mxu0 %v12798_v59  ;;  %11076 = vmatpush3.bf16.msra.mxu1 %v11809_v24  ;;  %v11850_v24 = vld [vmem:[#allocation9 + $0x68] ss:$12 sps:$4 sm:$0xff]  }
 0x12d   :  { %1307 = vmatprep.subr.bf16.mxu0 %v12801_v60  ;;  %11077 = vmatprep.subr.bf16.mxu1 %v12577_v2 }
 0x130   :  { %1308 = vmatpush1.bf16.msra.mxu0 %v12807_v62  ;;  %11078 = vmatpush3.bf16.msra.mxu1 %v11810_v27  ;;  %v11851_v27 = vld [vmem:[#allocation9 + $0x50] ss:$12 sps:$4 sm:$0xff]  }
 0x131   :  { %1481 = vmatprep.subr.bf16.mxu0 %v12774_v48  ;;  %11083 = vmatprep.subr.bf16.mxu1 %v12577_v2  ;;  %v12941_v48 = vld [vmem:[#allocation9 + $0x4c] ss:$12 sps:$4 sm:$0xff]  }
 0x133   :  { %9884 = vmatmul.mubr.msk.bf16.vlgmr.msra.gmra.mxu0 %vm210_vm4, %v1209_v31  ;;  %11080 = vmatmul.mubr.msk.bf16.vlgmr.msra.gmra.mxu1 %vm210_vm4, %v1209_v31 }
 0x134   :  { %1482 = vmatpush1.bf16.msra.mxu0 %v12780_v50  ;;  %11084 = vmatpush3.bf16.msra.mxu1 %v11811_v29  ;;  %v11843_v50 = vld [vmem:[#allocation9 + $0x50] ss:$12 sps:$4 sm:$0xff]  }
 0x135   :  { %1483 = vmatprep.subr.bf16.mxu0 %v12783_v51  ;;  %11085 = vmatprep.subr.bf16.mxu1 %v12577_v2  ;;  %v12948_v51 = vld [vmem:[#allocation9 + $0x34] ss:$12 sps:$4 sm:$0xff]  }
 0x136   :  { %1505 = vmatprep.mubr.bf16.mxu0 %v12575_v0  ;;  %11091 = vmatprep.mubr.msk.bf16.mxu1 %vm12582_vm0, %v12577_v2 }
 0x138   :  { %1484 = vmatpush1.bf16.msra.mxu0 %v12790_v53  ;;  %11086 = vmatpush3.bf16.msra.mxu1 %v11812_v32  ;;  %v11844_v53 = vld [vmem:[#allocation9 + $0x38] ss:$12 sps:$4 sm:$0xff]  }
 0x139   :  { %1485 = vmatprep.subr.bf16.mxu0 %v12794_v55  ;;  %11087 = vmatprep.subr.bf16.mxu1 %v12577_v2  ;;  %v12960_v55 = vld [vmem:[#allocation9 + $0x18] ss:$12 sps:$4 sm:$0xff]  }
 0x13a   :  { %v11852_v32 = vld [vmem:[#allocation9 + $0x38] ss:$12 sps:$4 sm:$0xff]  }
 0x13c   :  { %1486 = vmatpush1.bf16.msra.mxu0 %v12798_v59  ;;  %11088 = vmatpush3.bf16.msra.mxu1 %v11813_v33  ;;  %v11846_v59 = vld [vmem:[#allocation9 + $0x8] ss:$12 sps:$4 sm:$0xff]  }
 0x13d   :  { %1487 = vmatprep.subr.bf16.mxu0 %v12801_v60  ;;  %11089 = vmatprep.subr.bf16.mxu1 %v12577_v2 }
 0x140   :  { %1488 = vmatpush1.bf16.msra.mxu0 %v12807_v62  ;;  %11090 = vmatpush3.bf16.msra.mxu1 %v11814_v34 }
 0x141   :  { %1728 = vmatprep.subr.bf16.mxu0 %v12908_v35  ;;  %11095 = vmatprep.subr.bf16.mxu1 %v12577_v2 }
 0x143   :  { %9899 = vmatmul.mubr.msk.bf16.vlgmr.msra.gmra.mxu0 %vm210_vm4, %v1389_v38  ;;  %11092 = vmatmul.mubr.msk.bf16.vlgmr.msra.gmra.mxu1 %vm210_vm4, %v1389_v38 }
 0x144   :  { %1729 = vmatpush1.bf16.msra.mxu0 %v12913_v36  ;;  %11096 = vmatpush3.bf16.msra.mxu1 %v11827_v37 }
 0x145   :  { %1730 = vmatprep.subr.bf16.mxu0 %v12915_v39  ;;  %11097 = vmatprep.subr.bf16.mxu1 %v12577_v2 }
 0x146   :  { %1760 = vmatprep.mubr.bf16.mxu0 %v12575_v0  ;;  %11111 = vmatprep.mubr.msk.bf16.mxu1 %vm12582_vm0, %v12577_v2 }
 0x148   :  { %1731 = vmatpush1.bf16.msra.mxu0 %v12920_v40  ;;  %11098 = vmatpush3.bf16.msra.mxu1 %v11831_v41  ;;  %v11853_v41 = vld [vmem:[#allocation9 + $0x20] ss:$12 sps:$4 sm:$0xff]  }
 0x149   :  { %1732 = vmatprep.subr.bf16.mxu0 %v12924_v42  ;;  %11099 = vmatprep.subr.bf16.mxu1 %v12577_v2 }
 0x14c   :  { %1733 = vmatpush1.bf16.msra.mxu0 %v12929_v43  ;;  %11100 = vmatpush3.bf16.msra.mxu1 %v11835_v44  ;;  %v11854_v44 = vld [vmem:[#allocation9 + $0x8] ss:$12 sps:$4 sm:$0xff]  }
 0x14d   :  { %1734 = vmatprep.subr.bf16.mxu0 %v12934_v45  ;;  %11101 = vmatprep.subr.bf16.mxu1 %v12577_v2 }
 0x150   :  { %1735 = vmatpush1.bf16.msra.mxu0 %v12939_v46  ;;  %11102 = vmatpush3.bf16.msra.mxu1 %v11839_v47 }
 0x151   :  { %1736 = vmatprep.subr.bf16.mxu0 %v12941_v48  ;;  %11103 = vmatprep.subr.bf16.mxu1 %v12577_v2 }
 0x154   :  { %1737 = vmatpush1.bf16.msra.mxu0 %v12946_v49  ;;  %11104 = vmatpush3.bf16.msra.mxu1 %v11843_v50 }
 0x155   :  { %1738 = vmatprep.subr.bf16.mxu0 %v12948_v51  ;;  %11105 = vmatprep.subr.bf16.mxu1 %v12577_v2 }
 0x158   :  { %1739 = vmatpush1.bf16.msra.mxu0 %v12953_v52  ;;  %11106 = vmatpush3.bf16.msra.mxu1 %v11844_v53 }
 0x159   :  { %1740 = vmatprep.subr.bf16.mxu0 %v12955_v54  ;;  %11107 = vmatprep.subr.bf16.mxu1 %v12577_v2 }
 0x15c   :  { %1741 = vmatpush1.bf16.msra.mxu0 %v12960_v55  ;;  %11108 = vmatpush3.bf16.msra.mxu1 %v11845_v56 }
 0x15d   :  { %1742 = vmatprep.subr.bf16.mxu0 %v12962_v57  ;;  %11109 = vmatprep.subr.bf16.mxu1 %v12577_v2 }
 0x160   :  { %1743 = vmatpush1.bf16.msra.mxu0 %v12968_v58  ;;  %11110 = vmatpush3.bf16.msra.mxu1 %v11846_v59 }
 0x161   :  { %1992 = vmatprep.subr.bf16.mxu0 %v12908_v35  ;;  %11115 = vmatprep.subr.bf16.mxu1 %v12577_v2 }
 0x163   :  { %1761 = vmatmul.mubr.bf16.vlgmr.msra.gmra.mxu0 %v12575_v0  ;;  %11112 = vmatmul.mubr.bf16.vlgmr.msra.gmra.mxu1 %v12575_v0 }
 0x164   :  { %1993 = vmatpush1.bf16.msra.mxu0 %v12913_v36  ;;  %2024 = vmatprep.mubr.bf16.mxu0 %v12575_v0 }
 0x165   :  { %1994 = vmatprep.subr.bf16.mxu0 %v12915_v39  ;;  %11131 = vmatprep.mubr.msk.bf16.mxu1 %vm12582_vm0, %v12577_v2 }
 0x166   :  { %11116 = vmatpush3.bf16.msra.mxu1 %v11847_v14 }
 0x167   :  { %11117 = vmatprep.subr.bf16.mxu1 %v12577_v2 }
 0x168   :  { %1995 = vmatpush1.bf16.msra.mxu0 %v12920_v40 }
 0x169   :  { %1996 = vmatprep.subr.bf16.mxu0 %v12924_v42 }
 0x16a   :  { %11118 = vmatpush3.bf16.msra.mxu1 %v11848_v19 }
 0x16b   :  { %11119 = vmatprep.subr.bf16.mxu1 %v12577_v2 }
 0x16c   :  { %1997 = vmatpush1.bf16.msra.mxu0 %v12929_v43 }
 0x16d   :  { %1998 = vmatprep.subr.bf16.mxu0 %v12934_v45 }
 0x16e   :  { %11120 = vmatpush3.bf16.msra.mxu1 %v11849_v26 }
 0x16f   :  { %11121 = vmatprep.subr.bf16.mxu1 %v12577_v2 }
 0x170   :  { %1999 = vmatpush1.bf16.msra.mxu0 %v12939_v46 }
 0x171   :  { %2000 = vmatprep.subr.bf16.mxu0 %v12941_v48 }
 0x172   :  { %11122 = vmatpush3.bf16.msra.mxu1 %v11850_v24 }
 0x173   :  { %11123 = vmatprep.subr.bf16.mxu1 %v12577_v2 }
 0x174   :  { %2001 = vmatpush1.bf16.msra.mxu0 %v12946_v49 }
 0x175   :  { %2002 = vmatprep.subr.bf16.mxu0 %v12948_v51 }
 0x176   :  { %11124 = vmatpush3.bf16.msra.mxu1 %v11851_v27 }
 0x177   :  { %11125 = vmatprep.subr.bf16.mxu1 %v12577_v2 }
 0x178   :  { %2003 = vmatpush1.bf16.msra.mxu0 %v12953_v52 }
 0x179   :  { %2004 = vmatprep.subr.bf16.mxu0 %v12955_v54 }
 0x17a   :  { %11126 = vmatpush3.bf16.msra.mxu1 %v11852_v32 }
 0x17b   :  { %11127 = vmatprep.subr.bf16.mxu1 %v12577_v2 }
 0x17c   :  { %2005 = vmatpush1.bf16.msra.mxu0 %v12960_v55 }
 0x17d   :  { %2006 = vmatprep.subr.bf16.mxu0 %v12962_v57 }
 0x17e   :  { %11128 = vmatpush3.bf16.msra.mxu1 %v11853_v41 }
 0x17f   :  { %11129 = vmatprep.subr.bf16.mxu1 %v12577_v2 }
 0x180   :  { %2007 = vmatpush1.bf16.msra.mxu0 %v12968_v58 }
 0x181   :  { %2257 = vmatprep.subr.bf16.mxu0 %v12908_v35 }
 0x182   :  { %11130 = vmatpush3.bf16.msra.mxu1 %v11854_v44 }
 0x183   :  { %11135 = vmatprep.subr.bf16.mxu1 %v12577_v2 }
 0x193   :  { %v12996_v60 = vpop.f32.mrf.mxu0  ;;  %v12998_v61 = vpop.f32.mrf.mxu1 }
 0x195   :  { %v13000_v62 = vpop.f32.mrf.mxu0  ;;  %v11009_v63 = vpop.f32.mrf.mxu1 }
 0x197   :  { %v252_v1 = vpop.f32.mrf.mxu0  ;;  %v292_v3 = vpop.f32.mrf.mxu1 }
 0x199   :  { %v253_v4 = vpop.f32.mrf.mxu0  ;;  %v11010_v5 = vpop.f32.mrf.mxu1 }
 0x1a3   :  { %v13002_v6 = vpop.f32.mrf.mxu0  ;;  %v13004_v7 = vpop.f32.mrf.mxu1 }
 0x1a5   :  { %v13006_v8 = vpop.f32.mrf.mxu0  ;;  %v11021_v9 = vpop.f32.mrf.mxu1 }
 0x1a7   :  { %v431_v10 = vpop.f32.mrf.mxu0  ;;  %v471_v11 = vpop.f32.mrf.mxu1 }
 0x1a9   :  { %v432_v12 = vpop.f32.mrf.mxu0  ;;  %v11022_v13 = vpop.f32.mrf.mxu1 }
 0x1b3   :  { %v13008_v15 = vpop.f32.mrf.mxu0  ;;  %v13010_v16 = vpop.f32.mrf.mxu1 }
 0x1b5   :  { %v13013_v17 = vpop.f32.mrf.mxu0  ;;  %v11033_v18 = vpop.f32.mrf.mxu1 }
 0x1b7   :  { %v611_v20 = vpop.f32.mrf.mxu0  ;;  %v651_v21 = vpop.f32.mrf.mxu1 }
 0x1b9   :  { %v612_v22 = vpop.f32.mrf.mxu0  ;;  %v11034_v25 = vpop.f32.mrf.mxu1 }
 0x1c3   :  { %v13018_v28 = vpop.f32.mrf.mxu0  ;;  %v13020_v29 = vpop.f32.mrf.mxu1 }
 0x1c5   :  { %v13023_v30 = vpop.f32.mrf.mxu0  ;;  %v11045_v31 = vpop.f32.mrf.mxu1 }
 0x1c7   :  { %v791_v33 = vpop.f32.mrf.mxu0  ;;  %v831_v34 = vpop.f32.mrf.mxu1 }
 0x1c9   :  { %v792_v37 = vpop.f32.mrf.mxu0  ;;  %v11046_v38 = vpop.f32.mrf.mxu1 }
 0x1d3   :  { %v13028_v47 = vpop.f32.mrf.mxu0  ;;  %v13030_v50 = vpop.f32.mrf.mxu1 }
 0x1d5   :  { %v13032_v53 = vpop.f32.mrf.mxu0  ;;  %v11057_v56 = vpop.f32.mrf.mxu1 }
 0x1d7   :  { %v971_v59 = vpop.f32.mrf.mxu0  ;;  %v1011_v63 = vpop.f32.mrf.mxu1 }
 0x1d9   :  { %v972_v1 = vpop.f32.mrf.mxu0  ;;  %v11058_v3 = vpop.f32.mrf.mxu1 }
 0x1e3   :  { %v13034_v4 = vpop.f32.mrf.mxu0  ;;  %v13036_v5 = vpop.f32.mrf.mxu1 }
 0x1e5   :  { %v13038_v9 = vpop.f32.mrf.mxu0  ;;  %v11069_v10 = vpop.f32.mrf.mxu1 }
 0x1e7   :  { %v1151_v11 = vpop.f32.mrf.mxu0  ;;  %v1191_v12 = vpop.f32.mrf.mxu1 }
 0x1e9   :  { %v1152_v13 = vpop.f32.mrf.mxu0  ;;  %v11070_v14 = vpop.f32.mrf.mxu1 }
 0x1f3   :  { %v13040_v18 = vpop.f32.mrf.mxu0  ;;  %v13042_v19 = vpop.f32.mrf.mxu1 }
 0x1f5   :  { %v13044_v20 = vpop.f32.mrf.mxu0  ;;  %v11081_v21 = vpop.f32.mrf.mxu1 }
 0x1f7   :  { %v1331_v22 = vpop.f32.mrf.mxu0  ;;  %v1371_v25 = vpop.f32.mrf.mxu1 }
 0x1f8   :  { %v13057_v22 = vld [vmem:[%s14495_s3] ss:$0 sm:$0xff] }
 0x1f9   :  { %v1332_v26 = vpop.f32.mrf.mxu0  ;;  %v11082_v24 = vpop.f32.mrf.mxu1 }
 0x203   :  { %v13046_v27 = vpop.f32.mrf.mxu0  ;;  %v13048_v31 = vpop.f32.mrf.mxu1 }
 0x205   :  { %v13050_v32 = vpop.f32.mrf.mxu0  ;;  %v11093_v33 = vpop.f32.mrf.mxu1 }
 0x207   :  { %v1511_v34 = vpop.f32.mrf.mxu0  ;;  %v1551_v37 = vpop.f32.mrf.mxu1 }
 0x209   :  { %v1512_v38 = vpop.f32.mrf.mxu0  ;;  %v11094_v41 = vpop.f32.mrf.mxu1 }
 0x223   :  { %v1762_v44 = vpop.f32.mrf.mxu0  ;;  %v1803_v56 = vpop.f32.mrf.mxu1 }
 0x224   :  { %v1809_v59 = vadd.f32 %v1762_v44, %v12996_v60  ;;  %v1819_v60 = vadd.f32 %v13057_v22, %v1803_v56  ;;  %v11856_v56 = vld [vmem:[#allocation9 + $0x98] ss:$12 sps:$4 sm:$0xff]  }
 0x225   :  { %v1764_v63 = vpop.f32.mrf.mxu0  ;;  %v11113_v1 = vpop.f32.mrf.mxu1 }
 0x226   :  { %v1810_v3 = vmul.f32 0.5, %v1809_v59  ;;  %v1814_v14 = vadd.f32 %v1764_v63, %v13000_v62 }
 0x227   :  { %v1766_v10 = vpop.f32.mrf.mxu0  ;;  %v1806_v11 = vpop.f32.mrf.mxu1 }
 0x228   :  { %12311 = vtanh.f32 %v1810_v3  ;;  %v1815_v21 = vmul.f32 0.5, %v1814_v14  ;;  %v11857_v10 = vld [vmem:[#allocation9 + $0x80] ss:$12 sps:$4 sm:$0xff]   ;;  %v11858_v11 = vld [vmem:[#allocation9 + $0x68] ss:$12 sps:$4 sm:$0xff]  }
 0x229   :  { %v1767_v12 = vpop.f32.mrf.mxu0  ;;  %v11114_v13 = vpop.f32.mrf.mxu1  ;;  %v11862_v14 = vld [vmem:[#allocation9 + $0x8] ss:$12 sps:$4 sm:$0xff]  }
 0x22a   :  { %12313 = vtanh.f32 %v1815_v21  ;;  %v11859_v12 = vld [vmem:[#allocation9 + $0x50] ss:$12 sps:$4 sm:$0xff]   ;;  %v11861_v13 = vld [vmem:[#allocation9 + $0x20] ss:$12 sps:$4 sm:$0xff]  }
 0x235   :  { %v12312_v25 = vpop.eup %12311 }
 0x236   :  { %v1812_v26 = vadd.f32 1.0, %v12312_v25 }
 0x237   :  { %v12314_v37 = vpop.eup %12313 }
 0x238   :  { %v1813_v24 = vmul.f32 0.5, %v1812_v26  ;;  %v1817_v38 = vadd.f32 1.0, %v12314_v37 }
 0x23a   :  { %v1820_v33 = vmul.f32 %v1819_v60, %v1813_v24  ;;  %v1818_v41 = vmul.f32 0.5, %v1817_v38 }
 0x23c   :  { %v1821_v34 = vadd.f32 %v1820_v33, %v12998_v61  ;;  %v1823_v62 = vsub.f32 1.0, %v1818_v41  ;;  %v1825_v59 = vmul.f32 0.0, %v1818_v41  ;;  %v11855_v61 = vld [vmem:[#allocation9 + $0xb0] ss:$12 sps:$4 sm:$0xff]  }
 0x23e   :  { %12315 = vtanh.f32 %v1821_v34 }
 0x24b   :  { %v12316_v44 = vpop.eup %12315 }
 0x24c   :  { %v1824_v63 = vmul.f32 %v12316_v44, %v1823_v62 }
 0x24e   :  { %v13061_v1 = vadd.f32 %v1825_v59, %v1824_v63 }
 0x250   :  { %v13065_v3 = vpack.c.bf16 %v13061_v1, %v13061_v1 }
 0x252   :  { %2025 = vmatmul.mubr.bf16.vlgmr.msra.gmra.mxu0 %v13065_v3  ;;  %11132 = vmatmul.mubr.bf16.vlgmr.msra.gmra.mxu1 %v13065_v3 }
 0x253   :  { %2258 = vmatpush1.bf16.msra.mxu0 %v12913_v36  ;;  %2289 = vmatprep.mubr.bf16.mxu0 %v12575_v0 }
 0x254   :  { %2259 = vmatprep.subr.bf16.mxu0 %v12915_v39  ;;  %11151 = vmatprep.mubr.msk.bf16.mxu1 %vm12582_vm0, %v12577_v2 }
 0x255   :  { %11136 = vmatpush3.bf16.msra.mxu1 %v11855_v61 }
 0x256   :  { %11137 = vmatprep.subr.bf16.mxu1 %v12577_v2 }
 0x257   :  { %2260 = vmatpush1.bf16.msra.mxu0 %v12920_v40 }
 0x258   :  { %2261 = vmatprep.subr.bf16.mxu0 %v12924_v42 }
 0x259   :  { %11138 = vmatpush3.bf16.msra.mxu1 %v11856_v56 }
 0x25a   :  { %11139 = vmatprep.subr.bf16.mxu1 %v12577_v2 }
 0x25b   :  { %2262 = vmatpush1.bf16.msra.mxu0 %v12929_v43 }
 0x25c   :  { %2263 = vmatprep.subr.bf16.mxu0 %v12934_v45 }
 0x25d   :  { %11140 = vmatpush3.bf16.msra.mxu1 %v11857_v10 }
 0x25e   :  { %11141 = vmatprep.subr.bf16.mxu1 %v12577_v2 }
 0x25f   :  { %2264 = vmatpush1.bf16.msra.mxu0 %v12939_v46 }
 0x260   :  { %2265 = vmatprep.subr.bf16.mxu0 %v12941_v48 }
 0x261   :  { %11142 = vmatpush3.bf16.msra.mxu1 %v11858_v11 }
 0x262   :  { %11143 = vmatprep.subr.bf16.mxu1 %v12577_v2 }
 0x263   :  { %2266 = vmatpush1.bf16.msra.mxu0 %v12946_v49 }
 0x264   :  { %2267 = vmatprep.subr.bf16.mxu0 %v12948_v51 }
 0x265   :  { %11144 = vmatpush3.bf16.msra.mxu1 %v11859_v12 }
 0x266   :  { %11145 = vmatprep.subr.bf16.mxu1 %v12577_v2 }
 0x267   :  { %2268 = vmatpush1.bf16.msra.mxu0 %v12953_v52 }
 0x268   :  { %2269 = vmatprep.subr.bf16.mxu0 %v12955_v54 }
 0x26b   :  { %2270 = vmatpush1.bf16.msra.mxu0 %v12960_v55 }
 0x26c   :  { %2271 = vmatprep.subr.bf16.mxu0 %v12962_v57 }
 0x26f   :  { %2272 = vmatpush1.bf16.msra.mxu0 %v12968_v58 }
 0x270   :  { %2522 = vmatprep.subr.bf16.mxu0 %v12908_v35  ;;  %v11860_v35 = vld [vmem:[#allocation9 + $0x38] ss:$12 sps:$4 sm:$0xff]  }
 0x271   :  { %11146 = vmatpush3.bf16.msra.mxu1 %v11860_v35 }
 0x272   :  { %11147 = vmatprep.subr.bf16.mxu1 %v12577_v2 }
 0x275   :  { %11148 = vmatpush3.bf16.msra.mxu1 %v11861_v13 }
 0x276   :  { %11149 = vmatprep.subr.bf16.mxu1 %v12577_v2 }
 0x279   :  { %11150 = vmatpush3.bf16.msra.mxu1 %v11862_v14 }
 0x27a   :  { %11155 = vmatprep.subr.bf16.mxu1 %v12577_v2 }
 0x312   :  { %v2026_v21 = vpop.f32.mrf.mxu0  ;;  %v2067_v25 = vpop.f32.mrf.mxu1 }
 0x313   :  { %v2073_v26 = vadd.f32 %v2026_v21, %v13002_v6  ;;  %v2083_v56 = vadd.f32 %v13057_v22, %v2067_v25 }
 0x314   :  { %v2028_v60 = vpop.f32.mrf.mxu0  ;;  %v11133_v24 = vpop.f32.mrf.mxu1 }
 0x315   :  { %v2074_v33 = vmul.f32 0.5, %v2073_v26  ;;  %v2078_v62 = vadd.f32 %v2028_v60, %v13006_v8 }
 0x316   :  { %v2030_v34 = vpop.f32.mrf.mxu0  ;;  %v2070_v37 = vpop.f32.mrf.mxu1 }
 0x317   :  { %12317 = vtanh.f32 %v2074_v33  ;;  %v2079_v44 = vmul.f32 0.5, %v2078_v62 }
 0x318   :  { %v2031_v38 = vpop.f32.mrf.mxu0  ;;  %v11134_v41 = vpop.f32.mrf.mxu1 }
 0x319   :  { %12319 = vtanh.f32 %v2079_v44 }
 0x324   :  { %v12318_v59 = vpop.eup %12317 }
 0x325   :  { %v2076_v63 = vadd.f32 1.0, %v12318_v59 }
 0x326   :  { %v12320_v11 = vpop.eup %12319 }
 0x327   :  { %v2077_v61 = vmul.f32 0.5, %v2076_v63  ;;  %v2081_v12 = vadd.f32 1.0, %v12320_v11 }
 0x329   :  { %v2084_v10 = vmul.f32 %v2083_v56, %v2077_v61  ;;  %v2082_v35 = vmul.f32 0.5, %v2081_v12  ;;  %v13153_v12 = vld [vmem:[#allocation9 + $0xa8] ss:$12 sps:$4 sm:$0xff]  }
 0x32b   :  { %v2085_v6 = vadd.f32 %v2084_v10, %v13004_v7  ;;  %v2087_v13 = vsub.f32 1.0, %v2082_v35  ;;  %v2089_v26 = vmul.f32 %v2082_v35, %v13061_v1  ;;  %v11874_v35 = vld [vmem:[#allocation9 + $0xb0] ss:$12 sps:$4 sm:$0xff]  }
 0x32d   :  { %12321 = vtanh.f32 %v2085_v6 }
 0x33a   :  { %v12322_v14 = vpop.eup %12321 }
 0x33b   :  { %v2088_v21 = vmul.f32 %v12322_v14, %v2087_v13  ;;  %v13157_v13 = vld [vmem:[#allocation9 + $0x94] ss:$12 sps:$4 sm:$0xff]   ;;  %v13160_v14 = vld [vmem:[#allocation9 + $0x90] ss:$12 sps:$4 sm:$0xff]  }
 0x33d   :  { %v13101_v8 = vadd.f32 %v2089_v26, %v2088_v21  ;;  %v11878_v21 = vld [vmem:[#allocation9 + $0x98] ss:$12 sps:$4 sm:$0xff]   ;;  %v13164_v26 = vld [vmem:[#allocation9 + $0x7c] ss:$12 sps:$4 sm:$0xff]  }
 0x33f   :  { %v13105_v60 = vpack.c.bf16 %v13101_v8, %v13101_v8 }
 0x341   :  { %2290 = vmatmul.mubr.bf16.vlgmr.msra.gmra.mxu0 %v13105_v60  ;;  %11152 = vmatmul.mubr.bf16.vlgmr.msra.gmra.mxu1 %v13105_v60 }
 0x342   :  { %2523 = vmatpush1.bf16.msra.mxu0 %v12913_v36  ;;  %2554 = vmatprep.mubr.bf16.mxu0 %v12575_v0  ;;  %v11863_v36 = vld [vmem:[#allocation9 + $0xb0] ss:$12 sps:$4 sm:$0xff]  }
 0x343   :  { %2524 = vmatprep.subr.bf16.mxu0 %v12915_v39  ;;  %11171 = vmatprep.mubr.msk.bf16.mxu1 %vm12582_vm0, %v12577_v2  ;;  %v11864_v39 = vld [vmem:[#allocation9 + $0x98] ss:$12 sps:$4 sm:$0xff]  }
 0x344   :  { %11156 = vmatpush3.bf16.msra.mxu1 %v11863_v36  ;;  %v11882_v36 = vld [vmem:[#allocation9 + $0x80] ss:$12 sps:$4 sm:$0xff]  }
 0x345   :  { %11157 = vmatprep.subr.bf16.mxu1 %v12577_v2 }
 0x346   :  { %2525 = vmatpush1.bf16.msra.mxu0 %v12920_v40  ;;  %v11865_v40 = vld [vmem:[#allocation9 + $0x80] ss:$12 sps:$4 sm:$0xff]  }
 0x347   :  { %2526 = vmatprep.subr.bf16.mxu0 %v12924_v42  ;;  %v11866_v42 = vld [vmem:[#allocation9 + $0x68] ss:$12 sps:$4 sm:$0xff]  }
 0x348   :  { %11158 = vmatpush3.bf16.msra.mxu1 %v11864_v39  ;;  %v13171_v39 = vld [vmem:[#allocation9 + $0x64] ss:$12 sps:$4 sm:$0xff]  }
 0x349   :  { %11159 = vmatprep.subr.bf16.mxu1 %v12577_v2 }
 0x34a   :  { %2527 = vmatpush1.bf16.msra.mxu0 %v12929_v43  ;;  %v11867_v43 = vld [vmem:[#allocation9 + $0x50] ss:$12 sps:$4 sm:$0xff]  }
 0x34b   :  { %2528 = vmatprep.subr.bf16.mxu0 %v12934_v45  ;;  %v11868_v45 = vld [vmem:[#allocation9 + $0x38] ss:$12 sps:$4 sm:$0xff]  }
 0x34c   :  { %11160 = vmatpush3.bf16.msra.mxu1 %v11865_v40  ;;  %v13174_v40 = vld [vmem:[#allocation9 + $0x60] ss:$12 sps:$4 sm:$0xff]  }
 0x34d   :  { %11161 = vmatprep.subr.bf16.mxu1 %v12577_v2 }
 0x34e   :  { %2529 = vmatpush1.bf16.msra.mxu0 %v12939_v46  ;;  %v11869_v46 = vld [vmem:[#allocation9 + $0x20] ss:$12 sps:$4 sm:$0xff]  }
 0x34f   :  { %2530 = vmatprep.subr.bf16.mxu0 %v12941_v48  ;;  %v11870_v48 = vld [vmem:[#allocation9 + $0x8] ss:$12 sps:$4 sm:$0xff]  }
 0x350   :  { %11162 = vmatpush3.bf16.msra.mxu1 %v11866_v42  ;;  %v11886_v42 = vld [vmem:[#allocation9 + $0x68] ss:$12 sps:$4 sm:$0xff]  }
 0x351   :  { %11163 = vmatprep.subr.bf16.mxu1 %v12577_v2 }
 0x352   :  { %2531 = vmatpush1.bf16.msra.mxu0 %v12946_v49 }
 0x353   :  { %2532 = vmatprep.subr.bf16.mxu0 %v12948_v51 }
 0x354   :  { %11164 = vmatpush3.bf16.msra.mxu1 %v11867_v43  ;;  %v13178_v43 = vld [vmem:[#allocation9 + $0x4c] ss:$12 sps:$4 sm:$0xff]  }
 0x355   :  { %11165 = vmatprep.subr.bf16.mxu1 %v12577_v2 }
 0x356   :  { %2533 = vmatpush1.bf16.msra.mxu0 %v12953_v52 }
 0x357   :  { %2534 = vmatprep.subr.bf16.mxu0 %v12955_v54 }
 0x358   :  { %11166 = vmatpush3.bf16.msra.mxu1 %v11868_v45  ;;  %v13181_v45 = vld [vmem:[#allocation9 + $0x48] ss:$12 sps:$4 sm:$0xff]  }
 0x359   :  { %11167 = vmatprep.subr.bf16.mxu1 %v12577_v2 }
 0x35a   :  { %2535 = vmatpush1.bf16.msra.mxu0 %v12960_v55 }
 0x35b   :  { %2536 = vmatprep.subr.bf16.mxu0 %v12962_v57 }
 0x35c   :  { %11168 = vmatpush3.bf16.msra.mxu1 %v11869_v46  ;;  %v11890_v46 = vld [vmem:[#allocation9 + $0x50] ss:$12 sps:$4 sm:$0xff]  }
 0x35d   :  { %11169 = vmatprep.subr.bf16.mxu1 %v12577_v2 }
 0x35e   :  { %2537 = vmatpush1.bf16.msra.mxu0 %v12968_v58 }
 0x360   :  { %11170 = vmatpush3.bf16.msra.mxu1 %v11870_v48  ;;  %v13185_v48 = vld [vmem:[#allocation9 + $0x34] ss:$12 sps:$4 sm:$0xff]  }
 0x361   :  { %11175 = vmatprep.subr.bf16.mxu1 %v12577_v2 }
 0x401   :  { %v2291_v49 = vpop.f32.mrf.mxu0  ;;  %v2332_v51 = vpop.f32.mrf.mxu1 }
 0x402   :  { %v2338_v52 = vadd.f32 %v2291_v49, %v13008_v15  ;;  %v2348_v41 = vadd.f32 %v13057_v22, %v2332_v51  ;;  %v13188_v49 = vld [vmem:[#allocation9 + $0x30] ss:$12 sps:$4 sm:$0xff]   ;;  %v11894_v51 = vld [vmem:[#allocation9 + $0x38] ss:$12 sps:$4 sm:$0xff]  }
 0x403   :  { %v2293_v54 = vpop.f32.mrf.mxu0  ;;  %v11153_v55 = vpop.f32.mrf.mxu1 }
 0x404   :  { %v2339_v57 = vmul.f32 0.5, %v2338_v52  ;;  %v2343_v24 = vadd.f32 %v2293_v54, %v13013_v17  ;;  %v13192_v52 = vld [vmem:[#allocation9 + $0x1c] ss:$12 sps:$4 sm:$0xff]   ;;  %v13195_v54 = vld [vmem:[#allocation9 + $0x18] ss:$12 sps:$4 sm:$0xff]  }
 0x405   :  { %v2295_v58 = vpop.f32.mrf.mxu0  ;;  %v2335_v7 = vpop.f32.mrf.mxu1  ;;  %v11898_v55 = vld [vmem:[#allocation9 + $0x20] ss:$12 sps:$4 sm:$0xff]  }
 0x406   :  { %12323 = vtanh.f32 %v2339_v57  ;;  %v2344_v33 = vmul.f32 0.5, %v2343_v24  ;;  %v13199_v57 = vld [vmem:[#allocation9 + $0x4] ss:$12 sps:$4 sm:$0xff]   ;;  %v13202_v58 = vld [vmem:[#allocation9] ss:$12 sps:$4 sm:$0xff]  }
 0x407   :  { %v2296_v1 = vpop.f32.mrf.mxu0  ;;  %v11154_v25 = vpop.f32.mrf.mxu1  ;;  %v11902_v7 = vld [vmem:[#allocation9 + $0x8] ss:$12 sps:$4 sm:$0xff]  }
 0x408   :  { %12325 = vtanh.f32 %v2344_v33 }
 0x413   :  { %v12324_v34 = vpop.eup %12323 }
 0x414   :  { %v2341_v37 = vadd.f32 1.0, %v12324_v34 }
 0x415   :  { %v12326_v44 = vpop.eup %12325 }
 0x416   :  { %v2342_v38 = vmul.f32 0.5, %v2341_v37  ;;  %v2346_v59 = vadd.f32 1.0, %v12326_v44 }
 0x418   :  { %v2349_v62 = vmul.f32 %v2348_v41, %v2342_v38  ;;  %v2347_v63 = vmul.f32 0.5, %v2346_v59 }
 0x41a   :  { %v2350_v15 = vadd.f32 %v2349_v62, %v13010_v16  ;;  %v2352_v61 = vsub.f32 1.0, %v2347_v63  ;;  %v2354_v6 = vmul.f32 %v2347_v63, %v13101_v8  ;;  %v13151_v16 = vld [vmem:[#allocation9 + $0xac] ss:$12 sps:$4 sm:$0xff]  }
 0x41b   :  { %2787 = vmatprep.subr.bf16.mxu0 %v13151_v16  ;;  %v13167_v8 = vld [vmem:[#allocation9 + $0x78] ss:$12 sps:$4 sm:$0xff]  }
 0x41c   :  { %12327 = vtanh.f32 %v2350_v15 }
 0x429   :  { %v12328_v56 = vpop.eup %12327 }
 0x42a   :  { %v2353_v10 = vmul.f32 %v12328_v56, %v2352_v61 }
 0x42c   :  { %v13140_v17 = vadd.f32 %v2354_v6, %v2353_v10 }
 0x42e   :  { %v13144_v11 = vpack.c.bf16 %v13140_v17, %v13140_v17 }
 0x430   :  { %2555 = vmatmul.mubr.bf16.vlgmr.msra.gmra.mxu0 %v13144_v11  ;;  %11172 = vmatmul.mubr.bf16.vlgmr.msra.gmra.mxu1 %v13144_v11 }
 0x431   :  { %2819 = vmatprep.mubr.bf16.mxu0 %v12575_v0  ;;  %11191 = vmatprep.mubr.msk.bf16.mxu1 %vm12582_vm0, %v12577_v2 }
 0x432   :  { %2788 = vmatpush1.bf16.msra.mxu0 %v13153_v12  ;;  %11176 = vmatpush3.bf16.msra.mxu1 %v11874_v35 }
 0x433   :  { %11177 = vmatprep.subr.bf16.mxu1 %v12577_v2  ;;  %2789 = vmatprep.subr.bf16.mxu0 %v13157_v13 }
 0x436   :  { %2790 = vmatpush1.bf16.msra.mxu0 %v13160_v14  ;;  %11178 = vmatpush3.bf16.msra.mxu1 %v11878_v21 }
 0x437   :  { %11179 = vmatprep.subr.bf16.mxu1 %v12577_v2  ;;  %2791 = vmatprep.subr.bf16.mxu0 %v13164_v26 }
 0x43a   :  { %2792 = vmatpush1.bf16.msra.mxu0 %v13167_v8  ;;  %11180 = vmatpush3.bf16.msra.mxu1 %v11882_v36 }
 0x43b   :  { %11181 = vmatprep.subr.bf16.mxu1 %v12577_v2  ;;  %2793 = vmatprep.subr.bf16.mxu0 %v13171_v39 }
 0x43e   :  { %2794 = vmatpush1.bf16.msra.mxu0 %v13174_v40  ;;  %11182 = vmatpush3.bf16.msra.mxu1 %v11886_v42 }
 0x43f   :  { %11183 = vmatprep.subr.bf16.mxu1 %v12577_v2  ;;  %2795 = vmatprep.subr.bf16.mxu0 %v13178_v43 }
 0x442   :  { %2796 = vmatpush1.bf16.msra.mxu0 %v13181_v45  ;;  %11184 = vmatpush3.bf16.msra.mxu1 %v11890_v46 }
 0x443   :  { %11185 = vmatprep.subr.bf16.mxu1 %v12577_v2  ;;  %2797 = vmatprep.subr.bf16.mxu0 %v13185_v48 }
 0x446   :  { %2798 = vmatpush1.bf16.msra.mxu0 %v13188_v49  ;;  %11186 = vmatpush3.bf16.msra.mxu1 %v11894_v51 }
 0x447   :  { %11187 = vmatprep.subr.bf16.mxu1 %v12577_v2  ;;  %2799 = vmatprep.subr.bf16.mxu0 %v13192_v52 }
 0x44a   :  { %2800 = vmatpush1.bf16.msra.mxu0 %v13195_v54  ;;  %11188 = vmatpush3.bf16.msra.mxu1 %v11898_v55 }
 0x44b   :  { %11189 = vmatprep.subr.bf16.mxu1 %v12577_v2  ;;  %2801 = vmatprep.subr.bf16.mxu0 %v13199_v57 }
 0x44e   :  { %2802 = vmatpush1.bf16.msra.mxu0 %v13202_v58  ;;  %11190 = vmatpush3.bf16.msra.mxu1 %v11902_v7 }
 0x44f   :  { %3052 = vmatprep.subr.bf16.mxu0 %v13151_v16  ;;  %11195 = vmatprep.subr.bf16.mxu1 %v12577_v2 }
 0x4f0   :  { %v2556_v1 = vpop.f32.mrf.mxu0  ;;  %v2597_v25 = vpop.f32.mrf.mxu1 }
 0x4f1   :  { %v2603_v24 = vadd.f32 %v2556_v1, %v13018_v28  ;;  %v2613_v10 = vadd.f32 %v13057_v22, %v2597_v25  ;;  %v11905_v1 = vld [vmem:[#allocation9 + $0x80] ss:$12 sps:$4 sm:$0xff]   ;;  %v11906_v25 = vld [vmem:[#allocation9 + $0x68] ss:$12 sps:$4 sm:$0xff]  }
 0x4f2   :  { %v2558_v33 = vpop.f32.mrf.mxu0  ;;  %v11173_v34 = vpop.f32.mrf.mxu1 }
 0x4f3   :  { %v2604_v37 = vmul.f32 0.5, %v2603_v24  ;;  %v2608_v44 = vadd.f32 %v2558_v33, %v13023_v30  ;;  %v11907_v24 = vld [vmem:[#allocation9 + $0x50] ss:$12 sps:$4 sm:$0xff]   ;;  %v11908_v33 = vld [vmem:[#allocation9 + $0x38] ss:$12 sps:$4 sm:$0xff]  }
 0x4f4   :  { %v2560_v38 = vpop.f32.mrf.mxu0  ;;  %v2600_v41 = vpop.f32.mrf.mxu1  ;;  %v11909_v34 = vld [vmem:[#allocation9 + $0x20] ss:$12 sps:$4 sm:$0xff]  }
 0x4f5   :  { %12329 = vtanh.f32 %v2604_v37  ;;  %v2609_v59 = vmul.f32 0.5, %v2608_v44  ;;  %v11910_v37 = vld [vmem:[#allocation9 + $0x8] ss:$12 sps:$4 sm:$0xff]  }
 0x4f6   :  { %v2561_v62 = vpop.f32.mrf.mxu0  ;;  %v11174_v15 = vpop.f32.mrf.mxu1 }
 0x4f7   :  { %12331 = vtanh.f32 %v2609_v59 }
 0x502   :  { %v12330_v63 = vpop.eup %12329 }
 0x503   :  { %v2606_v61 = vadd.f32 1.0, %v12330_v63 }
 0x504   :  { %v12332_v35 = vpop.eup %12331 }
 0x505   :  { %v2607_v56 = vmul.f32 0.5, %v2606_v61  ;;  %v2611_v21 = vadd.f32 1.0, %v12332_v35 }
 0x507   :  { %v2614_v6 = vmul.f32 %v2613_v10, %v2607_v56  ;;  %v2612_v36 = vmul.f32 0.5, %v2611_v21 }
 0x509   :  { %v2615_v28 = vadd.f32 %v2614_v6, %v13020_v29  ;;  %v2617_v42 = vsub.f32 1.0, %v2612_v36  ;;  %v2619_v55 = vmul.f32 %v2612_v36, %v13140_v17  ;;  %v11903_v29 = vld [vmem:[#allocation9 + $0xb0] ss:$12 sps:$4 sm:$0xff]   ;;  %v11904_v17 = vld [vmem:[#allocation9 + $0x98] ss:$12 sps:$4 sm:$0xff]  }
 0x50b   :  { %12333 = vtanh.f32 %v2615_v28 }
 0x518   :  { %v12334_v46 = vpop.eup %12333 }
 0x519   :  { %v2618_v51 = vmul.f32 %v12334_v46, %v2617_v42 }
 0x51b   :  { %v13213_v30 = vadd.f32 %v2619_v55, %v2618_v51 }
 0x51d   :  { %v13217_v7 = vpack.c.bf16 %v13213_v30, %v13213_v30 }
 0x51f   :  { %2820 = vmatmul.mubr.bf16.vlgmr.msra.gmra.mxu0 %v13217_v7  ;;  %11192 = vmatmul.mubr.bf16.vlgmr.msra.gmra.mxu1 %v13217_v7 }
 0x520   :  { %3053 = vmatpush1.bf16.msra.mxu0 %v13153_v12  ;;  %3084 = vmatprep.mubr.bf16.mxu0 %v12575_v0 }
 0x521   :  { %3054 = vmatprep.subr.bf16.mxu0 %v13157_v13  ;;  %11211 = vmatprep.mubr.msk.bf16.mxu1 %vm12582_vm0, %v12577_v2 }
 0x522   :  { %11196 = vmatpush3.bf16.msra.mxu1 %v11903_v29 }
 0x523   :  { %11197 = vmatprep.subr.bf16.mxu1 %v12577_v2 }
 0x524   :  { %3055 = vmatpush1.bf16.msra.mxu0 %v13160_v14 }
 0x525   :  { %3056 = vmatprep.subr.bf16.mxu0 %v13164_v26 }
 0x526   :  { %11198 = vmatpush3.bf16.msra.mxu1 %v11904_v17 }
 0x527   :  { %11199 = vmatprep.subr.bf16.mxu1 %v12577_v2 }
 0x528   :  { %3057 = vmatpush1.bf16.msra.mxu0 %v13167_v8 }
 0x529   :  { %3058 = vmatprep.subr.bf16.mxu0 %v13171_v39 }
 0x52a   :  { %11200 = vmatpush3.bf16.msra.mxu1 %v11905_v1 }
 0x52b   :  { %11201 = vmatprep.subr.bf16.mxu1 %v12577_v2 }
 0x52c   :  { %3059 = vmatpush1.bf16.msra.mxu0 %v13174_v40 }
 0x52d   :  { %3060 = vmatprep.subr.bf16.mxu0 %v13178_v43 }
 0x52e   :  { %11202 = vmatpush3.bf16.msra.mxu1 %v11906_v25 }
 0x52f   :  { %11203 = vmatprep.subr.bf16.mxu1 %v12577_v2 }
 0x530   :  { %3061 = vmatpush1.bf16.msra.mxu0 %v13181_v45 }
 0x531   :  { %3062 = vmatprep.subr.bf16.mxu0 %v13185_v48 }
 0x532   :  { %11204 = vmatpush3.bf16.msra.mxu1 %v11907_v24 }
 0x533   :  { %11205 = vmatprep.subr.bf16.mxu1 %v12577_v2 }
 0x534   :  { %3063 = vmatpush1.bf16.msra.mxu0 %v13188_v49 }
 0x535   :  { %3064 = vmatprep.subr.bf16.mxu0 %v13192_v52 }
 0x536   :  { %11206 = vmatpush3.bf16.msra.mxu1 %v11908_v33 }
 0x537   :  { %11207 = vmatprep.subr.bf16.mxu1 %v12577_v2 }
 0x538   :  { %3065 = vmatpush1.bf16.msra.mxu0 %v13195_v54 }
 0x539   :  { %3066 = vmatprep.subr.bf16.mxu0 %v13199_v57 }
 0x53a   :  { %11208 = vmatpush3.bf16.msra.mxu1 %v11909_v34  ;;  %v11913_v34 = vld [vmem:[#allocation9 + $0x80] ss:$12 sps:$4 sm:$0xff]  }
 0x53b   :  { %11209 = vmatprep.subr.bf16.mxu1 %v12577_v2 }
 0x53c   :  { %3067 = vmatpush1.bf16.msra.mxu0 %v13202_v58 }
 0x53d   :  { %3317 = vmatprep.subr.bf16.mxu0 %v13151_v16 }
 0x53e   :  { %11210 = vmatpush3.bf16.msra.mxu1 %v11910_v37  ;;  %v11914_v37 = vld [vmem:[#allocation9 + $0x68] ss:$12 sps:$4 sm:$0xff]  }
 0x53f   :  { %11215 = vmatprep.subr.bf16.mxu1 %v12577_v2 }
 0x5df   :  { %v2821_v38 = vpop.f32.mrf.mxu0  ;;  %v2862_v41 = vpop.f32.mrf.mxu1 }
 0x5e0   :  { %v2868_v62 = vadd.f32 %v2821_v38, %v13028_v47  ;;  %v2878_v42 = vadd.f32 %v13057_v22, %v2862_v41  ;;  %v11915_v38 = vld [vmem:[#allocation9 + $0x50] ss:$12 sps:$4 sm:$0xff]   ;;  %v11917_v41 = vld [vmem:[#allocation9 + $0x20] ss:$12 sps:$4 sm:$0xff]  }
 0x5e1   :  { %v2823_v15 = vpop.f32.mrf.mxu0  ;;  %v11193_v44 = vpop.f32.mrf.mxu1 }
 0x5e2   :  { %v2869_v59 = vmul.f32 0.5, %v2868_v62  ;;  %v2873_v6 = vadd.f32 %v2823_v15, %v13032_v53  ;;  %v11918_v62 = vld [vmem:[#allocation9 + $0x8] ss:$12 sps:$4 sm:$0xff]  }
 0x5e3   :  { %v2825_v63 = vpop.f32.mrf.mxu0  ;;  %v2865_v61 = vpop.f32.mrf.mxu1 }
 0x5e4   :  { %12335 = vtanh.f32 %v2869_v59  ;;  %v2874_v28 = vmul.f32 0.5, %v2873_v6 }
 0x5e5   :  { %v2826_v56 = vpop.f32.mrf.mxu0  ;;  %v11194_v10 = vpop.f32.mrf.mxu1 }
 0x5e6   :  { %12337 = vtanh.f32 %v2874_v28 }
 0x5f1   :  { %v12336_v35 = vpop.eup %12335 }
 0x5f2   :  { %v2871_v21 = vadd.f32 1.0, %v12336_v35 }
 0x5f3   :  { %v12338_v51 = vpop.eup %12337 }
 0x5f4   :  { %v2872_v36 = vmul.f32 0.5, %v2871_v21  ;;  %v2876_v55 = vadd.f32 1.0, %v12338_v51 }
 0x5f6   :  { %v2879_v46 = vmul.f32 %v2878_v42, %v2872_v36  ;;  %v2877_v29 = vmul.f32 0.5, %v2876_v55 }
 0x5f8   :  { %v2880_v47 = vadd.f32 %v2879_v46, %v13030_v50  ;;  %v2882_v17 = vsub.f32 1.0, %v2877_v29  ;;  %v2884_v24 = vmul.f32 %v2877_v29, %v13213_v30  ;;  %v11911_v50 = vld [vmem:[#allocation9 + $0xb0] ss:$12 sps:$4 sm:$0xff]   ;;  %v11912_v30 = vld [vmem:[#allocation9 + $0x98] ss:$12 sps:$4 sm:$0xff]  }
 0x5fa   :  { %12339 = vtanh.f32 %v2880_v47 }
 0x607   :  { %v12340_v1 = vpop.eup %12339 }
 0x608   :  { %v2883_v25 = vmul.f32 %v12340_v1, %v2882_v17 }
 0x60a   :  { %v13253_v53 = vadd.f32 %v2884_v24, %v2883_v25 }
 0x60c   :  { %v13257_v33 = vpack.c.bf16 %v13253_v53, %v13253_v53 }
 0x60e   :  { %3085 = vmatmul.mubr.bf16.vlgmr.msra.gmra.mxu0 %v13257_v33  ;;  %11212 = vmatmul.mubr.bf16.vlgmr.msra.gmra.mxu1 %v13257_v33 }
 0x60f   :  { %3318 = vmatpush1.bf16.msra.mxu0 %v13153_v12  ;;  %3349 = vmatprep.mubr.bf16.mxu0 %v12575_v0 }
 0x610   :  { %3319 = vmatprep.subr.bf16.mxu0 %v13157_v13  ;;  %11231 = vmatprep.mubr.msk.bf16.mxu1 %vm12582_vm0, %v12577_v2 }
 0x611   :  { %11216 = vmatpush3.bf16.msra.mxu1 %v11911_v50 }
 0x612   :  { %11217 = vmatprep.subr.bf16.mxu1 %v12577_v2 }
 0x613   :  { %3320 = vmatpush1.bf16.msra.mxu0 %v13160_v14 }
 0x614   :  { %3321 = vmatprep.subr.bf16.mxu0 %v13164_v26 }
 0x615   :  { %11218 = vmatpush3.bf16.msra.mxu1 %v11912_v30 }
 0x616   :  { %11219 = vmatprep.subr.bf16.mxu1 %v12577_v2 }
 0x617   :  { %3322 = vmatpush1.bf16.msra.mxu0 %v13167_v8 }
 0x618   :  { %3323 = vmatprep.subr.bf16.mxu0 %v13171_v39 }
 0x619   :  { %11220 = vmatpush3.bf16.msra.mxu1 %v11913_v34 }
 0x61a   :  { %11221 = vmatprep.subr.bf16.mxu1 %v12577_v2 }
 0x61b   :  { %3324 = vmatpush1.bf16.msra.mxu0 %v13174_v40 }
 0x61c   :  { %3325 = vmatprep.subr.bf16.mxu0 %v13178_v43 }
 0x61d   :  { %11222 = vmatpush3.bf16.msra.mxu1 %v11914_v37 }
 0x61e   :  { %11223 = vmatprep.subr.bf16.mxu1 %v12577_v2 }
 0x61f   :  { %3326 = vmatpush1.bf16.msra.mxu0 %v13181_v45 }
 0x620   :  { %3327 = vmatprep.subr.bf16.mxu0 %v13185_v48 }
 0x621   :  { %11224 = vmatpush3.bf16.msra.mxu1 %v11915_v38 }
 0x622   :  { %11225 = vmatprep.subr.bf16.mxu1 %v12577_v2 }
 0x623   :  { %3328 = vmatpush1.bf16.msra.mxu0 %v13188_v49 }
 0x624   :  { %3329 = vmatprep.subr.bf16.mxu0 %v13192_v52 }
 0x627   :  { %3330 = vmatpush1.bf16.msra.mxu0 %v13195_v54 }
 0x628   :  { %3331 = vmatprep.subr.bf16.mxu0 %v13199_v57 }
 0x62b   :  { %3332 = vmatpush1.bf16.msra.mxu0 %v13202_v58 }
 0x62c   :  { %3582 = vmatprep.subr.bf16.mxu0 %v13151_v16  ;;  %v11916_v16 = vld [vmem:[#allocation9 + $0x38] ss:$12 sps:$4 sm:$0xff]  }
 0x62d   :  { %11226 = vmatpush3.bf16.msra.mxu1 %v11916_v16 }
 0x62e   :  { %11227 = vmatprep.subr.bf16.mxu1 %v12577_v2 }
 0x631   :  { %11228 = vmatpush3.bf16.msra.mxu1 %v11917_v41 }
 0x632   :  { %11229 = vmatprep.subr.bf16.mxu1 %v12577_v2 }
 0x635   :  { %11230 = vmatpush3.bf16.msra.mxu1 %v11918_v62 }
 0x636   :  { %11235 = vmatprep.subr.bf16.mxu1 %v12577_v2 }
 0x6ce   :  { %v3086_v15 = vpop.f32.mrf.mxu0  ;;  %v3127_v44 = vpop.f32.mrf.mxu1 }
 0x6cf   :  { %v3133_v59 = vadd.f32 %v3086_v15, %v13034_v4  ;;  %v3143_v51 = vadd.f32 %v13057_v22, %v3127_v44 }
 0x6d0   :  { %v3088_v63 = vpop.f32.mrf.mxu0  ;;  %v11213_v61 = vpop.f32.mrf.mxu1 }
 0x6d1   :  { %v3134_v56 = vmul.f32 0.5, %v3133_v59  ;;  %v3138_v21 = vadd.f32 %v3088_v63, %v13038_v9 }
 0x6d2   :  { %v3090_v10 = vpop.f32.mrf.mxu0  ;;  %v3130_v6 = vpop.f32.mrf.mxu1 }
 0x6d3   :  { %12341 = vtanh.f32 %v3134_v56  ;;  %v3139_v36 = vmul.f32 0.5, %v3138_v21 }
 0x6d4   :  { %v3091_v28 = vpop.f32.mrf.mxu0  ;;  %v11214_v35 = vpop.f32.mrf.mxu1 }
 0x6d5   :  { %12343 = vtanh.f32 %v3139_v36  ;;  %v11930_v36 = vld [vmem:[#allocation12 + $0xb0] ss:$12 sps:$4 sm:$0xff]  }
 0x6e0   :  { %v12342_v42 = vpop.eup %12341 }
 0x6e1   :  { %v3136_v46 = vadd.f32 1.0, %v12342_v42  ;;  %v13349_v42 = vld [vmem:[#allocation12 + $0x94] ss:$12 sps:$4 sm:$0xff]  }
 0x6e2   :  { %v12344_v29 = vpop.eup %12343 }
 0x6e3   :  { %v3137_v47 = vmul.f32 0.5, %v3136_v46  ;;  %v3141_v17 = vadd.f32 1.0, %v12344_v29  ;;  %v13352_v46 = vld [vmem:[#allocation12 + $0x90] ss:$12 sps:$4 sm:$0xff]  }
 0x6e4   :  { %v13363_v29 = vld [vmem:[#allocation12 + $0x64] ss:$12 sps:$4 sm:$0xff]  }
 0x6e5   :  { %v3144_v55 = vmul.f32 %v3143_v51, %v3137_v47  ;;  %v3142_v1 = vmul.f32 0.5, %v3141_v17  ;;  %v11934_v47 = vld [vmem:[#allocation12 + $0x98] ss:$12 sps:$4 sm:$0xff]   ;;  %v13356_v51 = vld [vmem:[#allocation12 + $0x7c] ss:$12 sps:$4 sm:$0xff]  }
 0x6e6   :  { %v13366_v17 = vld [vmem:[#allocation12 + $0x60] ss:$12 sps:$4 sm:$0xff]  }
 0x6e7   :  { %v3145_v4 = vadd.f32 %v3144_v55, %v13036_v5  ;;  %v3147_v25 = vsub.f32 1.0, %v3142_v1  ;;  %v3149_v30 = vmul.f32 %v3142_v1, %v13253_v53  ;;  %v11919_v5 = vld [vmem:[#allocation9 + $0xb0] ss:$12 sps:$4 sm:$0xff]   ;;  %v13359_v55 = vld [vmem:[#allocation12 + $0x78] ss:$12 sps:$4 sm:$0xff]  }
 0x6e8   :  { %v11942_v1 = vld [vmem:[#allocation12 + $0x68] ss:$12 sps:$4 sm:$0xff]  }
 0x6e9   :  { %12345 = vtanh.f32 %v3145_v4  ;;  %v11938_v4 = vld [vmem:[#allocation12 + $0x80] ss:$12 sps:$4 sm:$0xff]  }
 0x6f6   :  { %v12346_v24 = vpop.eup %12345 }
 0x6f7   :  { %v3148_v50 = vmul.f32 %v12346_v24, %v3147_v25  ;;  %v13370_v25 = vld [vmem:[#allocation12 + $0x4c] ss:$12 sps:$4 sm:$0xff]   ;;  %v13373_v24 = vld [vmem:[#allocation12 + $0x48] ss:$12 sps:$4 sm:$0xff]  }
 0x6f9   :  { %v13293_v9 = vadd.f32 %v3149_v30, %v3148_v50  ;;  %v11946_v50 = vld [vmem:[#allocation12 + $0x50] ss:$12 sps:$4 sm:$0xff]   ;;  %v13377_v30 = vld [vmem:[#allocation12 + $0x34] ss:$12 sps:$4 sm:$0xff]  }
 0x6fb   :  { %v13297_v34 = vpack.c.bf16 %v13293_v9, %v13293_v9 }
 0x6fd   :  { %3350 = vmatmul.mubr.bf16.vlgmr.msra.gmra.mxu0 %v13297_v34  ;;  %11232 = vmatmul.mubr.bf16.vlgmr.msra.gmra.mxu1 %v13297_v34 }
 0x6fe   :  { %3583 = vmatpush1.bf16.msra.mxu0 %v13153_v12  ;;  %3614 = vmatprep.mubr.bf16.mxu0 %v12575_v0  ;;  %v11920_v12 = vld [vmem:[#allocation9 + $0x98] ss:$12 sps:$4 sm:$0xff]  }
 0x6ff   :  { %3584 = vmatprep.subr.bf16.mxu0 %v13157_v13  ;;  %11251 = vmatprep.mubr.msk.bf16.mxu1 %vm12582_vm0, %v12577_v2  ;;  %v11921_v13 = vld [vmem:[#allocation9 + $0x80] ss:$12 sps:$4 sm:$0xff]  }
 0x700   :  { %11236 = vmatpush3.bf16.msra.mxu1 %v11919_v5  ;;  %v11950_v5 = vld [vmem:[#allocation12 + $0x38] ss:$12 sps:$4 sm:$0xff]  }
 0x701   :  { %11237 = vmatprep.subr.bf16.mxu1 %v12577_v2 }
 0x702   :  { %3585 = vmatpush1.bf16.msra.mxu0 %v13160_v14  ;;  %v11922_v14 = vld [vmem:[#allocation9 + $0x68] ss:$12 sps:$4 sm:$0xff]  }
 0x703   :  { %3586 = vmatprep.subr.bf16.mxu0 %v13164_v26  ;;  %v11923_v26 = vld [vmem:[#allocation9 + $0x50] ss:$12 sps:$4 sm:$0xff]  }
 0x704   :  { %11238 = vmatpush3.bf16.msra.mxu1 %v11920_v12  ;;  %v13384_v12 = vld [vmem:[#allocation12 + $0x1c] ss:$12 sps:$4 sm:$0xff]  }
 0x705   :  { %11239 = vmatprep.subr.bf16.mxu1 %v12577_v2 }
 0x706   :  { %3587 = vmatpush1.bf16.msra.mxu0 %v13167_v8  ;;  %v11924_v8 = vld [vmem:[#allocation9 + $0x38] ss:$12 sps:$4 sm:$0xff]  }
 0x707   :  { %3588 = vmatprep.subr.bf16.mxu0 %v13171_v39  ;;  %v11925_v39 = vld [vmem:[#allocation9 + $0x20] ss:$12 sps:$4 sm:$0xff]  }
 0x708   :  { %11240 = vmatpush3.bf16.msra.mxu1 %v11921_v13  ;;  %v13387_v13 = vld [vmem:[#allocation12 + $0x18] ss:$12 sps:$4 sm:$0xff]  }
 0x709   :  { %11241 = vmatprep.subr.bf16.mxu1 %v12577_v2 }
 0x70a   :  { %3589 = vmatpush1.bf16.msra.mxu0 %v13174_v40  ;;  %v11926_v40 = vld [vmem:[#allocation9 + $0x8] ss:$12 sps:$4 sm:$0xff]  }
 0x70b   :  { %3590 = vmatprep.subr.bf16.mxu0 %v13178_v43 }
 0x70c   :  { %11242 = vmatpush3.bf16.msra.mxu1 %v11922_v14  ;;  %v11954_v14 = vld [vmem:[#allocation12 + $0x20] ss:$12 sps:$4 sm:$0xff]  }
 0x70d   :  { %11243 = vmatprep.subr.bf16.mxu1 %v12577_v2 }
 0x70e   :  { %3591 = vmatpush1.bf16.msra.mxu0 %v13181_v45 }
 0x70f   :  { %3592 = vmatprep.subr.bf16.mxu0 %v13185_v48 }
 0x710   :  { %11244 = vmatpush3.bf16.msra.mxu1 %v11923_v26  ;;  %v13391_v26 = vld [vmem:[#allocation12 + $0x4] ss:$12 sps:$4 sm:$0xff]  }
 0x711   :  { %11245 = vmatprep.subr.bf16.mxu1 %v12577_v2 }
 0x712   :  { %3593 = vmatpush1.bf16.msra.mxu0 %v13188_v49 }
 0x713   :  { %3594 = vmatprep.subr.bf16.mxu0 %v13192_v52 }
 0x714   :  { %11246 = vmatpush3.bf16.msra.mxu1 %v11924_v8  ;;  %v13394_v8 = vld [vmem:[#allocation12] ss:$12 sps:$4 sm:$0xff]  }
 0x715   :  { %11247 = vmatprep.subr.bf16.mxu1 %v12577_v2 }
 0x716   :  { %3595 = vmatpush1.bf16.msra.mxu0 %v13195_v54 }
 0x717   :  { %3596 = vmatprep.subr.bf16.mxu0 %v13199_v57 }
 0x718   :  { %11248 = vmatpush3.bf16.msra.mxu1 %v11925_v39  ;;  %v11958_v39 = vld [vmem:[#allocation12 + $0x8] ss:$12 sps:$4 sm:$0xff]  }
 0x719   :  { %11249 = vmatprep.subr.bf16.mxu1 %v12577_v2 }
 0x71a   :  { %3597 = vmatpush1.bf16.msra.mxu0 %v13202_v58 }
 0x71c   :  { %11250 = vmatpush3.bf16.msra.mxu1 %v11926_v40  ;;  %v13397_v40 = vld [vmem:[#allocation10 + $0xac] ss:$12 sps:$4 sm:$0xff]  }
 0x71d   :  { %11255 = vmatprep.subr.bf16.mxu1 %v12577_v2 }
 0x7bd   :  { %v3351_v43 = vpop.f32.mrf.mxu0  ;;  %v3392_v45 = vpop.f32.mrf.mxu1 }
 0x7be   :  { %v3398_v48 = vadd.f32 %v3351_v43, %v13040_v18  ;;  %v3408_v44 = vadd.f32 %v13057_v22, %v3392_v45  ;;  %v13345_v22 = vld [vmem:[#allocation12 + $0xa8] ss:$12 sps:$4 sm:$0xff]  }
 0x7bf   :  { %v3353_v49 = vpop.f32.mrf.mxu0  ;;  %v11233_v52 = vpop.f32.mrf.mxu1 }
 0x7c0   :  { %v3399_v54 = vmul.f32 0.5, %v3398_v48  ;;  %v3403_v38 = vadd.f32 %v3353_v49, %v13044_v20 }
 0x7c1   :  { %v3355_v57 = vpop.f32.mrf.mxu0  ;;  %v3395_v58 = vpop.f32.mrf.mxu1 }
 0x7c2   :  { %12347 = vtanh.f32 %v3399_v54  ;;  %v3404_v16 = vmul.f32 0.5, %v3403_v38 }
 0x7c3   :  { %v3356_v53 = vpop.f32.mrf.mxu0  ;;  %v11234_v37 = vpop.f32.mrf.mxu1 }
 0x7c4   :  { %12349 = vtanh.f32 %v3404_v16 }
 0x7cf   :  { %v12348_v41 = vpop.eup %12347 }
 0x7d0   :  { %v3401_v62 = vadd.f32 1.0, %v12348_v41 }
 0x7d1   :  { %v12350_v63 = vpop.eup %12349 }
 0x7d2   :  { %v3402_v15 = vmul.f32 0.5, %v3401_v62  ;;  %v3406_v61 = vadd.f32 1.0, %v12350_v63 }
 0x7d4   :  { %v3409_v59 = vmul.f32 %v3408_v44, %v3402_v15  ;;  %v3407_v56 = vmul.f32 0.5, %v3406_v61  ;;  %v12415_v44 = vld [vmem:[%s14495_s3] ss:$0 sm:$0xff] }
 0x7d6   :  { %v3410_v18 = vadd.f32 %v3409_v59, %v13042_v19  ;;  %v3412_v10 = vsub.f32 1.0, %v3407_v56  ;;  %v3414_v35 = vmul.f32 %v3407_v56, %v13293_v9  ;;  %v13343_v19 = vld [vmem:[#allocation12 + $0xac] ss:$12 sps:$4 sm:$0xff]   ;;  %v13380_v9 = vld [vmem:[#allocation12 + $0x30] ss:$12 sps:$4 sm:$0xff]  }
 0x7d7   :  { %3896 = vmatprep.subr.bf16.mxu0 %v13343_v19 }
 0x7d8   :  { %12351 = vtanh.f32 %v3410_v18 }
 0x7e5   :  { %v12352_v6 = vpop.eup %12351 }
 0x7e6   :  { %v3413_v28 = vmul.f32 %v12352_v6, %v3412_v10 }
 0x7e8   :  { %v13332_v20 = vadd.f32 %v3414_v35, %v3413_v28 }
 0x7ea   :  { %v13336_v21 = vpack.c.bf16 %v13332_v20, %v13332_v20 }
 0x7ec   :  { %3615 = vmatmul.mubr.bf16.vlgmr.msra.gmra.mxu0 %v13336_v21  ;;  %11252 = vmatmul.mubr.bf16.vlgmr.msra.gmra.mxu1 %v13336_v21 }
 0x7ed   :  { %3928 = vmatprep.mubr.bf16.mxu0 %v12575_v0  ;;  %11271 = vmatprep.mubr.msk.bf16.mxu1 %vm12582_vm0, %v12577_v2 }
 0x7ee   :  { %3897 = vmatpush1.bf16.msra.mxu0 %v13345_v22  ;;  %11256 = vmatpush3.bf16.msra.mxu1 %v11930_v36  ;;  %v13409_v36 = vld [vmem:[#allocation10 + $0xa8] ss:$12 sps:$4 sm:$0xff]  }
 0x7ef   :  { %11257 = vmatprep.subr.bf16.mxu1 %v12577_v2  ;;  %3898 = vmatprep.subr.bf16.mxu0 %v13349_v42 }
 0x7f2   :  { %3899 = vmatpush1.bf16.msra.mxu0 %v13352_v46  ;;  %11258 = vmatpush3.bf16.msra.mxu1 %v11934_v47  ;;  %v11962_v47 = vld [vmem:[#allocation10 + $0xb0] ss:$12 sps:$4 sm:$0xff]  }
 0x7f3   :  { %11259 = vmatprep.subr.bf16.mxu1 %v12577_v2  ;;  %3900 = vmatprep.subr.bf16.mxu0 %v13356_v51 }
 0x7f6   :  { %3901 = vmatpush1.bf16.msra.mxu0 %v13359_v55  ;;  %11260 = vmatpush3.bf16.msra.mxu1 %v11938_v4 }
 0x7f7   :  { %11261 = vmatprep.subr.bf16.mxu1 %v12577_v2  ;;  %3902 = vmatprep.subr.bf16.mxu0 %v13363_v29 }
 0x7fa   :  { %3903 = vmatpush1.bf16.msra.mxu0 %v13366_v17  ;;  %11262 = vmatpush3.bf16.msra.mxu1 %v11942_v1  ;;  %v13413_v1 = vld [vmem:[#allocation10 + $0x94] ss:$12 sps:$4 sm:$0xff]  }
 0x7fb   :  { %11263 = vmatprep.subr.bf16.mxu1 %v12577_v2  ;;  %3904 = vmatprep.subr.bf16.mxu0 %v13370_v25 }
 0x7fe   :  { %3905 = vmatpush1.bf16.msra.mxu0 %v13373_v24  ;;  %11264 = vmatpush3.bf16.msra.mxu1 %v11946_v50  ;;  %v11966_v50 = vld [vmem:[#allocation10 + $0x98] ss:$12 sps:$4 sm:$0xff]  }
 0x7ff   :  { %11265 = vmatprep.subr.bf16.mxu1 %v12577_v2  ;;  %3906 = vmatprep.subr.bf16.mxu0 %v13377_v30 }
 0x802   :  { %3907 = vmatpush1.bf16.msra.mxu0 %v13380_v9  ;;  %11266 = vmatpush3.bf16.msra.mxu1 %v11950_v5  ;;  %v13428_v5 = vld [vmem:[#allocation10 + $0x78] ss:$12 sps:$4 sm:$0xff]  }
 0x803   :  { %11267 = vmatprep.subr.bf16.mxu1 %v12577_v2  ;;  %3908 = vmatprep.subr.bf16.mxu0 %v13384_v12 }
 0x806   :  { %3909 = vmatpush1.bf16.msra.mxu0 %v13387_v13  ;;  %11268 = vmatpush3.bf16.msra.mxu1 %v11954_v14  ;;  %v11970_v14 = vld [vmem:[#allocation10 + $0x80] ss:$12 sps:$4 sm:$0xff]  }
 0x807   :  { %11269 = vmatprep.subr.bf16.mxu1 %v12577_v2  ;;  %3910 = vmatprep.subr.bf16.mxu0 %v13391_v26 }
 0x80a   :  { %3911 = vmatpush1.bf16.msra.mxu0 %v13394_v8  ;;  %11270 = vmatpush3.bf16.msra.mxu1 %v11958_v39  ;;  %v13432_v39 = vld [vmem:[#allocation10 + $0x64] ss:$12 sps:$4 sm:$0xff]  }
 0x80b   :  { %4105 = vmatprep.subr.bf16.mxu0 %v13397_v40  ;;  %11275 = vmatprep.subr.bf16.mxu1 %v12577_v2 }
 0x8ac   :  { %v3616_v43 = vpop.f32.mrf.mxu0  ;;  %v3657_v45 = vpop.f32.mrf.mxu1 }
 0x8ad   :  { %v3663_v48 = vadd.f32 %v3616_v43, %v13046_v27  ;;  %v3673_v27 = vadd.f32 %v12415_v44, %v3657_v45  ;;  %v13435_v43 = vld [vmem:[#allocation10 + $0x60] ss:$12 sps:$4 sm:$0xff]   ;;  %v11974_v45 = vld [vmem:[#allocation10 + $0x68] ss:$12 sps:$4 sm:$0xff]   ;;  %v11992_v44 = vld [vmem:[#allocation12 + $0x98] ss:$12 sps:$4 sm:$0xff]  }
 0x8ae   :  { %v3618_v49 = vpop.f32.mrf.mxu0  ;;  %v11253_v52 = vpop.f32.mrf.mxu1 }
 0x8af   :  { %v3664_v54 = vmul.f32 0.5, %v3663_v48  ;;  %v3668_v38 = vadd.f32 %v3618_v49, %v13050_v32  ;;  %v13439_v48 = vld [vmem:[#allocation10 + $0x4c] ss:$12 sps:$4 sm:$0xff]   ;;  %v13442_v49 = vld [vmem:[#allocation10 + $0x48] ss:$12 sps:$4 sm:$0xff]  }
 0x8b0   :  { %v3620_v57 = vpop.f32.mrf.mxu0  ;;  %v3660_v58 = vpop.f32.mrf.mxu1  ;;  %v11978_v52 = vld [vmem:[#allocation10 + $0x50] ss:$12 sps:$4 sm:$0xff]  }
 0x8b1   :  { %12353 = vtanh.f32 %v3664_v54  ;;  %v3669_v16 = vmul.f32 0.5, %v3668_v38  ;;  %v13446_v54 = vld [vmem:[#allocation10 + $0x34] ss:$12 sps:$4 sm:$0xff]   ;;  %v13449_v57 = vld [vmem:[#allocation10 + $0x30] ss:$12 sps:$4 sm:$0xff]  }
 0x8b2   :  { %v3621_v53 = vpop.f32.mrf.mxu0  ;;  %v11254_v37 = vpop.f32.mrf.mxu1  ;;  %v11982_v58 = vld [vmem:[#allocation10 + $0x38] ss:$12 sps:$4 sm:$0xff]   ;;  %v11986_v38 = vld [vmem:[#allocation10 + $0x20] ss:$12 sps:$4 sm:$0xff]  }
 0x8b3   :  { %12355 = vtanh.f32 %v3669_v16  ;;  %v13453_v53 = vld [vmem:[#allocation10 + $0x1c] ss:$12 sps:$4 sm:$0xff]   ;;  %v13456_v37 = vld [vmem:[#allocation10 + $0x18] ss:$12 sps:$4 sm:$0xff]  }
 0x8b4   :  { %v13460_v16 = vld [vmem:[#allocation10 + $0x4] ss:$12 sps:$4 sm:$0xff]  }
 0x8be   :  { %v12354_v41 = vpop.eup %12353 }
 0x8bf   :  { %v3666_v62 = vadd.f32 1.0, %v12354_v41  ;;  %v13463_v41 = vld [vmem:[#allocation10] ss:$12 sps:$4 sm:$0xff]  }
 0x8c0   :  { %v12356_v63 = vpop.eup %12355 }
 0x8c1   :  { %v3667_v15 = vmul.f32 0.5, %v3666_v62  ;;  %v3671_v61 = vadd.f32 1.0, %v12356_v63  ;;  %v11990_v62 = vld [vmem:[#allocation10 + $0x8] ss:$12 sps:$4 sm:$0xff]   ;;  %v11996_v63 = vld [vmem:[#allocation12 + $0x38] ss:$12 sps:$4 sm:$0xff]  }
 0x8c3   :  { %v3674_v59 = vmul.f32 %v3673_v27, %v3667_v15  ;;  %v3672_v56 = vmul.f32 0.5, %v3671_v61  ;;  %v11991_v15 = vld [vmem:[#allocation12 + $0xb0] ss:$12 sps:$4 sm:$0xff]   ;;  %v11993_v27 = vld [vmem:[#allocation12 + $0x80] ss:$12 sps:$4 sm:$0xff]  }
 0x8c4   :  { %v11997_v61 = vld [vmem:[#allocation12 + $0x20] ss:$12 sps:$4 sm:$0xff]  }
 0x8c5   :  { %v3675_v18 = vadd.f32 %v3674_v59, %v13048_v31  ;;  %v3677_v10 = vsub.f32 1.0, %v3672_v56  ;;  %v3679_v28 = vmul.f32 %v3672_v56, %v13332_v20  ;;  %v13418_v31 = vld [vmem:[#allocation10 + $0x90] ss:$12 sps:$4 sm:$0xff]   ;;  %v11994_v59 = vld [vmem:[#allocation12 + $0x68] ss:$12 sps:$4 sm:$0xff]  }
 0x8c6   :  { %v13422_v20 = vld [vmem:[#allocation10 + $0x7c] ss:$12 sps:$4 sm:$0xff]  }
 0x8c7   :  { %12357 = vtanh.f32 %v3675_v18  ;;  %v11995_v18 = vld [vmem:[#allocation12 + $0x50] ss:$12 sps:$4 sm:$0xff]   ;;  %v11998_v56 = vld [vmem:[#allocation12 + $0x8] ss:$12 sps:$4 sm:$0xff]  }
 0x8d4   :  { %v12358_v6 = vpop.eup %12357 }
 0x8d5   :  { %v3678_v32 = vmul.f32 %v12358_v6, %v3677_v10  ;;  %v11999_v10 = vld [vmem:[#allocation10 + $0xb0] ss:$12 sps:$4 sm:$0xff]   ;;  %v12000_v6 = vld [vmem:[#allocation10 + $0x98] ss:$12 sps:$4 sm:$0xff]  }
 0x8d7   :  { %v3680_v35 = vadd.f32 %v3679_v28, %v3678_v32  ;;  %v12001_v32 = vld [vmem:[#allocation10 + $0x80] ss:$12 sps:$4 sm:$0xff]   ;;  %v12002_v28 = vld [vmem:[#allocation10 + $0x68] ss:$12 sps:$4 sm:$0xff]  }
 0x8d9   :  { %v13411_v4 = vpack.c.bf16 %v3680_v35, %v3680_v35  ;;  %v12003_v35 = vld [vmem:[#allocation10 + $0x50] ss:$12 sps:$4 sm:$0xff]  }
 0x8db   :  { %3929 = vmatmul.mubr.bf16.vlgmr.msra.gmra.mxu0 %v13411_v4  ;;  %11272 = vmatmul.mubr.bf16.vlgmr.msra.gmra.mxu1 %v13411_v4 }
 0x8dc   :  { %4106 = vmatpush1.bf16.msra.mxu0 %v13409_v36  ;;  %11276 = vmatpush3.bf16.msra.mxu1 %v11962_v47  ;;  %v12004_v47 = vld [vmem:[#allocation10 + $0x38] ss:$12 sps:$4 sm:$0xff]  }
 0x8dd   :  { %4107 = vmatprep.subr.bf16.mxu0 %v13413_v1  ;;  %11277 = vmatprep.subr.bf16.mxu1 %v12577_v2 }
 0x8de   :  { %4137 = vmatprep.mubr.bf16.mxu0 %v12575_v0  ;;  %11291 = vmatprep.mubr.msk.bf16.mxu1 %vm12582_vm0, %v12577_v2 }
 0x8e0   :  { %4108 = vmatpush1.bf16.msra.mxu0 %v13418_v31  ;;  %11278 = vmatpush3.bf16.msra.mxu1 %v11966_v50  ;;  %v12005_v50 = vld [vmem:[#allocation10 + $0x20] ss:$12 sps:$4 sm:$0xff]  }
 0x8e1   :  { %4109 = vmatprep.subr.bf16.mxu0 %v13422_v20  ;;  %11279 = vmatprep.subr.bf16.mxu1 %v12577_v2 }
 0x8e4   :  { %4110 = vmatpush1.bf16.msra.mxu0 %v13428_v5  ;;  %11280 = vmatpush3.bf16.msra.mxu1 %v11970_v14  ;;  %v12006_v14 = vld [vmem:[#allocation10 + $0x8] ss:$12 sps:$4 sm:$0xff]  }
 0x8e5   :  { %4111 = vmatprep.subr.bf16.mxu0 %v13432_v39  ;;  %11281 = vmatprep.subr.bf16.mxu1 %v12577_v2 }
 0x8e8   :  { %4112 = vmatpush1.bf16.msra.mxu0 %v13435_v43  ;;  %11282 = vmatpush3.bf16.msra.mxu1 %v11974_v45  ;;  %v12007_v45 = vld [vmem:[#allocation12 + $0xb0] ss:$12 sps:$4 sm:$0xff]  }
 0x8e9   :  { %4113 = vmatprep.subr.bf16.mxu0 %v13439_v48  ;;  %11283 = vmatprep.subr.bf16.mxu1 %v12577_v2 }
 0x8ec   :  { %4114 = vmatpush1.bf16.msra.mxu0 %v13442_v49  ;;  %11284 = vmatpush3.bf16.msra.mxu1 %v11978_v52  ;;  %v12008_v52 = vld [vmem:[#allocation12 + $0x98] ss:$12 sps:$4 sm:$0xff]  }
 0x8ed   :  { %4115 = vmatprep.subr.bf16.mxu0 %v13446_v54  ;;  %11285 = vmatprep.subr.bf16.mxu1 %v12577_v2 }
 0x8f0   :  { %4116 = vmatpush1.bf16.msra.mxu0 %v13449_v57  ;;  %11286 = vmatpush3.bf16.msra.mxu1 %v11982_v58  ;;  %v12042_v58 = vld [vmem:[#allocation12 + $0x50] ss:$12 sps:$4 sm:$0xff]  }
 0x8f1   :  { %4117 = vmatprep.subr.bf16.mxu0 %v13453_v53  ;;  %11287 = vmatprep.subr.bf16.mxu1 %v12577_v2 }
 0x8f4   :  { %4118 = vmatpush1.bf16.msra.mxu0 %v13456_v37  ;;  %11288 = vmatpush3.bf16.msra.mxu1 %v11986_v38  ;;  %v12046_v38 = vld [vmem:[#allocation12 + $0x38] ss:$12 sps:$4 sm:$0xff]  }
 0x8f5   :  { %4119 = vmatprep.subr.bf16.mxu0 %v13460_v16  ;;  %11289 = vmatprep.subr.bf16.mxu1 %v12577_v2 }
 0x8f8   :  { %4120 = vmatpush1.bf16.msra.mxu0 %v13463_v41  ;;  %11290 = vmatpush3.bf16.msra.mxu1 %v11990_v62  ;;  %v12050_v62 = vld [vmem:[#allocation12 + $0x20] ss:$12 sps:$4 sm:$0xff]  }
 0x8f9   :  { %4388 = vmatprep.subr.bf16.mxu0 %v13343_v19  ;;  %11295 = vmatprep.subr.bf16.mxu1 %v12577_v2 }
 0x8fb   :  { %4138 = vmatmul.mubr.bf16.vlgmr.msra.gmra.mxu0 %v13065_v3  ;;  %11292 = vmatmul.mubr.bf16.vlgmr.msra.gmra.mxu1 %v13065_v3 }
 0x8fc   :  { %4389 = vmatpush1.bf16.msra.mxu0 %v13345_v22  ;;  %11296 = vmatpush3.bf16.msra.mxu1 %v11991_v15  ;;  %v13637_v15 = vld [vmem:[#allocation12 + $0x4] ss:$12 sps:$4 sm:$0xff]  }
 0x8fd   :  { %4390 = vmatprep.subr.bf16.mxu0 %v13349_v42  ;;  %11297 = vmatprep.subr.bf16.mxu1 %v12577_v2 }
 0x8fe   :  { %4420 = vmatprep.mubr.bf16.mxu0 %v12575_v0  ;;  %11311 = vmatprep.mubr.msk.bf16.mxu1 %vm12582_vm0, %v12577_v2 }
 0x900   :  { %4391 = vmatpush1.bf16.msra.mxu0 %v13352_v46  ;;  %11298 = vmatpush3.bf16.msra.mxu1 %v11992_v44  ;;  %v13640_v44 = vld [vmem:[#allocation12] ss:$12 sps:$4 sm:$0xff]  }
 0x901   :  { %4392 = vmatprep.subr.bf16.mxu0 %v13356_v51  ;;  %11299 = vmatprep.subr.bf16.mxu1 %v12577_v2 }
 0x904   :  { %4393 = vmatpush1.bf16.msra.mxu0 %v13359_v55  ;;  %11300 = vmatpush3.bf16.msra.mxu1 %v11993_v27  ;;  %v12054_v27 = vld [vmem:[#allocation12 + $0x8] ss:$12 sps:$4 sm:$0xff]  }
 0x905   :  { %4394 = vmatprep.subr.bf16.mxu0 %v13363_v29  ;;  %11301 = vmatprep.subr.bf16.mxu1 %v12577_v2 }
 0x908   :  { %4395 = vmatpush1.bf16.msra.mxu0 %v13366_v17  ;;  %11302 = vmatpush3.bf16.msra.mxu1 %v11994_v59  ;;  %v13644_v59 = vld [vmem:[#allocation10 + $0xac] ss:$12 sps:$4 sm:$0xff]  }
 0x909   :  { %4396 = vmatprep.subr.bf16.mxu0 %v13370_v25  ;;  %11303 = vmatprep.subr.bf16.mxu1 %v12577_v2 }
 0x90c   :  { %4397 = vmatpush1.bf16.msra.mxu0 %v13373_v24  ;;  %11304 = vmatpush3.bf16.msra.mxu1 %v11995_v18  ;;  %v13647_v18 = vld [vmem:[#allocation10 + $0xa8] ss:$12 sps:$4 sm:$0xff]  }
 0x90d   :  { %4398 = vmatprep.subr.bf16.mxu0 %v13377_v30  ;;  %11305 = vmatprep.subr.bf16.mxu1 %v12577_v2 }
 0x910   :  { %4399 = vmatpush1.bf16.msra.mxu0 %v13380_v9  ;;  %11306 = vmatpush3.bf16.msra.mxu1 %v11996_v63  ;;  %v12058_v63 = vld [vmem:[#allocation10 + $0xb0] ss:$12 sps:$4 sm:$0xff]  }
 0x911   :  { %4400 = vmatprep.subr.bf16.mxu0 %v13384_v12  ;;  %11307 = vmatprep.subr.bf16.mxu1 %v12577_v2 }
 0x914   :  { %4401 = vmatpush1.bf16.msra.mxu0 %v13387_v13  ;;  %11308 = vmatpush3.bf16.msra.mxu1 %v11997_v61  ;;  %v13651_v61 = vld [vmem:[#allocation10 + $0x94] ss:$12 sps:$4 sm:$0xff]  }
 0x915   :  { %4402 = vmatprep.subr.bf16.mxu0 %v13391_v26  ;;  %11309 = vmatprep.subr.bf16.mxu1 %v12577_v2 }
 0x918   :  { %4403 = vmatpush1.bf16.msra.mxu0 %v13394_v8  ;;  %11310 = vmatpush3.bf16.msra.mxu1 %v11998_v56 }
 0x919   :  { %4597 = vmatprep.subr.bf16.mxu0 %v13397_v40  ;;  %11315 = vmatprep.subr.bf16.mxu1 %v12577_v2 }
 0x91b   :  { %4421 = vmatmul.mubr.bf16.vlgmr.msra.gmra.mxu0 %v13336_v21  ;;  %11312 = vmatmul.mubr.bf16.vlgmr.msra.gmra.mxu1 %v13336_v21 }
 0x91c   :  { %4598 = vmatpush1.bf16.msra.mxu0 %v13409_v36  ;;  %11316 = vmatpush3.bf16.msra.mxu1 %v11999_v10 }
 0x91d   :  { %4599 = vmatprep.subr.bf16.mxu0 %v13413_v1  ;;  %11317 = vmatprep.subr.bf16.mxu1 %v12577_v2 }
 0x91e   :  { %4629 = vmatprep.mubr.bf16.mxu0 %v12575_v0  ;;  %11331 = vmatprep.mubr.msk.bf16.mxu1 %vm12582_vm0, %v12577_v2 }
 0x920   :  { %4600 = vmatpush1.bf16.msra.mxu0 %v13418_v31  ;;  %11318 = vmatpush3.bf16.msra.mxu1 %v12000_v6  ;;  %v13660_v6 = vld [vmem:[#allocation10 + $0x90] ss:$12 sps:$4 sm:$0xff]  }
 0x921   :  { %4601 = vmatprep.subr.bf16.mxu0 %v13422_v20  ;;  %11319 = vmatprep.subr.bf16.mxu1 %v12577_v2 }
 0x924   :  { %4602 = vmatpush1.bf16.msra.mxu0 %v13428_v5  ;;  %11320 = vmatpush3.bf16.msra.mxu1 %v12001_v32  ;;  %v12062_v32 = vld [vmem:[#allocation10 + $0x98] ss:$12 sps:$4 sm:$0xff]  }
 0x925   :  { %4603 = vmatprep.subr.bf16.mxu0 %v13432_v39  ;;  %11321 = vmatprep.subr.bf16.mxu1 %v12577_v2 }
 0x928   :  { %4604 = vmatpush1.bf16.msra.mxu0 %v13435_v43  ;;  %11322 = vmatpush3.bf16.msra.mxu1 %v12002_v28 }
 0x929   :  { %4605 = vmatprep.subr.bf16.mxu0 %v13439_v48  ;;  %11323 = vmatprep.subr.bf16.mxu1 %v12577_v2 }
 0x92c   :  { %4606 = vmatpush1.bf16.msra.mxu0 %v13442_v49  ;;  %11324 = vmatpush3.bf16.msra.mxu1 %v12003_v35 }
 0x92d   :  { %4607 = vmatprep.subr.bf16.mxu0 %v13446_v54  ;;  %11325 = vmatprep.subr.bf16.mxu1 %v12577_v2 }
 0x930   :  { %4608 = vmatpush1.bf16.msra.mxu0 %v13449_v57  ;;  %11326 = vmatpush3.bf16.msra.mxu1 %v12004_v47  ;;  %v13666_v47 = vld [vmem:[#allocation10 + $0x7c] ss:$12 sps:$4 sm:$0xff]  }
 0x931   :  { %4609 = vmatprep.subr.bf16.mxu0 %v13453_v53  ;;  %11327 = vmatprep.subr.bf16.mxu1 %v12577_v2 }
 0x934   :  { %4610 = vmatpush1.bf16.msra.mxu0 %v13456_v37  ;;  %11328 = vmatpush3.bf16.msra.mxu1 %v12005_v50 }
 0x935   :  { %4611 = vmatprep.subr.bf16.mxu0 %v13460_v16  ;;  %11329 = vmatprep.subr.bf16.mxu1 %v12577_v2 }
 0x938   :  { %4612 = vmatpush1.bf16.msra.mxu0 %v13463_v41  ;;  %11330 = vmatpush3.bf16.msra.mxu1 %v12006_v14 }
 0x939   :  { %4880 = vmatprep.subr.bf16.mxu0 %v13343_v19  ;;  %11335 = vmatprep.subr.bf16.mxu1 %v12577_v2  ;;  %v12009_v19 = vld [vmem:[#allocation12 + $0x80] ss:$12 sps:$4 sm:$0xff]  }
 0x93b   :  { %4630 = vmatmul.mubr.bf16.vlgmr.msra.gmra.mxu0 %v13105_v60  ;;  %11332 = vmatmul.mubr.bf16.vlgmr.msra.gmra.mxu1 %v13105_v60 }
 0x93c   :  { %4881 = vmatpush1.bf16.msra.mxu0 %v13345_v22  ;;  %11336 = vmatpush3.bf16.msra.mxu1 %v12007_v45  ;;  %v12010_v22 = vld [vmem:[#allocation12 + $0x68] ss:$12 sps:$4 sm:$0xff]   ;;  %v13672_v45 = vld [vmem:[#allocation10 + $0x78] ss:$12 sps:$4 sm:$0xff]  }
 0x93d   :  { %4882 = vmatprep.subr.bf16.mxu0 %v13349_v42  ;;  %11337 = vmatprep.subr.bf16.mxu1 %v12577_v2  ;;  %v12011_v42 = vld [vmem:[#allocation12 + $0x50] ss:$12 sps:$4 sm:$0xff]  }
 0x93e   :  { %4912 = vmatprep.mubr.bf16.mxu0 %v12575_v0  ;;  %11351 = vmatprep.mubr.msk.bf16.mxu1 %vm12582_vm0, %v12577_v2 }
 0x940   :  { %4883 = vmatpush1.bf16.msra.mxu0 %v13352_v46  ;;  %11338 = vmatpush3.bf16.msra.mxu1 %v12008_v52  ;;  %v12012_v46 = vld [vmem:[#allocation12 + $0x38] ss:$12 sps:$4 sm:$0xff]   ;;  %v12066_v52 = vld [vmem:[#allocation10 + $0x80] ss:$12 sps:$4 sm:$0xff]  }
 0x941   :  { %4884 = vmatprep.subr.bf16.mxu0 %v13356_v51  ;;  %11339 = vmatprep.subr.bf16.mxu1 %v12577_v2  ;;  %v12013_v51 = vld [vmem:[#allocation12 + $0x20] ss:$12 sps:$4 sm:$0xff]  }
 0x944   :  { %4885 = vmatpush1.bf16.msra.mxu0 %v13359_v55  ;;  %11340 = vmatpush3.bf16.msra.mxu1 %v12009_v19  ;;  %v12014_v55 = vld [vmem:[#allocation12 + $0x8] ss:$12 sps:$4 sm:$0xff]  }
 0x945   :  { %4886 = vmatprep.subr.bf16.mxu0 %v13363_v29  ;;  %11341 = vmatprep.subr.bf16.mxu1 %v12577_v2  ;;  %v12015_v29 = vld [vmem:[#allocation10 + $0xb0] ss:$12 sps:$4 sm:$0xff]  }
 0x948   :  { %4887 = vmatpush1.bf16.msra.mxu0 %v13366_v17  ;;  %11342 = vmatpush3.bf16.msra.mxu1 %v12010_v22  ;;  %v12016_v17 = vld [vmem:[#allocation10 + $0x98] ss:$12 sps:$4 sm:$0xff]  }
 0x949   :  { %4888 = vmatprep.subr.bf16.mxu0 %v13370_v25  ;;  %11343 = vmatprep.subr.bf16.mxu1 %v12577_v2  ;;  %v12017_v25 = vld [vmem:[#allocation10 + $0x80] ss:$12 sps:$4 sm:$0xff]  }
 0x94c   :  { %4889 = vmatpush1.bf16.msra.mxu0 %v13373_v24  ;;  %11344 = vmatpush3.bf16.msra.mxu1 %v12011_v42  ;;  %v12018_v24 = vld [vmem:[#allocation10 + $0x68] ss:$12 sps:$4 sm:$0xff]   ;;  %v13676_v42 = vld [vmem:[#allocation10 + $0x64] ss:$12 sps:$4 sm:$0xff]  }
 0x94d   :  { %4890 = vmatprep.subr.bf16.mxu0 %v13377_v30  ;;  %11345 = vmatprep.subr.bf16.mxu1 %v12577_v2  ;;  %v12019_v30 = vld [vmem:[#allocation10 + $0x50] ss:$12 sps:$4 sm:$0xff]  }
 0x950   :  { %4891 = vmatpush1.bf16.msra.mxu0 %v13380_v9  ;;  %11346 = vmatpush3.bf16.msra.mxu1 %v12012_v46  ;;  %v12020_v9 = vld [vmem:[#allocation10 + $0x38] ss:$12 sps:$4 sm:$0xff]   ;;  %v13679_v46 = vld [vmem:[#allocation10 + $0x60] ss:$12 sps:$4 sm:$0xff]  }
 0x951   :  { %4892 = vmatprep.subr.bf16.mxu0 %v13384_v12  ;;  %11347 = vmatprep.subr.bf16.mxu1 %v12577_v2  ;;  %v12021_v12 = vld [vmem:[#allocation10 + $0x20] ss:$12 sps:$4 sm:$0xff]  }
 0x954   :  { %4893 = vmatpush1.bf16.msra.mxu0 %v13387_v13  ;;  %11348 = vmatpush3.bf16.msra.mxu1 %v12013_v51  ;;  %v12022_v13 = vld [vmem:[#allocation10 + $0x8] ss:$12 sps:$4 sm:$0xff]  }
 0x955   :  { %4894 = vmatprep.subr.bf16.mxu0 %v13391_v26  ;;  %11349 = vmatprep.subr.bf16.mxu1 %v12577_v2  ;;  %v13583_v26 = vld [vmem:[#allocation12 + $0xac] ss:$12 sps:$4 sm:$0xff]   ;;  %v12070_v51 = vld [vmem:[#allocation10 + $0x68] ss:$12 sps:$4 sm:$0xff]  }
 0x958   :  { %4895 = vmatpush1.bf16.msra.mxu0 %v13394_v8  ;;  %11350 = vmatpush3.bf16.msra.mxu1 %v12014_v55  ;;  %v13586_v8 = vld [vmem:[#allocation12 + $0xa8] ss:$12 sps:$4 sm:$0xff]   ;;  %v13683_v55 = vld [vmem:[#allocation10 + $0x4c] ss:$12 sps:$4 sm:$0xff]  }
 0x959   :  { %5089 = vmatprep.subr.bf16.mxu0 %v13397_v40  ;;  %11355 = vmatprep.subr.bf16.mxu1 %v12577_v2  ;;  %v12026_v40 = vld [vmem:[#allocation12 + $0xb0] ss:$12 sps:$4 sm:$0xff]  }
 0x95b   :  { %4913 = vmatmul.mubr.bf16.vlgmr.msra.gmra.mxu0 %v13297_v34  ;;  %11352 = vmatmul.mubr.bf16.vlgmr.msra.gmra.mxu1 %v13297_v34 }
 0x95c   :  { %5090 = vmatpush1.bf16.msra.mxu0 %v13409_v36  ;;  %11356 = vmatpush3.bf16.msra.mxu1 %v12015_v29  ;;  %v13590_v36 = vld [vmem:[#allocation12 + $0x94] ss:$12 sps:$4 sm:$0xff]  }
 0x95d   :  { %5091 = vmatprep.subr.bf16.mxu0 %v13413_v1  ;;  %11357 = vmatprep.subr.bf16.mxu1 %v12577_v2  ;;  %v13595_v1 = vld [vmem:[#allocation12 + $0x90] ss:$12 sps:$4 sm:$0xff]   ;;  %v13686_v29 = vld [vmem:[#allocation10 + $0x48] ss:$12 sps:$4 sm:$0xff]  }
 0x95e   :  { %5121 = vmatprep.mubr.bf16.mxu0 %v12575_v0  ;;  %11371 = vmatprep.mubr.msk.bf16.mxu1 %vm12582_vm0, %v12577_v2 }
 0x960   :  { %5092 = vmatpush1.bf16.msra.mxu0 %v13418_v31  ;;  %11358 = vmatpush3.bf16.msra.mxu1 %v12016_v17  ;;  %v12030_v31 = vld [vmem:[#allocation12 + $0x98] ss:$12 sps:$4 sm:$0xff]   ;;  %v12074_v17 = vld [vmem:[#allocation10 + $0x50] ss:$12 sps:$4 sm:$0xff]  }
 0x961   :  { %5093 = vmatprep.subr.bf16.mxu0 %v13422_v20  ;;  %11359 = vmatprep.subr.bf16.mxu1 %v12577_v2  ;;  %v13599_v20 = vld [vmem:[#allocation12 + $0x7c] ss:$12 sps:$4 sm:$0xff]  }
 0x964   :  { %5094 = vmatpush1.bf16.msra.mxu0 %v13428_v5  ;;  %11360 = vmatpush3.bf16.msra.mxu1 %v12017_v25  ;;  %v13605_v5 = vld [vmem:[#allocation12 + $0x78] ss:$12 sps:$4 sm:$0xff]   ;;  %v13690_v25 = vld [vmem:[#allocation10 + $0x34] ss:$12 sps:$4 sm:$0xff]  }
 0x965   :  { %5095 = vmatprep.subr.bf16.mxu0 %v13432_v39  ;;  %11361 = vmatprep.subr.bf16.mxu1 %v12577_v2  ;;  %v12034_v39 = vld [vmem:[#allocation12 + $0x80] ss:$12 sps:$4 sm:$0xff]  }
 0x968   :  { %5096 = vmatpush1.bf16.msra.mxu0 %v13435_v43  ;;  %11362 = vmatpush3.bf16.msra.mxu1 %v12018_v24  ;;  %v13609_v43 = vld [vmem:[#allocation12 + $0x64] ss:$12 sps:$4 sm:$0xff]  }
 0x969   :  { %5097 = vmatprep.subr.bf16.mxu0 %v13439_v48  ;;  %11363 = vmatprep.subr.bf16.mxu1 %v12577_v2  ;;  %v13612_v48 = vld [vmem:[#allocation12 + $0x60] ss:$12 sps:$4 sm:$0xff]   ;;  %v13693_v24 = vld [vmem:[#allocation10 + $0x30] ss:$12 sps:$4 sm:$0xff]  }
 0x96c   :  { %5098 = vmatpush1.bf16.msra.mxu0 %v13442_v49  ;;  %11364 = vmatpush3.bf16.msra.mxu1 %v12019_v30  ;;  %v12038_v49 = vld [vmem:[#allocation12 + $0x68] ss:$12 sps:$4 sm:$0xff]   ;;  %v12078_v30 = vld [vmem:[#allocation10 + $0x38] ss:$12 sps:$4 sm:$0xff]  }
 0x96d   :  { %5099 = vmatprep.subr.bf16.mxu0 %v13446_v54  ;;  %11365 = vmatprep.subr.bf16.mxu1 %v12577_v2  ;;  %v13616_v54 = vld [vmem:[#allocation12 + $0x4c] ss:$12 sps:$4 sm:$0xff]  }
 0x970   :  { %5100 = vmatpush1.bf16.msra.mxu0 %v13449_v57  ;;  %11366 = vmatpush3.bf16.msra.mxu1 %v12020_v9  ;;  %v13619_v57 = vld [vmem:[#allocation12 + $0x48] ss:$12 sps:$4 sm:$0xff]  }
 0x971   :  { %5101 = vmatprep.subr.bf16.mxu0 %v13453_v53  ;;  %11367 = vmatprep.subr.bf16.mxu1 %v12577_v2  ;;  %v13623_v53 = vld [vmem:[#allocation12 + $0x34] ss:$12 sps:$4 sm:$0xff]   ;;  %v13697_v9 = vld [vmem:[#allocation10 + $0x1c] ss:$12 sps:$4 sm:$0xff]  }
 0x974   :  { %5102 = vmatpush1.bf16.msra.mxu0 %v13456_v37  ;;  %11368 = vmatpush3.bf16.msra.mxu1 %v12021_v12  ;;  %v13626_v37 = vld [vmem:[#allocation12 + $0x30] ss:$12 sps:$4 sm:$0xff]   ;;  %v13700_v12 = vld [vmem:[#allocation10 + $0x18] ss:$12 sps:$4 sm:$0xff]  }
 0x975   :  { %5103 = vmatprep.subr.bf16.mxu0 %v13460_v16  ;;  %11369 = vmatprep.subr.bf16.mxu1 %v12577_v2  ;;  %v13630_v16 = vld [vmem:[#allocation12 + $0x1c] ss:$12 sps:$4 sm:$0xff]  }
 0x978   :  { %5104 = vmatpush1.bf16.msra.mxu0 %v13463_v41  ;;  %11370 = vmatpush3.bf16.msra.mxu1 %v12022_v13  ;;  %v13633_v41 = vld [vmem:[#allocation12 + $0x18] ss:$12 sps:$4 sm:$0xff]   ;;  %v12082_v13 = vld [vmem:[#allocation10 + $0x20] ss:$12 sps:$4 sm:$0xff]  }
 0x979   :  { %5372 = vmatprep.subr.bf16.mxu0 %v13583_v26  ;;  %11375 = vmatprep.subr.bf16.mxu1 %v12577_v2 }
 0x97b   :  { %5122 = vmatmul.mubr.bf16.vlgmr.msra.gmra.mxu0 %v13144_v11  ;;  %11372 = vmatmul.mubr.bf16.vlgmr.msra.gmra.mxu1 %v13144_v11 }
 0x97c   :  { %5373 = vmatpush1.bf16.msra.mxu0 %v13586_v8  ;;  %11376 = vmatpush3.bf16.msra.mxu1 %v12026_v40  ;;  %v13704_v40 = vld [vmem:[#allocation10 + $0x4] ss:$12 sps:$4 sm:$0xff]  }
 0x97d   :  { %5374 = vmatprep.subr.bf16.mxu0 %v13590_v36  ;;  %11377 = vmatprep.subr.bf16.mxu1 %v12577_v2 }
 0x97e   :  { %5404 = vmatprep.mubr.bf16.mxu0 %v12575_v0  ;;  %11391 = vmatprep.mubr.msk.bf16.mxu1 %vm12582_vm0, %v12577_v2 }
 0x980   :  { %5375 = vmatpush1.bf16.msra.mxu0 %v13595_v1  ;;  %11378 = vmatpush3.bf16.msra.mxu1 %v12030_v31  ;;  %v13707_v31 = vld [vmem:[#allocation10] ss:$12 sps:$4 sm:$0xff]  }
 0x981   :  { %5376 = vmatprep.subr.bf16.mxu0 %v13599_v20  ;;  %11379 = vmatprep.subr.bf16.mxu1 %v12577_v2 }
 0x984   :  { %5377 = vmatpush1.bf16.msra.mxu0 %v13605_v5  ;;  %11380 = vmatpush3.bf16.msra.mxu1 %v12034_v39  ;;  %v12086_v39 = vld [vmem:[#allocation10 + $0x8] ss:$12 sps:$4 sm:$0xff]  }
 0x985   :  { %5378 = vmatprep.subr.bf16.mxu0 %v13609_v43  ;;  %11381 = vmatprep.subr.bf16.mxu1 %v12577_v2 }
 0x988   :  { %5379 = vmatpush1.bf16.msra.mxu0 %v13612_v48  ;;  %11382 = vmatpush3.bf16.msra.mxu1 %v12038_v49  ;;  %v12087_v49 = vld [vmem:[#allocation12 + $0xb0] ss:$12 sps:$4 sm:$0xff]  }
 0x989   :  { %5380 = vmatprep.subr.bf16.mxu0 %v13616_v54  ;;  %11383 = vmatprep.subr.bf16.mxu1 %v12577_v2 }
 0x98c   :  { %5381 = vmatpush1.bf16.msra.mxu0 %v13619_v57  ;;  %11384 = vmatpush3.bf16.msra.mxu1 %v12042_v58 }
 0x98d   :  { %5382 = vmatprep.subr.bf16.mxu0 %v13623_v53  ;;  %11385 = vmatprep.subr.bf16.mxu1 %v12577_v2 }
 0x990   :  { %5383 = vmatpush1.bf16.msra.mxu0 %v13626_v37  ;;  %11386 = vmatpush3.bf16.msra.mxu1 %v12046_v38 }
 0x991   :  { %5384 = vmatprep.subr.bf16.mxu0 %v13630_v16  ;;  %11387 = vmatprep.subr.bf16.mxu1 %v12577_v2 }
 0x994   :  { %5385 = vmatpush1.bf16.msra.mxu0 %v13633_v41  ;;  %11388 = vmatpush3.bf16.msra.mxu1 %v12050_v62 }
 0x995   :  { %5386 = vmatprep.subr.bf16.mxu0 %v13637_v15  ;;  %11389 = vmatprep.subr.bf16.mxu1 %v12577_v2 }
 0x998   :  { %5387 = vmatpush1.bf16.msra.mxu0 %v13640_v44  ;;  %11390 = vmatpush3.bf16.msra.mxu1 %v12054_v27 }
 0x999   :  { %5581 = vmatprep.subr.bf16.mxu0 %v13644_v59  ;;  %11395 = vmatprep.subr.bf16.mxu1 %v12577_v2 }
 0x99b   :  { %5405 = vmatmul.mubr.bf16.vlgmr.msra.gmra.mxu0 %v13257_v33  ;;  %11392 = vmatmul.mubr.bf16.vlgmr.msra.gmra.mxu1 %v13257_v33  ;;  %v13655_v56 = vpop.f32.mrf.mxu0  ;;  %v13657_v10 = vpop.f32.mrf.mxu1 }
 0x99c   :  { %5582 = vmatpush1.bf16.msra.mxu0 %v13647_v18  ;;  %11396 = vmatpush3.bf16.msra.mxu1 %v12058_v63  ;;  %v12088_v63 = vld [vmem:[#allocation12 + $0x98] ss:$12 sps:$4 sm:$0xff]  }
 0x99d   :  { %v13662_v28 = vpop.f32.mrf.mxu0  ;;  %v11273_v35 = vpop.f32.mrf.mxu1  ;;  %5583 = vmatprep.subr.bf16.mxu0 %v13651_v61  ;;  %11397 = vmatprep.subr.bf16.mxu1 %v12577_v2 }
 0x99e   :  { %5613 = vmatprep.mubr.bf16.mxu0 %v12575_v0  ;;  %11411 = vmatprep.mubr.msk.bf16.mxu1 %vm12582_vm0, %v12577_v2 }
 0x99f   :  { %v3934_v50 = vpop.f32.mrf.mxu0  ;;  %v3974_v14 = vpop.f32.mrf.mxu1 }
 0x9a0   :  { %5584 = vmatpush1.bf16.msra.mxu0 %v13660_v6  ;;  %11398 = vmatpush3.bf16.msra.mxu1 %v12062_v32  ;;  %v12089_v14 = vld [vmem:[#allocation12 + $0x80] ss:$12 sps:$4 sm:$0xff]  }
 0x9a1   :  { %v3935_v19 = vpop.f32.mrf.mxu0  ;;  %v11274_v22 = vpop.f32.mrf.mxu1  ;;  %5585 = vmatprep.subr.bf16.mxu0 %v13666_v47  ;;  %11399 = vmatprep.subr.bf16.mxu1 %v12577_v2 }
 0x9a2   :  { %v12091_v22 = vld [vmem:[#allocation12 + $0x50] ss:$12 sps:$4 sm:$0xff]  }
 0x9a4   :  { %5586 = vmatpush1.bf16.msra.mxu0 %v13672_v45  ;;  %11400 = vmatpush3.bf16.msra.mxu1 %v12066_v52 }
 0x9a5   :  { %5587 = vmatprep.subr.bf16.mxu0 %v13676_v42  ;;  %11401 = vmatprep.subr.bf16.mxu1 %v12577_v2 }
 0x9a8   :  { %5588 = vmatpush1.bf16.msra.mxu0 %v13679_v46  ;;  %11402 = vmatpush3.bf16.msra.mxu1 %v12070_v51  ;;  %v12092_v51 = vld [vmem:[#allocation12 + $0x38] ss:$12 sps:$4 sm:$0xff]  }
 0x9a9   :  { %5589 = vmatprep.subr.bf16.mxu0 %v13683_v55  ;;  %11403 = vmatprep.subr.bf16.mxu1 %v12577_v2 }
 0x9ac   :  { %5590 = vmatpush1.bf16.msra.mxu0 %v13686_v29  ;;  %11404 = vmatpush3.bf16.msra.mxu1 %v12074_v17  ;;  %v12093_v17 = vld [vmem:[#allocation12 + $0x20] ss:$12 sps:$4 sm:$0xff]  }
 0x9ad   :  { %5591 = vmatprep.subr.bf16.mxu0 %v13690_v25  ;;  %11405 = vmatprep.subr.bf16.mxu1 %v12577_v2 }
 0x9b0   :  { %5592 = vmatpush1.bf16.msra.mxu0 %v13693_v24  ;;  %11406 = vmatpush3.bf16.msra.mxu1 %v12078_v30  ;;  %v12094_v30 = vld [vmem:[#allocation12 + $0x8] ss:$12 sps:$4 sm:$0xff]  }
 0x9b1   :  { %5593 = vmatprep.subr.bf16.mxu0 %v13697_v9  ;;  %11407 = vmatprep.subr.bf16.mxu1 %v12577_v2 }
 0x9b4   :  { %5594 = vmatpush1.bf16.msra.mxu0 %v13700_v12  ;;  %11408 = vmatpush3.bf16.msra.mxu1 %v12082_v13  ;;  %v12095_v13 = vld [vmem:[#allocation10 + $0xb0] ss:$12 sps:$4 sm:$0xff]  }
 0x9b5   :  { %5595 = vmatprep.subr.bf16.mxu0 %v13704_v40  ;;  %11409 = vmatprep.subr.bf16.mxu1 %v12577_v2 }
 0x9b8   :  { %5596 = vmatpush1.bf16.msra.mxu0 %v13707_v31  ;;  %11410 = vmatpush3.bf16.msra.mxu1 %v12086_v39 }
 0x9b9   :  { %5864 = vmatprep.subr.bf16.mxu0 %v13583_v26  ;;  %11415 = vmatprep.subr.bf16.mxu1 %v12577_v2 }
 0x9bb   :  { %v4139_v58 = vpop.f32.mrf.mxu0  ;;  %v4180_v38 = vpop.f32.mrf.mxu1  ;;  %5614 = vmatmul.mubr.bf16.vlgmr.msra.gmra.mxu0 %v13217_v7  ;;  %11412 = vmatmul.mubr.bf16.vlgmr.msra.gmra.mxu1 %v13217_v7 }
 0x9bc   :  { %v13717_v62 = vadd.f32 %v4139_v58, %v13655_v56  ;;  %v13720_v27 = vadd.f32 %v4180_v38, %v13657_v10  ;;  %5865 = vmatpush1.bf16.msra.mxu0 %v13586_v8  ;;  %11416 = vmatpush3.bf16.msra.mxu1 %v12087_v49  ;;  %v12096_v58 = vld [vmem:[#allocation10 + $0x98] ss:$12 sps:$4 sm:$0xff]  }
 0x9bd   :  { %v4141_v32 = vpop.f32.mrf.mxu0  ;;  %v11293_v35 = vpop.f32.mrf.mxu1  ;;  %5866 = vmatprep.subr.bf16.mxu0 %v13590_v36  ;;  %11417 = vmatprep.subr.bf16.mxu1 %v12577_v2 }
 0x9be   :  { %v13726_v50 = vadd.f32 %v4141_v32, %v13662_v28  ;;  %5896 = vmatprep.mubr.bf16.mxu0 %v12575_v0  ;;  %11431 = vmatprep.mubr.msk.bf16.mxu1 %vm12582_vm0, %v12577_v2  ;;  %v12090_v28 = vld [vmem:[#allocation12 + $0x68] ss:$12 sps:$4 sm:$0xff]  }
 0x9bf   :  { %v4143_v56 = vpop.f32.mrf.mxu0  ;;  %v4183_v10 = vpop.f32.mrf.mxu1 }
 0x9c0   :  { %5867 = vmatpush1.bf16.msra.mxu0 %v13595_v1  ;;  %11418 = vmatpush3.bf16.msra.mxu1 %v12088_v63 }
 0x9c1   :  { %v4144_v52 = vpop.f32.mrf.mxu0  ;;  %v11294_v19 = vpop.f32.mrf.mxu1  ;;  %5868 = vmatprep.subr.bf16.mxu0 %v13599_v20  ;;  %11419 = vmatprep.subr.bf16.mxu1 %v12577_v2 }
 0x9c2   :  { %v12099_v52 = vld [vmem:[#allocation10 + $0x50] ss:$12 sps:$4 sm:$0xff]   ;;  %v12100_v19 = vld [vmem:[#allocation10 + $0x38] ss:$12 sps:$4 sm:$0xff]  }
 0x9c4   :  { %5869 = vmatpush1.bf16.msra.mxu0 %v13605_v5  ;;  %11420 = vmatpush3.bf16.msra.mxu1 %v12089_v14  ;;  %v12098_v14 = vld [vmem:[#allocation10 + $0x68] ss:$12 sps:$4 sm:$0xff]  }
 0x9c5   :  { %5870 = vmatprep.subr.bf16.mxu0 %v13609_v43  ;;  %11421 = vmatprep.subr.bf16.mxu1 %v12577_v2 }
 0x9c8   :  { %5871 = vmatpush1.bf16.msra.mxu0 %v13612_v48  ;;  %11422 = vmatpush3.bf16.msra.mxu1 %v12090_v28  ;;  %v12101_v28 = vld [vmem:[#allocation10 + $0x20] ss:$12 sps:$4 sm:$0xff]  }
 0x9c9   :  { %5872 = vmatprep.subr.bf16.mxu0 %v13616_v54  ;;  %11423 = vmatprep.subr.bf16.mxu1 %v12577_v2 }
 0x9cc   :  { %5873 = vmatpush1.bf16.msra.mxu0 %v13619_v57  ;;  %11424 = vmatpush3.bf16.msra.mxu1 %v12091_v22  ;;  %v12102_v22 = vld [vmem:[#allocation10 + $0x8] ss:$12 sps:$4 sm:$0xff]  }
 0x9cd   :  { %5874 = vmatprep.subr.bf16.mxu0 %v13623_v53  ;;  %11425 = vmatprep.subr.bf16.mxu1 %v12577_v2 }
 0x9d0   :  { %5875 = vmatpush1.bf16.msra.mxu0 %v13626_v37  ;;  %11426 = vmatpush3.bf16.msra.mxu1 %v12092_v51  ;;  %v12103_v51 = vld [vmem:[#allocation12 + $0xb0] ss:$12 sps:$4 sm:$0xff]  }
 0x9d1   :  { %5876 = vmatprep.subr.bf16.mxu0 %v13630_v16  ;;  %11427 = vmatprep.subr.bf16.mxu1 %v12577_v2 }
 0x9d4   :  { %5877 = vmatpush1.bf16.msra.mxu0 %v13633_v41  ;;  %11428 = vmatpush3.bf16.msra.mxu1 %v12093_v17 }
 0x9d5   :  { %5878 = vmatprep.subr.bf16.mxu0 %v13637_v15  ;;  %11429 = vmatprep.subr.bf16.mxu1 %v12577_v2 }
 0x9d8   :  { %5879 = vmatpush1.bf16.msra.mxu0 %v13640_v44  ;;  %11430 = vmatpush3.bf16.msra.mxu1 %v12094_v30 }
 0x9d9   :  { %6073 = vmatprep.subr.bf16.mxu0 %v13644_v59  ;;  %11435 = vmatprep.subr.bf16.mxu1 %v12577_v2 }
 0x9db   :  { %v4422_v39 = vpop.f32.mrf.mxu0  ;;  %v4463_v49 = vpop.f32.mrf.mxu1  ;;  %5897 = vmatmul.mubr.bf16.vlgmr.msra.gmra.mxu0 %v13217_v7  ;;  %11432 = vmatmul.mubr.bf16.vlgmr.msra.gmra.mxu1 %v13217_v7  ;;  %v12097_v7 = vld [vmem:[#allocation10 + $0x80] ss:$12 sps:$4 sm:$0xff]  }
 0x9dc   :  { %6074 = vmatpush1.bf16.msra.mxu0 %v13647_v18  ;;  %11436 = vmatpush3.bf16.msra.mxu1 %v12095_v13 }
 0x9dd   :  { %v4424_v38 = vpop.f32.mrf.mxu0  ;;  %v11313_v63 = vpop.f32.mrf.mxu1  ;;  %6075 = vmatprep.subr.bf16.mxu0 %v13651_v61  ;;  %11437 = vmatprep.subr.bf16.mxu1 %v12577_v2 }
 0x9de   :  { %6105 = vmatprep.mubr.bf16.mxu0 %v12575_v0  ;;  %11451 = vmatprep.mubr.msk.bf16.mxu1 %vm12582_vm0, %v12577_v2  ;;  %v12104_v63 = vld [vmem:[#allocation12 + $0x98] ss:$12 sps:$4 sm:$0xff]  }
 0x9df   :  { %v4426_v32 = vpop.f32.mrf.mxu0  ;;  %v4466_v35 = vpop.f32.mrf.mxu1 }
 0x9e0   :  { %6076 = vmatpush1.bf16.msra.mxu0 %v13660_v6  ;;  %11438 = vmatpush3.bf16.msra.mxu1 %v12096_v58 }
 0x9e1   :  { %v4427_v56 = vpop.f32.mrf.mxu0  ;;  %v11314_v10 = vpop.f32.mrf.mxu1  ;;  %6077 = vmatprep.subr.bf16.mxu0 %v13666_v47  ;;  %11439 = vmatprep.subr.bf16.mxu1 %v12577_v2 }
 0x9e2   :  { %v13864_v10 = vld [vmem:[#allocation12 + $0x7c] ss:$12 sps:$4 sm:$0xff]  }
 0x9e4   :  { %6078 = vmatpush1.bf16.msra.mxu0 %v13672_v45  ;;  %11440 = vmatpush3.bf16.msra.mxu1 %v12097_v7 }
 0x9e5   :  { %6079 = vmatprep.subr.bf16.mxu0 %v13676_v42  ;;  %11441 = vmatprep.subr.bf16.mxu1 %v12577_v2 }
 0x9e8   :  { %6080 = vmatpush1.bf16.msra.mxu0 %v13679_v46  ;;  %11442 = vmatpush3.bf16.msra.mxu1 %v12098_v14 }
 0x9e9   :  { %6081 = vmatprep.subr.bf16.mxu0 %v13683_v55  ;;  %11443 = vmatprep.subr.bf16.mxu1 %v12577_v2 }
 0x9ec   :  { %6082 = vmatpush1.bf16.msra.mxu0 %v13686_v29  ;;  %11444 = vmatpush3.bf16.msra.mxu1 %v12099_v52 }
 0x9ed   :  { %6083 = vmatprep.subr.bf16.mxu0 %v13690_v25  ;;  %11445 = vmatprep.subr.bf16.mxu1 %v12577_v2 }
 0x9f0   :  { %6084 = vmatpush1.bf16.msra.mxu0 %v13693_v24  ;;  %11446 = vmatpush3.bf16.msra.mxu1 %v12100_v19  ;;  %v13873_v19 = vld [vmem:[#allocation12 + $0x78] ss:$12 sps:$4 sm:$0xff]  }
 0x9f1   :  { %6085 = vmatprep.subr.bf16.mxu0 %v13697_v9  ;;  %11447 = vmatprep.subr.bf16.mxu1 %v12577_v2 }
 0x9f4   :  { %6086 = vmatpush1.bf16.msra.mxu0 %v13700_v12  ;;  %11448 = vmatpush3.bf16.msra.mxu1 %v12101_v28  ;;  %v12130_v28 = vld [vmem:[#allocation12 + $0x80] ss:$12 sps:$4 sm:$0xff]  }
 0x9f5   :  { %6087 = vmatprep.subr.bf16.mxu0 %v13704_v40  ;;  %11449 = vmatprep.subr.bf16.mxu1 %v12577_v2 }
 0x9f8   :  { %6088 = vmatpush1.bf16.msra.mxu0 %v13707_v31  ;;  %11450 = vmatpush3.bf16.msra.mxu1 %v12102_v22 }
 0x9f9   :  { %6356 = vmatprep.subr.bf16.mxu0 %v13583_v26  ;;  %11455 = vmatprep.subr.bf16.mxu1 %v12577_v2 }
 0x9fb   :  { %v4631_v17 = vpop.f32.mrf.mxu0  ;;  %v4672_v30 = vpop.f32.mrf.mxu1  ;;  %6106 = vmatmul.mubr.bf16.vlgmr.msra.gmra.mxu0 %v13257_v33  ;;  %11452 = vmatmul.mubr.bf16.vlgmr.msra.gmra.mxu1 %v13257_v33 }
 0x9fc   :  { %v13783_v13 = vadd.f32 %v4631_v17, %v4422_v39  ;;  %v13785_v58 = vadd.f32 %v4672_v30, %v4463_v49  ;;  %6357 = vmatpush1.bf16.msra.mxu0 %v13586_v8  ;;  %11456 = vmatpush3.bf16.msra.mxu1 %v12103_v51  ;;  %v12105_v8 = vld [vmem:[#allocation12 + $0x80] ss:$12 sps:$4 sm:$0xff]   ;;  %v13877_v17 = vld [vmem:[#allocation12 + $0x64] ss:$12 sps:$4 sm:$0xff]  }
 0x9fd   :  { %v4633_v32 = vpop.f32.mrf.mxu0  ;;  %v11333_v35 = vpop.f32.mrf.mxu1  ;;  %6358 = vmatprep.subr.bf16.mxu0 %v13590_v36  ;;  %11457 = vmatprep.subr.bf16.mxu1 %v12577_v2  ;;  %v12106_v36 = vld [vmem:[#allocation12 + $0x68] ss:$12 sps:$4 sm:$0xff]   ;;  %v13880_v30 = vld [vmem:[#allocation12 + $0x60] ss:$12 sps:$4 sm:$0xff]  }
 0x9fe   :  { %v13790_v26 = vadd.f32 %v4633_v32, %v4424_v38  ;;  %6388 = vmatprep.mubr.bf16.mxu0 %v12575_v0  ;;  %11471 = vmatprep.mubr.msk.bf16.mxu1 %vm12582_vm0, %v12577_v2  ;;  %v13884_v32 = vld [vmem:[#allocation12 + $0x4c] ss:$12 sps:$4 sm:$0xff]   ;;  %v13887_v35 = vld [vmem:[#allocation12 + $0x48] ss:$12 sps:$4 sm:$0xff]  }
 0x9ff   :  { %v4635_v33 = vpop.f32.mrf.mxu0  ;;  %v4675_v39 = vpop.f32.mrf.mxu1 }
 0xa00   :  { %6359 = vmatpush1.bf16.msra.mxu0 %v13595_v1  ;;  %11458 = vmatpush3.bf16.msra.mxu1 %v12104_v63  ;;  %v12107_v1 = vld [vmem:[#allocation12 + $0x50] ss:$12 sps:$4 sm:$0xff]   ;;  %v12134_v63 = vld [vmem:[#allocation12 + $0x68] ss:$12 sps:$4 sm:$0xff]  }
 0xa01   :  { %v4636_v49 = vpop.f32.mrf.mxu0  ;;  %v11334_v7 = vpop.f32.mrf.mxu1  ;;  %6360 = vmatprep.subr.bf16.mxu0 %v13599_v20  ;;  %11459 = vmatprep.subr.bf16.mxu1 %v12577_v2  ;;  %v12108_v20 = vld [vmem:[#allocation12 + $0x38] ss:$12 sps:$4 sm:$0xff]   ;;  %v12138_v33 = vld [vmem:[#allocation12 + $0x50] ss:$12 sps:$4 sm:$0xff]   ;;  %v13891_v39 = vld [vmem:[#allocation12 + $0x34] ss:$12 sps:$4 sm:$0xff]  }
 0xa02   :  { %v12142_v49 = vld [vmem:[#allocation12 + $0x38] ss:$12 sps:$4 sm:$0xff]   ;;  %v13898_v7 = vld [vmem:[#allocation12 + $0x1c] ss:$12 sps:$4 sm:$0xff]  }
 0xa04   :  { %6361 = vmatpush1.bf16.msra.mxu0 %v13605_v5  ;;  %11460 = vmatpush3.bf16.msra.mxu1 %v12105_v8  ;;  %v12109_v5 = vld [vmem:[#allocation12 + $0x20] ss:$12 sps:$4 sm:$0xff]   ;;  %v13894_v8 = vld [vmem:[#allocation12 + $0x30] ss:$12 sps:$4 sm:$0xff]  }
 0xa05   :  { %6362 = vmatprep.subr.bf16.mxu0 %v13609_v43  ;;  %11461 = vmatprep.subr.bf16.mxu1 %v12577_v2  ;;  %v12110_v43 = vld [vmem:[#allocation12 + $0x8] ss:$12 sps:$4 sm:$0xff]  }
 0xa08   :  { %6363 = vmatpush1.bf16.msra.mxu0 %v13612_v48  ;;  %11462 = vmatpush3.bf16.msra.mxu1 %v12106_v36  ;;  %v12111_v48 = vld [vmem:[#allocation10 + $0xb0] ss:$12 sps:$4 sm:$0xff]   ;;  %v13901_v36 = vld [vmem:[#allocation12 + $0x18] ss:$12 sps:$4 sm:$0xff]  }
 0xa09   :  { %6364 = vmatprep.subr.bf16.mxu0 %v13616_v54  ;;  %11463 = vmatprep.subr.bf16.mxu1 %v12577_v2 }
 0xa0c   :  { %6365 = vmatpush1.bf16.msra.mxu0 %v13619_v57  ;;  %11464 = vmatpush3.bf16.msra.mxu1 %v12107_v1  ;;  %v12146_v1 = vld [vmem:[#allocation12 + $0x20] ss:$12 sps:$4 sm:$0xff]  }
 0xa0d   :  { %6366 = vmatprep.subr.bf16.mxu0 %v13623_v53  ;;  %11465 = vmatprep.subr.bf16.mxu1 %v12577_v2  ;;  %v12112_v53 = vld [vmem:[#allocation10 + $0x98] ss:$12 sps:$4 sm:$0xff]  }
 0xa10   :  { %6367 = vmatpush1.bf16.msra.mxu0 %v13626_v37  ;;  %11466 = vmatpush3.bf16.msra.mxu1 %v12108_v20  ;;  %v13905_v20 = vld [vmem:[#allocation12 + $0x4] ss:$12 sps:$4 sm:$0xff]  }
 0xa11   :  { %6368 = vmatprep.subr.bf16.mxu0 %v13630_v16  ;;  %11467 = vmatprep.subr.bf16.mxu1 %v12577_v2 }
 0xa14   :  { %6369 = vmatpush1.bf16.msra.mxu0 %v13633_v41  ;;  %11468 = vmatpush3.bf16.msra.mxu1 %v12109_v5  ;;  %v13908_v5 = vld [vmem:[#allocation12] ss:$12 sps:$4 sm:$0xff]  }
 0xa15   :  { %6370 = vmatprep.subr.bf16.mxu0 %v13637_v15  ;;  %11469 = vmatprep.subr.bf16.mxu1 %v12577_v2 }
 0xa18   :  { %6371 = vmatpush1.bf16.msra.mxu0 %v13640_v44  ;;  %11470 = vmatpush3.bf16.msra.mxu1 %v12110_v43  ;;  %v12150_v43 = vld [vmem:[#allocation12 + $0x8] ss:$12 sps:$4 sm:$0xff]  }
 0xa19   :  { %6565 = vmatprep.subr.bf16.mxu0 %v13644_v59  ;;  %11475 = vmatprep.subr.bf16.mxu1 %v12577_v2 }
 0xa1b   :  { %v4914_v54 = vpop.f32.mrf.mxu0  ;;  %v4955_v57 = vpop.f32.mrf.mxu1  ;;  %6389 = vmatmul.mubr.bf16.vlgmr.msra.gmra.mxu0 %v13144_v11  ;;  %11472 = vmatmul.mubr.bf16.vlgmr.msra.gmra.mxu1 %v13144_v11  ;;  %v12113_v11 = vld [vmem:[#allocation10 + $0x80] ss:$12 sps:$4 sm:$0xff]  }
 0xa1c   :  { %6566 = vmatpush1.bf16.msra.mxu0 %v13647_v18  ;;  %11476 = vmatpush3.bf16.msra.mxu1 %v12111_v48  ;;  %v12114_v18 = vld [vmem:[#allocation10 + $0x68] ss:$12 sps:$4 sm:$0xff]   ;;  %v13912_v48 = vld [vmem:[#allocation10 + $0xac] ss:$12 sps:$4 sm:$0xff]  }
 0xa1d   :  { %v13819_v37 = vpop.f32.mrf.mxu0  ;;  %v11353_v16 = vpop.f32.mrf.mxu1  ;;  %6567 = vmatprep.subr.bf16.mxu0 %v13651_v61  ;;  %11477 = vmatprep.subr.bf16.mxu1 %v12577_v2  ;;  %v12115_v61 = vld [vmem:[#allocation10 + $0x50] ss:$12 sps:$4 sm:$0xff]  }
 0xa1e   :  { %6597 = vmatprep.mubr.bf16.mxu0 %v12575_v0  ;;  %11491 = vmatprep.mubr.msk.bf16.mxu1 %vm12582_vm0, %v12577_v2 }
 0xa1f   :  { %v4918_v41 = vpop.f32.mrf.mxu0  ;;  %v4958_v15 = vpop.f32.mrf.mxu1 }
 0xa20   :  { %6568 = vmatpush1.bf16.msra.mxu0 %v13660_v6  ;;  %11478 = vmatpush3.bf16.msra.mxu1 %v12112_v53  ;;  %v12116_v6 = vld [vmem:[#allocation10 + $0x38] ss:$12 sps:$4 sm:$0xff]   ;;  %v13919_v53 = vld [vmem:[#allocation10 + $0x94] ss:$12 sps:$4 sm:$0xff]   ;;  %v13928_v41 = vld [vmem:[#allocation10 + $0x90] ss:$12 sps:$4 sm:$0xff]  }
 0xa21   :  { %v4919_v44 = vpop.f32.mrf.mxu0  ;;  %v11354_v59 = vpop.f32.mrf.mxu1  ;;  %6569 = vmatprep.subr.bf16.mxu0 %v13666_v47  ;;  %11479 = vmatprep.subr.bf16.mxu1 %v12577_v2  ;;  %v12117_v47 = vld [vmem:[#allocation10 + $0x20] ss:$12 sps:$4 sm:$0xff]   ;;  %v12158_v15 = vld [vmem:[#allocation10 + $0x98] ss:$12 sps:$4 sm:$0xff]  }
 0xa22   :  { %v13934_v59 = vld [vmem:[#allocation10 + $0x7c] ss:$12 sps:$4 sm:$0xff]  }
 0xa24   :  { %6570 = vmatpush1.bf16.msra.mxu0 %v13672_v45  ;;  %11480 = vmatpush3.bf16.msra.mxu1 %v12113_v11  ;;  %v12118_v45 = vld [vmem:[#allocation10 + $0x8] ss:$12 sps:$4 sm:$0xff]  }
 0xa25   :  { %6571 = vmatprep.subr.bf16.mxu0 %v13676_v42  ;;  %11481 = vmatprep.subr.bf16.mxu1 %v12577_v2  ;;  %v13844_v42 = vld [vmem:[#allocation12 + $0xac] ss:$12 sps:$4 sm:$0xff]  }
 0xa28   :  { %6572 = vmatpush1.bf16.msra.mxu0 %v13679_v46  ;;  %11482 = vmatpush3.bf16.msra.mxu1 %v12114_v18  ;;  %v13847_v46 = vld [vmem:[#allocation12 + $0xa8] ss:$12 sps:$4 sm:$0xff]  }
 0xa29   :  { %6573 = vmatprep.subr.bf16.mxu0 %v13683_v55  ;;  %11483 = vmatprep.subr.bf16.mxu1 %v12577_v2  ;;  %v12122_v55 = vld [vmem:[#allocation12 + $0xb0] ss:$12 sps:$4 sm:$0xff]  }
 0xa2c   :  { %6574 = vmatpush1.bf16.msra.mxu0 %v13686_v29  ;;  %11484 = vmatpush3.bf16.msra.mxu1 %v12115_v61  ;;  %v13851_v29 = vld [vmem:[#allocation12 + $0x94] ss:$12 sps:$4 sm:$0xff]   ;;  %v13940_v61 = vld [vmem:[#allocation10 + $0x78] ss:$12 sps:$4 sm:$0xff]  }
 0xa2d   :  { %6575 = vmatprep.subr.bf16.mxu0 %v13690_v25  ;;  %11485 = vmatprep.subr.bf16.mxu1 %v12577_v2 }
 0xa30   :  { %6576 = vmatpush1.bf16.msra.mxu0 %v13693_v24  ;;  %11486 = vmatpush3.bf16.msra.mxu1 %v12116_v6  ;;  %v12162_v6 = vld [vmem:[#allocation10 + $0x80] ss:$12 sps:$4 sm:$0xff]  }
 0xa31   :  { %6577 = vmatprep.subr.bf16.mxu0 %v13697_v9  ;;  %11487 = vmatprep.subr.bf16.mxu1 %v12577_v2 }
 0xa34   :  { %6578 = vmatpush1.bf16.msra.mxu0 %v13700_v12  ;;  %11488 = vmatpush3.bf16.msra.mxu1 %v12117_v47 }
 0xa35   :  { %6579 = vmatprep.subr.bf16.mxu0 %v13704_v40  ;;  %11489 = vmatprep.subr.bf16.mxu1 %v12577_v2  ;;  %v13860_v40 = vld [vmem:[#allocation12 + $0x90] ss:$12 sps:$4 sm:$0xff]  }
 0xa38   :  { %6580 = vmatpush1.bf16.msra.mxu0 %v13707_v31  ;;  %11490 = vmatpush3.bf16.msra.mxu1 %v12118_v45  ;;  %v12126_v31 = vld [vmem:[#allocation12 + $0x98] ss:$12 sps:$4 sm:$0xff]  }
 0xa39   :  { %6848 = vmatprep.subr.bf16.mxu0 %v13844_v42  ;;  %11495 = vmatprep.subr.bf16.mxu1 %v12577_v2 }
 0xa3b   :  { %v5123_v25 = vpop.f32.mrf.mxu0  ;;  %v5164_v24 = vpop.f32.mrf.mxu1  ;;  %6598 = vmatmul.mubr.bf16.vlgmr.msra.gmra.mxu0 %v13297_v34  ;;  %11492 = vmatmul.mubr.bf16.vlgmr.msra.gmra.mxu1 %v13297_v34 }
 0xa3c   :  { %v13855_v9 = vadd.f32 %v5123_v25, %v4914_v54  ;;  %v13857_v12 = vadd.f32 %v5164_v24, %v4955_v57  ;;  %6849 = vmatpush1.bf16.msra.mxu0 %v13847_v46  ;;  %11496 = vmatpush3.bf16.msra.mxu1 %v12122_v55  ;;  %v13915_v54 = vld [vmem:[#allocation10 + $0xa8] ss:$12 sps:$4 sm:$0xff]   ;;  %v12154_v57 = vld [vmem:[#allocation10 + $0xb0] ss:$12 sps:$4 sm:$0xff]   ;;  %v13947_v25 = vld [vmem:[#allocation10 + $0x60] ss:$12 sps:$4 sm:$0xff]  }
 0xa3d   :  { %v5125_v38 = vpop.f32.mrf.mxu0  ;;  %v11373_v56 = vpop.f32.mrf.mxu1  ;;  %6850 = vmatprep.subr.bf16.mxu0 %v13851_v29  ;;  %11497 = vmatprep.subr.bf16.mxu1 %v12577_v2  ;;  %v13944_v55 = vld [vmem:[#allocation10 + $0x64] ss:$12 sps:$4 sm:$0xff]   ;;  %v12166_v24 = vld [vmem:[#allocation10 + $0x68] ss:$12 sps:$4 sm:$0xff]  }
 0xa3e   :  { %v13867_v34 = vadd.f32 %v5125_v38, %v13819_v37  ;;  %6880 = vmatprep.mubr.bf16.mxu0 %v12575_v0  ;;  %11511 = vmatprep.mubr.msk.bf16.mxu1 %vm12582_vm0, %v12577_v2  ;;  %v13954_v38 = vld [vmem:[#allocation10 + $0x48] ss:$12 sps:$4 sm:$0xff]   ;;  %v12170_v56 = vld [vmem:[#allocation10 + $0x50] ss:$12 sps:$4 sm:$0xff]  }
 0xa3f   :  { %v5127_v14 = vpop.f32.mrf.mxu0  ;;  %v5167_v52 = vpop.f32.mrf.mxu1 }
 0xa40   :  { %6851 = vmatpush1.bf16.msra.mxu0 %v13860_v40  ;;  %11498 = vmatpush3.bf16.msra.mxu1 %v12126_v31  ;;  %v13951_v31 = vld [vmem:[#allocation10 + $0x4c] ss:$12 sps:$4 sm:$0xff]   ;;  %v13958_v14 = vld [vmem:[#allocation10 + $0x34] ss:$12 sps:$4 sm:$0xff]   ;;  %v13961_v52 = vld [vmem:[#allocation10 + $0x30] ss:$12 sps:$4 sm:$0xff]  }
 0xa41   :  { %v5128_v22 = vpop.f32.mrf.mxu0  ;;  %v11374_v51 = vpop.f32.mrf.mxu1  ;;  %6852 = vmatprep.subr.bf16.mxu0 %v13864_v10  ;;  %11499 = vmatprep.subr.bf16.mxu1 %v12577_v2 }
 0xa42   :  { %v13965_v22 = vld [vmem:[#allocation10 + $0x1c] ss:$12 sps:$4 sm:$0xff]   ;;  %v13968_v51 = vld [vmem:[#allocation10 + $0x18] ss:$12 sps:$4 sm:$0xff]  }
 0xa44   :  { %6853 = vmatpush1.bf16.msra.mxu0 %v13873_v19  ;;  %11500 = vmatpush3.bf16.msra.mxu1 %v12130_v28  ;;  %v12174_v28 = vld [vmem:[#allocation10 + $0x38] ss:$12 sps:$4 sm:$0xff]  }
 0xa45   :  { %6854 = vmatprep.subr.bf16.mxu0 %v13877_v17  ;;  %11501 = vmatprep.subr.bf16.mxu1 %v12577_v2 }
 0xa48   :  { %6855 = vmatpush1.bf16.msra.mxu0 %v13880_v30  ;;  %11502 = vmatpush3.bf16.msra.mxu1 %v12134_v63  ;;  %v12178_v63 = vld [vmem:[#allocation10 + $0x20] ss:$12 sps:$4 sm:$0xff]  }
 0xa49   :  { %6856 = vmatprep.subr.bf16.mxu0 %v13884_v32  ;;  %11503 = vmatprep.subr.bf16.mxu1 %v12577_v2 }
 0xa4c   :  { %6857 = vmatpush1.bf16.msra.mxu0 %v13887_v35  ;;  %11504 = vmatpush3.bf16.msra.mxu1 %v12138_v33  ;;  %v13972_v33 = vld [vmem:[#allocation10 + $0x4] ss:$12 sps:$4 sm:$0xff]  }
 0xa4d   :  { %6858 = vmatprep.subr.bf16.mxu0 %v13891_v39  ;;  %11505 = vmatprep.subr.bf16.mxu1 %v12577_v2 }
 0xa50   :  { %6859 = vmatpush1.bf16.msra.mxu0 %v13894_v8  ;;  %11506 = vmatpush3.bf16.msra.mxu1 %v12142_v49  ;;  %v13975_v49 = vld [vmem:[#allocation10] ss:$12 sps:$4 sm:$0xff]  }
 0xa51   :  { %6860 = vmatprep.subr.bf16.mxu0 %v13898_v7  ;;  %11507 = vmatprep.subr.bf16.mxu1 %v12577_v2 }
 0xa54   :  { %6861 = vmatpush1.bf16.msra.mxu0 %v13901_v36  ;;  %11508 = vmatpush3.bf16.msra.mxu1 %v12146_v1  ;;  %v12182_v1 = vld [vmem:[#allocation10 + $0x8] ss:$12 sps:$4 sm:$0xff]  }
 0xa55   :  { %6862 = vmatprep.subr.bf16.mxu0 %v13905_v20  ;;  %11509 = vmatprep.subr.bf16.mxu1 %v12577_v2 }
 0xa58   :  { %6863 = vmatpush1.bf16.msra.mxu0 %v13908_v5  ;;  %11510 = vmatpush3.bf16.msra.mxu1 %v12150_v43  ;;  %v12183_v43 = vld [vmem:[#allocation12 + $0xb0] ss:$12 sps:$4 sm:$0xff]  }
 0xa59   :  { %7057 = vmatprep.subr.bf16.mxu0 %v13912_v48  ;;  %11515 = vmatprep.subr.bf16.mxu1 %v12577_v2 }
 0xa5b   :  { %v13921_v37 = vpop.f32.mrf.mxu0  ;;  %v13923_v16 = vpop.f32.mrf.mxu1  ;;  %6881 = vmatmul.mubr.bf16.vlgmr.msra.gmra.mxu0 %v13105_v60  ;;  %11512 = vmatmul.mubr.bf16.vlgmr.msra.gmra.mxu1 %v13105_v60 }
 0xa5c   :  { %7058 = vmatpush1.bf16.msra.mxu0 %v13915_v54  ;;  %11516 = vmatpush3.bf16.msra.mxu1 %v12154_v57 }
 0xa5d   :  { %v13930_v11 = vpop.f32.mrf.mxu0  ;;  %v11393_v44 = vpop.f32.mrf.mxu1  ;;  %7059 = vmatprep.subr.bf16.mxu0 %v13919_v53  ;;  %11517 = vmatprep.subr.bf16.mxu1 %v12577_v2 }
 0xa5e   :  { %7089 = vmatprep.mubr.bf16.mxu0 %v12575_v0  ;;  %11531 = vmatprep.mubr.msk.bf16.mxu1 %vm12582_vm0, %v12577_v2 }
 0xa5f   :  { %v5410_v60 = vpop.f32.mrf.mxu0  ;;  %v5450_v18 = vpop.f32.mrf.mxu1 }
 0xa60   :  { %7060 = vmatpush1.bf16.msra.mxu0 %v13928_v41  ;;  %11518 = vmatpush3.bf16.msra.mxu1 %v12158_v15  ;;  %v12184_v18 = vld [vmem:[#allocation12 + $0x98] ss:$12 sps:$4 sm:$0xff]  }
 0xa61   :  { %v5411_v47 = vpop.f32.mrf.mxu0  ;;  %v11394_v45 = vpop.f32.mrf.mxu1  ;;  %7061 = vmatprep.subr.bf16.mxu0 %v13934_v59  ;;  %11519 = vmatprep.subr.bf16.mxu1 %v12577_v2 }
 0xa64   :  { %7062 = vmatpush1.bf16.msra.mxu0 %v13940_v61  ;;  %11520 = vmatpush3.bf16.msra.mxu1 %v12162_v6 }
 0xa65   :  { %7063 = vmatprep.subr.bf16.mxu0 %v13944_v55  ;;  %11521 = vmatprep.subr.bf16.mxu1 %v12577_v2 }
 0xa68   :  { %7064 = vmatpush1.bf16.msra.mxu0 %v13947_v25  ;;  %11522 = vmatpush3.bf16.msra.mxu1 %v12166_v24  ;;  %v14054_v24 = vld [vmem:[#allocation13 + $0x94] ss:$12 sps:$4 sm:$0xff]  }
 0xa69   :  { %7065 = vmatprep.subr.bf16.mxu0 %v13951_v31  ;;  %11523 = vmatprep.subr.bf16.mxu1 %v12577_v2 }
 0xa6c   :  { %7066 = vmatpush1.bf16.msra.mxu0 %v13954_v38  ;;  %11524 = vmatpush3.bf16.msra.mxu1 %v12170_v56 }
 0xa6d   :  { %7067 = vmatprep.subr.bf16.mxu0 %v13958_v14  ;;  %11525 = vmatprep.subr.bf16.mxu1 %v12577_v2 }
 0xa70   :  { %7068 = vmatpush1.bf16.msra.mxu0 %v13961_v52  ;;  %11526 = vmatpush3.bf16.msra.mxu1 %v12174_v28  ;;  %v12215_v28 = vld [vmem:[#allocation13 + $0x98] ss:$12 sps:$4 sm:$0xff]  }
 0xa71   :  { %7069 = vmatprep.subr.bf16.mxu0 %v13965_v22  ;;  %11527 = vmatprep.subr.bf16.mxu1 %v12577_v2 }
 0xa74   :  { %7070 = vmatpush1.bf16.msra.mxu0 %v13968_v51  ;;  %11528 = vmatpush3.bf16.msra.mxu1 %v12178_v63  ;;  %v14067_v63 = vld [vmem:[#allocation13 + $0x7c] ss:$12 sps:$4 sm:$0xff]  }
 0xa75   :  { %7071 = vmatprep.subr.bf16.mxu0 %v13972_v33  ;;  %11529 = vmatprep.subr.bf16.mxu1 %v12577_v2 }
 0xa78   :  { %7072 = vmatpush1.bf16.msra.mxu0 %v13975_v49  ;;  %11530 = vmatpush3.bf16.msra.mxu1 %v12182_v1  ;;  %v14077_v1 = vld [vmem:[#allocation13 + $0x78] ss:$12 sps:$4 sm:$0xff]  }
 0xa79   :  { %7340 = vmatprep.subr.bf16.mxu0 %v13844_v42  ;;  %11535 = vmatprep.subr.bf16.mxu1 %v12577_v2 }
 0xa7b   :  { %v5615_v57 = vpop.f32.mrf.mxu0  ;;  %v5656_v15 = vpop.f32.mrf.mxu1  ;;  %7090 = vmatmul.mubr.bf16.vlgmr.msra.gmra.mxu0 %v13336_v21  ;;  %11532 = vmatmul.mubr.bf16.vlgmr.msra.gmra.mxu1 %v13336_v21 }
 0xa7c   :  { %v13985_v44 = vadd.f32 %v5615_v57, %v13921_v37  ;;  %v13988_v60 = vadd.f32 %v5656_v15, %v13923_v16  ;;  %7341 = vmatpush1.bf16.msra.mxu0 %v13847_v46  ;;  %11536 = vmatpush3.bf16.msra.mxu1 %v12183_v43  ;;  %v12185_v46 = vld [vmem:[#allocation12 + $0x80] ss:$12 sps:$4 sm:$0xff]  }
 0xa7d   :  { %v5617_v6 = vpop.f32.mrf.mxu0  ;;  %v11413_v42 = vpop.f32.mrf.mxu1  ;;  %7342 = vmatprep.subr.bf16.mxu0 %v13851_v29  ;;  %11537 = vmatprep.subr.bf16.mxu1 %v12577_v2  ;;  %v12186_v29 = vld [vmem:[#allocation12 + $0x68] ss:$12 sps:$4 sm:$0xff]   ;;  %v12219_v43 = vld [vmem:[#allocation13 + $0x80] ss:$12 sps:$4 sm:$0xff]  }
 0xa7e   :  { %v13994_v47 = vadd.f32 %v5617_v6, %v13930_v11  ;;  %7372 = vmatprep.mubr.bf16.mxu0 %v12575_v0  ;;  %11551 = vmatprep.mubr.msk.bf16.mxu1 %vm12582_vm0, %v12577_v2  ;;  %v12197_v11 = vld [vmem:[#allocation10 + $0x20] ss:$12 sps:$4 sm:$0xff]   ;;  %v12223_v42 = vld [vmem:[#allocation13 + $0x68] ss:$12 sps:$4 sm:$0xff]  }
 0xa7f   :  { %v5619_v21 = vpop.f32.mrf.mxu0  ;;  %v5659_v37 = vpop.f32.mrf.mxu1  ;;  %v14084_v6 = vld [vmem:[#allocation13 + $0x60] ss:$12 sps:$4 sm:$0xff]  }
 0xa80   :  { %7343 = vmatpush1.bf16.msra.mxu0 %v13860_v40  ;;  %11538 = vmatpush3.bf16.msra.mxu1 %v12184_v18  ;;  %v12187_v40 = vld [vmem:[#allocation12 + $0x50] ss:$12 sps:$4 sm:$0xff]   ;;  %v14087_v21 = vld [vmem:[#allocation13 + $0x4c] ss:$12 sps:$4 sm:$0xff]   ;;  %v14091_v37 = vld [vmem:[#allocation13 + $0x48] ss:$12 sps:$4 sm:$0xff]  }
 0xa81   :  { %v5620_v16 = vpop.f32.mrf.mxu0  ;;  %v11414_v45 = vpop.f32.mrf.mxu1  ;;  %7344 = vmatprep.subr.bf16.mxu0 %v13864_v10  ;;  %11539 = vmatprep.subr.bf16.mxu1 %v12577_v2  ;;  %v12188_v10 = vld [vmem:[#allocation12 + $0x38] ss:$12 sps:$4 sm:$0xff]  }
 0xa82   :  { %v14080_v18 = vld [vmem:[#allocation13 + $0x64] ss:$12 sps:$4 sm:$0xff]   ;;  %v14094_v16 = vld [vmem:[#allocation13 + $0x34] ss:$12 sps:$4 sm:$0xff]  }
 0xa83   :  { %v14098_v45 = vld [vmem:[#allocation13 + $0x30] ss:$12 sps:$4 sm:$0xff]  }
 0xa84   :  { %7345 = vmatpush1.bf16.msra.mxu0 %v13873_v19  ;;  %11540 = vmatpush3.bf16.msra.mxu1 %v12185_v46  ;;  %v12189_v19 = vld [vmem:[#allocation12 + $0x20] ss:$12 sps:$4 sm:$0xff]   ;;  %v12227_v46 = vld [vmem:[#allocation13 + $0x50] ss:$12 sps:$4 sm:$0xff]  }
 0xa85   :  { %7346 = vmatprep.subr.bf16.mxu0 %v13877_v17  ;;  %11541 = vmatprep.subr.bf16.mxu1 %v12577_v2  ;;  %v12190_v17 = vld [vmem:[#allocation12 + $0x8] ss:$12 sps:$4 sm:$0xff]  }
 0xa88   :  { %7347 = vmatpush1.bf16.msra.mxu0 %v13880_v30  ;;  %11542 = vmatpush3.bf16.msra.mxu1 %v12186_v29  ;;  %v12191_v30 = vld [vmem:[#allocation10 + $0xb0] ss:$12 sps:$4 sm:$0xff]   ;;  %v12228_v29 = vld [vmem:[#allocation13 + $0x38] ss:$12 sps:$4 sm:$0xff]  }
 0xa89   :  { %7348 = vmatprep.subr.bf16.mxu0 %v13884_v32  ;;  %11543 = vmatprep.subr.bf16.mxu1 %v12577_v2 }
 0xa8c   :  { %7349 = vmatpush1.bf16.msra.mxu0 %v13887_v35  ;;  %11544 = vmatpush3.bf16.msra.mxu1 %v12187_v40  ;;  %v14101_v40 = vld [vmem:[#allocation13 + $0x1c] ss:$12 sps:$4 sm:$0xff]  }
 0xa8d   :  { %7350 = vmatprep.subr.bf16.mxu0 %v13891_v39  ;;  %11545 = vmatprep.subr.bf16.mxu1 %v12577_v2  ;;  %v12192_v39 = vld [vmem:[#allocation10 + $0x98] ss:$12 sps:$4 sm:$0xff]  }
 0xa90   :  { %7351 = vmatpush1.bf16.msra.mxu0 %v13894_v8  ;;  %11546 = vmatpush3.bf16.msra.mxu1 %v12188_v10  ;;  %v14105_v10 = vld [vmem:[#allocation13 + $0x18] ss:$12 sps:$4 sm:$0xff]  }
 0xa91   :  { %7352 = vmatprep.subr.bf16.mxu0 %v13898_v7  ;;  %11547 = vmatprep.subr.bf16.mxu1 %v12577_v2 }
 0xa94   :  { %7353 = vmatpush1.bf16.msra.mxu0 %v13901_v36  ;;  %11548 = vmatpush3.bf16.msra.mxu1 %v12189_v19  ;;  %v12229_v19 = vld [vmem:[#allocation13 + $0x20] ss:$12 sps:$4 sm:$0xff]  }
 0xa95   :  { %7354 = vmatprep.subr.bf16.mxu0 %v13905_v20  ;;  %11549 = vmatprep.subr.bf16.mxu1 %v12577_v2 }
 0xa98   :  { %7355 = vmatpush1.bf16.msra.mxu0 %v13908_v5  ;;  %11550 = vmatpush3.bf16.msra.mxu1 %v12190_v17  ;;  %v14108_v17 = vld [vmem:[#allocation13 + $0x4] ss:$12 sps:$4 sm:$0xff]  }
 0xa99   :  { %7549 = vmatprep.subr.bf16.mxu0 %v13912_v48  ;;  %11555 = vmatprep.subr.bf16.mxu1 %v12577_v2 }
 0xa9b   :  { %v5898_v32 = vpop.f32.mrf.mxu0  ;;  %v5939_v35 = vpop.f32.mrf.mxu1  ;;  %7373 = vmatmul.mubr.bf16.vlgmr.msra.gmra.mxu0 %v13065_v3  ;;  %11552 = vmatmul.mubr.bf16.vlgmr.msra.gmra.mxu1 %v13065_v3  ;;  %v12193_v3 = vld [vmem:[#allocation10 + $0x80] ss:$12 sps:$4 sm:$0xff]  }
 0xa9c   :  { %7550 = vmatpush1.bf16.msra.mxu0 %v13915_v54  ;;  %11556 = vmatpush3.bf16.msra.mxu1 %v12191_v30  ;;  %v12194_v54 = vld [vmem:[#allocation10 + $0x68] ss:$12 sps:$4 sm:$0xff]   ;;  %v14112_v30 = vld [vmem:[#allocation13] ss:$12 sps:$4 sm:$0xff]  }
 0xa9d   :  { %v14023_v8 = vpop.f32.mrf.mxu0  ;;  %v11433_v7 = vpop.f32.mrf.mxu1  ;;  %7551 = vmatprep.subr.bf16.mxu0 %v13919_v53  ;;  %11557 = vmatprep.subr.bf16.mxu1 %v12577_v2  ;;  %v12195_v53 = vld [vmem:[#allocation10 + $0x50] ss:$12 sps:$4 sm:$0xff]  }
 0xa9e   :  { %7581 = vmatprep.mubr.bf16.mxu0 %v12575_v0  ;;  %11571 = vmatprep.mubr.msk.bf16.mxu1 %vm12582_vm0, %v12577_v2 }
 0xa9f   :  { %v5902_v36 = vpop.f32.mrf.mxu0  ;;  %v5942_v20 = vpop.f32.mrf.mxu1 }
 0xaa0   :  { %7552 = vmatpush1.bf16.msra.mxu0 %v13928_v41  ;;  %11558 = vmatpush3.bf16.msra.mxu1 %v12192_v39  ;;  %v12196_v41 = vld [vmem:[#allocation10 + $0x38] ss:$12 sps:$4 sm:$0xff]  }
 0xaa1   :  { %v5903_v5 = vpop.f32.mrf.mxu0  ;;  %v11434_v48 = vpop.f32.mrf.mxu1  ;;  %7553 = vmatprep.subr.bf16.mxu0 %v13934_v59  ;;  %11559 = vmatprep.subr.bf16.mxu1 %v12577_v2  ;;  %v12198_v59 = vld [vmem:[#allocation10 + $0x8] ss:$12 sps:$4 sm:$0xff]  }
 0xaa4   :  { %7554 = vmatpush1.bf16.msra.mxu0 %v13940_v61  ;;  %11560 = vmatpush3.bf16.msra.mxu1 %v12193_v3  ;;  %v14048_v61 = vld [vmem:[#allocation13 + $0xac] ss:$12 sps:$4 sm:$0xff]  }
 0xaa5   :  { %7555 = vmatprep.subr.bf16.mxu0 %v13944_v55  ;;  %11561 = vmatprep.subr.bf16.mxu1 %v12577_v2  ;;  %v14051_v55 = vld [vmem:[#allocation13 + $0xa8] ss:$12 sps:$4 sm:$0xff]  }
 0xaa8   :  { %7556 = vmatpush1.bf16.msra.mxu0 %v13947_v25  ;;  %11562 = vmatpush3.bf16.msra.mxu1 %v12194_v54  ;;  %v12211_v25 = vld [vmem:[#allocation13 + $0xb0] ss:$12 sps:$4 sm:$0xff]  }
 0xaa9   :  { %7557 = vmatprep.subr.bf16.mxu0 %v13951_v31  ;;  %11563 = vmatprep.subr.bf16.mxu1 %v12577_v2 }
 0xaac   :  { %7558 = vmatpush1.bf16.msra.mxu0 %v13954_v38  ;;  %11564 = vmatpush3.bf16.msra.mxu1 %v12195_v53 }
 0xaad   :  { %7559 = vmatprep.subr.bf16.mxu0 %v13958_v14  ;;  %11565 = vmatprep.subr.bf16.mxu1 %v12577_v2 }
 0xab0   :  { %7560 = vmatpush1.bf16.msra.mxu0 %v13961_v52  ;;  %11566 = vmatpush3.bf16.msra.mxu1 %v12196_v41  ;;  %v14064_v52 = vld [vmem:[#allocation13 + $0x90] ss:$12 sps:$4 sm:$0xff]  }
 0xab1   :  { %7561 = vmatprep.subr.bf16.mxu0 %v13965_v22  ;;  %11567 = vmatprep.subr.bf16.mxu1 %v12577_v2 }
 0xab4   :  { %7562 = vmatpush1.bf16.msra.mxu0 %v13968_v51  ;;  %11568 = vmatpush3.bf16.msra.mxu1 %v12197_v11 }
 0xab5   :  { %7563 = vmatprep.subr.bf16.mxu0 %v13972_v33  ;;  %11569 = vmatprep.subr.bf16.mxu1 %v12577_v2 }
 0xab8   :  { %7564 = vmatpush1.bf16.msra.mxu0 %v13975_v49  ;;  %11570 = vmatpush3.bf16.msra.mxu1 %v12198_v59 }
 0xab9   :  { %7806 = vmatprep.subr.bf16.mxu0 %v14048_v61  ;;  %11575 = vmatprep.subr.bf16.mxu1 %v12577_v2 }
 0xabb   :  { %v6107_v31 = vpop.f32.mrf.mxu0  ;;  %v6148_v38 = vpop.f32.mrf.mxu1  ;;  %7582 = vmatmul.mubr.bf16.vlgmr.msra.gmra.mxu0 %v13411_v4  ;;  %11572 = vmatmul.mubr.bf16.vlgmr.msra.gmra.mxu1 %v13411_v4 }
 0xabc   :  { %v14059_v56 = vadd.f32 %v6107_v31, %v5898_v32  ;;  %v14061_v14 = vadd.f32 %v6148_v38, %v5939_v35  ;;  %7807 = vmatpush1.bf16.msra.mxu0 %v14051_v55  ;;  %11576 = vmatpush3.bf16.msra.mxu1 %v12211_v25  ;;  %v12230_v32 = vld [vmem:[#allocation13 + $0x8] ss:$12 sps:$4 sm:$0xff]  }
 0xabd   :  { %v6109_v22 = vpop.f32.mrf.mxu0  ;;  %v11453_v51 = vpop.f32.mrf.mxu1  ;;  %7808 = vmatprep.subr.bf16.mxu0 %v14054_v24  ;;  %11577 = vmatprep.subr.bf16.mxu1 %v12577_v2 }
 0xabe   :  { %v14071_v4 = vadd.f32 %v6109_v22, %v14023_v8  ;;  %7838 = vmatprep.mubr.bf16.mxu0 %v12575_v0  ;;  %11591 = vmatprep.mubr.msk.bf16.mxu1 %vm12582_vm0, %v12577_v2 }
 0xabf   :  { %v6111_v33 = vpop.f32.mrf.mxu0  ;;  %v6151_v49 = vpop.f32.mrf.mxu1 }
 0xac0   :  { %7809 = vmatpush1.bf16.msra.mxu0 %v14064_v52  ;;  %11578 = vmatpush3.bf16.msra.mxu1 %v12215_v28 }
 0xac1   :  { %v6112_v57 = vpop.f32.mrf.mxu0  ;;  %v11454_v15 = vpop.f32.mrf.mxu1  ;;  %7810 = vmatprep.subr.bf16.mxu0 %v14067_v63  ;;  %11579 = vmatprep.subr.bf16.mxu1 %v12577_v2 }
 0xac4   :  { %7811 = vmatpush1.bf16.msra.mxu0 %v14077_v1  ;;  %11580 = vmatpush3.bf16.msra.mxu1 %v12219_v43 }
 0xac5   :  { %7812 = vmatprep.subr.bf16.mxu0 %v14080_v18  ;;  %11581 = vmatprep.subr.bf16.mxu1 %v12577_v2 }
 0xac8   :  { %7813 = vmatpush1.bf16.msra.mxu0 %v14084_v6  ;;  %11582 = vmatpush3.bf16.msra.mxu1 %v12223_v42 }
 0xac9   :  { %7814 = vmatprep.subr.bf16.mxu0 %v14087_v21  ;;  %11583 = vmatprep.subr.bf16.mxu1 %v12577_v2 }
 0xacc   :  { %7815 = vmatpush1.bf16.msra.mxu0 %v14091_v37  ;;  %11584 = vmatpush3.bf16.msra.mxu1 %v12227_v46 }
 0xacd   :  { %7816 = vmatprep.subr.bf16.mxu0 %v14094_v16  ;;  %11585 = vmatprep.subr.bf16.mxu1 %v12577_v2 }
 0xad0   :  { %7817 = vmatpush1.bf16.msra.mxu0 %v14098_v45  ;;  %11586 = vmatpush3.bf16.msra.mxu1 %v12228_v29  ;;  %v12231_v29 = vld [vmem:[#allocation13 + $0xb0] ss:$12 sps:$4 sm:$0xff]  }
 0xad1   :  { %7818 = vmatprep.subr.bf16.mxu0 %v14101_v40  ;;  %11587 = vmatprep.subr.bf16.mxu1 %v12577_v2 }
 0xad4   :  { %7819 = vmatpush1.bf16.msra.mxu0 %v14105_v10  ;;  %11588 = vmatpush3.bf16.msra.mxu1 %v12229_v19  ;;  %v12232_v19 = vld [vmem:[#allocation13 + $0x98] ss:$12 sps:$4 sm:$0xff]  }
 0xad5   :  { %7820 = vmatprep.subr.bf16.mxu0 %v14108_v17  ;;  %11589 = vmatprep.subr.bf16.mxu1 %v12577_v2 }
 0xad8   :  { %7821 = vmatpush1.bf16.msra.mxu0 %v14112_v30  ;;  %11590 = vmatpush3.bf16.msra.mxu1 %v12230_v32  ;;  %v12233_v32 = vld [vmem:[#allocation13 + $0x80] ss:$12 sps:$4 sm:$0xff]  }
 0xad9   :  { %8072 = vmatprep.subr.bf16.mxu0 %v14048_v61  ;;  %11595 = vmatprep.subr.bf16.mxu1 %v12577_v2 }
 0xadb   :  { %v6390_v35 = vpop.f32.mrf.mxu0  ;;  %v6431_v39 = vpop.f32.mrf.mxu1  ;;  %7839 = vmatmul.mubr.bf16.vlgmr.msra.gmra.mxu0 %v12575_v0  ;;  %11592 = vmatmul.mubr.bf16.vlgmr.msra.gmra.mxu1 %v12575_v0 }
 0xadc   :  { %8073 = vmatpush1.bf16.msra.mxu0 %v14051_v55  ;;  %8104 = vmatprep.mubr.bf16.mxu0 %v12575_v0 }
 0xadd   :  { %v6392_v8 = vpop.f32.mrf.mxu0  ;;  %v11473_v7 = vpop.f32.mrf.mxu1  ;;  %8074 = vmatprep.subr.bf16.mxu0 %v14054_v24  ;;  %11611 = vmatprep.mubr.msk.bf16.mxu1 %vm12582_vm0, %v12577_v2 }
 0xade   :  { %11596 = vmatpush3.bf16.msra.mxu1 %v12231_v29 }
 0xadf   :  { %v6394_v36 = vpop.f32.mrf.mxu0  ;;  %v6434_v20 = vpop.f32.mrf.mxu1  ;;  %11597 = vmatprep.subr.bf16.mxu1 %v12577_v2 }
 0xae0   :  { %8075 = vmatpush1.bf16.msra.mxu0 %v14064_v52 }
 0xae1   :  { %v6395_v3 = vpop.f32.mrf.mxu0  ;;  %v11474_v5 = vpop.f32.mrf.mxu1  ;;  %8076 = vmatprep.subr.bf16.mxu0 %v14067_v63 }
 0xae2   :  { %11598 = vmatpush3.bf16.msra.mxu1 %v12232_v19 }
 0xae3   :  { %11599 = vmatprep.subr.bf16.mxu1 %v12577_v2 }
 0xae4   :  { %8077 = vmatpush1.bf16.msra.mxu0 %v14077_v1 }
 0xae5   :  { %8078 = vmatprep.subr.bf16.mxu0 %v14080_v18 }
 0xae6   :  { %11600 = vmatpush3.bf16.msra.mxu1 %v12233_v32 }
 0xae7   :  { %11601 = vmatprep.subr.bf16.mxu1 %v12577_v2 }
 0xae8   :  { %8079 = vmatpush1.bf16.msra.mxu0 %v14084_v6 }
 0xae9   :  { %8080 = vmatprep.subr.bf16.mxu0 %v14087_v21 }
 0xaec   :  { %8081 = vmatpush1.bf16.msra.mxu0 %v14091_v37 }
 0xaed   :  { %8082 = vmatprep.subr.bf16.mxu0 %v14094_v16 }
 0xaf0   :  { %8083 = vmatpush1.bf16.msra.mxu0 %v14098_v45 }
 0xaf1   :  { %8084 = vmatprep.subr.bf16.mxu0 %v14101_v40 }
 0xaf4   :  { %8085 = vmatpush1.bf16.msra.mxu0 %v14105_v10 }
 0xaf5   :  { %8086 = vmatprep.subr.bf16.mxu0 %v14108_v17 }
 0xaf8   :  { %8087 = vmatpush1.bf16.msra.mxu0 %v14112_v30 }
 0xaf9   :  { %8337 = vmatprep.subr.bf16.mxu0 %v14048_v61 }
 0xafb   :  { %v6599_v48 = vpop.f32.mrf.mxu0  ;;  %v6640_v54 = vpop.f32.mrf.mxu1 }
 0xafc   :  { %v14140_v53 = vadd.f32 %v6599_v48, %v6390_v35  ;;  %v14142_v41 = vadd.f32 %v6640_v54, %v6431_v39  ;;  %v12234_v35 = vld [vmem:[#allocation13 + $0x68] ss:$12 sps:$4 sm:$0xff]   ;;  %v12235_v39 = vld [vmem:[#allocation13 + $0x50] ss:$12 sps:$4 sm:$0xff]   ;;  %v12236_v48 = vld [vmem:[#allocation13 + $0x38] ss:$12 sps:$4 sm:$0xff]  }
 0xafd   :  { %v6601_v11 = vpop.f32.mrf.mxu0  ;;  %v11493_v59 = vpop.f32.mrf.mxu1  ;;  %11602 = vmatpush3.bf16.msra.mxu1 %v12234_v35 }
 0xafe   :  { %v14144_v25 = vadd.f32 %v6601_v11, %v6392_v8  ;;  %11603 = vmatprep.subr.bf16.mxu1 %v12577_v2 }
 0xaff   :  { %v6603_v31 = vpop.f32.mrf.mxu0  ;;  %v6643_v38 = vpop.f32.mrf.mxu1 }
 0xb01   :  { %v6604_v28 = vpop.f32.mrf.mxu0  ;;  %v11494_v22 = vpop.f32.mrf.mxu1  ;;  %11604 = vmatpush3.bf16.msra.mxu1 %v12235_v39 }
 0xb02   :  { %11605 = vmatprep.subr.bf16.mxu1 %v12577_v2  ;;  %v12237_v28 = vld [vmem:[#allocation13 + $0x20] ss:$12 sps:$4 sm:$0xff]   ;;  %v12238_v22 = vld [vmem:[#allocation13 + $0x8] ss:$12 sps:$4 sm:$0xff]  }
 0xb05   :  { %11606 = vmatpush3.bf16.msra.mxu1 %v12236_v48 }
 0xb06   :  { %11607 = vmatprep.subr.bf16.mxu1 %v12577_v2 }
 0xb09   :  { %11608 = vmatpush3.bf16.msra.mxu1 %v12237_v28 }
 0xb0a   :  { %11609 = vmatprep.subr.bf16.mxu1 %v12577_v2 }
 0xb0d   :  { %11610 = vmatpush3.bf16.msra.mxu1 %v12238_v22 }
 0xb0e   :  { %11615 = vmatprep.subr.bf16.mxu1 %v12577_v2 }
 0xb1b   :  { %v6882_v51 = vpop.f32.mrf.mxu0  ;;  %v6923_v33 = vpop.f32.mrf.mxu1 }
 0xb1d   :  { %v6884_v49 = vpop.f32.mrf.mxu0  ;;  %v11513_v43 = vpop.f32.mrf.mxu1 }
 0xb1f   :  { %v6886_v57 = vpop.f32.mrf.mxu0  ;;  %v6926_v15 = vpop.f32.mrf.mxu1 }
 0xb21   :  { %v6887_v42 = vpop.f32.mrf.mxu0  ;;  %v11514_v46 = vpop.f32.mrf.mxu1 }
 0xb3b   :  { %v7091_v8 = vpop.f32.mrf.mxu0  ;;  %v7132_v7 = vpop.f32.mrf.mxu1 }
 0xb3c   :  { %v14150_v36 = vadd.f32 %v7091_v8, %v6882_v51  ;;  %v14152_v20 = vadd.f32 %v7132_v7, %v6923_v33 }
 0xb3d   :  { %v7093_v3 = vpop.f32.mrf.mxu0  ;;  %v11533_v5 = vpop.f32.mrf.mxu1 }
 0xb3e   :  { %v14155_v54 = vadd.f32 %v7093_v3, %v6884_v49 }
 0xb3f   :  { %v7095_v11 = vpop.f32.mrf.mxu0  ;;  %v7135_v59 = vpop.f32.mrf.mxu1 }
 0xb40   :  { %v3686_v59 = vshrl.u32 %v115_v23, 7 }
 0xb41   :  { %v7096_v31 = vpop.f32.mrf.mxu0  ;;  %v11534_v38 = vpop.f32.mrf.mxu1 }
 0xb42   :  { %v3687_v31 = vsub.s32 0, %v3686_v59  ;;  %v3683_v38 = vld [vmem:[%s14498_s6] sm:$0x7]  ;;  %v3691_v22 = vsub.s32 1, %v3686_v59 }
 0xb44   :  { %v14170_v28 = vrot.slane %v3683_v38, %v3687_v31 }
 0xb5b   :  { %v7374_v51 = vpop.f32.mrf.mxu0  ;;  %v7415_v33 = vpop.f32.mrf.mxu1 }
 0xb5d   :  { %v7376_v43 = vpop.f32.mrf.mxu0  ;;  %v11553_v49 = vpop.f32.mrf.mxu1 }
 0xb5f   :  { %v7378_v57 = vpop.f32.mrf.mxu0  ;;  %v7418_v15 = vpop.f32.mrf.mxu1 }
 0xb60   :  { %v14174_v57 = vrot.slane %v3683_v38, %v3691_v22 }
 0xb61   :  { %v7379_v42 = vpop.f32.mrf.mxu0  ;;  %v11554_v46 = vpop.f32.mrf.mxu1 }
 0xb7b   :  { %v7583_v29 = vpop.f32.mrf.mxu0  ;;  %v7624_v19 = vpop.f32.mrf.mxu1 }
 0xb7c   :  { %v14160_v32 = vadd.f32 %v7583_v29, %v7374_v51  ;;  %v14162_v35 = vadd.f32 %v7624_v19, %v7415_v33  ;;  %v4186_v51 = vadd.f32 %v13717_v62, %v14170_v28  ;;  %v4187_v19 = vadd.f32 %v13726_v50, %v14174_v57  ;;  %v14181_v62 = vld [vmem:[%s14500_s8] ss:$0 sm:$0xff] }
 0xb7d   :  { %v7585_v39 = vpop.f32.mrf.mxu0  ;;  %v11573_v8 = vpop.f32.mrf.mxu1 }
 0xb7e   :  { %v14164_v7 = vadd.f32 %v7585_v39, %v7376_v43 }
 0xb7f   :  { %v7587_v3 = vpop.f32.mrf.mxu0  ;;  %v7627_v5 = vpop.f32.mrf.mxu1 }
 0xb81   :  { %v7588_v48 = vpop.f32.mrf.mxu0  ;;  %v11574_v11 = vpop.f32.mrf.mxu1 }
 0xb82   :  { %v3695_v48 = vsub.s32 2, %v3686_v59 }
 0xb84   :  { %v14183_v31 = vrot.slane %v3683_v38, %v3695_v48  ;;  %v12243_v48 = vld [vmem:[#allocation13 + $0x50] ss:$12 sps:$4 sm:$0xff]  }
 0xb86   :  { %v4188_v50 = vadd.f32 %v13720_v27, %v14183_v31  ;;  %v12239_v27 = vld [vmem:[#allocation13 + $0xb0] ss:$12 sps:$4 sm:$0xff]  }
 0xb9b   :  { %v7840_v33 = vpop.f32.mrf.mxu0  ;;  %v7881_v43 = vpop.f32.mrf.mxu1 }
 0xb9c   :  { %v7887_v49 = vadd.f32 %v7840_v33, %v4186_v51  ;;  %v7897_v51 = vadd.f32 %v14181_v62, %v7881_v43 }
 0xb9d   :  { %v7842_v15 = vpop.f32.mrf.mxu0  ;;  %v11593_v42 = vpop.f32.mrf.mxu1 }
 0xb9e   :  { %v7888_v46 = vmul.f32 0.5, %v7887_v49  ;;  %v7892_v3 = vadd.f32 %v7842_v15, %v4187_v19 }
 0xb9f   :  { %v7844_v23 = vpop.f32.mrf.mxu0  ;;  %v7884_v29 = vpop.f32.mrf.mxu1 }
 0xba0   :  { %12359 = vtanh.f32 %v7888_v46  ;;  %v7893_v5 = vmul.f32 0.5, %v7892_v3  ;;  %v12241_v3 = vld [vmem:[#allocation13 + $0x80] ss:$12 sps:$4 sm:$0xff]  }
 0xba1   :  { %v7845_v39 = vpop.f32.mrf.mxu0  ;;  %v11594_v8 = vpop.f32.mrf.mxu1 }
 0xba2   :  { %12361 = vtanh.f32 %v7893_v5  ;;  %v12240_v8 = vld [vmem:[#allocation13 + $0x98] ss:$12 sps:$4 sm:$0xff]   ;;  %v12242_v5 = vld [vmem:[#allocation13 + $0x68] ss:$12 sps:$4 sm:$0xff]  }
 0xbad   :  { %v12360_v11 = vpop.eup %12359 }
 0xbae   :  { %v7890_v22 = vadd.f32 1.0, %v12360_v11  ;;  %v12245_v11 = vld [vmem:[#allocation13 + $0x20] ss:$12 sps:$4 sm:$0xff]  }
 0xbaf   :  { %v12362_v59 = vpop.eup %12361 }
 0xbb0   :  { %v7891_v33 = vmul.f32 0.5, %v7890_v22  ;;  %v7895_v42 = vadd.f32 1.0, %v12362_v59  ;;  %v12246_v22 = vld [vmem:[#allocation13 + $0x8] ss:$12 sps:$4 sm:$0xff]  }
 0xbb2   :  { %v7898_v49 = vmul.f32 %v7897_v51, %v7891_v33  ;;  %v7896_v46 = vmul.f32 0.5, %v7895_v42  ;;  %v4678_v51 = vadd.f32 %v13783_v13, %v14170_v28 }
 0xbb4   :  { %v7899_v15 = vadd.f32 %v7898_v49, %v4188_v50  ;;  %v7901_v23 = vsub.f32 1.0, %v7896_v46  ;;  %v7903_v19 = vmul.f32 0.0, %v7896_v46 }
 0xbb6   :  { %12363 = vtanh.f32 %v7899_v15 }
 0xbc3   :  { %v12364_v29 = vpop.eup %12363 }
 0xbc4   :  { %v7902_v39 = vmul.f32 %v12364_v29, %v7901_v23  ;;  %v4679_v29 = vadd.f32 %v13790_v26, %v14174_v57 }
 0xbc6   :  { %v14188_v38 = vadd.f32 %v7903_v19, %v7902_v39 }
 0xbc8   :  { %v7911_v43 = vpack.c.bf16 %v14188_v38, %v14188_v38  ;;  %7905 = vst.msk [vmem:[#allocation15] sm:$0xff] %vm210_vm4, %v14188_v38 }
 0xbc9   :  { %7907 = vst.msk [vmem:[#allocation15 + $0x38] sm:$0xff] %vm7906_vm12, %v14188_v38 }
 0xbca   :  { %8105 = vmatmul.mubr.bf16.vlgmr.msra.gmra.mxu0 %v7911_v43  ;;  %11612 = vmatmul.mubr.bf16.vlgmr.msra.gmra.mxu1 %v7911_v43 }
 0xbcb   :  { %8338 = vmatpush1.bf16.msra.mxu0 %v14051_v55  ;;  %8369 = vmatprep.mubr.bf16.mxu0 %v12575_v0 }
 0xbcc   :  { %8339 = vmatprep.subr.bf16.mxu0 %v14054_v24  ;;  %11631 = vmatprep.mubr.msk.bf16.mxu1 %vm12582_vm0, %v12577_v2 }
 0xbcd   :  { %11616 = vmatpush3.bf16.msra.mxu1 %v12239_v27 }
 0xbce   :  { %11617 = vmatprep.subr.bf16.mxu1 %v12577_v2 }
 0xbcf   :  { %8340 = vmatpush1.bf16.msra.mxu0 %v14064_v52 }
 0xbd0   :  { %8341 = vmatprep.subr.bf16.mxu0 %v14067_v63 }
 0xbd1   :  { %11618 = vmatpush3.bf16.msra.mxu1 %v12240_v8 }
 0xbd2   :  { %11619 = vmatprep.subr.bf16.mxu1 %v12577_v2 }
 0xbd3   :  { %8342 = vmatpush1.bf16.msra.mxu0 %v14077_v1 }
 0xbd4   :  { %8343 = vmatprep.subr.bf16.mxu0 %v14080_v18 }
 0xbd5   :  { %11620 = vmatpush3.bf16.msra.mxu1 %v12241_v3 }
 0xbd6   :  { %11621 = vmatprep.subr.bf16.mxu1 %v12577_v2 }
 0xbd7   :  { %8344 = vmatpush1.bf16.msra.mxu0 %v14084_v6 }
 0xbd8   :  { %8345 = vmatprep.subr.bf16.mxu0 %v14087_v21 }
 0xbd9   :  { %11622 = vmatpush3.bf16.msra.mxu1 %v12242_v5 }
 0xbda   :  { %11623 = vmatprep.subr.bf16.mxu1 %v12577_v2 }
 0xbdb   :  { %8346 = vmatpush1.bf16.msra.mxu0 %v14091_v37 }
 0xbdc   :  { %8347 = vmatprep.subr.bf16.mxu0 %v14094_v16 }
 0xbdd   :  { %11624 = vmatpush3.bf16.msra.mxu1 %v12243_v48  ;;  %v4680_v48 = vadd.f32 %v13785_v58, %v14183_v31 }
 0xbde   :  { %11625 = vmatprep.subr.bf16.mxu1 %v12577_v2 }
 0xbdf   :  { %8348 = vmatpush1.bf16.msra.mxu0 %v14098_v45 }
 0xbe0   :  { %8349 = vmatprep.subr.bf16.mxu0 %v14101_v40 }
 0xbe3   :  { %8350 = vmatpush1.bf16.msra.mxu0 %v14105_v10 }
 0xbe4   :  { %8351 = vmatprep.subr.bf16.mxu0 %v14108_v17 }
 0xbe7   :  { %8352 = vmatpush1.bf16.msra.mxu0 %v14112_v30 }
 0xbe8   :  { %8602 = vmatprep.subr.bf16.mxu0 %v14048_v61  ;;  %v12244_v61 = vld [vmem:[#allocation13 + $0x38] ss:$12 sps:$4 sm:$0xff]  }
 0xbe9   :  { %11626 = vmatpush3.bf16.msra.mxu1 %v12244_v61 }
 0xbea   :  { %11627 = vmatprep.subr.bf16.mxu1 %v12577_v2 }
 0xbed   :  { %11628 = vmatpush3.bf16.msra.mxu1 %v12245_v11 }
 0xbee   :  { %11629 = vmatprep.subr.bf16.mxu1 %v12577_v2 }
 0xbf1   :  { %11630 = vmatpush3.bf16.msra.mxu1 %v12246_v22 }
 0xbf2   :  { %11635 = vmatprep.subr.bf16.mxu1 %v12577_v2 }
 0xc8a   :  { %v8106_v33 = vpop.f32.mrf.mxu0  ;;  %v8147_v50 = vpop.f32.mrf.mxu1 }
 0xc8b   :  { %v8153_v49 = vadd.f32 %v8106_v33, %v4678_v51  ;;  %v8163_v5 = vadd.f32 %v14181_v62, %v8147_v50 }
 0xc8c   :  { %v8108_v15 = vpop.f32.mrf.mxu0  ;;  %v11613_v59 = vpop.f32.mrf.mxu1 }
 0xc8d   :  { %v8154_v42 = vmul.f32 0.5, %v8153_v49  ;;  %v8158_v43 = vadd.f32 %v8108_v15, %v4679_v29 }
 0xc8e   :  { %v8110_v46 = vpop.f32.mrf.mxu0  ;;  %v8150_v23 = vpop.f32.mrf.mxu1 }
 0xc8f   :  { %12365 = vtanh.f32 %v8154_v42  ;;  %v8159_v27 = vmul.f32 0.5, %v8158_v43  ;;  %v5171_v46 = vadd.f32 %v13867_v34, %v14174_v57 }
 0xc90   :  { %v8111_v19 = vpop.f32.mrf.mxu0  ;;  %v11614_v39 = vpop.f32.mrf.mxu1 }
 0xc91   :  { %12367 = vtanh.f32 %v8159_v27 }
 0xc9c   :  { %v12366_v8 = vpop.eup %12365 }
 0xc9d   :  { %v8156_v3 = vadd.f32 1.0, %v12366_v8 }
 0xc9e   :  { %v12368_v22 = vpop.eup %12367 }
 0xc9f   :  { %v8157_v13 = vmul.f32 0.5, %v8156_v3  ;;  %v8161_v51 = vadd.f32 1.0, %v12368_v22  ;;  %v5172_v3 = vadd.f32 %v13857_v12, %v14183_v31 }
 0xca1   :  { %v8164_v61 = vmul.f32 %v8163_v5, %v8157_v13  ;;  %v8162_v33 = vmul.f32 0.5, %v8161_v51 }
 0xca3   :  { %v8165_v11 = vadd.f32 %v8164_v61, %v4680_v48  ;;  %v8167_v26 = vsub.f32 1.0, %v8162_v33  ;;  %v8169_v15 = vmul.f32 %v8162_v33, %v14188_v38 }
 0xca5   :  { %12369 = vtanh.f32 %v8165_v11 }
 0xcb2   :  { %v12370_v49 = vpop.eup %12369 }
 0xcb3   :  { %v8168_v59 = vmul.f32 %v12370_v49, %v8167_v26  ;;  %v14284_v49 = vld [vmem:[#allocation13 + $0xac] ss:$12 sps:$4 sm:$0xff]  }
 0xcb5   :  { %v14231_v42 = vadd.f32 %v8169_v15, %v8168_v59  ;;  %v14286_v59 = vld [vmem:[#allocation13 + $0xa8] ss:$12 sps:$4 sm:$0xff]   ;;  %v12258_v15 = vld [vmem:[#allocation13 + $0xb0] ss:$12 sps:$4 sm:$0xff]  }
 0xcb7   :  { %8171 = vst.msk [vmem:[#allocation15 + $0x8] sm:$0xff] %vm210_vm4, %v14231_v42  ;;  %v8176_v58 = vpack.c.bf16 %v14231_v42, %v14231_v42 }
 0xcb8   :  { %8172 = vst.msk [vmem:[#allocation15 + $0x30] sm:$0xff] %vm7906_vm12, %v14231_v42 }
 0xcb9   :  { %8370 = vmatmul.mubr.bf16.vlgmr.msra.gmra.mxu0 %v8176_v58  ;;  %11632 = vmatmul.mubr.bf16.vlgmr.msra.gmra.mxu1 %v8176_v58  ;;  %v14293_v58 = vld [vmem:[#allocation13 + $0x90] ss:$12 sps:$4 sm:$0xff]  }
 0xcba   :  { %8603 = vmatpush1.bf16.msra.mxu0 %v14051_v55  ;;  %8634 = vmatprep.mubr.bf16.mxu0 %v12575_v0  ;;  %v12247_v55 = vld [vmem:[#allocation13 + $0xb0] ss:$12 sps:$4 sm:$0xff]  }
 0xcbb   :  { %8604 = vmatprep.subr.bf16.mxu0 %v14054_v24  ;;  %11651 = vmatprep.mubr.msk.bf16.mxu1 %vm12582_vm0, %v12577_v2  ;;  %v12248_v24 = vld [vmem:[#allocation13 + $0x98] ss:$12 sps:$4 sm:$0xff]  }
 0xcbc   :  { %11636 = vmatpush3.bf16.msra.mxu1 %v12247_v55  ;;  %v12262_v55 = vld [vmem:[#allocation13 + $0x98] ss:$12 sps:$4 sm:$0xff]  }
 0xcbd   :  { %11637 = vmatprep.subr.bf16.mxu1 %v12577_v2 }
 0xcbe   :  { %8605 = vmatpush1.bf16.msra.mxu0 %v14064_v52  ;;  %v12249_v52 = vld [vmem:[#allocation13 + $0x80] ss:$12 sps:$4 sm:$0xff]  }
 0xcbf   :  { %8606 = vmatprep.subr.bf16.mxu0 %v14067_v63  ;;  %v12250_v63 = vld [vmem:[#allocation13 + $0x68] ss:$12 sps:$4 sm:$0xff]  }
 0xcc0   :  { %11638 = vmatpush3.bf16.msra.mxu1 %v12248_v24  ;;  %v14297_v24 = vld [vmem:[#allocation13 + $0x7c] ss:$12 sps:$4 sm:$0xff]  }
 0xcc1   :  { %11639 = vmatprep.subr.bf16.mxu1 %v12577_v2 }
 0xcc2   :  { %8607 = vmatpush1.bf16.msra.mxu0 %v14077_v1  ;;  %v12251_v1 = vld [vmem:[#allocation13 + $0x50] ss:$12 sps:$4 sm:$0xff]  }
 0xcc3   :  { %8608 = vmatprep.subr.bf16.mxu0 %v14080_v18  ;;  %v12252_v18 = vld [vmem:[#allocation13 + $0x38] ss:$12 sps:$4 sm:$0xff]  }
 0xcc4   :  { %11640 = vmatpush3.bf16.msra.mxu1 %v12249_v52  ;;  %v14300_v52 = vld [vmem:[#allocation13 + $0x78] ss:$12 sps:$4 sm:$0xff]  }
 0xcc5   :  { %11641 = vmatprep.subr.bf16.mxu1 %v12577_v2 }
 0xcc6   :  { %8609 = vmatpush1.bf16.msra.mxu0 %v14084_v6  ;;  %v12253_v6 = vld [vmem:[#allocation13 + $0x20] ss:$12 sps:$4 sm:$0xff]  }
 0xcc7   :  { %8610 = vmatprep.subr.bf16.mxu0 %v14087_v21  ;;  %v12254_v21 = vld [vmem:[#allocation13 + $0x8] ss:$12 sps:$4 sm:$0xff]  }
 0xcc8   :  { %11642 = vmatpush3.bf16.msra.mxu1 %v12250_v63  ;;  %v12266_v63 = vld [vmem:[#allocation13 + $0x80] ss:$12 sps:$4 sm:$0xff]  }
 0xcc9   :  { %11643 = vmatprep.subr.bf16.mxu1 %v12577_v2 }
 0xcca   :  { %8611 = vmatpush1.bf16.msra.mxu0 %v14091_v37  ;;  %v5170_v37 = vadd.f32 %v13855_v9, %v14170_v28 }
 0xccb   :  { %8612 = vmatprep.subr.bf16.mxu0 %v14094_v16 }
 0xccc   :  { %11644 = vmatpush3.bf16.msra.mxu1 %v12251_v1  ;;  %v14304_v1 = vld [vmem:[#allocation13 + $0x64] ss:$12 sps:$4 sm:$0xff]  }
 0xccd   :  { %11645 = vmatprep.subr.bf16.mxu1 %v12577_v2 }
 0xcce   :  { %8613 = vmatpush1.bf16.msra.mxu0 %v14098_v45 }
 0xccf   :  { %8614 = vmatprep.subr.bf16.mxu0 %v14101_v40 }
 0xcd0   :  { %11646 = vmatpush3.bf16.msra.mxu1 %v12252_v18  ;;  %v14307_v18 = vld [vmem:[#allocation13 + $0x60] ss:$12 sps:$4 sm:$0xff]  }
 0xcd1   :  { %11647 = vmatprep.subr.bf16.mxu1 %v12577_v2 }
 0xcd2   :  { %8615 = vmatpush1.bf16.msra.mxu0 %v14105_v10 }
 0xcd3   :  { %8616 = vmatprep.subr.bf16.mxu0 %v14108_v17 }
 0xcd4   :  { %11648 = vmatpush3.bf16.msra.mxu1 %v12253_v6  ;;  %v12270_v6 = vld [vmem:[#allocation13 + $0x68] ss:$12 sps:$4 sm:$0xff]  }
 0xcd5   :  { %11649 = vmatprep.subr.bf16.mxu1 %v12577_v2 }
 0xcd6   :  { %8617 = vmatpush1.bf16.msra.mxu0 %v14112_v30 }
 0xcd7   :  { %8867 = vmatprep.subr.bf16.mxu0 %v14284_v49 }
 0xcd8   :  { %11650 = vmatpush3.bf16.msra.mxu1 %v12254_v21  ;;  %v14311_v21 = vld [vmem:[#allocation13 + $0x4c] ss:$12 sps:$4 sm:$0xff]  }
 0xcd9   :  { %11655 = vmatprep.subr.bf16.mxu1 %v12577_v2 }
 0xd79   :  { %v8371_v16 = vpop.f32.mrf.mxu0  ;;  %v8412_v45 = vpop.f32.mrf.mxu1 }
 0xd7a   :  { %v8418_v40 = vadd.f32 %v8371_v16, %v5170_v37  ;;  %v8428_v8 = vadd.f32 %v14181_v62, %v8412_v45  ;;  %v14314_v37 = vld [vmem:[#allocation13 + $0x48] ss:$12 sps:$4 sm:$0xff]   ;;  %v12274_v16 = vld [vmem:[#allocation13 + $0x50] ss:$12 sps:$4 sm:$0xff]  }
 0xd7b   :  { %v8373_v10 = vpop.f32.mrf.mxu0  ;;  %v11633_v17 = vpop.f32.mrf.mxu1  ;;  %v14318_v45 = vld [vmem:[#allocation13 + $0x34] ss:$12 sps:$4 sm:$0xff]  }
 0xd7c   :  { %v8419_v30 = vmul.f32 0.5, %v8418_v40  ;;  %v8423_v19 = vadd.f32 %v8373_v10, %v5171_v46  ;;  %v14321_v40 = vld [vmem:[#allocation13 + $0x30] ss:$12 sps:$4 sm:$0xff]   ;;  %v12278_v10 = vld [vmem:[#allocation13 + $0x38] ss:$12 sps:$4 sm:$0xff]  }
 0xd7d   :  { %v8375_v38 = vpop.f32.mrf.mxu0  ;;  %v8415_v50 = vpop.f32.mrf.mxu1  ;;  %v14325_v17 = vld [vmem:[#allocation13 + $0x1c] ss:$12 sps:$4 sm:$0xff]   ;;  %v14335_v46 = vld [vmem:[#allocation13] ss:$12 sps:$4 sm:$0xff]  }
 0xd7e   :  { %12371 = vtanh.f32 %v8419_v30  ;;  %v8424_v39 = vmul.f32 0.5, %v8423_v19  ;;  %v14328_v30 = vld [vmem:[#allocation13 + $0x18] ss:$12 sps:$4 sm:$0xff]   ;;  %v12282_v38 = vld [vmem:[#allocation13 + $0x20] ss:$12 sps:$4 sm:$0xff]  }
 0xd7f   :  { %v8376_v23 = vpop.f32.mrf.mxu0  ;;  %v11634_v29 = vpop.f32.mrf.mxu1  ;;  %v14332_v50 = vld [vmem:[#allocation13 + $0x4] ss:$12 sps:$4 sm:$0xff]  }
 0xd80   :  { %12373 = vtanh.f32 %v8424_v39  ;;  %v12286_v23 = vld [vmem:[#allocation13 + $0x8] ss:$12 sps:$4 sm:$0xff]   ;;  %v5662_v29 = vadd.f32 %v13985_v44, %v14170_v28 }
 0xd8b   :  { %v12372_v43 = vpop.eup %12371 }
 0xd8c   :  { %v8421_v27 = vadd.f32 1.0, %v12372_v43 }
 0xd8d   :  { %v12374_v48 = vpop.eup %12373 }
 0xd8e   :  { %v8422_v9 = vmul.f32 0.5, %v8421_v27  ;;  %v8426_v61 = vadd.f32 1.0, %v12374_v48 }
 0xd90   :  { %v8429_v13 = vmul.f32 %v8428_v8, %v8422_v9  ;;  %v8427_v11 = vmul.f32 0.5, %v8426_v61 }
 0xd92   :  { %v8430_v5 = vadd.f32 %v8429_v13, %v5172_v3  ;;  %v8432_v34 = vsub.f32 1.0, %v8427_v11  ;;  %v8434_v33 = vmul.f32 %v8427_v11, %v14231_v42  ;;  %v14290_v42 = vld [vmem:[#allocation13 + $0x94] ss:$12 sps:$4 sm:$0xff]  }
 0xd94   :  { %12375 = vtanh.f32 %v8430_v5  ;;  %v5663_v5 = vadd.f32 %v13994_v47, %v14174_v57 }
 0xda1   :  { %v12376_v22 = vpop.eup %12375 }
 0xda2   :  { %v8433_v51 = vmul.f32 %v12376_v22, %v8432_v34 }
 0xda4   :  { %v14273_v26 = vadd.f32 %v8434_v33, %v8433_v51 }
 0xda6   :  { %8436 = vst.msk [vmem:[#allocation15 + $0x10] sm:$0xff] %vm210_vm4, %v14273_v26  ;;  %v8441_v12 = vpack.c.bf16 %v14273_v26, %v14273_v26 }
 0xda7   :  { %8437 = vst.msk [vmem:[#allocation15 + $0x28] sm:$0xff] %vm7906_vm12, %v14273_v26 }
 0xda8   :  { %8635 = vmatmul.mubr.bf16.vlgmr.msra.gmra.mxu0 %v8441_v12  ;;  %11652 = vmatmul.mubr.bf16.vlgmr.msra.gmra.mxu1 %v8441_v12  ;;  %v5664_v12 = vadd.f32 %v13988_v60, %v14183_v31 }
 0xda9   :  { %8899 = vmatprep.mubr.bf16.mxu0 %v12575_v0  ;;  %11671 = vmatprep.mubr.msk.bf16.mxu1 %vm12582_vm0, %v12577_v2 }
 0xdaa   :  { %8868 = vmatpush1.bf16.msra.mxu0 %v14286_v59  ;;  %11656 = vmatpush3.bf16.msra.mxu1 %v12258_v15 }
 0xdab   :  { %11657 = vmatprep.subr.bf16.mxu1 %v12577_v2  ;;  %8869 = vmatprep.subr.bf16.mxu0 %v14290_v42 }
 0xdae   :  { %8870 = vmatpush1.bf16.msra.mxu0 %v14293_v58  ;;  %11658 = vmatpush3.bf16.msra.mxu1 %v12262_v55 }
 0xdaf   :  { %11659 = vmatprep.subr.bf16.mxu1 %v12577_v2  ;;  %8871 = vmatprep.subr.bf16.mxu0 %v14297_v24 }
 0xdb2   :  { %8872 = vmatpush1.bf16.msra.mxu0 %v14300_v52  ;;  %11660 = vmatpush3.bf16.msra.mxu1 %v12266_v63 }
 0xdb3   :  { %11661 = vmatprep.subr.bf16.mxu1 %v12577_v2  ;;  %8873 = vmatprep.subr.bf16.mxu0 %v14304_v1 }
 0xdb6   :  { %8874 = vmatpush1.bf16.msra.mxu0 %v14307_v18  ;;  %11662 = vmatpush3.bf16.msra.mxu1 %v12270_v6 }
 0xdb7   :  { %11663 = vmatprep.subr.bf16.mxu1 %v12577_v2  ;;  %8875 = vmatprep.subr.bf16.mxu0 %v14311_v21 }
 0xdba   :  { %8876 = vmatpush1.bf16.msra.mxu0 %v14314_v37  ;;  %11664 = vmatpush3.bf16.msra.mxu1 %v12274_v16 }
 0xdbb   :  { %11665 = vmatprep.subr.bf16.mxu1 %v12577_v2  ;;  %8877 = vmatprep.subr.bf16.mxu0 %v14318_v45 }
 0xdbe   :  { %8878 = vmatpush1.bf16.msra.mxu0 %v14321_v40  ;;  %11666 = vmatpush3.bf16.msra.mxu1 %v12278_v10 }
 0xdbf   :  { %11667 = vmatprep.subr.bf16.mxu1 %v12577_v2  ;;  %8879 = vmatprep.subr.bf16.mxu0 %v14325_v17 }
 0xdc2   :  { %8880 = vmatpush1.bf16.msra.mxu0 %v14328_v30  ;;  %11668 = vmatpush3.bf16.msra.mxu1 %v12282_v38 }
 0xdc3   :  { %11669 = vmatprep.subr.bf16.mxu1 %v12577_v2  ;;  %8881 = vmatprep.subr.bf16.mxu0 %v14332_v50 }
 0xdc6   :  { %8882 = vmatpush1.bf16.msra.mxu0 %v14335_v46  ;;  %11670 = vmatpush3.bf16.msra.mxu1 %v12286_v23 }
 0xdc7   :  { %9132 = vmatprep.subr.bf16.mxu0 %v14284_v49  ;;  %11675 = vmatprep.subr.bf16.mxu1 %v12577_v2 }
 0xe68   :  { %v8636_v19 = vpop.f32.mrf.mxu0  ;;  %v8677_v39 = vpop.f32.mrf.mxu1 }
 0xe69   :  { %v8683_v43 = vadd.f32 %v8636_v19, %v5662_v29  ;;  %v8693_v33 = vadd.f32 %v14181_v62, %v8677_v39  ;;  %v12288_v19 = vld [vmem:[#allocation13 + $0x98] ss:$12 sps:$4 sm:$0xff]   ;;  %v12289_v39 = vld [vmem:[#allocation13 + $0x80] ss:$12 sps:$4 sm:$0xff]  }
 0xe6a   :  { %v8638_v27 = vpop.f32.mrf.mxu0  ;;  %v11653_v9 = vpop.f32.mrf.mxu1 }
 0xe6b   :  { %v8684_v8 = vmul.f32 0.5, %v8683_v43  ;;  %v8688_v11 = vadd.f32 %v8638_v27, %v5663_v5  ;;  %v12290_v43 = vld [vmem:[#allocation13 + $0x68] ss:$12 sps:$4 sm:$0xff]   ;;  %v12291_v27 = vld [vmem:[#allocation13 + $0x50] ss:$12 sps:$4 sm:$0xff]  }
 0xe6c   :  { %v8640_v3 = vpop.f32.mrf.mxu0  ;;  %v8680_v13 = vpop.f32.mrf.mxu1  ;;  %v12292_v9 = vld [vmem:[#allocation13 + $0x38] ss:$12 sps:$4 sm:$0xff]  }
 0xe6d   :  { %12377 = vtanh.f32 %v8684_v8  ;;  %v8689_v34 = vmul.f32 0.5, %v8688_v11  ;;  %v12293_v8 = vld [vmem:[#allocation13 + $0x20] ss:$12 sps:$4 sm:$0xff]   ;;  %v12294_v3 = vld [vmem:[#allocation13 + $0x8] ss:$12 sps:$4 sm:$0xff]   ;;  %v6154_v13 = vadd.f32 %v14059_v56, %v14170_v28 }
 0xe6e   :  { %v8641_v48 = vpop.f32.mrf.mxu0  ;;  %v11654_v61 = vpop.f32.mrf.mxu1 }
 0xe6f   :  { %12379 = vtanh.f32 %v8689_v34 }
 0xe7a   :  { %v12378_v22 = vpop.eup %12377 }
 0xe7b   :  { %v8686_v51 = vadd.f32 1.0, %v12378_v22 }
 0xe7c   :  { %v12380_v63 = vpop.eup %12379 }
 0xe7d   :  { %v8687_v44 = vmul.f32 0.5, %v8686_v51  ;;  %v8691_v6 = vadd.f32 1.0, %v12380_v63 }
 0xe7f   :  { %v8694_v15 = vmul.f32 %v8693_v33, %v8687_v44  ;;  %v8692_v16 = vmul.f32 0.5, %v8691_v6  ;;  %v6155_v33 = vadd.f32 %v14071_v4, %v14174_v57 }
 0xe81   :  { %v8695_v55 = vadd.f32 %v8694_v15, %v5664_v12  ;;  %v8697_v47 = vsub.f32 1.0, %v8692_v16  ;;  %v8699_v23 = vmul.f32 %v8692_v16, %v14273_v26  ;;  %v12287_v26 = vld [vmem:[#allocation13 + $0xb0] ss:$12 sps:$4 sm:$0xff]  }
 0xe83   :  { %12381 = vtanh.f32 %v8695_v55 }
 0xe90   :  { %v12382_v10 = vpop.eup %12381 }
 0xe91   :  { %v8698_v38 = vmul.f32 %v12382_v10, %v8697_v47  ;;  %v6156_v10 = vadd.f32 %v14061_v14, %v14183_v31 }
 0xe93   :  { %v14349_v29 = vadd.f32 %v8699_v23, %v8698_v38 }
 0xe95   :  { %8701 = vst.msk [vmem:[#allocation15 + $0x18] sm:$0xff] %vm210_vm4, %v14349_v29  ;;  %v8706_v60 = vpack.c.bf16 %v14349_v29, %v14349_v29 }
 0xe96   :  { %8702 = vst.msk [vmem:[#allocation15 + $0x20] sm:$0xff] %vm7906_vm12, %v14349_v29 }
 0xe97   :  { %8900 = vmatmul.mubr.bf16.vlgmr.msra.gmra.mxu0 %v8706_v60  ;;  %11672 = vmatmul.mubr.bf16.vlgmr.msra.gmra.mxu1 %v8706_v60 }
 0xe98   :  { %9133 = vmatpush1.bf16.msra.mxu0 %v14286_v59  ;;  %9164 = vmatprep.mubr.bf16.mxu0 %v12575_v0 }
 0xe99   :  { %9134 = vmatprep.subr.bf16.mxu0 %v14290_v42  ;;  %11691 = vmatprep.mubr.msk.bf16.mxu1 %vm12582_vm0, %v12577_v2 }
 0xe9a   :  { %11676 = vmatpush3.bf16.msra.mxu1 %v12287_v26 }
 0xe9b   :  { %11677 = vmatprep.subr.bf16.mxu1 %v12577_v2 }
 0xe9c   :  { %9135 = vmatpush1.bf16.msra.mxu0 %v14293_v58 }
 0xe9d   :  { %9136 = vmatprep.subr.bf16.mxu0 %v14297_v24 }
 0xe9e   :  { %11678 = vmatpush3.bf16.msra.mxu1 %v12288_v19 }
 0xe9f   :  { %11679 = vmatprep.subr.bf16.mxu1 %v12577_v2 }
 0xea0   :  { %9137 = vmatpush1.bf16.msra.mxu0 %v14300_v52 }
 0xea1   :  { %9138 = vmatprep.subr.bf16.mxu0 %v14304_v1 }
 0xea2   :  { %11680 = vmatpush3.bf16.msra.mxu1 %v12289_v39 }
 0xea3   :  { %11681 = vmatprep.subr.bf16.mxu1 %v12577_v2 }
 0xea4   :  { %9139 = vmatpush1.bf16.msra.mxu0 %v14307_v18 }
 0xea5   :  { %9140 = vmatprep.subr.bf16.mxu0 %v14311_v21 }
 0xea6   :  { %11682 = vmatpush3.bf16.msra.mxu1 %v12290_v43 }
 0xea7   :  { %11683 = vmatprep.subr.bf16.mxu1 %v12577_v2 }
 0xea8   :  { %9141 = vmatpush1.bf16.msra.mxu0 %v14314_v37 }
 0xea9   :  { %9142 = vmatprep.subr.bf16.mxu0 %v14318_v45 }
 0xeaa   :  { %11684 = vmatpush3.bf16.msra.mxu1 %v12291_v27 }
 0xeab   :  { %11685 = vmatprep.subr.bf16.mxu1 %v12577_v2 }
 0xeac   :  { %9143 = vmatpush1.bf16.msra.mxu0 %v14321_v40 }
 0xead   :  { %9144 = vmatprep.subr.bf16.mxu0 %v14325_v17 }
 0xeae   :  { %11686 = vmatpush3.bf16.msra.mxu1 %v12292_v9 }
 0xeaf   :  { %11687 = vmatprep.subr.bf16.mxu1 %v12577_v2 }
 0xeb0   :  { %9145 = vmatpush1.bf16.msra.mxu0 %v14328_v30 }
 0xeb1   :  { %9146 = vmatprep.subr.bf16.mxu0 %v14332_v50 }
 0xeb2   :  { %11688 = vmatpush3.bf16.msra.mxu1 %v12293_v8  ;;  %v12296_v8 = vld [vmem:[#allocation13 + $0x98] ss:$12 sps:$4 sm:$0xff]  }
 0xeb3   :  { %11689 = vmatprep.subr.bf16.mxu1 %v12577_v2 }
 0xeb4   :  { %9147 = vmatpush1.bf16.msra.mxu0 %v14335_v46 }
 0xeb5   :  { %9397 = vmatprep.subr.bf16.mxu0 %v14284_v49 }
 0xeb6   :  { %11690 = vmatpush3.bf16.msra.mxu1 %v12294_v3  ;;  %v12297_v3 = vld [vmem:[#allocation13 + $0x80] ss:$12 sps:$4 sm:$0xff]  }
 0xeb7   :  { %11695 = vmatprep.subr.bf16.mxu1 %v12577_v2 }
 0xf57   :  { %v8901_v5 = vpop.f32.mrf.mxu0  ;;  %v8942_v48 = vpop.f32.mrf.mxu1 }
 0xf58   :  { %v8948_v61 = vadd.f32 %v8901_v5, %v6154_v13  ;;  %v8958_v47 = vadd.f32 %v14181_v62, %v8942_v48  ;;  %v12298_v13 = vld [vmem:[#allocation13 + $0x68] ss:$12 sps:$4 sm:$0xff]   ;;  %v12299_v5 = vld [vmem:[#allocation13 + $0x50] ss:$12 sps:$4 sm:$0xff]   ;;  %v12301_v48 = vld [vmem:[#allocation13 + $0x20] ss:$12 sps:$4 sm:$0xff]  }
 0xf59   :  { %v8903_v11 = vpop.f32.mrf.mxu0  ;;  %v11673_v34 = vpop.f32.mrf.mxu1 }
 0xf5a   :  { %v8949_v22 = vmul.f32 0.5, %v8948_v61  ;;  %v8953_v55 = vadd.f32 %v8903_v11, %v6155_v33  ;;  %v12302_v61 = vld [vmem:[#allocation13 + $0x8] ss:$12 sps:$4 sm:$0xff]   ;;  %v6646_v11 = vadd.f32 %v14140_v53, %v14170_v28 }
 0xf5b   :  { %v8905_v51 = vpop.f32.mrf.mxu0  ;;  %v8945_v44 = vpop.f32.mrf.mxu1 }
 0xf5c   :  { %12383 = vtanh.f32 %v8949_v22  ;;  %v8954_v63 = vmul.f32 0.5, %v8953_v55 }
 0xf5d   :  { %v8906_v12 = vpop.f32.mrf.mxu0  ;;  %v11674_v15 = vpop.f32.mrf.mxu1 }
 0xf5e   :  { %12385 = vtanh.f32 %v8954_v63  ;;  %v6647_v63 = vadd.f32 %v14144_v25, %v14174_v57 }
 0xf69   :  { %v12384_v6 = vpop.eup %12383 }
 0xf6a   :  { %v8951_v16 = vadd.f32 1.0, %v12384_v6 }
 0xf6b   :  { %v12386_v60 = vpop.eup %12385 }
 0xf6c   :  { %v8952_v56 = vmul.f32 0.5, %v8951_v16  ;;  %v8956_v26 = vadd.f32 1.0, %v12386_v60  ;;  %v6648_v60 = vadd.f32 %v14142_v41, %v14183_v31 }
 0xf6e   :  { %v8959_v38 = vmul.f32 %v8958_v47, %v8952_v56  ;;  %v8957_v19 = vmul.f32 0.5, %v8956_v26 }
 0xf70   :  { %v8960_v23 = vadd.f32 %v8959_v38, %v6156_v10  ;;  %v8962_v4 = vsub.f32 1.0, %v8957_v19  ;;  %v8964_v27 = vmul.f32 %v8957_v19, %v14349_v29  ;;  %v12295_v29 = vld [vmem:[#allocation13 + $0xb0] ss:$12 sps:$4 sm:$0xff]  }
 0xf72   :  { %12387 = vtanh.f32 %v8960_v23 }
 0xf7f   :  { %v12388_v39 = vpop.eup %12387 }
 0xf80   :  { %v8963_v43 = vmul.f32 %v12388_v39, %v8962_v4 }
 0xf82   :  { %v14392_v9 = vadd.f32 %v8964_v27, %v8963_v43 }
 0xf84   :  { %8966 = vst.msk [vmem:[#allocation15 + $0x20] sm:$0xff] %vm210_vm4, %v14392_v9  ;;  %v8971_v14 = vpack.c.bf16 %v14392_v9, %v14392_v9 }
 0xf85   :  { %8967 = vst.msk [vmem:[#allocation15 + $0x18] sm:$0xff] %vm7906_vm12, %v14392_v9 }
 0xf86   :  { %9165 = vmatmul.mubr.bf16.vlgmr.msra.gmra.mxu0 %v8971_v14  ;;  %11692 = vmatmul.mubr.bf16.vlgmr.msra.gmra.mxu1 %v8971_v14 }
 0xf87   :  { %9398 = vmatpush1.bf16.msra.mxu0 %v14286_v59  ;;  %9429 = vmatprep.mubr.bf16.mxu0 %v12575_v0 }
 0xf88   :  { %9399 = vmatprep.subr.bf16.mxu0 %v14290_v42  ;;  %11711 = vmatprep.mubr.msk.bf16.mxu1 %vm12582_vm0, %v12577_v2 }
 0xf89   :  { %11696 = vmatpush3.bf16.msra.mxu1 %v12295_v29 }
 0xf8a   :  { %11697 = vmatprep.subr.bf16.mxu1 %v12577_v2 }
 0xf8b   :  { %9400 = vmatpush1.bf16.msra.mxu0 %v14293_v58 }
 0xf8c   :  { %9401 = vmatprep.subr.bf16.mxu0 %v14297_v24 }
 0xf8d   :  { %11698 = vmatpush3.bf16.msra.mxu1 %v12296_v8 }
 0xf8e   :  { %11699 = vmatprep.subr.bf16.mxu1 %v12577_v2 }
 0xf8f   :  { %9402 = vmatpush1.bf16.msra.mxu0 %v14300_v52 }
 0xf90   :  { %9403 = vmatprep.subr.bf16.mxu0 %v14304_v1 }
 0xf91   :  { %11700 = vmatpush3.bf16.msra.mxu1 %v12297_v3  ;;  %v7139_v3 = vadd.f32 %v14155_v54, %v14174_v57 }
 0xf92   :  { %11701 = vmatprep.subr.bf16.mxu1 %v12577_v2 }
 0xf93   :  { %9404 = vmatpush1.bf16.msra.mxu0 %v14307_v18 }
 0xf94   :  { %9405 = vmatprep.subr.bf16.mxu0 %v14311_v21 }
 0xf95   :  { %11702 = vmatpush3.bf16.msra.mxu1 %v12298_v13 }
 0xf96   :  { %11703 = vmatprep.subr.bf16.mxu1 %v12577_v2 }
 0xf97   :  { %9406 = vmatpush1.bf16.msra.mxu0 %v14314_v37 }
 0xf98   :  { %9407 = vmatprep.subr.bf16.mxu0 %v14318_v45 }
 0xf99   :  { %11704 = vmatpush3.bf16.msra.mxu1 %v12299_v5 }
 0xf9a   :  { %11705 = vmatprep.subr.bf16.mxu1 %v12577_v2 }
 0xf9b   :  { %9408 = vmatpush1.bf16.msra.mxu0 %v14321_v40 }
 0xf9c   :  { %9409 = vmatprep.subr.bf16.mxu0 %v14325_v17 }
 0xf9f   :  { %9410 = vmatpush1.bf16.msra.mxu0 %v14328_v30 }
 0xfa0   :  { %9411 = vmatprep.subr.bf16.mxu0 %v14332_v50 }
 0xfa3   :  { %9412 = vmatpush1.bf16.msra.mxu0 %v14335_v46 }
 0xfa4   :  { %9662 = vmatprep.subr.bf16.mxu0 %v14284_v49  ;;  %v12300_v49 = vld [vmem:[#allocation13 + $0x38] ss:$12 sps:$4 sm:$0xff]  }
 0xfa5   :  { %11706 = vmatpush3.bf16.msra.mxu1 %v12300_v49 }
 0xfa6   :  { %11707 = vmatprep.subr.bf16.mxu1 %v12577_v2 }
 0xfa9   :  { %11708 = vmatpush3.bf16.msra.mxu1 %v12301_v48 }
 0xfaa   :  { %11709 = vmatprep.subr.bf16.mxu1 %v12577_v2 }
 0xfad   :  { %11710 = vmatpush3.bf16.msra.mxu1 %v12302_v61 }
 0xfae   :  { %11715 = vmatprep.subr.bf16.mxu1 %v12577_v2 }
0x1046   :  { %v9166_v34 = vpop.f32.mrf.mxu0  ;;  %v9207_v22 = vpop.f32.mrf.mxu1 }
0x1047   :  { %v9213_v51 = vadd.f32 %v9166_v34, %v6646_v11  ;;  %v9223_v23 = vadd.f32 %v14181_v62, %v9207_v22  ;;  %v7140_v34 = vadd.f32 %v14152_v20, %v14183_v31  ;;  %v7630_v20 = vadd.f32 %v14160_v32, %v14170_v28 }
0x1048   :  { %v9168_v44 = vpop.f32.mrf.mxu0  ;;  %v11693_v33 = vpop.f32.mrf.mxu1 }
0x1049   :  { %v9214_v12 = vmul.f32 0.5, %v9213_v51  ;;  %v9218_v56 = vadd.f32 %v9168_v44, %v6647_v63 }
0x104a   :  { %v9170_v15 = vpop.f32.mrf.mxu0  ;;  %v9210_v55 = vpop.f32.mrf.mxu1 }
0x104b   :  { %12389 = vtanh.f32 %v9214_v12  ;;  %v9219_v47 = vmul.f32 0.5, %v9218_v56 }
0x104c   :  { %v9171_v6 = vpop.f32.mrf.mxu0  ;;  %v11694_v16 = vpop.f32.mrf.mxu1 }
0x104d   :  { %12391 = vtanh.f32 %v9219_v47 }
0x1058   :  { %v12390_v10 = vpop.eup %12389 }
0x1059   :  { %v9216_v38 = vadd.f32 1.0, %v12390_v10 }
0x105a   :  { %v12392_v4 = vpop.eup %12391 }
0x105b   :  { %v9217_v53 = vmul.f32 0.5, %v9216_v38  ;;  %v9221_v39 = vadd.f32 1.0, %v12392_v4 }
0x105d   :  { %v9224_v26 = vmul.f32 %v9223_v23, %v9217_v53  ;;  %v9222_v43 = vmul.f32 0.5, %v9221_v39 }
0x105f   :  { %v9225_v19 = vadd.f32 %v9224_v26, %v6648_v60  ;;  %v9227_v25 = vsub.f32 1.0, %v9222_v43  ;;  %v9229_v29 = vmul.f32 %v9222_v43, %v14392_v9  ;;  %v7631_v26 = vadd.f32 %v14164_v7, %v14174_v57 }
0x1061   :  { %12393 = vtanh.f32 %v9225_v19 }
0x106e   :  { %v12394_v27 = vpop.eup %12393 }
0x106f   :  { %v9228_v14 = vmul.f32 %v12394_v27, %v9227_v25 }
0x1071   :  { %v14435_v8 = vadd.f32 %v9229_v29, %v9228_v14  ;;  %v7632_v29 = vadd.f32 %v14162_v35, %v14183_v31 }
0x1073   :  { %9231 = vst.msk [vmem:[#allocation15 + $0x28] sm:$0xff] %vm210_vm4, %v14435_v8  ;;  %v9236_v41 = vpack.c.bf16 %v14435_v8, %v14435_v8 }
0x1074   :  { %9232 = vst.msk [vmem:[#allocation15 + $0x10] sm:$0xff] %vm7906_vm12, %v14435_v8 }
0x1075   :  { %9430 = vmatmul.mubr.bf16.vlgmr.msra.gmra.mxu0 %v9236_v41  ;;  %11712 = vmatmul.mubr.bf16.vlgmr.msra.gmra.mxu1 %v9236_v41 }
0x1076   :  { %9663 = vmatpush1.bf16.msra.mxu0 %v14286_v59  ;;  %9694 = vmatprep.mubr.bf16.mxu0 %v12575_v0  ;;  %v12303_v0 = vld [vmem:[#allocation13 + $0xb0] ss:$12 sps:$4 sm:$0xff]   ;;  %v12304_v59 = vld [vmem:[#allocation13 + $0x98] ss:$12 sps:$4 sm:$0xff]  }
0x1077   :  { %9664 = vmatprep.subr.bf16.mxu0 %v14290_v42  ;;  %11731 = vmatprep.mubr.msk.bf16.mxu1 %vm12582_vm0, %v12577_v2  ;;  %v12305_v42 = vld [vmem:[#allocation13 + $0x80] ss:$12 sps:$4 sm:$0xff]  }
0x1078   :  { %11716 = vmatpush3.bf16.msra.mxu1 %v12303_v0 }
0x1079   :  { %11717 = vmatprep.subr.bf16.mxu1 %v12577_v2 }
0x107a   :  { %9665 = vmatpush1.bf16.msra.mxu0 %v14293_v58  ;;  %v12306_v58 = vld [vmem:[#allocation13 + $0x68] ss:$12 sps:$4 sm:$0xff]  }
0x107b   :  { %9666 = vmatprep.subr.bf16.mxu0 %v14297_v24  ;;  %v12307_v24 = vld [vmem:[#allocation13 + $0x50] ss:$12 sps:$4 sm:$0xff]  }
0x107c   :  { %11718 = vmatpush3.bf16.msra.mxu1 %v12304_v59 }
0x107d   :  { %11719 = vmatprep.subr.bf16.mxu1 %v12577_v2 }
0x107e   :  { %9667 = vmatpush1.bf16.msra.mxu0 %v14300_v52  ;;  %v12308_v52 = vld [vmem:[#allocation13 + $0x38] ss:$12 sps:$4 sm:$0xff]  }
0x107f   :  { %9668 = vmatprep.subr.bf16.mxu0 %v14304_v1  ;;  %v12309_v1 = vld [vmem:[#allocation13 + $0x20] ss:$12 sps:$4 sm:$0xff]  }
0x1080   :  { %11720 = vmatpush3.bf16.msra.mxu1 %v12305_v42 }
0x1081   :  { %11721 = vmatprep.subr.bf16.mxu1 %v12577_v2 }
0x1082   :  { %9669 = vmatpush1.bf16.msra.mxu0 %v14307_v18  ;;  %v12310_v18 = vld [vmem:[#allocation13 + $0x8] ss:$12 sps:$4 sm:$0xff]  }
0x1083   :  { %9670 = vmatprep.subr.bf16.mxu0 %v14311_v21  ;;  %v7138_v21 = vadd.f32 %v14150_v36, %v14170_v28  ;;  %v12416_v28 = vld [vmem:[%s14500_s8] ss:$0 sm:$0xff]  ;;  %s12537_s8 = scalar_lea.vmem %s9770_s1, 1024 }
0x1084   :  { %11722 = vmatpush3.bf16.msra.mxu1 %v12306_v58  ;;  %p12538_p2 = scmp.ne.s32.totalorder %s9770_s1, %s12537_s8  ;;  %p12543_p4 = scmp.lt.s32.totalorder %s12537_s8, %s12537_s8 }
0x1085   :  { %11723 = vmatprep.subr.bf16.mxu1 %v12577_v2 }
0x1086   :  { %9671 = vmatpush1.bf16.msra.mxu0 %v14314_v37  ;;  %p12544_p5 = por %p12543_p4, %p12542_p3 }
0x1087   :  { %9672 = vmatprep.subr.bf16.mxu0 %v14318_v45 }
0x1088   :  { %11724 = vmatpush3.bf16.msra.mxu1 %v12307_v24  ;;  %p12545_p6 = pnand %p12544_p5, %p12538_p2 }
0x1089   :  { %11725 = vmatprep.subr.bf16.mxu1 %v12577_v2 }
0x108a   :  { %9673 = vmatpush1.bf16.msra.mxu0 %v14321_v40 }
0x108b   :  { %9674 = vmatprep.subr.bf16.mxu0 %v14325_v17 }
0x108c   :  { %11726 = vmatpush3.bf16.msra.mxu1 %v12308_v52 }
0x108d   :  { %11727 = vmatprep.subr.bf16.mxu1 %v12577_v2 }
0x108e   :  { %9675 = vmatpush1.bf16.msra.mxu0 %v14328_v30 }
0x108f   :  { %9676 = vmatprep.subr.bf16.mxu0 %v14332_v50 }
0x1090   :  { %11728 = vmatpush3.bf16.msra.mxu1 %v12309_v1 }
0x1091   :  { %11729 = vmatprep.subr.bf16.mxu1 %v12577_v2 }
0x1092   :  { %9677 = vmatpush1.bf16.msra.mxu0 %v14335_v46 }
0x1094   :  { %11730 = vmatpush3.bf16.msra.mxu1 %v12310_v18 }
0x1135   :  { %v9431_v37 = vpop.f32.mrf.mxu0  ;;  %v9472_v45 = vpop.f32.mrf.mxu1 }
0x1136   :  { %v9478_v40 = vadd.f32 %v9431_v37, %v7138_v21  ;;  %v9488_v11 = vadd.f32 %v14181_v62, %v9472_v45 }
0x1137   :  { %v9433_v17 = vpop.f32.mrf.mxu0  ;;  %v11713_v30 = vpop.f32.mrf.mxu1 }
0x1138   :  { %v9479_v50 = vmul.f32 0.5, %v9478_v40  ;;  %v9483_v2 = vadd.f32 %v9433_v17, %v7139_v3 }
0x1139   :  { %v9435_v46 = vpop.f32.mrf.mxu0  ;;  %v9475_v9 = vpop.f32.mrf.mxu1 }
0x113a   :  { %12395 = vtanh.f32 %v9479_v50  ;;  %v9484_v49 = vmul.f32 0.5, %v9483_v2 }
0x113b   :  { %v9436_v13 = vpop.f32.mrf.mxu0  ;;  %v11714_v5 = vpop.f32.mrf.mxu1 }
0x113c   :  { %12397 = vtanh.f32 %v9484_v49 }
0x1147   :  { %v12396_v48 = vpop.eup %12395 }
0x1148   :  { %v9481_v61 = vadd.f32 1.0, %v12396_v48 }
0x1149   :  { %v12398_v44 = vpop.eup %12397 }
0x114a   :  { %v9482_v36 = vmul.f32 0.5, %v9481_v61  ;;  %v9486_v33 = vadd.f32 1.0, %v12398_v44 }
0x114c   :  { %v9489_v22 = vmul.f32 %v9488_v11, %v9482_v36  ;;  %v9487_v12 = vmul.f32 0.5, %v9486_v33 }
0x114e   :  { %v9490_v51 = vadd.f32 %v9489_v22, %v7140_v34  ;;  %v9492_v54 = vsub.f32 1.0, %v9487_v12  ;;  %v9494_v63 = vmul.f32 %v9487_v12, %v14435_v8 }
0x1150   :  { %12399 = vtanh.f32 %v9490_v51 }
0x115d   :  { %v12400_v15 = vpop.eup %12399 }
0x115e   :  { %v9493_v55 = vmul.f32 %v12400_v15, %v9492_v54 }
0x1160   :  { %v9495_v6 = vadd.f32 %v9494_v63, %v9493_v55 }
0x1162   :  { %9496 = vst.msk [vmem:[#allocation15 + $0x30] sm:$0xff] %vm210_vm4, %v9495_v6  ;;  %v9501_v62 = vpack.c.bf16 %v9495_v6, %v9495_v6 }
0x1163   :  { %9497 = vst.msk [vmem:[#allocation15 + $0x8] sm:$0xff] %vm7906_vm12, %v9495_v6 }
0x1164   :  { %9695 = vmatmul.mubr.bf16.vlgmr.msra.gmra.mxu0 %v9501_v62  ;;  %11732 = vmatmul.mubr.bf16.vlgmr.msra.gmra.mxu1 %v9501_v62 }
0x1224   :  { %v9696_v16 = vpop.f32.mrf.mxu0  ;;  %v9737_v56 = vpop.f32.mrf.mxu1 }
0x1225   :  { %v9743_v47 = vadd.f32 %v9696_v16, %v7630_v20  ;;  %v9753_v14 = vadd.f32 %v12416_v28, %v9737_v56 }
0x1226   :  { %v9698_v10 = vpop.f32.mrf.mxu0  ;;  %v11733_v38 = vpop.f32.mrf.mxu1 }
0x1227   :  { %v9744_v53 = vmul.f32 0.5, %v9743_v47  ;;  %v9748_v39 = vadd.f32 %v9698_v10, %v7631_v26 }
0x1228   :  { %v9700_v23 = vpop.f32.mrf.mxu0  ;;  %v9740_v60 = vpop.f32.mrf.mxu1 }
0x1229   :  { %12401 = vtanh.f32 %v9744_v53  ;;  %v9749_v43 = vmul.f32 0.5, %v9748_v39 }
0x122a   :  { %v9701_v19 = vpop.f32.mrf.mxu0  ;;  %v11734_v4 = vpop.f32.mrf.mxu1 }
0x122b   :  { %12403 = vtanh.f32 %v9749_v43 }
0x1236   :  { %v12402_v25 = vpop.eup %12401 }
0x1237   :  { %v9746_v27 = vadd.f32 1.0, %v12402_v25 }
0x1238   :  { %v12404_v7 = vpop.eup %12403 }
0x1239   :  { %v9747_v32 = vmul.f32 0.5, %v9746_v27  ;;  %v9751_v57 = vadd.f32 1.0, %v12404_v7 }
0x123b   :  { %v9754_v8 = vmul.f32 %v9753_v14, %v9747_v32  ;;  %v9752_v0 = vmul.f32 0.5, %v9751_v57 }
0x123d   :  { %v9755_v41 = vadd.f32 %v9754_v8, %v7632_v29  ;;  %v9757_v59 = vsub.f32 1.0, %v9752_v0  ;;  %v9759_v24 = vmul.f32 %v9752_v0, %v9495_v6 }
0x123f   :  { %12405 = vtanh.f32 %v9755_v41 }
0x124c   :  { %v12406_v42 = vpop.eup %12405 }
0x124d   :  { %v9758_v58 = vmul.f32 %v12406_v42, %v9757_v59 }
0x124f   :  { %v9760_v52 = vadd.f32 %v9759_v24, %v9758_v58 }
0x1251   :  { %9761 = vst.msk [vmem:[#allocation15 + $0x38] sm:$0xff] %vm210_vm4, %v9760_v52 }
0x1252   :  { %9762 = vst.msk [vmem:[#allocation15] sm:$0xff] %vm7906_vm12, %v9760_v52 }
0x1253   :  { %12548 = shalt.err (!%p12545_p6)
}
0x1254   :  { %9772 = dma.vmem_to_hbm [thread:$0]  %s9770_s1, 1024, %s14501_s9, [#allocation6]  }
0x1255   :  { %12565 = dma.done.wait [#allocation6], 1024  }
0x1256   :  { %12566 = vsyncadd [#allocation6], 4294966272 }
0x1257   :  { %9776 = vsyncpa [#allocation5], 1 }
0x1258   :  { %9777 = vsyncpa [#allocation8], 1 }
0x1259   :  { %9778 = vsyncpa [#allocation11], 1 }
0x125a   :  { %9779 = vsyncpa [#allocation14], 1 }
0x125b   :  { %9780 = vsyncpa [#allocation6], 1 }

</bundles_post_ra>
